<compile_context>
chip_gen: v7x
topology: tpu7x:2x2x1
jax: 0.10.0
libtpu: 0.0.40
codegen_flags: <defaults>
</compile_context>

<pallas_src>
import math

import jax
import jax.numpy as jnp
from jax import lax
from jax.experimental import pallas as pl
from jax.experimental.pallas import tpu as pltpu


# ---------------------------------------------------------------------------
# Plain-JAX helpers shared by the Pallas path and the reference
# ---------------------------------------------------------------------------
def _gelu_jax(x):
    return jax.nn.gelu(x, approximate=False)


def _conv2d(x, w, b, stride=1, padding=0):
    out = lax.conv_general_dilated(
        x, w, window_strides=(stride, stride),
        padding=((padding, padding), (padding, padding)),
        dimension_numbers=("NCHW", "OIHW", "NCHW"))
    return out + b[None, :, None, None]


def _maxpool(x, k, s):
    return lax.reduce_window(x, -jnp.inf, lax.max,
                             window_dimensions=(1, 1, k, k),
                             window_strides=(1, 1, s, s),
                             padding="VALID")


def _bilinear_resize_nchw(x, out_h, out_w):
    """Matches torch F.interpolate(mode='bilinear', align_corners=False) upsampling."""
    _, _, H, W = x.shape

    def src(out_size, in_size):
        scale = in_size / out_size
        s = (jnp.arange(out_size, dtype=jnp.float32) + 0.5) * scale - 0.5
        s = jnp.clip(s, 0.0, in_size - 1)
        i0 = jnp.floor(s).astype(jnp.int32)
        i1 = jnp.minimum(i0 + 1, in_size - 1)
        return i0, i1, (s - i0.astype(jnp.float32)).astype(x.dtype)

    y0, y1, wy = src(out_h, H)
    x0, x1, wx = src(out_w, W)
    rows = (x[:, :, y0, :] * (1.0 - wy)[None, None, :, None]
            + x[:, :, y1, :] * wy[None, None, :, None])
    out = (rows[:, :, :, x0] * (1.0 - wx)[None, None, None, :]
           + rows[:, :, :, x1] * wx[None, None, None, :])
    return out


# ---------------------------------------------------------------------------
# Pallas kernels
# ---------------------------------------------------------------------------
def _gelu_tanh(x):
    # tanh-approx GELU: routes to the EUP slot instead of a long erf VALU
    # polynomial.  Deviates < 4e-4 from torch's exact GELU (within the bf16
    # I/O budget of this path).
    c = math.sqrt(2.0 / math.pi)
    return 0.5 * x * (1.0 + jnp.tanh(c * (x + 0.044715 * (x * x * x))))


def _rfdb_point_kernel(x_ref, r1_ref, r2_ref, c4_ref,
                       wd_ref, bd_ref, wf_ref, bf_ref,
                       out_ref, c1o_ref):
    """Distill Linears + GELU(c4) + (c5 fuse with ESA.conv1 folded in).

    Data refs are (1, C, TILE) with the spatial axis on lanes.  The fuse weight
    wf_ref has shape (4, C+f, dc): rows 0:C produce `out`, rows C:C+f produce
    ESA's conv1 output (folded at trace time).
    """
    f32 = jnp.float32
    C = out_ref.shape[1]

    x = x_ref[0].astype(f32)       # (C,  T)
    r1 = r1_ref[0].astype(f32)     # (C,  T)
    r2 = r2_ref[0].astype(f32)     # (C,  T)
    c4p = c4_ref[0].astype(f32)    # (dc, T)

    d1 = _gelu_tanh(jnp.dot(wd_ref[0], x, preferred_element_type=f32) + bd_ref[0])
    d2 = _gelu_tanh(jnp.dot(wd_ref[1], r1, preferred_element_type=f32) + bd_ref[1])
    d3 = _gelu_tanh(jnp.dot(wd_ref[2], r2, preferred_element_type=f32) + bd_ref[2])
    r4 = _gelu_tanh(c4p)

    # [out ; esa_conv1(out)] = Wfold @ [d1; d2; d3; r4] + bfold   (no concat)
    acc = (jnp.dot(wf_ref[0], d1, preferred_element_type=f32)
           + jnp.dot(wf_ref[1], d2, preferred_element_type=f32)
           + jnp.dot(wf_ref[2], d3, preferred_element_type=f32)
           + jnp.dot(wf_ref[3], r4, preferred_element_type=f32)
           + bf_ref[...])
    out_ref[0] = acc[:C].astype(out_ref.dtype)
    c1o_ref[0] = acc[C:].astype(c1o_ref.dtype)


def _esa_tail_kernel(out_ref, c1_ref, c3_ref, wf_ref, bf_ref, w4_ref, b4_ref,
                     res_ref):
    """ESA tail: conv_f, add, conv4, sigmoid, and the final mask multiply."""
    f32 = jnp.float32
    out = out_ref[0].astype(f32)    # (C, T)
    c1_ = c1_ref[0].astype(f32)     # (f, T)
    c3u = c3_ref[0].astype(f32)     # (f, T)

    cf = jnp.dot(wf_ref[...], c1_, preferred_element_type=f32) + bf_ref[...]
    c4 = jnp.dot(w4_ref[...], c3u + cf, preferred_element_type=f32) + b4_ref[...]
    # Numerically-stable sigmoid via the (EUP) tanh identity.
    m = 0.5 * (jnp.tanh(0.5 * c4) + 1.0)
    res_ref[0] = (out * m).astype(res_ref.dtype)


# ---------------------------------------------------------------------------
# pallas_call wrappers
# ---------------------------------------------------------------------------
def _pick_lane_tile(batch, hw):
    """Use the full spatial extent as the lane tile (fewest grid steps; the
    per-step VMEM footprint is ~1 MiB double-buffered, far under limits).

    When batch == 1, keep >= 2 'parallel' grid steps for the two v7x
    TensorCores by capping the tile at the largest 128-multiple divisor of
    HW that is <= HW/2.  If HW is not a multiple of 128 we fall back to a
    single full-extent (lane-masked, slower) block.
    """
    if hw % 128 != 0:
        return hw
    if batch >= 2:
        return hw
    best = hw
    for t in range(128, hw // 2 + 1, 128):
        if hw % t == 0:
            best = t
    return best


def _data_spec(ch, tn):
    return pl.BlockSpec((1, ch, tn), lambda b, t: (b, 0, t))


def _weight_spec(arr):
    nd = arr.ndim
    return pl.BlockSpec(arr.shape, lambda b, t, nd=nd: (0,) * nd)


_COMPILER_PARAMS = pltpu.CompilerParams(
    dimension_semantics=("parallel", "parallel"),
    vmem_limit_bytes=32 * 1024 * 1024)


def _call_point_kernel(x_f, r1_f, r2_f, c4p_f, wd, bd, wfold, bfold, tn):
    B, C, HW = x_f.shape
    dc = c4p_f.shape[1]
    f = wfold.shape[1] - C
    grid = (B, HW // tn)
    return pl.pallas_call(
        _rfdb_point_kernel,
        out_shape=(jax.ShapeDtypeStruct((B, C, HW), x_f.dtype),
                   jax.ShapeDtypeStruct((B, f, HW), x_f.dtype)),
        grid_spec=pltpu.PrefetchScalarGridSpec(
            num_scalar_prefetch=0,
            grid=grid,
            in_specs=[_data_spec(C, tn), _data_spec(C, tn), _data_spec(C, tn),
                      _data_spec(dc, tn),
                      _weight_spec(wd), _weight_spec(bd),
                      _weight_spec(wfold), _weight_spec(bfold)],
            out_specs=[_data_spec(C, tn), _data_spec(f, tn)]),
        compiler_params=_COMPILER_PARAMS,
    )(x_f, r1_f, r2_f, c4p_f, wd, bd, wfold, bfold)


def _call_esa_tail(out_f, c1_f, c3_f, wf, bf, w4, b4, tn, out_dtype):
    B, C, HW = out_f.shape
    f = c1_f.shape[1]
    grid = (B, HW // tn)
    return pl.pallas_call(
        _esa_tail_kernel,
        out_shape=jax.ShapeDtypeStruct((B, C, HW), out_dtype),
        grid_spec=pltpu.PrefetchScalarGridSpec(
            num_scalar_prefetch=0,
            grid=grid,
            in_specs=[_data_spec(C, tn), _data_spec(f, tn), _data_spec(f, tn),
                      _weight_spec(wf), _weight_spec(bf),
                      _weight_spec(w4), _weight_spec(b4)],
            out_specs=_data_spec(C, tn)),
        compiler_params=_COMPILER_PARAMS,
    )(out_f, c1_f, c3_f, wf, bf, w4, b4)


# ---------------------------------------------------------------------------
# Full RFDB forward (Pallas path)
# ---------------------------------------------------------------------------
def rfdb_pallas(x, params):
    """x: NCHW (B, C, H, W)  ->  NCHW (B, C, H, W)."""
    B, C, H, W = x.shape
    dc = C // 2
    f = C // 4
    HW = H * W
    tn = _pick_lane_tile(B, HW)
    io_dtype = jnp.bfloat16        # Pallas-boundary dtype (in-kernel math is f32)

    # Residual 3x3-conv chain (XLA; see TODO at top of file).
    r1 = _gelu_jax(_conv2d(x, params["c1_r_w"], params["c1_r_b"], padding=1) + x)
    r2 = _gelu_jax(_conv2d(r1, params["c2_r_w"], params["c2_r_b"], padding=1) + r1)
    r3 = _gelu_jax(_conv2d(r2, params["c3_r_w"], params["c3_r_b"], padding=1) + r2)
    c4_pre = _conv2d(r3, params["c4_w"], params["c4_b"], padding=1)  # GELU in-kernel

    # NCHW -> bf16 (B, C, H*W): free reshape, no transpose, half the HBM traffic.
    x_f = x.astype(io_dtype).reshape(B, C, HW)
    r1_f = r1.astype(io_dtype).reshape(B, C, HW)
    r2_f = r2.astype(io_dtype).reshape(B, C, HW)
    c4p_f = c4_pre.astype(io_dtype).reshape(B, dc, HW)

    # Pack the tiny weights once at trace time, folding ESA.conv1 into the c5
    # fuse: [out; c1_] = Wfold @ [d1; d2; d3; r4] + bfold.
    wd = jnp.stack([params["c1_d_w"], params["c2_d_w"], params["c3_d_w"]])
    bd = jnp.stack([params["c1_d_b"], params["c2_d_b"], params["c3_d_b"]])[..., None]
    wc1 = params["esa_conv1_w"]                       # (f, C)
    bc1 = params["esa_conv1_b"]                       # (f,)
    w5 = params["c5_w"]                               # (C, 4*dc)
    b5 = params["c5_b"]                               # (C,)
    w5_chunks = [w5[:, i * dc:(i + 1) * dc] for i in range(4)]
    wfold = jnp.stack([jnp.concatenate([wi, wc1 @ wi], axis=0)
                       for wi in w5_chunks])          # (4, C+f, dc)
    bfold = jnp.concatenate([b5, wc1 @ b5 + bc1])[:, None]   # (C+f, 1)

    out_f, c1_f = _call_point_kernel(x_f, r1_f, r2_f, c4p_f, wd, bd, wfold, bfold, tn)

    # ESA spatial chain (XLA: strided conv, max-pool, 3x3 convs, bilinear).
    c1_map = c1_f.astype(jnp.float32).reshape(B, f, H, W)
    c1s = _conv2d(c1_map, params["esa_conv2_w"], params["esa_conv2_b"],
                  stride=2, padding=0)
    v_max = _maxpool(c1s, 7, 3)
    v_range = _gelu_jax(_conv2d(v_max, params["esa_conv_max_w"],
                                params["esa_conv_max_b"], padding=0))
    c3 = _gelu_jax(_conv2d(v_range, params["esa_conv3_w"],
                           params["esa_conv3_b"], padding=0))
    c3 = _conv2d(c3, params["esa_conv3__w"], params["esa_conv3__b"], padding=0)
    c3_up = _bilinear_resize_nchw(c3, H, W)

    wf = params["esa_conv_f_w"]
    bf = params["esa_conv_f_b"][:, None]
    w4 = params["esa_conv4_w"]
    b4 = params["esa_conv4_b"][:, None]

    res_f = _call_esa_tail(out_f, c1_f, c3_up.astype(io_dtype).reshape(B, f, HW),
                           wf, bf, w4, b4, tn, x.dtype)
    return res_f.reshape(B, C, H, W)


# ---------------------------------------------------------------------------
# Pure-JAX reference (mirrors the PyTorch RFDB.forward incl. ESA)
# ---------------------------------------------------------------------------
def rfdb_ref(x, params):
    B, C, H, W = x.shape

    def lin(t_nhwc, w, b):  # nn.Linear on the trailing channel dim
        return jnp.einsum("bhwc,oc->bhwo", t_nhwc, w) + b

    nhwc = lambda t: jnp.transpose(t, (0, 2, 3, 1))
    nchw = lambda t: jnp.transpose(t, (0, 3, 1, 2))

    d1 = _gelu_jax(lin(nhwc(x), params["c1_d_w"], params["c1_d_b"]))
    r1 = _gelu_jax(_conv2d(x, params["c1_r_w"], params["c1_r_b"], padding=1) + x)
    d2 = _gelu_jax(lin(nhwc(r1), params["c2_d_w"], params["c2_d_b"]))
    r2 = _gelu_jax(_conv2d(r1, params["c2_r_w"], params["c2_r_b"], padding=1) + r1)
    d3 = _gelu_jax(lin(nhwc(r2), params["c3_d_w"], params["c3_d_b"]))
    r3 = _gelu_jax(_conv2d(r2, params["c3_r_w"], params["c3_r_b"], padding=1) + r2)
    r4 = _gelu_jax(_conv2d(r3, params["c4_w"], params["c4_b"], padding=1))
    cat = jnp.concatenate([d1, d2, d3, nhwc(r4)], axis=3)
    out = nchw(lin(cat, params["c5_w"], params["c5_b"]))

    # ESA
    c1_ = lin(nhwc(out), params["esa_conv1_w"], params["esa_conv1_b"])
    c1s = _conv2d(nchw(c1_), params["esa_conv2_w"], params["esa_conv2_b"],
                  stride=2, padding=0)
    v_max = _maxpool(c1s, 7, 3)
    v_range = _gelu_jax(_conv2d(v_max, params["esa_conv_max_w"],
                                params["esa_conv_max_b"], padding=0))
    c3 = _gelu_jax(_conv2d(v_range, params["esa_conv3_w"],
                           params["esa_conv3_b"], padding=0))
    c3 = _conv2d(c3, params["esa_conv3__w"], params["esa_conv3__b"], padding=0)
    c3u = _bilinear_resize_nchw(c3, H, W)
    cf = lin(c1_, params["esa_conv_f_w"], params["esa_conv_f_b"])
    c4 = lin(nhwc(c3u) + cf, params["esa_conv4_w"], params["esa_conv4_b"])
    m = jax.nn.sigmoid(nchw(c4))
    return out * m


# ---------------------------------------------------------------------------
# Parameter init (torch-style uniform, deterministic)
# ---------------------------------------------------------------------------
def init_params(key, in_channels, dtype=jnp.float32):
    C = in_channels
    dc = C // 2
    f = C // 4
    specs = [
        ("c1_d", "lin", C, dc), ("c2_d", "lin", C, dc), ("c3_d", "lin", C, dc),
        ("c1_r", "conv", C, C), ("c2_r", "conv", C, C), ("c3_r", "conv", C, C),
        ("c4", "conv", C, dc),
        ("c5", "lin", 4 * dc, C),
        ("esa_conv1", "lin", C, f), ("esa_conv_f", "lin", f, f),
        ("esa_conv4", "lin", f, C),
        ("esa_conv2", "conv", f, f), ("esa_conv_max", "conv", f, f),
        ("esa_conv3", "conv", f, f), ("esa_conv3_", "conv", f, f),
    ]
    params = {}
    keys = jax.random.split(key, 2 * len(specs))
    for i, (name, kind, cin, cout) in enumerate(specs):
        wk, bk = keys[2 * i], keys[2 * i + 1]
        if kind == "lin":
            wshape, fan_in = (cout, cin), cin
        else:
            wshape, fan_in = (cout, cin, 3, 3), cin * 9
        bound = 1.0 / math.sqrt(fan_in)
        params[name + "_w"] = jax.random.uniform(wk, wshape, dtype, -bound, bound)
        params[name + "_b"] = jax.random.uniform(bk, (cout,), dtype, -bound, bound)
    return params


if __name__ == "__main__":
    # Small but ESA-valid shapes: the unpadded ESA chain (stride-2 conv, 7x7/3
    # max-pool, three 3x3 convs) needs spatial >= ~51, so use 64x64.
    in_channels = 16
    B, H, W = 2, 64, 64

    key = jax.random.PRNGKey(0)
    kp, kx = jax.random.split(key)
    params = init_params(kp, in_channels)
    x = jax.random.normal(kx, (B, in_channels, H, W), jnp.float32)

    out = jax.jit(rfdb_pallas)(x, params)
    out = jax.block_until_ready(out)

    ref = rfdb_ref(x, params)
    assert out.shape == (B, in_channels, H, W)
    # bf16 activations cross the Pallas boundary, so compare with a bf16-level
    # tolerance against the f32 reference.
    assert jnp.allclose(out, ref, atol=3e-2, rtol=3e-2), "mismatch vs reference"

    print("KERNEL_OK")
</pallas_src>

<mosaic_0001>
module attributes {stable_mosaic.version = 11 : i64} {
  func.func @_rfdb_point_kernel(%arg0: i32, %arg1: i32, %arg2: memref<1x16x4096xbf16, #tpu.memory_space<vmem>>, %arg3: memref<1x16x4096xbf16, #tpu.memory_space<vmem>>, %arg4: memref<1x16x4096xbf16, #tpu.memory_space<vmem>>, %arg5: memref<1x8x4096xbf16, #tpu.memory_space<vmem>>, %arg6: memref<3x8x16xf32, #tpu.memory_space<vmem>>, %arg7: memref<3x8x1xf32, #tpu.memory_space<vmem>>, %arg8: memref<4x20x8xf32, #tpu.memory_space<vmem>>, %arg9: memref<20x1xf32, #tpu.memory_space<vmem>>, %arg10: memref<1x16x4096xbf16, #tpu.memory_space<vmem>>, %arg11: memref<1x4x4096xbf16, #tpu.memory_space<vmem>>) attributes {dimension_semantics = [#tpu.dimension_semantics<parallel>, #tpu.dimension_semantics<parallel>], iteration_bounds = array<i64: 2, 1>, scalar_prefetch = 0 : i64, scratch_operands = 0 : i64, tpu.core_type = #tpu.core_type<tc>, window_params = [{transform_indices = @transform_0, window_bounds = array<i64: 1, 16, 4096>}, {transform_indices = @transform_1, window_bounds = array<i64: 1, 16, 4096>}, {transform_indices = @transform_2, window_bounds = array<i64: 1, 16, 4096>}, {transform_indices = @transform_3, window_bounds = array<i64: 1, 8, 4096>}, {pipeline_mode = #tpu.pipeline_mode<synchronous>, transform_indices = @transform_4, window_bounds = array<i64: 3, 8, 16>}, {pipeline_mode = #tpu.pipeline_mode<synchronous>, transform_indices = @transform_5, window_bounds = array<i64: 3, 8, 1>}, {pipeline_mode = #tpu.pipeline_mode<synchronous>, transform_indices = @transform_6, window_bounds = array<i64: 4, 20, 8>}, {pipeline_mode = #tpu.pipeline_mode<synchronous>, transform_indices = @transform_7, window_bounds = array<i64: 20, 1>}, {transform_indices = @transform_8, window_bounds = array<i64: 1, 16, 4096>}, {transform_indices = @transform_9, window_bounds = array<i64: 1, 4, 4096>}]} {
    %c0 = arith.constant 0 : index
    %c0_0 = arith.constant 0 : index
    %c0_1 = arith.constant 0 : index
    %0 = vector.load %arg2[%c0, %c0_0, %c0_1] : memref<1x16x4096xbf16, #tpu.memory_space<vmem>>, vector<1x16x4096xbf16>
    %1 = vector.shape_cast %0 : vector<1x16x4096xbf16> to vector<16x4096xbf16>
    %2 = arith.extf %1 : vector<16x4096xbf16> to vector<16x4096xf32>
    %c0_2 = arith.constant 0 : index
    %c0_3 = arith.constant 0 : index
    %c0_4 = arith.constant 0 : index
    %3 = vector.load %arg3[%c0_2, %c0_3, %c0_4] : memref<1x16x4096xbf16, #tpu.memory_space<vmem>>, vector<1x16x4096xbf16>
    %4 = vector.shape_cast %3 : vector<1x16x4096xbf16> to vector<16x4096xbf16>
    %5 = arith.extf %4 : vector<16x4096xbf16> to vector<16x4096xf32>
    %c0_5 = arith.constant 0 : index
    %c0_6 = arith.constant 0 : index
    %c0_7 = arith.constant 0 : index
    %6 = vector.load %arg4[%c0_5, %c0_6, %c0_7] : memref<1x16x4096xbf16, #tpu.memory_space<vmem>>, vector<1x16x4096xbf16>
    %7 = vector.shape_cast %6 : vector<1x16x4096xbf16> to vector<16x4096xbf16>
    %8 = arith.extf %7 : vector<16x4096xbf16> to vector<16x4096xf32>
    %c0_8 = arith.constant 0 : index
    %c0_9 = arith.constant 0 : index
    %c0_10 = arith.constant 0 : index
    %9 = vector.load %arg5[%c0_8, %c0_9, %c0_10] : memref<1x8x4096xbf16, #tpu.memory_space<vmem>>, vector<1x8x4096xbf16>
    %10 = vector.shape_cast %9 : vector<1x8x4096xbf16> to vector<8x4096xbf16>
    %11 = arith.extf %10 : vector<8x4096xbf16> to vector<8x4096xf32>
    %c0_11 = arith.constant 0 : index
    %c0_12 = arith.constant 0 : index
    %c0_13 = arith.constant 0 : index
    %12 = vector.load %arg6[%c0_11, %c0_12, %c0_13] : memref<3x8x16xf32, #tpu.memory_space<vmem>>, vector<1x8x16xf32>
    %13 = vector.shape_cast %12 : vector<1x8x16xf32> to vector<8x16xf32>
    %cst = arith.constant dense<0.000000e+00> : vector<8x4096xf32>
    %14 = tpu.matmul %13, %2, %cst {dimension_numbers = #tpu.dot_dimension_numbers<[1], [0], [0], [1], [0, 0, 1, 1], [], []>} : vector<8x16xf32>, vector<16x4096xf32>, vector<8x4096xf32> -> vector<8x4096xf32>
    %c0_14 = arith.constant 0 : index
    %c0_15 = arith.constant 0 : index
    %c0_16 = arith.constant 0 : index
    %15 = vector.load %arg7[%c0_14, %c0_15, %c0_16] : memref<3x8x1xf32, #tpu.memory_space<vmem>>, vector<1x8x1xf32>
    %16 = vector.shape_cast %15 : vector<1x8x1xf32> to vector<8x1xf32>
    %17 = vector.broadcast %16 : vector<8x1xf32> to vector<8x4096xf32>
    %18 = arith.addf %14, %17 : vector<8x4096xf32>
    %cst_17 = arith.constant 5.000000e-01 : f32
    %19 = vector.broadcast %cst_17 : f32 to vector<8x4096xf32>
    %20 = arith.mulf %19, %18 : vector<8x4096xf32>
    %21 = arith.mulf %18, %18 : vector<8x4096xf32>
    %22 = arith.mulf %21, %18 : vector<8x4096xf32>
    %cst_18 = arith.constant 4.471500e-02 : f32
    %23 = vector.broadcast %cst_18 : f32 to vector<8x4096xf32>
    %24 = arith.mulf %23, %22 : vector<8x4096xf32>
    %25 = arith.addf %18, %24 : vector<8x4096xf32>
    %cst_19 = arith.constant 0.797884583 : f32
    %26 = vector.broadcast %cst_19 : f32 to vector<8x4096xf32>
    %27 = arith.mulf %26, %25 : vector<8x4096xf32>
    %28 = math.tanh %27 : vector<8x4096xf32>
    %cst_20 = arith.constant 1.000000e+00 : f32
    %29 = vector.broadcast %cst_20 : f32 to vector<8x4096xf32>
    %30 = arith.addf %29, %28 : vector<8x4096xf32>
    %31 = arith.mulf %20, %30 : vector<8x4096xf32>
    %c1 = arith.constant 1 : index
    %c0_21 = arith.constant 0 : index
    %c0_22 = arith.constant 0 : index
    %32 = vector.load %arg6[%c1, %c0_21, %c0_22] : memref<3x8x16xf32, #tpu.memory_space<vmem>>, vector<1x8x16xf32>
    %33 = vector.shape_cast %32 : vector<1x8x16xf32> to vector<8x16xf32>
    %cst_23 = arith.constant dense<0.000000e+00> : vector<8x4096xf32>
    %34 = tpu.matmul %33, %5, %cst_23 {dimension_numbers = #tpu.dot_dimension_numbers<[1], [0], [0], [1], [0, 0, 1, 1], [], []>} : vector<8x16xf32>, vector<16x4096xf32>, vector<8x4096xf32> -> vector<8x4096xf32>
    %c1_24 = arith.constant 1 : index
    %c0_25 = arith.constant 0 : index
    %c0_26 = arith.constant 0 : index
    %35 = vector.load %arg7[%c1_24, %c0_25, %c0_26] : memref<3x8x1xf32, #tpu.memory_space<vmem>>, vector<1x8x1xf32>
    %36 = vector.shape_cast %35 : vector<1x8x1xf32> to vector<8x1xf32>
    %37 = vector.broadcast %36 : vector<8x1xf32> to vector<8x4096xf32>
    %38 = arith.addf %34, %37 : vector<8x4096xf32>
    %cst_27 = arith.constant 5.000000e-01 : f32
    %39 = vector.broadcast %cst_27 : f32 to vector<8x4096xf32>
    %40 = arith.mulf %39, %38 : vector<8x4096xf32>
    %41 = arith.mulf %38, %38 : vector<8x4096xf32>
    %42 = arith.mulf %41, %38 : vector<8x4096xf32>
    %cst_28 = arith.constant 4.471500e-02 : f32
    %43 = vector.broadcast %cst_28 : f32 to vector<8x4096xf32>
    %44 = arith.mulf %43, %42 : vector<8x4096xf32>
    %45 = arith.addf %38, %44 : vector<8x4096xf32>
    %cst_29 = arith.constant 0.797884583 : f32
    %46 = vector.broadcast %cst_29 : f32 to vector<8x4096xf32>
    %47 = arith.mulf %46, %45 : vector<8x4096xf32>
    %48 = math.tanh %47 : vector<8x4096xf32>
    %cst_30 = arith.constant 1.000000e+00 : f32
    %49 = vector.broadcast %cst_30 : f32 to vector<8x4096xf32>
    %50 = arith.addf %49, %48 : vector<8x4096xf32>
    %51 = arith.mulf %40, %50 : vector<8x4096xf32>
    %c2 = arith.constant 2 : index
    %c0_31 = arith.constant 0 : index
    %c0_32 = arith.constant 0 : index
    %52 = vector.load %arg6[%c2, %c0_31, %c0_32] : memref<3x8x16xf32, #tpu.memory_space<vmem>>, vector<1x8x16xf32>
    %53 = vector.shape_cast %52 : vector<1x8x16xf32> to vector<8x16xf32>
    %cst_33 = arith.constant dense<0.000000e+00> : vector<8x4096xf32>
    %54 = tpu.matmul %53, %8, %cst_33 {dimension_numbers = #tpu.dot_dimension_numbers<[1], [0], [0], [1], [0, 0, 1, 1], [], []>} : vector<8x16xf32>, vector<16x4096xf32>, vector<8x4096xf32> -> vector<8x4096xf32>
    %c2_34 = arith.constant 2 : index
    %c0_35 = arith.constant 0 : index
    %c0_36 = arith.constant 0 : index
    %55 = vector.load %arg7[%c2_34, %c0_35, %c0_36] : memref<3x8x1xf32, #tpu.memory_space<vmem>>, vector<1x8x1xf32>
    %56 = vector.shape_cast %55 : vector<1x8x1xf32> to vector<8x1xf32>
    %57 = vector.broadcast %56 : vector<8x1xf32> to vector<8x4096xf32>
    %58 = arith.addf %54, %57 : vector<8x4096xf32>
    %cst_37 = arith.constant 5.000000e-01 : f32
    %59 = vector.broadcast %cst_37 : f32 to vector<8x4096xf32>
    %60 = arith.mulf %59, %58 : vector<8x4096xf32>
    %61 = arith.mulf %58, %58 : vector<8x4096xf32>
    %62 = arith.mulf %61, %58 : vector<8x4096xf32>
    %cst_38 = arith.constant 4.471500e-02 : f32
    %63 = vector.broadcast %cst_38 : f32 to vector<8x4096xf32>
    %64 = arith.mulf %63, %62 : vector<8x4096xf32>
    %65 = arith.addf %58, %64 : vector<8x4096xf32>
    %cst_39 = arith.constant 0.797884583 : f32
    %66 = vector.broadcast %cst_39 : f32 to vector<8x4096xf32>
    %67 = arith.mulf %66, %65 : vector<8x4096xf32>
    %68 = math.tanh %67 : vector<8x4096xf32>
    %cst_40 = arith.constant 1.000000e+00 : f32
    %69 = vector.broadcast %cst_40 : f32 to vector<8x4096xf32>
    %70 = arith.addf %69, %68 : vector<8x4096xf32>
    %71 = arith.mulf %60, %70 : vector<8x4096xf32>
    %cst_41 = arith.constant 5.000000e-01 : f32
    %72 = vector.broadcast %cst_41 : f32 to vector<8x4096xf32>
    %73 = arith.mulf %72, %11 : vector<8x4096xf32>
    %74 = arith.mulf %11, %11 : vector<8x4096xf32>
    %75 = arith.mulf %74, %11 : vector<8x4096xf32>
    %cst_42 = arith.constant 4.471500e-02 : f32
    %76 = vector.broadcast %cst_42 : f32 to vector<8x4096xf32>
    %77 = arith.mulf %76, %75 : vector<8x4096xf32>
    %78 = arith.addf %11, %77 : vector<8x4096xf32>
    %cst_43 = arith.constant 0.797884583 : f32
    %79 = vector.broadcast %cst_43 : f32 to vector<8x4096xf32>
    %80 = arith.mulf %79, %78 : vector<8x4096xf32>
    %81 = math.tanh %80 : vector<8x4096xf32>
    %cst_44 = arith.constant 1.000000e+00 : f32
    %82 = vector.broadcast %cst_44 : f32 to vector<8x4096xf32>
    %83 = arith.addf %82, %81 : vector<8x4096xf32>
    %84 = arith.mulf %73, %83 : vector<8x4096xf32>
    %c0_45 = arith.constant 0 : index
    %c0_46 = arith.constant 0 : index
    %c0_47 = arith.constant 0 : index
    %85 = vector.load %arg8[%c0_45, %c0_46, %c0_47] : memref<4x20x8xf32, #tpu.memory_space<vmem>>, vector<1x20x8xf32>
    %86 = vector.shape_cast %85 : vector<1x20x8xf32> to vector<20x8xf32>
    %cst_48 = arith.constant dense<0.000000e+00> : vector<20x4096xf32>
    %87 = tpu.matmul %86, %31, %cst_48 {dimension_numbers = #tpu.dot_dimension_numbers<[1], [0], [0], [1], [0, 0, 1, 1], [], []>} : vector<20x8xf32>, vector<8x4096xf32>, vector<20x4096xf32> -> vector<20x4096xf32>
    %c1_49 = arith.constant 1 : index
    %c0_50 = arith.constant 0 : index
    %c0_51 = arith.constant 0 : index
    %88 = vector.load %arg8[%c1_49, %c0_50, %c0_51] : memref<4x20x8xf32, #tpu.memory_space<vmem>>, vector<1x20x8xf32>
    %89 = vector.shape_cast %88 : vector<1x20x8xf32> to vector<20x8xf32>
    %cst_52 = arith.constant dense<0.000000e+00> : vector<20x4096xf32>
    %90 = tpu.matmul %89, %51, %cst_52 {dimension_numbers = #tpu.dot_dimension_numbers<[1], [0], [0], [1], [0, 0, 1, 1], [], []>} : vector<20x8xf32>, vector<8x4096xf32>, vector<20x4096xf32> -> vector<20x4096xf32>
    %91 = arith.addf %87, %90 : vector<20x4096xf32>
    %c2_53 = arith.constant 2 : index
    %c0_54 = arith.constant 0 : index
    %c0_55 = arith.constant 0 : index
    %92 = vector.load %arg8[%c2_53, %c0_54, %c0_55] : memref<4x20x8xf32, #tpu.memory_space<vmem>>, vector<1x20x8xf32>
    %93 = vector.shape_cast %92 : vector<1x20x8xf32> to vector<20x8xf32>
    %cst_56 = arith.constant dense<0.000000e+00> : vector<20x4096xf32>
    %94 = tpu.matmul %93, %71, %cst_56 {dimension_numbers = #tpu.dot_dimension_numbers<[1], [0], [0], [1], [0, 0, 1, 1], [], []>} : vector<20x8xf32>, vector<8x4096xf32>, vector<20x4096xf32> -> vector<20x4096xf32>
    %95 = arith.addf %91, %94 : vector<20x4096xf32>
    %c3 = arith.constant 3 : index
    %c0_57 = arith.constant 0 : index
    %c0_58 = arith.constant 0 : index
    %96 = vector.load %arg8[%c3, %c0_57, %c0_58] : memref<4x20x8xf32, #tpu.memory_space<vmem>>, vector<1x20x8xf32>
    %97 = vector.shape_cast %96 : vector<1x20x8xf32> to vector<20x8xf32>
    %cst_59 = arith.constant dense<0.000000e+00> : vector<20x4096xf32>
    %98 = tpu.matmul %97, %84, %cst_59 {dimension_numbers = #tpu.dot_dimension_numbers<[1], [0], [0], [1], [0, 0, 1, 1], [], []>} : vector<20x8xf32>, vector<8x4096xf32>, vector<20x4096xf32> -> vector<20x4096xf32>
    %99 = arith.addf %95, %98 : vector<20x4096xf32>
    %c0_60 = arith.constant 0 : index
    %c0_61 = arith.constant 0 : index
    %100 = vector.load %arg9[%c0_60, %c0_61] : memref<20x1xf32, #tpu.memory_space<vmem>>, vector<20x1xf32>
    %101 = vector.broadcast %100 : vector<20x1xf32> to vector<20x4096xf32>
    %102 = arith.addf %99, %101 : vector<20x4096xf32>
    %103 = vector.extract_strided_slice %102 {offsets = [0, 0], sizes = [16, 4096], strides = [1, 1]} : vector<20x4096xf32> to vector<16x4096xf32>
    %104 = arith.truncf %103 : vector<16x4096xf32> to vector<16x4096xbf16>
    %c0_62 = arith.constant 0 : index
    %c0_63 = arith.constant 0 : index
    %c0_64 = arith.constant 0 : index
    %105 = vector.load %arg10[%c0_62, %c0_63, %c0_64] : memref<1x16x4096xbf16, #tpu.memory_space<vmem>>, vector<1x16x4096xbf16>
    %106 = vector.shape_cast %105 : vector<1x16x4096xbf16> to vector<16x4096xbf16>
    %107 = vector.shape_cast %104 : vector<16x4096xbf16> to vector<1x16x4096xbf16>
    tpu.vector_store %arg10[%c0_62, %c0_63, %c0_64], %107 {strides = array<i32>} : memref<1x16x4096xbf16, #tpu.memory_space<vmem>>, vector<1x16x4096xbf16>,
    %108 = vector.extract_strided_slice %102 {offsets = [16, 0], sizes = [4, 4096], strides = [1, 1]} : vector<20x4096xf32> to vector<4x4096xf32>
    %109 = arith.truncf %108 : vector<4x4096xf32> to vector<4x4096xbf16>
    %c0_65 = arith.constant 0 : index
    %c0_66 = arith.constant 0 : index
    %c0_67 = arith.constant 0 : index
    %110 = vector.load %arg11[%c0_65, %c0_66, %c0_67] : memref<1x4x4096xbf16, #tpu.memory_space<vmem>>, vector<1x4x4096xbf16>
    %111 = vector.shape_cast %110 : vector<1x4x4096xbf16> to vector<4x4096xbf16>
    %112 = vector.shape_cast %109 : vector<4x4096xbf16> to vector<1x4x4096xbf16>
    tpu.vector_store %arg11[%c0_65, %c0_66, %c0_67], %112 {strides = array<i32>} : memref<1x4x4096xbf16, #tpu.memory_space<vmem>>, vector<1x4x4096xbf16>,
    return
  }
  func.func @transform_0(%arg0: i32, %arg1: i32) -> (i32, i32, i32) {
    %c0_i32 = arith.constant 0 : i32
    %c0_i32_0 = arith.constant 0 : i32
    return %arg0, %c0_i32, %arg1 : i32, i32, i32
  }
  func.func @transform_1(%arg0: i32, %arg1: i32) -> (i32, i32, i32) {
    %c0_i32 = arith.constant 0 : i32
    %c0_i32_0 = arith.constant 0 : i32
    return %arg0, %c0_i32, %arg1 : i32, i32, i32
  }
  func.func @transform_2(%arg0: i32, %arg1: i32) -> (i32, i32, i32) {
    %c0_i32 = arith.constant 0 : i32
    %c0_i32_0 = arith.constant 0 : i32
    return %arg0, %c0_i32, %arg1 : i32, i32, i32
  }
  func.func @transform_3(%arg0: i32, %arg1: i32) -> (i32, i32, i32) {
    %c0_i32 = arith.constant 0 : i32
    %c0_i32_0 = arith.constant 0 : i32
    return %arg0, %c0_i32, %arg1 : i32, i32, i32
  }
  func.func @transform_4(%arg0: i32, %arg1: i32) -> (i32, i32, i32) {
    %c0_i32 = arith.constant 0 : i32
    %c0_i32_0 = arith.constant 0 : i32
    %c0_i32_1 = arith.constant 0 : i32
    %c0_i32_2 = arith.constant 0 : i32
    return %c0_i32, %c0_i32_0, %c0_i32_1 : i32, i32, i32
  }
  func.func @transform_5(%arg0: i32, %arg1: i32) -> (i32, i32, i32) {
    %c0_i32 = arith.constant 0 : i32
    %c0_i32_0 = arith.constant 0 : i32
    %c0_i32_1 = arith.constant 0 : i32
    %c0_i32_2 = arith.constant 0 : i32
    return %c0_i32, %c0_i32_0, %c0_i32_1 : i32, i32, i32
  }
  func.func @transform_6(%arg0: i32, %arg1: i32) -> (i32, i32, i32) {
    %c0_i32 = arith.constant 0 : i32
    %c0_i32_0 = arith.constant 0 : i32
    %c0_i32_1 = arith.constant 0 : i32
    %c0_i32_2 = arith.constant 0 : i32
    return %c0_i32, %c0_i32_0, %c0_i32_1 : i32, i32, i32
  }
  func.func @transform_7(%arg0: i32, %arg1: i32) -> (i32, i32) {
    %c0_i32 = arith.constant 0 : i32
    %c0_i32_0 = arith.constant 0 : i32
    %c0_i32_1 = arith.constant 0 : i32
    return %c0_i32, %c0_i32_0 : i32, i32
  }
  func.func @transform_8(%arg0: i32, %arg1: i32) -> (i32, i32, i32) {
    %c0_i32 = arith.constant 0 : i32
    %c0_i32_0 = arith.constant 0 : i32
    return %arg0, %c0_i32, %arg1 : i32, i32, i32
  }
  func.func @transform_9(%arg0: i32, %arg1: i32) -> (i32, i32, i32) {
    %c0_i32 = arith.constant 0 : i32
    %c0_i32_0 = arith.constant 0 : i32
    return %arg0, %c0_i32, %arg1 : i32, i32, i32
  }
}

module attributes {stable_mosaic.version = 11 : i64} {
  func.func @_esa_tail_kernel(%arg0: i32, %arg1: i32, %arg2: memref<1x16x4096xbf16, #tpu.memory_space<vmem>>, %arg3: memref<1x4x4096xbf16, #tpu.memory_space<vmem>>, %arg4: memref<1x4x4096xbf16, #tpu.memory_space<vmem>>, %arg5: memref<4x4xf32, #tpu.memory_space<vmem>>, %arg6: memref<4x1xf32, #tpu.memory_space<vmem>>, %arg7: memref<16x4xf32, #tpu.memory_space<vmem>>, %arg8: memref<16x1xf32, #tpu.memory_space<vmem>>, %arg9: memref<1x16x4096xf32, #tpu.memory_space<vmem>>) attributes {dimension_semantics = [#tpu.dimension_semantics<parallel>, #tpu.dimension_semantics<parallel>], iteration_bounds = array<i64: 2, 1>, scalar_prefetch = 0 : i64, scratch_operands = 0 : i64, tpu.core_type = #tpu.core_type<tc>, window_params = [{transform_indices = @transform_0, window_bounds = array<i64: 1, 16, 4096>}, {transform_indices = @transform_1, window_bounds = array<i64: 1, 4, 4096>}, {transform_indices = @transform_2, window_bounds = array<i64: 1, 4, 4096>}, {pipeline_mode = #tpu.pipeline_mode<synchronous>, transform_indices = @transform_3, window_bounds = array<i64: 4, 4>}, {pipeline_mode = #tpu.pipeline_mode<synchronous>, transform_indices = @transform_4, window_bounds = array<i64: 4, 1>}, {pipeline_mode = #tpu.pipeline_mode<synchronous>, transform_indices = @transform_5, window_bounds = array<i64: 16, 4>}, {pipeline_mode = #tpu.pipeline_mode<synchronous>, transform_indices = @transform_6, window_bounds = array<i64: 16, 1>}, {transform_indices = @transform_7, window_bounds = array<i64: 1, 16, 4096>}]} {
    %c0 = arith.constant 0 : index
    %c0_0 = arith.constant 0 : index
    %c0_1 = arith.constant 0 : index
    %0 = vector.load %arg2[%c0, %c0_0, %c0_1] : memref<1x16x4096xbf16, #tpu.memory_space<vmem>>, vector<1x16x4096xbf16>
    %1 = vector.shape_cast %0 : vector<1x16x4096xbf16> to vector<16x4096xbf16>
    %2 = arith.extf %1 : vector<16x4096xbf16> to vector<16x4096xf32>
    %c0_2 = arith.constant 0 : index
    %c0_3 = arith.constant 0 : index
    %c0_4 = arith.constant 0 : index
    %3 = vector.load %arg3[%c0_2, %c0_3, %c0_4] : memref<1x4x4096xbf16, #tpu.memory_space<vmem>>, vector<1x4x4096xbf16>
    %4 = vector.shape_cast %3 : vector<1x4x4096xbf16> to vector<4x4096xbf16>
    %5 = arith.extf %4 : vector<4x4096xbf16> to vector<4x4096xf32>
    %c0_5 = arith.constant 0 : index
    %c0_6 = arith.constant 0 : index
    %c0_7 = arith.constant 0 : index
    %6 = vector.load %arg4[%c0_5, %c0_6, %c0_7] : memref<1x4x4096xbf16, #tpu.memory_space<vmem>>, vector<1x4x4096xbf16>
    %7 = vector.shape_cast %6 : vector<1x4x4096xbf16> to vector<4x4096xbf16>
    %8 = arith.extf %7 : vector<4x4096xbf16> to vector<4x4096xf32>
    %c0_8 = arith.constant 0 : index
    %c0_9 = arith.constant 0 : index
    %9 = vector.load %arg5[%c0_8, %c0_9] : memref<4x4xf32, #tpu.memory_space<vmem>>, vector<4x4xf32>
    %cst = arith.constant dense<0.000000e+00> : vector<4x4096xf32>
    %10 = tpu.matmul %9, %5, %cst {dimension_numbers = #tpu.dot_dimension_numbers<[1], [0], [0], [1], [0, 0, 1, 1], [], []>} : vector<4x4xf32>, vector<4x4096xf32>, vector<4x4096xf32> -> vector<4x4096xf32>
    %c0_10 = arith.constant 0 : index
    %c0_11 = arith.constant 0 : index
    %11 = vector.load %arg6[%c0_10, %c0_11] : memref<4x1xf32, #tpu.memory_space<vmem>>, vector<4x1xf32>
    %12 = vector.broadcast %11 : vector<4x1xf32> to vector<4x4096xf32>
    %13 = arith.addf %10, %12 : vector<4x4096xf32>
    %c0_12 = arith.constant 0 : index
    %c0_13 = arith.constant 0 : index
    %14 = vector.load %arg7[%c0_12, %c0_13] : memref<16x4xf32, #tpu.memory_space<vmem>>, vector<16x4xf32>
    %15 = arith.addf %8, %13 : vector<4x4096xf32>
    %cst_14 = arith.constant dense<0.000000e+00> : vector<16x4096xf32>
    %16 = tpu.matmul %14, %15, %cst_14 {dimension_numbers = #tpu.dot_dimension_numbers<[1], [0], [0], [1], [0, 0, 1, 1], [], []>} : vector<16x4xf32>, vector<4x4096xf32>, vector<16x4096xf32> -> vector<16x4096xf32>
    %c0_15 = arith.constant 0 : index
    %c0_16 = arith.constant 0 : index
    %17 = vector.load %arg8[%c0_15, %c0_16] : memref<16x1xf32, #tpu.memory_space<vmem>>, vector<16x1xf32>
    %18 = vector.broadcast %17 : vector<16x1xf32> to vector<16x4096xf32>
    %19 = arith.addf %16, %18 : vector<16x4096xf32>
    %cst_17 = arith.constant 5.000000e-01 : f32
    %20 = vector.broadcast %cst_17 : f32 to vector<16x4096xf32>
    %21 = arith.mulf %20, %19 : vector<16x4096xf32>
    %22 = math.tanh %21 : vector<16x4096xf32>
    %cst_18 = arith.constant 1.000000e+00 : f32
    %23 = vector.broadcast %cst_18 : f32 to vector<16x4096xf32>
    %24 = arith.addf %22, %23 : vector<16x4096xf32>
    %cst_19 = arith.constant 5.000000e-01 : f32
    %25 = vector.broadcast %cst_19 : f32 to vector<16x4096xf32>
    %26 = arith.mulf %25, %24 : vector<16x4096xf32>
    %27 = arith.mulf %2, %26 : vector<16x4096xf32>
    %c0_20 = arith.constant 0 : index
    %c0_21 = arith.constant 0 : index
    %c0_22 = arith.constant 0 : index
    %28 = vector.load %arg9[%c0_20, %c0_21, %c0_22] : memref<1x16x4096xf32, #tpu.memory_space<vmem>>, vector<1x16x4096xf32>
    %29 = vector.shape_cast %28 : vector<1x16x4096xf32> to vector<16x4096xf32>
    %30 = vector.shape_cast %27 : vector<16x4096xf32> to vector<1x16x4096xf32>
    tpu.vector_store %arg9[%c0_20, %c0_21, %c0_22], %30 {strides = array<i32>} : memref<1x16x4096xf32, #tpu.memory_space<vmem>>, vector<1x16x4096xf32>,
    return
  }
  func.func @transform_0(%arg0: i32, %arg1: i32) -> (i32, i32, i32) {
    %c0_i32 = arith.constant 0 : i32
    %c0_i32_0 = arith.constant 0 : i32
    return %arg0, %c0_i32, %arg1 : i32, i32, i32
  }
  func.func @transform_1(%arg0: i32, %arg1: i32) -> (i32, i32, i32) {
    %c0_i32 = arith.constant 0 : i32
    %c0_i32_0 = arith.constant 0 : i32
    return %arg0, %c0_i32, %arg1 : i32, i32, i32
  }
  func.func @transform_2(%arg0: i32, %arg1: i32) -> (i32, i32, i32) {
    %c0_i32 = arith.constant 0 : i32
    %c0_i32_0 = arith.constant 0 : i32
    return %arg0, %c0_i32, %arg1 : i32, i32, i32
  }
  func.func @transform_3(%arg0: i32, %arg1: i32) -> (i32, i32) {
    %c0_i32 = arith.constant 0 : i32
    %c0_i32_0 = arith.constant 0 : i32
    %c0_i32_1 = arith.constant 0 : i32
    return %c0_i32, %c0_i32_0 : i32, i32
  }
  func.func @transform_4(%arg0: i32, %arg1: i32) -> (i32, i32) {
    %c0_i32 = arith.constant 0 : i32
    %c0_i32_0 = arith.constant 0 : i32
    %c0_i32_1 = arith.constant 0 : i32
    return %c0_i32, %c0_i32_0 : i32, i32
  }
  func.func @transform_5(%arg0: i32, %arg1: i32) -> (i32, i32) {
    %c0_i32 = arith.constant 0 : i32
    %c0_i32_0 = arith.constant 0 : i32
    %c0_i32_1 = arith.constant 0 : i32
    return %c0_i32, %c0_i32_0 : i32, i32
  }
  func.func @transform_6(%arg0: i32, %arg1: i32) -> (i32, i32) {
    %c0_i32 = arith.constant 0 : i32
    %c0_i32_0 = arith.constant 0 : i32
    %c0_i32_1 = arith.constant 0 : i32
    return %c0_i32, %c0_i32_0 : i32, i32
  }
  func.func @transform_7(%arg0: i32, %arg1: i32) -> (i32, i32, i32) {
    %c0_i32 = arith.constant 0 : i32
    %c0_i32_0 = arith.constant 0 : i32
    return %arg0, %c0_i32, %arg1 : i32, i32, i32
  }
}

</mosaic_0001>

<bundles_post_ra>
// kernel: rfdb_pallas.2
= control target key start
LH: loop header
LB: loop body
LE: loop exit
PB: predicated region body
PF: predicated region fallthrough
CT: control target
= control target key end

     0   :  { %s13032_s30 = smov 0   ;;  %s13034_s10 = smov 0   ;;  %s15511_s0 = inlined_call_operand.vmem [shape: bf16[2,16,4096], index: 0, kind: input, shape index: {}]   ;;  %s15512_s1 = inlined_call_operand.vmem [shape: bf16[2,16,4096], index: 1, kind: input, shape index: {}]   ;;  %s15513_s2 = inlined_call_operand.vmem [shape: bf16[2,16,4096], index: 2, kind: input, shape index: {}]   ;;  %s15514_s3 = inlined_call_operand.vmem [shape: bf16[2,8,4096], index: 3, kind: input, shape index: {}]   ;;  %s15515_s4 = inlined_call_operand.vmem [shape: f32[3,8,16], index: 4, kind: input, shape index: {}]   ;;  %s15516_s5 = inlined_call_operand.vmem [shape: f32[3,8,1], index: 5, kind: input, shape index: {}]   ;;  %s15517_s6 = inlined_call_operand.vmem [shape: f32[4,20,8], index: 6, kind: input, shape index: {}]   ;;  %s15518_s7 = inlined_call_operand.vmem [shape: f32[20,1], index: 7, kind: input, shape index: {}]   ;;  %s15519_s8 = inlined_call_operand.vmem [shape: bf16[2,16,4096], index: 8, kind: output, shape index: {0}]   ;;  %s15520_s9 = inlined_call_operand.vmem [shape: bf16[2,4,4096], index: 9, kind: output, shape index: {1}]  }
   0x1   :  { %s13036_s11 = smov 0  }
   0x2 LB: > { %s32_s12 = sadd.s32 1, %s12973_s10  ;;  %p11740_p0 = scmp.ge.s32.totalorder %s12977_s11, 1  ;;  %s12977_s11 = sphi %s13036_s11, %s20_s11   ;;  %s12973_s10 = sphi %s13034_s10, %s15621_s10   ;;  %s12969_s30 = sphi %s13032_s30, %s15620_s30  }
   0x3   : > { %p34_p1 = scmp.ge.s32.totalorder %s32_s12, 2  ;;  %p364_p2 = scmp.lt.s32.totalorder %s12977_s11, 3 }
   0x5   : > { %s15623_s12 = smov (%p34_p1, %s32_s12), 0  ;;  %p365_p3 = pnand %p11740_p0, %p364_p2 }
   0x7   : > { %368 = sbr.rel (%p365_p3) target bundleno = 917 (0x395), region = 52 }
   0xe   : > { %p445_p4 = scmp.lt.s32.totalorder %s12969_s30, 1  ;;  %v15521_v0 = vmov 0.0   ;;  %v11770_v1 = vld [vmem:[%s15516_s5 + $0x8] sm:$0xff]  ;;  %v12980_v2 = vmov 0   ;;  %v841_v3 = vld [vmem:[%s15516_s5] sm:$0xff]  ;;  %vm847_vm0 = vcmask 130048  }
   0xf   : > { %915 = vmatprep.mubr.f32.mxu0 %v15521_v0  ;;  %986 = vmatprep.mubr.f32.mxu1 %v15521_v0  ;;  %v13080_v17 = vld [vmem:[%s15515_s4] sm:$0xff]  ;;  %vm5442_vm1 = vcmask 64512  }
  0x10   : > { %s15625_s30 = smov (!%p445_p4, %s12969_s30), 1  ;;  %12697 = vset.pattern.permute.xlu0 %v12980_v2  ;;  %12698 = vset.pattern.permute.xlu1 %v12980_v2  ;;  %v10991_v24 = vld [vmem:[%s15518_s7] sm:$0xff] }
  0x11   : > { %2281 = vperm.xlu0 %12697, %v11770_v1   ;;  %s13058_s15 = sshll.u32 %s15625_s30, 8 }
  0x12   : > { %s13067_s20 = scalar_lea.vmem %s15511_s0, %s13058_s15  ;;  %s13141_s27 = scalar_lea.vmem %s15512_s1, %s13058_s15 }
  0x13   : > { %v504_v4 = vld [vmem:[%s13067_s20] sm:$0xff]  ;;  %v505_v6 = vld [vmem:[%s13067_s20 + $0x8] sm:$0xff]  ;;  %v506_v10 = vld [vmem:[%s13067_s20 + $0x10] sm:$0xff]  ;;  %s13232_s16 = scalar_lea.vmem %s15513_s2, %s13058_s15  ;;  %s15341_s23 = scalar_lea.vmem %s15519_s8, %s13058_s15 }
  0x14   : > { %v520_v5 = vld [vmem:[%s13067_s20 + $0x80] sm:$0xff]  ;;  %v521_v8 = vld [vmem:[%s13067_s20 + $0x88] sm:$0xff]  ;;  %v522_v11 = vld [vmem:[%s13067_s20 + $0x90] sm:$0xff]  ;;  %s12061_s15 = sshll.u32 %s15625_s30, 6 }
  0x15   : > { %v12574_v7 = vcombine.high %v504_v4, %v520_v5  ;;  %v12575_v9 = vcombine.low %v504_v4, %v520_v5  ;;  %844 = vperm.xlu0 %12697, %v841_v3   ;;  %v12576_v12 = vcombine.high %v505_v6, %v521_v8  ;;  %v12577_v13 = vcombine.low %v505_v6, %v521_v8  ;;  %v507_v15 = vld [vmem:[%s13067_s20 + $0x18] sm:$0xff]  ;;  %v508_v19 = vld [vmem:[%s13067_s20 + $0x20] sm:$0xff]  ;;  %v509_v22 = vld [vmem:[%s13067_s20 + $0x28] sm:$0xff]  ;;  %s15370_s25 = scalar_lea.vmem %s15520_s9, %s12061_s15 }
  0x16   : > { %v12578_v14 = vcombine.high %v506_v10, %v522_v11  ;;  %v523_v16 = vld [vmem:[%s13067_s20 + $0x98] sm:$0xff]  ;;  %v524_v20 = vld [vmem:[%s13067_s20 + $0xa0] sm:$0xff]  ;;  %v12579_v21 = vcombine.low %v506_v10, %v522_v11  ;;  %v525_v23 = vld [vmem:[%s13067_s20 + $0xa8] sm:$0xff] }
  0x17   : > { %12095 = vmatprep.subr.bf16.mxu0 %v12574_v7  ;;  %v12580_v18 = vcombine.high %v507_v15, %v523_v16  ;;  %12099 = vmatprep.subr.bf16.mxu1 %v12576_v12  ;;  %v12581_v25 = vcombine.low %v507_v15, %v523_v16  ;;  %v12582_v26 = vcombine.high %v508_v19, %v524_v20  ;;  %v510_v28 = vld [vmem:[%s13067_s20 + $0x30] sm:$0xff]  ;;  %v511_v31 = vld [vmem:[%s13067_s20 + $0x38] sm:$0xff]  ;;  %v512_v36 = vld [vmem:[%s13067_s20 + $0x40] sm:$0xff] }
  0x18   : > { %12097 = vmatpush1.bf16.msra.mxu0 %v12575_v9  ;;  %12101 = vmatpush1.bf16.msra.mxu1 %v12577_v13  ;;  %v12584_v27 = vcombine.high %v509_v22, %v525_v23  ;;  %v526_v29 = vld [vmem:[%s13067_s20 + $0xb0] sm:$0xff]  ;;  %v12583_v30 = vcombine.low %v508_v19, %v524_v20  ;;  %v527_v32 = vld [vmem:[%s13067_s20 + $0xb8] sm:$0xff]  ;;  %v12585_v33 = vcombine.low %v509_v22, %v525_v23  ;;  %v528_v37 = vld [vmem:[%s13067_s20 + $0xc0] sm:$0xff] }
  0x19   : > { %12103 = vmatprep.subr.bf16.mxu0 %v12578_v14  ;;  %12107 = vmatprep.subr.bf16.mxu1 %v12580_v18  ;;  %v12586_v34 = vcombine.high %v510_v28, %v526_v29  ;;  %v12588_v35 = vcombine.high %v511_v31, %v527_v32  ;;  %v12587_v38 = vcombine.low %v510_v28, %v526_v29  ;;  %v513_v39 = vld [vmem:[%s13067_s20 + $0x48] sm:$0xff]  ;;  %v514_v44 = vld [vmem:[%s13067_s20 + $0x50] sm:$0xff]  ;;  %v515_v47 = vld [vmem:[%s13067_s20 + $0x58] sm:$0xff] }
  0x1a   : > { %10996 = vperm.xlu0 %12697, %v10991_v24   ;;  %v529_v40 = vld [vmem:[%s13067_s20 + $0xc8] sm:$0xff]  ;;  %v12589_v41 = vcombine.low %v511_v31, %v527_v32  ;;  %v12590_v42 = vcombine.high %v512_v36, %v528_v37  ;;  %v530_v45 = vld [vmem:[%s13067_s20 + $0xd0] sm:$0xff]  ;;  %v12591_v46 = vcombine.low %v512_v36, %v528_v37  ;;  %v531_v48 = vld [vmem:[%s13067_s20 + $0xd8] sm:$0xff] }
  0x1b   : > { %11753 = vmatmul.mubr.msk.f32.vlgmr.msra.gmra.mrb[0].mxu0 %vm847_vm0, %v13080_v17  ;;  %11754 = vmatmul.mubr.msk.f32.vlgmr.msra.gmra.mrb[0].mxu1 %vm847_vm0, %v13080_v17  ;;  %v12592_v43 = vcombine.high %v513_v39, %v529_v40  ;;  %v12593_v49 = vcombine.low %v513_v39, %v529_v40  ;;  %v12594_v50 = vcombine.high %v514_v44, %v530_v45  ;;  %v516_v52 = vld [vmem:[%s13067_s20 + $0x60] sm:$0xff]  ;;  %v517_v55 = vld [vmem:[%s13067_s20 + $0x68] sm:$0xff]  ;;  %v518_v60 = vld [vmem:[%s13067_s20 + $0x70] sm:$0xff] }
  0x1c   : > { %12105 = vmatpush1.bf16.msra.mxu0 %v12579_v21  ;;  %12109 = vmatpush1.bf16.msra.mxu1 %v12581_v25  ;;  %v12596_v51 = vcombine.high %v515_v47, %v531_v48  ;;  %v532_v53 = vld [vmem:[%s13067_s20 + $0xe0] sm:$0xff]  ;;  %v12595_v54 = vcombine.low %v514_v44, %v530_v45  ;;  %v533_v56 = vld [vmem:[%s13067_s20 + $0xe8] sm:$0xff]  ;;  %v12597_v57 = vcombine.low %v515_v47, %v531_v48  ;;  %v534_v61 = vld [vmem:[%s13067_s20 + $0xf0] sm:$0xff] }
  0x1d   : > { %1057 = vmatprep.mubr.f32.mxu0 %v15521_v0  ;;  %1128 = vmatprep.mubr.f32.mxu1 %v15521_v0  ;;  %v12598_v58 = vcombine.high %v516_v52, %v532_v53  ;;  %v12600_v59 = vcombine.high %v517_v55, %v533_v56  ;;  %v12599_v62 = vcombine.low %v516_v52, %v532_v53  ;;  %v519_v63 = vld [vmem:[%s13067_s20 + $0x78] sm:$0xff]  ;;  %v600_v5 = vld [vmem:[%s13141_s27] sm:$0xff]  ;;  %v601_v8 = vld [vmem:[%s13141_s27 + $0x8] sm:$0xff] }
  0x1e   : > { %12111 = vmatprep.subr.bf16.mxu0 %v12582_v26  ;;  %12115 = vmatprep.subr.bf16.mxu1 %v12584_v27  ;;  %v535_v1 = vld [vmem:[%s13067_s20 + $0xf8] sm:$0xff]  ;;  %v12601_v2 = vcombine.low %v517_v55, %v533_v56  ;;  %v12602_v3 = vcombine.high %v518_v60, %v534_v61  ;;  %v616_v6 = vld [vmem:[%s13141_s27 + $0x80] sm:$0xff]  ;;  %v12603_v7 = vcombine.low %v518_v60, %v534_v61  ;;  %v617_v9 = vld [vmem:[%s13141_s27 + $0x88] sm:$0xff] }
  0x1f   : > { %11755 = vmatmul.mubr.msk.f32.vlgmr.msra.gmra.mrb[2].mxu0 %vm847_vm0, %v13080_v17  ;;  %11756 = vmatmul.mubr.msk.f32.vlgmr.msra.gmra.mrb[2].mxu1 %vm847_vm0, %v13080_v17  ;;  %v12604_v4 = vcombine.high %v519_v63, %v535_v1  ;;  %v12605_v10 = vcombine.low %v519_v63, %v535_v1  ;;  %v12606_v11 = vcombine.high %v600_v5, %v616_v6  ;;  %v602_v13 = vld [vmem:[%s13141_s27 + $0x10] sm:$0xff]  ;;  %v603_v16 = vld [vmem:[%s13141_s27 + $0x18] sm:$0xff]  ;;  %v604_v22 = vld [vmem:[%s13141_s27 + $0x20] sm:$0xff] }
  0x20   : > { %12113 = vmatpush1.bf16.msra.mxu0 %v12583_v30  ;;  %12117 = vmatpush1.bf16.msra.mxu1 %v12585_v33  ;;  %v12608_v12 = vcombine.high %v601_v8, %v617_v9  ;;  %v618_v14 = vld [vmem:[%s13141_s27 + $0x90] sm:$0xff]  ;;  %v12607_v15 = vcombine.low %v600_v5, %v616_v6  ;;  %v619_v18 = vld [vmem:[%s13141_s27 + $0x98] sm:$0xff]  ;;  %v12609_v19 = vcombine.low %v601_v8, %v617_v9  ;;  %v620_v23 = vld [vmem:[%s13141_s27 + $0xa0] sm:$0xff] }
  0x21   : > { %1199 = vmatprep.mubr.f32.mxu0 %v15521_v0  ;;  %1270 = vmatprep.mubr.f32.mxu1 %v15521_v0  ;;  %v12610_v20 = vcombine.high %v602_v13, %v618_v14  ;;  %v12612_v21 = vcombine.high %v603_v16, %v619_v18  ;;  %v13174_v24 = vld [vmem:[%s15515_s4 + $0x8] sm:$0xff]  ;;  %v12611_v25 = vcombine.low %v602_v13, %v618_v14  ;;  %v606_v30 = vld [vmem:[%s13141_s27 + $0x30] sm:$0xff]  ;;  %v607_v33 = vld [vmem:[%s13141_s27 + $0x38] sm:$0xff] }
  0x22   : > { %12119 = vmatprep.subr.bf16.mxu0 %v12586_v34  ;;  %12123 = vmatprep.subr.bf16.mxu1 %v12588_v35  ;;  %v605_v26 = vld [vmem:[%s13141_s27 + $0x28] sm:$0xff]  ;;  %v12613_v28 = vcombine.low %v603_v16, %v619_v18  ;;  %v622_v31 = vld [vmem:[%s13141_s27 + $0xb0] sm:$0xff]  ;;  %v12615_v32 = vcombine.low %v604_v22, %v620_v23  ;;  %v623_v34 = vld [vmem:[%s13141_s27 + $0xb8] sm:$0xff] }
  0x23   : > { %11757 = vmatmul.mubr.msk.f32.vlgmr.msra.gmra.mrb[4].mxu0 %vm847_vm0, %v13080_v17  ;;  %11758 = vmatmul.mubr.msk.f32.vlgmr.msra.gmra.mrb[4].mxu1 %vm847_vm0, %v13080_v17  ;;  %v621_v27 = vld [vmem:[%s13141_s27 + $0xa8] sm:$0xff]  ;;  %v12618_v36 = vcombine.high %v606_v30, %v622_v31  ;;  %v12620_v37 = vcombine.high %v607_v33, %v623_v34  ;;  %v624_v39 = vld [vmem:[%s13141_s27 + $0xc0] sm:$0xff]  ;;  %v12619_v40 = vcombine.low %v606_v30, %v622_v31  ;;  %v626_v47 = vld [vmem:[%s13141_s27 + $0xd0] sm:$0xff] }
  0x24   : > { %12121 = vmatpush1.bf16.msra.mxu0 %v12587_v38  ;;  %12125 = vmatpush1.bf16.msra.mxu1 %v12589_v41  ;;  %v12616_v29 = vcombine.high %v605_v26, %v621_v27  ;;  %v12617_v35 = vcombine.low %v605_v26, %v621_v27  ;;  %v608_v38 = vld [vmem:[%s13141_s27 + $0x40] sm:$0xff]  ;;  %v609_v41 = vld [vmem:[%s13141_s27 + $0x48] sm:$0xff]  ;;  %v630_v63 = vld [vmem:[%s13141_s27 + $0xf0] sm:$0xff] }
  0x25   : > { %1341 = vmatprep.mubr.f32.mxu0 %v15521_v0  ;;  %1412 = vmatprep.mubr.f32.mxu1 %v15521_v0  ;;  %v12622_v44 = vcombine.high %v608_v38, %v624_v39  ;;  %v12623_v48 = vcombine.low %v608_v38, %v624_v39  ;;  %v628_v55 = vld [vmem:[%s13141_s27 + $0xe0] sm:$0xff]  ;;  %v714_v16 = vld [vmem:[%s13232_s16 + $0x90] sm:$0xff] }
  0x26   : > { %12127 = vmatprep.subr.bf16.mxu0 %v12590_v42  ;;  %12131 = vmatprep.subr.bf16.mxu1 %v12592_v43  ;;  %v625_v42 = vld [vmem:[%s13141_s27 + $0xc8] sm:$0xff]  ;;  %v12621_v43 = vcombine.low %v607_v33, %v623_v34  ;;  %v712_v8 = vld [vmem:[%s13232_s16 + $0x80] sm:$0xff]  ;;  %v13265_v27 = vld [vmem:[%s15515_s4 + $0x10] sm:$0xff] }
  0x27   : > { %11759 = vmatmul.mubr.msk.f32.vlgmr.msra.gmra.mrb[6].mxu0 %vm847_vm0, %v13080_v17  ;;  %11760 = vmatmul.mubr.msk.f32.vlgmr.msra.gmra.mrb[6].mxu1 %vm847_vm0, %v13080_v17  ;;  %v12624_v45 = vcombine.high %v609_v41, %v625_v42  ;;  %v716_v26 = vld [vmem:[%s13232_s16 + $0xa0] sm:$0xff]  ;;  %v718_v33 = vld [vmem:[%s13232_s16 + $0xb0] sm:$0xff] }
  0x28   : > { %12129 = vmatpush1.bf16.msra.mxu0 %v12591_v46  ;;  %12133 = vmatpush1.bf16.msra.mxu1 %v12593_v49  ;;  %v610_v46 = vld [vmem:[%s13141_s27 + $0x50] sm:$0xff]  ;;  %v611_v49 = vld [vmem:[%s13141_s27 + $0x58] sm:$0xff] }
  0x29   : > { %1483 = vmatprep.mubr.f32.mxu0 %v15521_v0  ;;  %1554 = vmatprep.mubr.f32.mxu1 %v15521_v0  ;;  %v12626_v52 = vcombine.high %v610_v46, %v626_v47  ;;  %v12627_v56 = vcombine.low %v610_v46, %v626_v47 }
  0x2a   : > { %12135 = vmatprep.subr.bf16.mxu0 %v12594_v50  ;;  %12139 = vmatprep.subr.bf16.mxu1 %v12596_v51  ;;  %v627_v50 = vld [vmem:[%s13141_s27 + $0xd8] sm:$0xff]  ;;  %v12625_v51 = vcombine.low %v609_v41, %v625_v42  ;;  %v720_v41 = vld [vmem:[%s13232_s16 + $0xc0] sm:$0xff] }
  0x2b   : > { %11761 = vmatmul.mubr.msk.f32.vlgmr.msra.gmra.mrb[8].mxu0 %vm847_vm0, %v13080_v17  ;;  %11762 = vmatmul.mubr.msk.f32.vlgmr.msra.gmra.mrb[8].mxu1 %vm847_vm0, %v13080_v17  ;;  %v12628_v53 = vcombine.high %v611_v49, %v627_v50 }
  0x2c   : > { %12137 = vmatpush1.bf16.msra.mxu0 %v12595_v54  ;;  %12141 = vmatpush1.bf16.msra.mxu1 %v12597_v57  ;;  %v612_v54 = vld [vmem:[%s13141_s27 + $0x60] sm:$0xff]  ;;  %v613_v57 = vld [vmem:[%s13141_s27 + $0x68] sm:$0xff] }
  0x2d   : > { %1625 = vmatprep.mubr.f32.mxu0 %v15521_v0  ;;  %1696 = vmatprep.mubr.f32.mxu1 %v15521_v0  ;;  %v12630_v60 = vcombine.high %v612_v54, %v628_v55  ;;  %v12631_v1 = vcombine.low %v612_v54, %v628_v55 }
  0x2e   : > { %12143 = vmatprep.subr.bf16.mxu0 %v12598_v58  ;;  %12147 = vmatprep.subr.bf16.mxu1 %v12600_v59  ;;  %v629_v58 = vld [vmem:[%s13141_s27 + $0xe8] sm:$0xff]  ;;  %v12629_v59 = vcombine.low %v611_v49, %v627_v50  ;;  %v722_v49 = vld [vmem:[%s13232_s16 + $0xd0] sm:$0xff] }
  0x2f   : > { %11763 = vmatmul.mubr.msk.f32.vlgmr.msra.gmra.mrb[10].mxu0 %vm847_vm0, %v13080_v17  ;;  %11764 = vmatmul.mubr.msk.f32.vlgmr.msra.gmra.mrb[10].mxu1 %vm847_vm0, %v13080_v17  ;;  %v12632_v61 = vcombine.high %v613_v57, %v629_v58 }
  0x30   : > { %12145 = vmatpush1.bf16.msra.mxu0 %v12599_v62  ;;  %12149 = vmatpush1.bf16.msra.mxu1 %v12601_v2  ;;  %v614_v62 = vld [vmem:[%s13141_s27 + $0x70] sm:$0xff]  ;;  %v615_v2 = vld [vmem:[%s13141_s27 + $0x78] sm:$0xff] }
  0x31   : > { %1767 = vmatprep.mubr.f32.mxu0 %v15521_v0  ;;  %1838 = vmatprep.mubr.f32.mxu1 %v15521_v0  ;;  %v12634_v5 = vcombine.high %v614_v62, %v630_v63  ;;  %v12635_v9 = vcombine.low %v614_v62, %v630_v63 }
  0x32   : > { %12151 = vmatprep.subr.bf16.mxu0 %v12602_v3  ;;  %12155 = vmatprep.subr.bf16.mxu1 %v12604_v4  ;;  %v631_v3 = vld [vmem:[%s13141_s27 + $0xf8] sm:$0xff]  ;;  %v12633_v4 = vcombine.low %v613_v57, %v629_v58  ;;  %v724_v57 = vld [vmem:[%s13232_s16 + $0xe0] sm:$0xff]  ;;  %s12059_s27 = sshll.u32 %s15625_s30, 7 }
  0x33   : > { %11765 = vmatmul.mubr.msk.f32.vlgmr.msra.gmra.mrb[12].mxu0 %vm847_vm0, %v13080_v17  ;;  %11766 = vmatmul.mubr.msk.f32.vlgmr.msra.gmra.mrb[12].mxu1 %vm847_vm0, %v13080_v17  ;;  %v12636_v6 = vcombine.high %v615_v2, %v631_v3  ;;  %s14734_s13 = scalar_lea.vmem %s15514_s3, %s12059_s27 }
  0x34   : > { %12153 = vmatpush1.bf16.msra.mxu0 %v12603_v7  ;;  %12157 = vmatpush1.bf16.msra.mxu1 %v12605_v10  ;;  %v696_v7 = vld [vmem:[%s13232_s16] sm:$0xff]  ;;  %v697_v10 = vld [vmem:[%s13232_s16 + $0x8] sm:$0xff] }
  0x35   : > { %1909 = vmatprep.mubr.f32.mxu0 %v15521_v0  ;;  %1980 = vmatprep.mubr.f32.mxu1 %v15521_v0  ;;  %v12638_v13 = vcombine.high %v696_v7, %v712_v8  ;;  %v12639_v18 = vcombine.low %v696_v7, %v712_v8 }
  0x36   : > { %12159 = vmatprep.subr.bf16.mxu0 %v12606_v11  ;;  %12163 = vmatprep.subr.bf16.mxu1 %v12608_v12  ;;  %v713_v11 = vld [vmem:[%s13232_s16 + $0x88] sm:$0xff]  ;;  %v12637_v12 = vcombine.low %v615_v2, %v631_v3  ;;  %v726_v2 = vld [vmem:[%s13232_s16 + $0xf0] sm:$0xff] }
  0x37   : > { %11767 = vmatmul.mubr.msk.f32.vlgmr.msra.gmra.mrb[14].mxu0 %vm847_vm0, %v13080_v17  ;;  %11768 = vmatmul.mubr.msk.f32.vlgmr.msra.gmra.mrb[14].mxu1 %vm847_vm0, %v13080_v17  ;;  %v12614_v17 = vcombine.high %v604_v22, %v620_v23  ;;  %v12640_v14 = vcombine.high %v697_v10, %v713_v11 }
  0x38   : > { %12161 = vmatpush1.bf16.msra.mxu0 %v12607_v15  ;;  %12165 = vmatpush1.bf16.msra.mxu1 %v12609_v19  ;;  %v698_v15 = vld [vmem:[%s13232_s16 + $0x10] sm:$0xff]  ;;  %v699_v19 = vld [vmem:[%s13232_s16 + $0x18] sm:$0xff] }
  0x39   : > { %2351 = vmatprep.mubr.f32.mxu0 %v15521_v0  ;;  %2422 = vmatprep.mubr.f32.mxu1 %v15521_v0  ;;  %v12642_v22 = vcombine.high %v698_v15, %v714_v16 }
  0x3a   : > { %12167 = vmatprep.subr.bf16.mxu0 %v12610_v20  ;;  %12171 = vmatprep.subr.bf16.mxu1 %v12612_v21  ;;  %v715_v20 = vld [vmem:[%s13232_s16 + $0x98] sm:$0xff]  ;;  %v12641_v21 = vcombine.low %v697_v10, %v713_v11 }
  0x3b   : > { %11771 = vmatmul.mubr.msk.f32.vlgmr.msra.gmra.mrb[16].mxu0 %vm847_vm0, %v13174_v24  ;;  %11772 = vmatmul.mubr.msk.f32.vlgmr.msra.gmra.mrb[16].mxu1 %vm847_vm0, %v13174_v24  ;;  %v12644_v23 = vcombine.high %v699_v19, %v715_v20  ;;  %v12645_v30 = vcombine.low %v699_v19, %v715_v20  ;;  %v11788_v20 = vld [vmem:[%s15516_s5 + $0x10] sm:$0xff] }
  0x3c   : > { %12169 = vmatpush1.bf16.msra.mxu0 %v12611_v25  ;;  %12173 = vmatpush1.bf16.msra.mxu1 %v12613_v28  ;;  %v700_v25 = vld [vmem:[%s13232_s16 + $0x20] sm:$0xff]  ;;  %v12643_v28 = vcombine.low %v698_v15, %v714_v16 }
  0x3d   : > { %2493 = vmatprep.mubr.f32.mxu0 %v15521_v0  ;;  %2564 = vmatprep.mubr.f32.mxu1 %v15521_v0  ;;  %v12647_v34 = vcombine.low %v700_v25, %v716_v26 }
  0x3e   : > { %12175 = vmatprep.subr.bf16.mxu0 %v12614_v17  ;;  %12179 = vmatprep.subr.bf16.mxu1 %v12616_v29  ;;  %v701_v17 = vld [vmem:[%s13232_s16 + $0x28] sm:$0xff] }
  0x3f   : > { %11773 = vmatmul.mubr.msk.f32.vlgmr.msra.gmra.mrb[18].mxu0 %vm847_vm0, %v13174_v24  ;;  %11774 = vmatmul.mubr.msk.f32.vlgmr.msra.gmra.mrb[18].mxu1 %vm847_vm0, %v13174_v24  ;;  %v717_v29 = vld [vmem:[%s13232_s16 + $0xa8] sm:$0xff] }
  0x40   : > { %12177 = vmatpush1.bf16.msra.mxu0 %v12615_v32  ;;  %12181 = vmatpush1.bf16.msra.mxu1 %v12617_v35  ;;  %v12648_v31 = vcombine.high %v701_v17, %v717_v29  ;;  %v702_v32 = vld [vmem:[%s13232_s16 + $0x30] sm:$0xff]  ;;  %v703_v35 = vld [vmem:[%s13232_s16 + $0x38] sm:$0xff] }
  0x41   : > { %2635 = vmatprep.mubr.f32.mxu0 %v15521_v0  ;;  %2706 = vmatprep.mubr.f32.mxu1 %v15521_v0  ;;  %v12650_v38 = vcombine.high %v702_v32, %v718_v33  ;;  %v12651_v42 = vcombine.low %v702_v32, %v718_v33 }
  0x42   : > { %12183 = vmatprep.subr.bf16.mxu0 %v12618_v36  ;;  %12187 = vmatprep.subr.bf16.mxu1 %v12620_v37  ;;  %v719_v36 = vld [vmem:[%s13232_s16 + $0xb8] sm:$0xff]  ;;  %v12649_v37 = vcombine.low %v701_v17, %v717_v29 }
  0x43   : > { %11775 = vmatmul.mubr.msk.f32.vlgmr.msra.gmra.mrb[20].mxu0 %vm847_vm0, %v13174_v24  ;;  %11776 = vmatmul.mubr.msk.f32.vlgmr.msra.gmra.mrb[20].mxu1 %vm847_vm0, %v13174_v24  ;;  %v12652_v39 = vcombine.high %v703_v35, %v719_v36 }
  0x44   : > { %12185 = vmatpush1.bf16.msra.mxu0 %v12619_v40  ;;  %12189 = vmatpush1.bf16.msra.mxu1 %v12621_v43  ;;  %v704_v40 = vld [vmem:[%s13232_s16 + $0x40] sm:$0xff]  ;;  %v705_v43 = vld [vmem:[%s13232_s16 + $0x48] sm:$0xff] }
  0x45   : > { %2777 = vmatprep.mubr.f32.mxu0 %v15521_v0  ;;  %2848 = vmatprep.mubr.f32.mxu1 %v15521_v0  ;;  %v12654_v46 = vcombine.high %v704_v40, %v720_v41  ;;  %v12655_v50 = vcombine.low %v704_v40, %v720_v41 }
  0x46   : > { %12191 = vmatprep.subr.bf16.mxu0 %v12622_v44  ;;  %12195 = vmatprep.subr.bf16.mxu1 %v12624_v45  ;;  %v721_v44 = vld [vmem:[%s13232_s16 + $0xc8] sm:$0xff]  ;;  %v12653_v45 = vcombine.low %v703_v35, %v719_v36  ;;  %v10993_v36 = vld [vmem:[%s15518_s7 + $0x10] sm:$0xf] }
  0x47   : > { %11777 = vmatmul.mubr.msk.f32.vlgmr.msra.gmra.mrb[22].mxu0 %vm847_vm0, %v13174_v24  ;;  %11778 = vmatmul.mubr.msk.f32.vlgmr.msra.gmra.mrb[22].mxu1 %vm847_vm0, %v13174_v24  ;;  %v12656_v47 = vcombine.high %v705_v43, %v721_v44 }
  0x48   : > { %12193 = vmatpush1.bf16.msra.mxu0 %v12623_v48  ;;  %12197 = vmatpush1.bf16.msra.mxu1 %v12625_v51  ;;  %v706_v48 = vld [vmem:[%s13232_s16 + $0x50] sm:$0xff]  ;;  %v707_v51 = vld [vmem:[%s13232_s16 + $0x58] sm:$0xff] }
  0x49   : > { %2919 = vmatprep.mubr.f32.mxu0 %v15521_v0  ;;  %2990 = vmatprep.mubr.f32.mxu1 %v15521_v0  ;;  %v12658_v54 = vcombine.high %v706_v48, %v722_v49  ;;  %v12659_v58 = vcombine.low %v706_v48, %v722_v49 }
  0x4a   : > { %12199 = vmatprep.subr.bf16.mxu0 %v12626_v52  ;;  %12203 = vmatprep.subr.bf16.mxu1 %v12628_v53  ;;  %v723_v52 = vld [vmem:[%s13232_s16 + $0xd8] sm:$0xff]  ;;  %v12657_v53 = vcombine.low %v705_v43, %v721_v44 }
  0x4b   : > { %11779 = vmatmul.mubr.msk.f32.vlgmr.msra.gmra.mrb[24].mxu0 %vm847_vm0, %v13174_v24  ;;  %11780 = vmatmul.mubr.msk.f32.vlgmr.msra.gmra.mrb[24].mxu1 %vm847_vm0, %v13174_v24  ;;  %v12660_v55 = vcombine.high %v707_v51, %v723_v52 }
  0x4c   : > { %12201 = vmatpush1.bf16.msra.mxu0 %v12627_v56  ;;  %12205 = vmatpush1.bf16.msra.mxu1 %v12629_v59  ;;  %v708_v56 = vld [vmem:[%s13232_s16 + $0x60] sm:$0xff]  ;;  %v709_v59 = vld [vmem:[%s13232_s16 + $0x68] sm:$0xff] }
  0x4d   : > { %3061 = vmatprep.mubr.f32.mxu0 %v15521_v0  ;;  %3132 = vmatprep.mubr.f32.mxu1 %v15521_v0  ;;  %v12662_v62 = vcombine.high %v708_v56, %v724_v57  ;;  %v12663_v3 = vcombine.low %v708_v56, %v724_v57 }
  0x4e   : > { %12207 = vmatprep.subr.bf16.mxu0 %v12630_v60  ;;  %12211 = vmatprep.subr.bf16.mxu1 %v12632_v61  ;;  %v725_v60 = vld [vmem:[%s13232_s16 + $0xe8] sm:$0xff]  ;;  %v12661_v61 = vcombine.low %v707_v51, %v723_v52 }
  0x4f   : > { %11781 = vmatmul.mubr.msk.f32.vlgmr.msra.gmra.mrb[26].mxu0 %vm847_vm0, %v13174_v24  ;;  %11782 = vmatmul.mubr.msk.f32.vlgmr.msra.gmra.mrb[26].mxu1 %vm847_vm0, %v13174_v24  ;;  %v12664_v63 = vcombine.high %v709_v59, %v725_v60 }
  0x50   : > { %12209 = vmatpush1.bf16.msra.mxu0 %v12631_v1  ;;  %12213 = vmatpush1.bf16.msra.mxu1 %v12633_v4  ;;  %v710_v1 = vld [vmem:[%s13232_s16 + $0x70] sm:$0xff]  ;;  %v711_v4 = vld [vmem:[%s13232_s16 + $0x78] sm:$0xff] }
  0x51   : > { %3203 = vmatprep.mubr.f32.mxu0 %v15521_v0  ;;  %3274 = vmatprep.mubr.f32.mxu1 %v15521_v0  ;;  %v12666_v7 = vcombine.high %v710_v1, %v726_v2 }
  0x52   : > { %12215 = vmatprep.subr.bf16.mxu0 %v12634_v5  ;;  %12219 = vmatprep.subr.bf16.mxu1 %v12636_v6  ;;  %v727_v5 = vld [vmem:[%s13232_s16 + $0xf8] sm:$0xff]  ;;  %v12665_v6 = vcombine.low %v709_v59, %v725_v60 }
  0x53   : > { %11783 = vmatmul.mubr.msk.f32.vlgmr.msra.gmra.mrb[28].mxu0 %vm847_vm0, %v13174_v24  ;;  %11784 = vmatmul.mubr.msk.f32.vlgmr.msra.gmra.mrb[28].mxu1 %vm847_vm0, %v13174_v24  ;;  %v12668_v8 = vcombine.high %v711_v4, %v727_v5  ;;  %v12669_v10 = vcombine.low %v711_v4, %v727_v5 }
  0x54   : > { %12217 = vmatpush1.bf16.msra.mxu0 %v12635_v9  ;;  %12221 = vmatpush1.bf16.msra.mxu1 %v12637_v12  ;;  %v12667_v9 = vcombine.low %v710_v1, %v726_v2 }
  0x55   : > { %3345 = vmatprep.mubr.f32.mxu0 %v15521_v0  ;;  %3416 = vmatprep.mubr.f32.mxu1 %v15521_v0 }
  0x56   : > { %12223 = vmatprep.subr.bf16.mxu0 %v12638_v13  ;;  %12227 = vmatprep.subr.bf16.mxu1 %v12640_v14 }
  0x57   : > { %11785 = vmatmul.mubr.msk.f32.vlgmr.msra.gmra.mrb[30].mxu0 %vm847_vm0, %v13174_v24  ;;  %11786 = vmatmul.mubr.msk.f32.vlgmr.msra.gmra.mrb[30].mxu1 %vm847_vm0, %v13174_v24  ;;  %v12646_v24 = vcombine.high %v700_v25, %v716_v26 }
  0x58   : > { %12225 = vmatpush1.bf16.msra.mxu0 %v12639_v18  ;;  %12229 = vmatpush1.bf16.msra.mxu1 %v12641_v21 }
  0x59   : > { %3787 = vmatprep.mubr.f32.mxu0 %v15521_v0  ;;  %3858 = vmatprep.mubr.f32.mxu1 %v15521_v0 }
  0x5a   : > { %12231 = vmatprep.subr.bf16.mxu0 %v12642_v22  ;;  %12235 = vmatprep.subr.bf16.mxu1 %v12644_v23 }
  0x5b   : > { %11789 = vmatmul.mubr.msk.f32.vlgmr.msra.gmra.mrb[32].mxu0 %vm847_vm0, %v13265_v27  ;;  %11790 = vmatmul.mubr.msk.f32.vlgmr.msra.gmra.mrb[32].mxu1 %vm847_vm0, %v13265_v27 }
  0x5c   : > { %12233 = vmatpush1.bf16.msra.mxu0 %v12643_v28  ;;  %12237 = vmatpush1.bf16.msra.mxu1 %v12645_v30 }
  0x5d   : > { %3929 = vmatprep.mubr.f32.mxu0 %v15521_v0  ;;  %4000 = vmatprep.mubr.f32.mxu1 %v15521_v0 }
  0x5e   : > { %12239 = vmatprep.subr.bf16.mxu0 %v12646_v24  ;;  %12243 = vmatprep.subr.bf16.mxu1 %v12648_v31 }
  0x5f   : > { %11791 = vmatmul.mubr.msk.f32.vlgmr.msra.gmra.mrb[34].mxu0 %vm847_vm0, %v13265_v27  ;;  %11792 = vmatmul.mubr.msk.f32.vlgmr.msra.gmra.mrb[34].mxu1 %vm847_vm0, %v13265_v27 }
  0x60   : > { %12241 = vmatpush1.bf16.msra.mxu0 %v12647_v34  ;;  %12245 = vmatpush1.bf16.msra.mxu1 %v12649_v37 }
  0x61   : > { %4071 = vmatprep.mubr.f32.mxu0 %v15521_v0  ;;  %4142 = vmatprep.mubr.f32.mxu1 %v15521_v0 }
  0x62   : > { %12247 = vmatprep.subr.bf16.mxu0 %v12650_v38  ;;  %12251 = vmatprep.subr.bf16.mxu1 %v12652_v39 }
  0x63   : > { %11793 = vmatmul.mubr.msk.f32.vlgmr.msra.gmra.mrb[36].mxu0 %vm847_vm0, %v13265_v27  ;;  %11794 = vmatmul.mubr.msk.f32.vlgmr.msra.gmra.mrb[36].mxu1 %vm847_vm0, %v13265_v27 }
  0x64   : > { %12249 = vmatpush1.bf16.msra.mxu0 %v12651_v42  ;;  %12253 = vmatpush1.bf16.msra.mxu1 %v12653_v45  ;;  %v10992_v45 = vld [vmem:[%s15518_s7 + $0x8] sm:$0xff] }
  0x65   : > { %4213 = vmatprep.mubr.f32.mxu0 %v15521_v0  ;;  %4284 = vmatprep.mubr.f32.mxu1 %v15521_v0 }
  0x66   : > { %12255 = vmatprep.subr.bf16.mxu0 %v12654_v46  ;;  %12259 = vmatprep.subr.bf16.mxu1 %v12656_v47 }
  0x67   : > { %11795 = vmatmul.mubr.msk.f32.vlgmr.msra.gmra.mrb[38].mxu0 %vm847_vm0, %v13265_v27  ;;  %11796 = vmatmul.mubr.msk.f32.vlgmr.msra.gmra.mrb[38].mxu1 %vm847_vm0, %v13265_v27 }
  0x68   : > { %12257 = vmatpush1.bf16.msra.mxu0 %v12655_v50  ;;  %12261 = vmatpush1.bf16.msra.mxu1 %v12657_v53 }
  0x69   : > { %4355 = vmatprep.mubr.f32.mxu0 %v15521_v0  ;;  %4426 = vmatprep.mubr.f32.mxu1 %v15521_v0 }
  0x6a   : > { %12263 = vmatprep.subr.bf16.mxu0 %v12658_v54  ;;  %12267 = vmatprep.subr.bf16.mxu1 %v12660_v55 }
  0x6b   : > { %11797 = vmatmul.mubr.msk.f32.vlgmr.msra.gmra.mrb[40].mxu0 %vm847_vm0, %v13265_v27  ;;  %11798 = vmatmul.mubr.msk.f32.vlgmr.msra.gmra.mrb[40].mxu1 %vm847_vm0, %v13265_v27 }
  0x6c   : > { %12265 = vmatpush1.bf16.msra.mxu0 %v12659_v58  ;;  %12269 = vmatpush1.bf16.msra.mxu1 %v12661_v61 }
  0x6d   : > { %4497 = vmatprep.mubr.f32.mxu0 %v15521_v0  ;;  %4568 = vmatprep.mubr.f32.mxu1 %v15521_v0 }
  0x6e   : > { %12271 = vmatprep.subr.bf16.mxu0 %v12662_v62  ;;  %12275 = vmatprep.subr.bf16.mxu1 %v12664_v63 }
  0x6f   : > { %11799 = vmatmul.mubr.msk.f32.vlgmr.msra.gmra.mrb[42].mxu0 %vm847_vm0, %v13265_v27  ;;  %11800 = vmatmul.mubr.msk.f32.vlgmr.msra.gmra.mrb[42].mxu1 %vm847_vm0, %v13265_v27 }
  0x70   : > { %12273 = vmatpush1.bf16.msra.mxu0 %v12663_v3  ;;  %12277 = vmatpush1.bf16.msra.mxu1 %v12665_v6 }
  0x71   : > { %4639 = vmatprep.mubr.f32.mxu0 %v15521_v0  ;;  %4710 = vmatprep.mubr.f32.mxu1 %v15521_v0 }
  0x72   : > { %12279 = vmatprep.subr.bf16.mxu0 %v12666_v7  ;;  %12283 = vmatprep.subr.bf16.mxu1 %v12668_v8 }
  0x73   : > { %11801 = vmatmul.mubr.msk.f32.vlgmr.msra.gmra.mrb[44].mxu0 %vm847_vm0, %v13265_v27  ;;  %11802 = vmatmul.mubr.msk.f32.vlgmr.msra.gmra.mrb[44].mxu1 %vm847_vm0, %v13265_v27 }
  0x74   : > { %12281 = vmatpush1.bf16.msra.mxu0 %v12667_v9  ;;  %12285 = vmatpush1.bf16.msra.mxu1 %v12669_v10 }
  0x75   : > { %4781 = vmatprep.mubr.f32.mxu0 %v15521_v0  ;;  %4852 = vmatprep.mubr.f32.mxu1 %v15521_v0 }
  0x76   : > { %3717 = vperm.xlu1 %12698, %v11788_v20  }
  0x77   : > { %11803 = vmatmul.mubr.msk.f32.vlgmr.msra.gmra.mrb[46].mxu0 %vm847_vm0, %v13265_v27  ;;  %11804 = vmatmul.mubr.msk.f32.vlgmr.msra.gmra.mrb[46].mxu1 %vm847_vm0, %v13265_v27 }
  0x78   : > { %5516 = vmatprep.mubr.f32.mxu0 %v15521_v0  ;;  %5599 = vmatprep.mubr.f32.mxu1 %v15521_v0 }
  0x7a   : > { %11006 = vperm.xlu1 %12698, %v10993_v36  }
  0x7e   : > { %11001 = vperm.xlu1 %12698, %v10992_v45  }
  0xee   : > { %v13339_v11 = vpop.f32.mrb[0].mxu0  ;;  %v13341_v12 = vpop.f32.mrb[0].mxu1 }
  0xef   : > { %v13343_v13 = vpop.f32.mrb[1].mxu0  ;;  %v13345_v14 = vpop.f32.mrb[1].mxu1 }
  0xf2   : > { %v13347_v15 = vpop.f32.mrb[2].mxu0  ;;  %v13349_v16 = vpop.f32.mrb[2].mxu1 }
  0xf3   : > { %15523 = vst [vmem:[#allocation2_spill] sm:$0xff] %v13347_v15  ;;  %15524 = vst [vmem:[#allocation3_spill] sm:$0xff] %v13349_v16  ;;  %v13351_v18 = vpop.f32.mrb[3].mxu0  ;;  %v13353_v19 = vpop.f32.mrb[3].mxu1 }
  0xf4   : > { %15525 = vst [vmem:[#allocation4_spill] sm:$0xff] %v13353_v19 }
  0xf6   : > { %v13358_v21 = vpop.f32.mrb[4].mxu0  ;;  %v13360_v22 = vpop.f32.mrb[4].mxu1 }
  0xf7   : > { %15526 = vst [vmem:[#allocation5_spill] sm:$0xff] %v13358_v21  ;;  %15527 = vst [vmem:[#allocation6_spill] sm:$0xff] %v13360_v22  ;;  %v13362_v23 = vpop.f32.mrb[5].mxu0  ;;  %v13364_v25 = vpop.f32.mrb[5].mxu1 }
  0xf8   : > { %15528 = vst [vmem:[#allocation7_spill] sm:$0xff] %v13362_v23  ;;  %15529 = vst [vmem:[#allocation8_spill] sm:$0xff] %v13364_v25 }
  0xfa   : > { %v13366_v26 = vpop.f32.mrb[6].mxu0  ;;  %v13368_v27 = vpop.f32.mrb[6].mxu1 }
  0xfb   : > { %15530 = vst [vmem:[#allocation9_spill] sm:$0xff] %v13366_v26  ;;  %15531 = vst [vmem:[#allocation10_spill] sm:$0xff] %v13368_v27  ;;  %v13370_v28 = vpop.f32.mrb[7].mxu0  ;;  %v13372_v17 = vpop.f32.mrb[7].mxu1 }
  0xfc   : > { %15532 = vst [vmem:[#allocation11_spill] sm:$0xff] %v13370_v28  ;;  %15533 = vst [vmem:[#allocation12_spill] sm:$0xff] %v13372_v17 }
  0xfe   : > { %v13374_v29 = vpop.f32.mrb[8].mxu0  ;;  %v13376_v30 = vpop.f32.mrb[8].mxu1 }
  0xff   : > { %15534 = vst [vmem:[#allocation13_spill] sm:$0xff] %v13374_v29  ;;  %15535 = vst [vmem:[#allocation14_spill] sm:$0xff] %v13376_v30  ;;  %v13378_v24 = vpop.f32.mrb[9].mxu0  ;;  %v13380_v31 = vpop.f32.mrb[9].mxu1 }
 0x100   : > { %15536 = vst [vmem:[#allocation15_spill] sm:$0xff] %v13378_v24  ;;  %15537 = vst [vmem:[#allocation16_spill] sm:$0xff] %v13380_v31 }
 0x102   : > { %v13382_v32 = vpop.f32.mrb[10].mxu0  ;;  %v13384_v33 = vpop.f32.mrb[10].mxu1 }
 0x103   : > { %15538 = vst [vmem:[#allocation17_spill] sm:$0xff] %v13382_v32  ;;  %15539 = vst [vmem:[#allocation18_spill] sm:$0xff] %v13384_v33  ;;  %v13386_v34 = vpop.f32.mrb[11].mxu0  ;;  %v13388_v35 = vpop.f32.mrb[11].mxu1 }
 0x104   : > { %15540 = vst [vmem:[#allocation19_spill] sm:$0xff] %v13386_v34  ;;  %15541 = vst [vmem:[#allocation20_spill] sm:$0xff] %v13388_v35 }
 0x106   : > { %v13393_v37 = vpop.f32.mrb[12].mxu0  ;;  %v13395_v38 = vpop.f32.mrb[12].mxu1 }
 0x107   : > { %15542 = vst [vmem:[#allocation21_spill] sm:$0xff] %v13393_v37  ;;  %15543 = vst [vmem:[#allocation22_spill] sm:$0xff] %v13395_v38  ;;  %v13397_v39 = vpop.f32.mrb[13].mxu0  ;;  %v13399_v40 = vpop.f32.mrb[13].mxu1 }
 0x108   : > { %15544 = vst [vmem:[#allocation23_spill] sm:$0xff] %v13397_v39  ;;  %15545 = vst [vmem:[#allocation24_spill] sm:$0xff] %v13399_v40 }
 0x10a   : > { %v13401_v41 = vpop.f32.mrb[14].mxu0  ;;  %v13403_v42 = vpop.f32.mrb[14].mxu1 }
 0x10b   : > { %15546 = vst [vmem:[#allocation25_spill] sm:$0xff] %v13401_v41  ;;  %15547 = vst [vmem:[#allocation26_spill] sm:$0xff] %v13403_v42  ;;  %v13405_v43 = vpop.f32.mrb[15].mxu0  ;;  %v13407_v44 = vpop.f32.mrb[15].mxu1 }
 0x10c   : > { %15548 = vst [vmem:[#allocation27_spill] sm:$0xff] %v13405_v43  ;;  %15549 = vst [vmem:[#allocation28_spill] sm:$0xff] %v13407_v44  ;;  %v13446_v42 = vpop.permute.xlu0 %2281 }
 0x10e   : > { %v2353_v46 = vpop.f32.mrb[16].mxu0  ;;  %v2424_v47 = vpop.f32.mrb[16].mxu1 }
 0x10f   : > { %v2355_v48 = vpop.f32.mrb[17].mxu0  ;;  %v2426_v49 = vpop.f32.mrb[17].mxu1  ;;  %v13449_v41 = vadd.f32 %v2353_v46, %v13446_v42  ;;  %v13452_v44 = vadd.f32 %v2424_v47, %v13446_v42 }
 0x110   : > { %v13460_v37 = vadd.f32 %v2355_v48, %v13446_v42  ;;  %v13465_v39 = vadd.f32 %v2426_v49, %v13446_v42 }
 0x111   : > { %v3455_v38 = vmul.f32 %v13449_v41, %v13449_v41  ;;  %v3457_v40 = vmul.f32 %v13452_v44, %v13452_v44 }
 0x112   : > { %v2495_v50 = vpop.f32.mrb[18].mxu0  ;;  %v2566_v51 = vpop.f32.mrb[18].mxu1  ;;  %v3456_v33 = vmul.f32 %v13460_v37, %v13460_v37  ;;  %v3458_v35 = vmul.f32 %v13465_v39, %v13465_v39 }
 0x113   : > { %v2497_v52 = vpop.f32.mrb[19].mxu0  ;;  %v2568_v53 = vpop.f32.mrb[19].mxu1  ;;  %v13455_v43 = vadd.f32 %v2495_v50, %v13446_v42  ;;  %v13470_v47 = vadd.f32 %v2566_v51, %v13446_v42  ;;  %v3487_v50 = vmul.f32 %v3455_v38, %v13449_v41  ;;  %v3489_v49 = vmul.f32 %v3457_v40, %v13452_v44 }
 0x114   : > { %v13479_v32 = vadd.f32 %v2497_v52, %v13446_v42  ;;  %v13485_v34 = vadd.f32 %v2568_v53, %v13446_v42  ;;  %v3488_v52 = vmul.f32 %v3456_v33, %v13460_v37  ;;  %v3490_v24 = vmul.f32 %v3458_v35, %v13465_v39 }
 0x115   : > { %v3459_v46 = vmul.f32 %v13455_v43, %v13455_v43  ;;  %v3461_v38 = vmul.f32 %v13470_v47, %v13470_v47  ;;  %v3521_v31 = vmul.f32 0.044715, %v3489_v49 }
 0x116   : > { %v2637_v54 = vpop.f32.mrb[20].mxu0  ;;  %v2708_v55 = vpop.f32.mrb[20].mxu1  ;;  %v3460_v53 = vmul.f32 %v13479_v32, %v13479_v32  ;;  %v3520_v26 = vmul.f32 0.044715, %v3488_v52 }
 0x117   : > { %v2639_v56 = vpop.f32.mrb[21].mxu0  ;;  %v2710_v57 = vpop.f32.mrb[21].mxu1  ;;  %v13476_v48 = vadd.f32 %v2637_v54, %v13446_v42  ;;  %v3491_v51 = vmul.f32 %v3459_v46, %v13455_v43  ;;  %v3519_v54 = vmul.f32 0.044715, %v3487_v50  ;;  %v13502_v46 = vadd.f32 %v2708_v55, %v13446_v42 }
 0x118   : > { %v13491_v30 = vadd.f32 %v2639_v56, %v13446_v42  ;;  %v13497_v29 = vadd.f32 %v2710_v57, %v13446_v42  ;;  %v3462_v56 = vmul.f32 %v13485_v34, %v13485_v34  ;;  %v3493_v33 = vmul.f32 %v3461_v38, %v13470_v47 }
 0x119   : > { %v3463_v40 = vmul.f32 %v13476_v48, %v13476_v48  ;;  %v3523_v50 = vmul.f32 0.044715, %v3491_v51  ;;  %v3551_v57 = vadd.f32 %v3519_v54, %v13449_v41  ;;  %v3492_v49 = vmul.f32 %v3460_v53, %v13479_v32 }
 0x11a   : > { %v2779_v58 = vpop.f32.mrb[22].mxu0  ;;  %v13412_v59 = vpop.f32.mrb[22].mxu1  ;;  %v3464_v27 = vmul.f32 %v13491_v30, %v13491_v30  ;;  %v3466_v55 = vmul.f32 %v13497_v29, %v13497_v29  ;;  %v3465_v35 = vmul.f32 %v13502_v46, %v13502_v46  ;;  %v3553_v28 = vadd.f32 %v3521_v31, %v13452_v44 }
 0x11b   : > { %v2781_v60 = vpop.f32.mrb[23].mxu0  ;;  %v2852_v61 = vpop.f32.mrb[23].mxu1  ;;  %v3495_v17 = vmul.f32 %v3463_v40, %v13476_v48  ;;  %v13518_v51 = vadd.f32 %v2779_v58, %v13446_v42  ;;  %v3522_v54 = vmul.f32 0.044715, %v3490_v24  ;;  %v3494_v52 = vmul.f32 %v3462_v56, %v13485_v34 }
 0x11c   : > { %v13521_v38 = vadd.f32 %v2781_v60, %v13446_v42  ;;  %v13526_v40 = vadd.f32 %v2852_v61, %v13446_v42  ;;  %v3555_v22 = vadd.f32 %v3523_v50, %v13455_v43  ;;  %v3525_v53 = vmul.f32 0.044715, %v3493_v33 }
 0x11d   : > { %v3496_v21 = vmul.f32 %v3464_v27, %v13491_v30  ;;  %v3583_v25 = vmul.f32 0.7978846, %v3551_v57  ;;  %v3552_v58 = vadd.f32 %v3520_v26, %v13460_v37  ;;  %v3527_v23 = vmul.f32 0.044715, %v3495_v17 }
 0x11e   : > { %v13414_v62 = vpop.f32.mrb[24].mxu0  ;;  %v13416_v63 = vpop.f32.mrb[24].mxu1  ;;  %v3498_v60 = vmul.f32 %v3466_v55, %v13497_v29  ;;  %v3524_v16 = vmul.f32 0.044715, %v3492_v49  ;;  %v3497_v31 = vmul.f32 %v3465_v35, %v13502_v46  ;;  %v3467_v24 = vmul.f32 %v13518_v51, %v13518_v51 }
 0x11f   : > { %v13418_v1 = vpop.f32.mrb[25].mxu0  ;;  %v13420_v2 = vpop.f32.mrb[25].mxu1  ;;  %v3468_v61 = vmul.f32 %v13521_v38, %v13521_v38  ;;  %v3585_v56 = vmul.f32 0.7978846, %v3553_v28  ;;  %v3554_v50 = vadd.f32 %v3522_v54, %v13465_v39  ;;  %v3526_v33 = vmul.f32 0.044715, %v3494_v52 }
 0x120   : > { %v3470_v27 = vmul.f32 %v13526_v40, %v13526_v40  ;;  %v3587_v26 = vmul.f32 0.7978846, %v3555_v22  ;;  %v3557_v17 = vadd.f32 %v3525_v53, %v13470_v47  ;;  %v3528_v57 = vmul.f32 0.044715, %v3496_v21 }
 0x121   : > { %v13543_v55 = vadd.f32 %v13412_v59, %v13446_v42  ;;  %12699 = vtanh.f32 %v3583_v25  ;;  %v3584_v49 = vmul.f32 0.7978846, %v3552_v58  ;;  %v3559_v35 = vadd.f32 %v3527_v23, %v13476_v48 }
 0x122   : > { %v13422_v3 = vpop.f32.mrb[26].mxu0  ;;  %v13424_v4 = vpop.f32.mrb[26].mxu1  ;;  %v3530_v15 = vmul.f32 0.044715, %v3498_v60  ;;  %v3556_v28 = vadd.f32 %v3524_v16, %v13479_v32  ;;  %v3529_v54 = vmul.f32 0.044715, %v3497_v31  ;;  %v3499_v52 = vmul.f32 %v3467_v24, %v13518_v51 }
 0x123   : > { %v13426_v5 = vpop.f32.mrb[27].mxu0  ;;  %v13428_v6 = vpop.f32.mrb[27].mxu1  ;;  %v3500_v19 = vmul.f32 %v3468_v61, %v13521_v38  ;;  %12701 = vtanh.f32 %v3585_v56  ;;  %v3586_v22 = vmul.f32 0.7978846, %v3554_v50  ;;  %v3558_v21 = vadd.f32 %v3526_v33, %v13485_v34 }
 0x124   : > { %v3502_v53 = vmul.f32 %v3470_v27, %v13526_v40  ;;  %12703 = vtanh.f32 %v3587_v26  ;;  %v3589_v59 = vmul.f32 0.7978846, %v3557_v17  ;;  %v3560_v25 = vadd.f32 %v3528_v57, %v13491_v30 }
 0x125   : > { %v3469_v23 = vmul.f32 %v13543_v55, %v13543_v55  ;;  %v3591_v58 = vmul.f32 0.7978846, %v3559_v35  ;;  %v3562_v16 = vadd.f32 %v3530_v15, %v13497_v29  ;;  %v13557_v60 = vadd.f32 %v13418_v1, %v13446_v42 }
 0x126   : > { %v13430_v7 = vpop.f32.mrb[28].mxu0  ;;  %v13432_v8 = vpop.f32.mrb[28].mxu1  ;;  %12705 = vtanh.f32 %v3584_v49  ;;  %v3588_v31 = vmul.f32 0.7978846, %v3556_v28  ;;  %v3561_v24 = vadd.f32 %v3529_v54, %v13502_v46  ;;  %v3531_v61 = vmul.f32 0.044715, %v3499_v52 }
 0x127   : > { %v13434_v9 = vpop.f32.mrb[29].mxu0  ;;  %v13436_v10 = vpop.f32.mrb[29].mxu1  ;;  %v3532_v56 = vmul.f32 0.044715, %v3500_v19  ;;  %v3590_v50 = vmul.f32 0.7978846, %v3558_v21  ;;  %v13562_v27 = vadd.f32 %v13420_v2, %v13446_v42  ;;  %12707 = vtanh.f32 %v3586_v22 }
 0x128   : > { %v3534_v33 = vmul.f32 0.044715, %v3502_v53  ;;  %v3423_v26 = vmul.f32 0.5, %v13449_v41  ;;  %12709 = vtanh.f32 %v3589_v59  ;;  %v3592_v15 = vmul.f32 0.7978846, %v3560_v25 }
 0x129   : > { %12711 = vtanh.f32 %v3591_v58  ;;  %v3594_v1 = vmul.f32 0.7978846, %v3562_v16  ;;  %v3501_v17 = vmul.f32 %v3469_v23, %v13543_v55  ;;  %v3472_v57 = vmul.f32 %v13557_v60, %v13557_v60 }
 0x12a   : > { %v13438_v20 = vpop.f32.mrb[30].mxu0  ;;  %v13440_v36 = vpop.f32.mrb[30].mxu1  ;;  %v3593_v49 = vmul.f32 0.7978846, %v3561_v24  ;;  %v3563_v19 = vadd.f32 %v3531_v61, %v13518_v51  ;;  %v3564_v35 = vadd.f32 %v3532_v56, %v13521_v38  ;;  %12713 = vtanh.f32 %v3588_v31 }
 0x12b   : > { %v13442_v45 = vpop.f32.mrb[31].mxu0  ;;  %v13444_v0 = vpop.f32.mrb[31].mxu1  ;;  %v3566_v28 = vadd.f32 %v3534_v33, %v13526_v40  ;;  %v13573_v41 = vadd.f32 %v13414_v62, %v13446_v42  ;;  %v3474_v54 = vmul.f32 %v13562_v27, %v13562_v27  ;;  %12715 = vtanh.f32 %v3590_v50 }
 0x12c   : > { %v12700_v2 = vpop.eup %12699  ;;  %v3425_v52 = vmul.f32 0.5, %v13452_v44  ;;  %v13579_v22 = vmul.f32 0.5, %v13455_v43  ;;  %v13583_v21 = vadd.f32 %v13416_v63, %v13446_v42  ;;  %12717 = vtanh.f32 %v3592_v15 }
 0x12d   : > { %v12702_v62 = vpop.eup %12701  ;;  %v13590_v25 = vmul.f32 0.5, %v13470_v47  ;;  %v3533_v23 = vmul.f32 0.044715, %v3501_v17  ;;  %v3504_v58 = vmul.f32 %v3472_v57, %v13557_v60  ;;  %12719 = vtanh.f32 %v3594_v1 }
 0x12e   : > { %v13585_v53 = vpop.f32.mrb[32].mxu0  ;;  %v13587_v59 = vpop.f32.mrb[32].mxu1  ;;  %12721 = vtanh.f32 %v3593_v49  ;;  %v13597_v63 = vmul.f32 0.7978846, %v3563_v19  ;;  %v3596_v31 = vmul.f32 0.7978846, %v3564_v35  ;;  %v3471_v50 = vmul.f32 %v13573_v41, %v13573_v41 }
 0x12f   : > { %15550 = vst [vmem:[#allocation29_spill] sm:$0xff] %v13585_v53  ;;  %15551 = vst [vmem:[#allocation30_spill] sm:$0xff] %v13587_v59  ;;  %v13593_v44 = vpop.f32.mrb[33].mxu0  ;;  %v13595_v43 = vpop.f32.mrb[33].mxu1  ;;  %v3598_v47 = vmul.f32 0.7978846, %v3566_v28  ;;  %v3506_v33 = vmul.f32 %v3474_v54, %v13562_v27  ;;  %v3473_v1 = vmul.f32 %v13583_v21, %v13583_v21  ;;  %v13610_v17 = vadd.f32 %v13426_v5, %v13446_v42 }
 0x130   : > { %15552 = vst [vmem:[#allocation31_spill] sm:$0xff] %v13593_v44  ;;  %15553 = vst [vmem:[#allocation32_spill] sm:$0xff] %v13595_v43  ;;  %v12704_v16 = vpop.eup %12703  ;;  %v3647_v15 = vadd.f32 1.0, %v12700_v2  ;;  %v3424_v57 = vmul.f32 0.5, %v13460_v37  ;;  %v13614_v35 = vadd.f32 %v3533_v23, %v13543_v55  ;;  %v3536_v28 = vmul.f32 0.044715, %v3504_v58 }
 0x131   : > { %v12706_v56 = vpop.eup %12705  ;;  %v3649_v2 = vadd.f32 1.0, %v12702_v62  ;;  %v3426_v53 = vmul.f32 0.5, %v13465_v39  ;;  %12723 = vtanh.f32 %v3596_v31  ;;  %v3538_v62 = vmul.f32 0.044715, %v3506_v33 }
 0x132   : > { %v13599_v24 = vpop.f32.mrb[34].mxu0  ;;  %v13601_v61 = vpop.f32.mrb[34].mxu1  ;;  %v3648_v49 = vadd.f32 1.0, %v12706_v56  ;;  %v3679_v43 = vmul.f32 %v3647_v15, %v3423_v26  ;;  %12725 = vtanh.f32 %v3598_v47  ;;  %v3651_v26 = vadd.f32 1.0, %v12704_v16 }
 0x133   : > { %15554 = vst [vmem:[#allocation33_spill] sm:$0xff] %v13599_v24  ;;  %15555 = vst [vmem:[#allocation34_spill] sm:$0xff] %v13601_v61  ;;  %v12708_v19 = vpop.eup %12707  ;;  %v13618_v61 = vadd.f32 %v13428_v6, %v13446_v42  ;;  %v13620_v54 = vpop.f32.mrb[35].mxu0  ;;  %v13632_v6 = vmul.f32 %v3471_v50, %v13573_v41  ;;  %v3476_v50 = vmul.f32 %v13610_v17, %v13610_v17  ;;  %12727 = vtanh.f32 %v13597_v63 }
 0x134   : > { %15556 = vst [vmem:[#allocation35_spill] sm:$0xff] %v13620_v54  ;;  %v13622_v24 = vpop.f32.mrb[35].mxu1  ;;  %v12710_v59 = vpop.eup %12709  ;;  %v3680_v5 = vmul.f32 %v3648_v49, %v3424_v57  ;;  %v3650_v37 = vadd.f32 1.0, %v12708_v19  ;;  %v13644_v49 = vmul.f32 %v3473_v1, %v13583_v21  ;;  %v3681_v47 = vmul.f32 %v3649_v2, %v3425_v52 }
 0x135   : > { %15557 = vst [vmem:[#allocation36_spill] sm:$0xff] %v13622_v24  ;;  %v13629_v58 = vpop.eup %12711  ;;  %v13637_v24 = vld [vmem:[%s15517_s6 + $0x18] sm:$0xff]  ;;  %v3430_v52 = vmul.f32 0.5, %v13485_v34  ;;  %v3570_v2 = vadd.f32 %v3538_v62, %v13562_v27  ;;  %v3434_v62 = vmul.f32 0.5, %v13497_v29 }
 0x136   : > { %v13625_v56 = vpop.f32.mrb[36].mxu0  ;;  %v13627_v23 = vpop.f32.mrb[36].mxu1  ;;  %5452 = vmatprep.subr.mxu0 %v3680_v5  ;;  %v3682_v33 = vmul.f32 %v3650_v37, %v3426_v53  ;;  %v3568_v5 = vadd.f32 %v3536_v28, %v13557_v60  ;;  %v3478_v53 = vmul.f32 %v13618_v61, %v13618_v61  ;;  %v15566_v28 = vmov 0.0  }
 0x137   : > { %15558 = vst [vmem:[#allocation37_spill] sm:$0xff] %v13625_v56  ;;  %15559 = vst [vmem:[#allocation38_spill] sm:$0xff] %v13627_v23  ;;  %v13639_v39 = vpop.f32.mrb[37].mxu0  ;;  %v13641_v31 = vpop.f32.mrb[37].mxu1  ;;  %5453 = vmatpush1.msra.mxu0 %v3679_v43  ;;  %v3428_v56 = vmul.f32 0.5, %v13479_v32 }
 0x138   : > { %15560 = vst [vmem:[#allocation39_spill] sm:$0xff] %v13639_v39  ;;  %15561 = vst [vmem:[#allocation40_spill] sm:$0xff] %v13641_v31  ;;  %v12714_v57 = vpop.eup %12713  ;;  %v3653_v39 = vadd.f32 1.0, %v12710_v59  ;;  %5535 = vmatprep.subr.mxu1 %v3682_v33  ;;  %11808 = vmatmul.mubr.msk.f32.vlgmr.msra.gmra.mrb[48].mxu0 %vm5442_vm1, %v13637_v24  ;;  %v3600_v29 = vmul.f32 0.7978846, %v3568_v5 }
 0x139   : > { %v12716_v23 = vpop.eup %12715  ;;  %v3652_v31 = vadd.f32 1.0, %v12714_v57  ;;  %5536 = vmatpush1.msra.mxu1 %v3681_v47  ;;  %5522 = vmatprep.mubr.f32.mxu0 %v15566_v28  ;;  %v3432_v57 = vmul.f32 0.5, %v13491_v30  ;;  %v3597_v47 = vmul.f32 0.7978846, %v13614_v35  ;;  %v3535_v5 = vmul.f32 0.044715, %v13632_v6 }
 0x13a   : > { %v13648_v15 = vpop.f32.mrb[38].mxu0  ;;  %v13650_v19 = vpop.f32.mrb[38].mxu1  ;;  %v3654_v43 = vadd.f32 1.0, %v12716_v23  ;;  %11811 = vmatmul.mubr.msk.f32.vlgmr.msra.gmra.mrb[48].mxu1 %vm5442_vm1, %v13637_v24  ;;  %v3537_v63 = vmul.f32 0.044715, %v13644_v49  ;;  %v13724_v6 = vadd.f32 %v13424_v4, %v13446_v42  ;;  %v3655_v49 = vadd.f32 1.0, %v13629_v58 }
 0x13b   : > { %15562 = vst [vmem:[#allocation41_spill] sm:$0xff] %v13648_v15  ;;  %15563 = vst [vmem:[#allocation42_spill] sm:$0xff] %v13650_v19  ;;  %v13653_v54 = vpop.f32.mrb[39].mxu0  ;;  %v13655_v1 = vpop.f32.mrb[39].mxu1  ;;  %v3684_v37 = vmul.f32 %v3652_v31, %v3428_v56  ;;  %v13680_v56 = vld [vmem:[%s15517_s6 + $0x20] sm:$0xff]  ;;  %5605 = vmatprep.mubr.f32.mxu1 %v15566_v28  ;;  %12729 = vtanh.f32 %v3597_v47 }
 0x13c   : > { %v12718_v44 = vpop.eup %12717  ;;  %v3686_v23 = vmul.f32 %v3654_v43, %v3430_v52  ;;  %11809 = vmatmul.mubr.msk.f32.gmra.mrb[50].mxu0 %vm5442_vm1, %v13680_v56  ;;  %12731 = vtanh.f32 %v3600_v29  ;;  %v3569_v29 = vadd.f32 %v3537_v63, %v13583_v21 }
 0x13d   : > { %v12720_v16 = vpop.eup %12719  ;;  %v3656_v33 = vadd.f32 1.0, %v12718_v44  ;;  %5618 = vmatprep.subr.mxu0 %v3684_v37  ;;  %5528 = vmatprep.mubr.f32.mxu0 %v15566_v28 }
 0x13e   : > { %v13663_v32 = vpop.f32.mrb[40].mxu0  ;;  %v13665_v59 = vpop.f32.mrb[40].mxu1  ;;  %v3658_v30 = vadd.f32 1.0, %v12720_v16  ;;  %v3510_v16 = vmul.f32 %v3478_v53, %v13618_v61  ;;  %5701 = vmatprep.subr.mxu1 %v3686_v23  ;;  %v13710_v53 = vadd.f32 %v13422_v3, %v13446_v42  ;;  %11812 = vmatmul.mubr.msk.f32.gmra.mrb[50].mxu1 %vm5442_vm1, %v13680_v56 }
 0x13f   : > { %15564 = vst [vmem:[#allocation43_spill] sm:$0xff] %v13663_v32  ;;  %15565 = vst [vmem:[#allocation44_spill] sm:$0xff] %v13665_v59  ;;  %v13670_v19 = vpop.f32.mrb[41].mxu0  ;;  %v13672_v15 = vpop.f32.mrb[41].mxu1  ;;  %v3683_v59 = vmul.f32 %v3651_v26, %v13579_v22  ;;  %v3508_v32 = vmul.f32 %v3476_v50, %v13610_v17  ;;  %v3685_v22 = vmul.f32 %v3653_v39, %v13590_v25  ;;  %v3602_v50 = vmul.f32 0.7978846, %v3570_v2 }
 0x140   : > { %v12722_v34 = vpop.eup %12721  ;;  %v3688_v26 = vmul.f32 %v3656_v33, %v3432_v57  ;;  %5611 = vmatprep.mubr.f32.mxu1 %v15566_v28  ;;  %v3475_v58 = vmul.f32 %v13710_v53, %v13710_v53 }
 0x141   : > { %5619 = vmatpush1.msra.mxu0 %v3683_v59  ;;  %5702 = vmatpush1.msra.mxu1 %v3685_v22  ;;  %v12724_v37 = vpop.eup %12723  ;;  %v13717_v59 = vld [vmem:[%s15517_s6 + $0x28] sm:$0xf]  ;;  %v3540_v3 = vmul.f32 0.044715, %v3508_v32  ;;  %v13741_v32 = vadd.f32 %v13436_v10, %v13446_v42  ;;  %12733 = vtanh.f32 %v3602_v50  ;;  %v3567_v22 = vadd.f32 %v3535_v5, %v13573_v41 }
 0x142   : > { %v13683_v44 = vpop.f32.mrb[42].mxu0  ;;  %v13685_v31 = vpop.f32.mrb[42].mxu1  ;;  %5784 = vmatprep.subr.mxu0 %v3688_v26  ;;  %11810 = vmatmul.mubr.msk.f32.gmra.mrb[52].mxu0 %vm5442_vm1, %v13717_v59  ;;  %v3660_v47 = vadd.f32 1.0, %v12724_v37  ;;  %v3433_v26 = vmul.f32 0.5, %v13502_v46  ;;  %v3438_v5 = vmul.f32 0.5, %v13526_v40 }
 0x143   : > { %15567 = vst [vmem:[#allocation45_spill] sm:$0xff] %v13683_v44  ;;  %15568 = vst [vmem:[#allocation46_spill] sm:$0xff] %v13685_v31  ;;  %v13691_v52 = vpop.f32.mrb[43].mxu0  ;;  %v13693_v43 = vpop.f32.mrb[43].mxu1  ;;  %v3690_v31 = vmul.f32 %v3658_v30, %v3434_v62  ;;  %v3542_v62 = vmul.f32 0.044715, %v3510_v16  ;;  %v13733_v30 = vadd.f32 %v13434_v9, %v13446_v42  ;;  %11813 = vmatmul.mubr.msk.f32.gmra.mrb[52].mxu1 %vm5442_vm1, %v13717_v59  ;;  %5682 = vmatprep.mubr.f32.mxu0 %v15566_v28 }
 0x144   : > { %v12726_v57 = vpop.eup %12725  ;;  %v3431_v9 = vmul.f32 0.5, %v13476_v48  ;;  %5765 = vmatprep.mubr.f32.mxu1 %v15566_v28  ;;  %v3436_v48 = vmul.f32 0.5, %v13521_v38  ;;  %v3572_v16 = vadd.f32 %v3540_v3, %v13610_v17  ;;  %v3482_v46 = vmul.f32 %v13741_v32, %v13741_v32 }
 0x145   : > { %5867 = vmatprep.subr.mxu1 %v3690_v31  ;;  %v3657_v31 = vadd.f32 1.0, %v12722_v34  ;;  %v3662_v10 = vadd.f32 1.0, %v12726_v57  ;;  %v3477_v34 = vmul.f32 %v13724_v6, %v13724_v6  ;;  %v3480_v50 = vmul.f32 %v13733_v30, %v13733_v30 }
 0x146   : > { %v13696_v44 = vpop.f32.mrb[44].mxu0  ;;  %v13698_v35 = vpop.f32.mrb[44].mxu1  ;;  %v3687_v37 = vmul.f32 %v3655_v49, %v3431_v9  ;;  %v3574_v57 = vadd.f32 %v3542_v62, %v13618_v61  ;;  %11814 = vmatmul.mubr.msk.f32.vlgmr.msra.gmra.mrb[54].mxu0 %vm5442_vm1, %v13637_v24  ;;  %v3507_v38 = vmul.f32 %v3475_v58, %v13710_v53  ;;  %v3601_v49 = vmul.f32 0.7978846, %v3569_v29 }
 0x147   : > { %15569 = vst [vmem:[#allocation47_spill] sm:$0xff] %v13696_v44  ;;  %15570 = vst [vmem:[#allocation48_spill] sm:$0xff] %v13698_v35  ;;  %v13702_v25 = vpop.f32.mrb[45].mxu0  ;;  %v13704_v39 = vpop.f32.mrb[45].mxu1  ;;  %v3689_v63 = vmul.f32 %v3657_v31, %v3433_v26  ;;  %v3599_v35 = vmul.f32 0.7978846, %v3567_v22  ;;  %11817 = vmatmul.mubr.msk.f32.vlgmr.msra.gmra.mrb[54].mxu1 %vm5442_vm1, %v13637_v24  ;;  %v3694_v3 = vmul.f32 %v3662_v10, %v3438_v5  ;;  %5688 = vmatprep.mubr.f32.mxu0 %v15566_v28 }
 0x148   : > { %5785 = vmatpush1.msra.mxu0 %v3687_v37  ;;  %v3509_v40 = vmul.f32 %v3477_v34, %v13724_v6  ;;  %v12728_v62 = vpop.eup %12727  ;;  %v3604_v9 = vmul.f32 0.7978846, %v3572_v16  ;;  %v3512_v44 = vmul.f32 %v3480_v50, %v13733_v30  ;;  %v3514_v22 = vmul.f32 %v3482_v46, %v13741_v32  ;;  %5771 = vmatprep.mubr.f32.mxu1 %v15566_v28 }
 0x149   : > { %5868 = vmatpush1.msra.mxu1 %v3689_v63  ;;  %v12730_v31 = vpop.eup %12729  ;;  %12735 = vtanh.f32 %v3599_v35  ;;  %v3539_v10 = vmul.f32 0.044715, %v3507_v38  ;;  %v13786_v34 = vadd.f32 %v13432_v8, %v13446_v42  ;;  %v13790_v35 = vadd.f32 %v13442_v45, %v13446_v42 }
 0x14a   : > { %v13719_v2 = vpop.f32.mrb[46].mxu0  ;;  %v13727_v33 = vpop.f32.mrb[46].mxu1  ;;  %6033 = vmatprep.subr.mxu1 %v3694_v3  ;;  %11815 = vmatmul.mubr.msk.f32.gmra.mrb[56].mxu0 %vm5442_vm1, %v13680_v56  ;;  %12737 = vtanh.f32 %v3601_v49  ;;  %v3541_v29 = vmul.f32 0.044715, %v3509_v40  ;;  %v3659_v16 = vadd.f32 1.0, %v12728_v62  ;;  %v3661_v37 = vadd.f32 1.0, %v12730_v31 }
 0x14b   : > { %15571 = vst [vmem:[#allocation49_spill] sm:$0xff] %v13727_v33  ;;  %v13729_v23 = vpop.f32.mrb[47].mxu0  ;;  %v13737_v4 = vpop.f32.mrb[47].mxu1  ;;  %v3692_v33 = vmul.f32 %v3660_v47, %v3436_v48  ;;  %v3606_v47 = vmul.f32 0.7978846, %v3574_v57  ;;  %11818 = vmatmul.mubr.msk.f32.gmra.mrb[56].mxu1 %vm5442_vm1, %v13680_v56  ;;  %5694 = vmatprep.mubr.f32.mxu0 %v15566_v28  ;;  %v13795_v48 = vadd.f32 %v13444_v0, %v13446_v42  ;;  %12739 = vtanh.f32 %v3604_v9 }
 0x14c   : > { %v12732_v58 = vpop.eup %12731  ;;  %5777 = vmatprep.mubr.f32.mxu1 %v15566_v28  ;;  %v3546_v50 = vmul.f32 0.044715, %v3514_v22  ;;  %v3435_v5 = vmul.f32 0.5, %v13518_v51  ;;  %v3571_v45 = vadd.f32 %v3539_v10, %v13710_v53  ;;  %v3437_v57 = vmul.f32 0.5, %v13543_v55 }
 0x14d   : > { %5950 = vmatprep.subr.mxu0 %v3692_v33  ;;  %v13779_v33 = vadd.f32 %v13430_v7, %v13446_v42  ;;  %v12734_v26 = vpop.eup %12733  ;;  %v3544_v7 = vmul.f32 0.044715, %v3512_v44  ;;  %v3664_v8 = vadd.f32 1.0, %v12732_v58  ;;  %12741 = vtanh.f32 %v3606_v47 }
 0x14e   : > { %11816 = vmatmul.mubr.msk.f32.gmra.mrb[58].mxu0 %vm5442_vm1, %v13717_v59  ;;  %v3666_v0 = vadd.f32 1.0, %v12734_v26  ;;  %v3573_v46 = vadd.f32 %v3541_v29, %v13724_v6  ;;  %v3481_v63 = vmul.f32 %v13786_v34, %v13786_v34  ;;  %v3440_v51 = vmul.f32 0.5, %v13557_v60  ;;  %v13825_v26 = vpop.permute.xlu0 %844 }
 0x14f   : > { %v3479_v44 = vmul.f32 %v13779_v33, %v13779_v33  ;;  %11819 = vmatmul.mubr.msk.f32.gmra.mrb[58].mxu1 %vm5442_vm1, %v13717_v59  ;;  %5848 = vmatprep.mubr.f32.mxu0 %v15566_v28  ;;  %v3576_v38 = vadd.f32 %v3544_v7, %v13733_v30  ;;  %v3484_v3 = vmul.f32 %v13790_v35, %v13790_v35  ;;  %v3442_v40 = vmul.f32 0.5, %v13562_v27 }
 0x150   : > { %5931 = vmatprep.mubr.f32.mxu1 %v15566_v28  ;;  %v3691_v49 = vmul.f32 %v3659_v16, %v3435_v5  ;;  %v3578_v62 = vadd.f32 %v3546_v50, %v13741_v32  ;;  %v3486_v55 = vmul.f32 %v13795_v48, %v13795_v48  ;;  %v3693_v9 = vmul.f32 %v3661_v37, %v3437_v57 }
 0x151   : > { %v3696_v31 = vmul.f32 %v3664_v8, %v3440_v51  ;;  %v3603_v47 = vmul.f32 0.7978846, %v3571_v45  ;;  %v3511_v60 = vmul.f32 %v3479_v44, %v13779_v33  ;;  %v3698_v22 = vmul.f32 %v3666_v0, %v3442_v40 }
 0x152   : > { %11820 = vmatmul.mubr.msk.f32.vlgmr.msra.gmra.mrb[60].mxu0 %vm5442_vm1, %v13637_v24  ;;  %v3605_v58 = vmul.f32 0.7978846, %v3573_v46  ;;  %v3513_v27 = vmul.f32 %v3481_v63, %v13786_v34  ;;  %v3608_v29 = vmul.f32 0.7978846, %v3576_v38  ;;  %v3516_v7 = vmul.f32 %v3484_v3, %v13790_v35 }
 0x153   : > { %11823 = vmatmul.mubr.msk.f32.vlgmr.msra.gmra.mrb[60].mxu1 %vm5442_vm1, %v13637_v24  ;;  %5951 = vmatpush1.msra.mxu0 %v3691_v49  ;;  %v12736_v10 = vpop.eup %12735  ;;  %v3610_v50 = vmul.f32 0.7978846, %v3578_v62  ;;  %v3518_v37 = vmul.f32 %v3486_v55, %v13795_v48  ;;  %12743 = vtanh.f32 %v3603_v47  ;;  %v3543_v5 = vmul.f32 0.044715, %v3511_v60 }
 0x154   : > { %6034 = vmatpush1.msra.mxu1 %v3693_v9  ;;  %6116 = vmatprep.subr.mxu0 %v3696_v31  ;;  %v12738_v16 = vpop.eup %12737  ;;  %v13835_v45 = vadd.f32 %v13438_v20, %v13446_v42  ;;  %v13842_v0 = vadd.f32 %v13343_v13, %v13825_v26  ;;  %12745 = vtanh.f32 %v3605_v58  ;;  %v3545_v57 = vmul.f32 0.044715, %v3513_v27 }
 0x155   : > { %6199 = vmatprep.subr.mxu1 %v3698_v22  ;;  %5854 = vmatprep.mubr.f32.mxu0 %v15566_v28  ;;  %v12740_v8 = vpop.eup %12739  ;;  %v13846_v46 = vadd.f32 %v13440_v36, %v13446_v42  ;;  %v13851_v20 = vadd.f32 %v13345_v14, %v13825_v26  ;;  %v3548_v63 = vmul.f32 0.044715, %v3516_v7  ;;  %v3663_v51 = vadd.f32 1.0, %v12736_v10 }
 0x156   : > { %5937 = vmatprep.mubr.f32.mxu1 %v15566_v28  ;;  %11821 = vmatmul.mubr.msk.f32.gmra.mrb[62].mxu0 %vm5442_vm1, %v13680_v56  ;;  %12747 = vtanh.f32 %v3608_v29  ;;  %v3550_v38 = vmul.f32 0.044715, %v3518_v37  ;;  %v3665_v13 = vadd.f32 1.0, %v12738_v16  ;;  %v3668_v3 = vadd.f32 1.0, %v12740_v8 }
 0x157   : > { %11824 = vmatmul.mubr.msk.f32.gmra.mrb[62].mxu1 %vm5442_vm1, %v13680_v56  ;;  %5860 = vmatprep.mubr.f32.mxu0 %v15566_v28  ;;  %v12742_v44 = vpop.eup %12741  ;;  %12749 = vtanh.f32 %v3610_v50  ;;  %v3439_v49 = vmul.f32 0.5, %v13573_v41  ;;  %v3575_v42 = vadd.f32 %v3543_v5, %v13779_v33  ;;  %v3483_v36 = vmul.f32 %v13835_v45, %v13835_v45 }
 0x158   : > { %5943 = vmatprep.mubr.f32.mxu1 %v15566_v28  ;;  %v3670_v14 = vadd.f32 1.0, %v12742_v44  ;;  %v3441_v40 = vmul.f32 0.5, %v13583_v21  ;;  %v3577_v62 = vadd.f32 %v3545_v57, %v13786_v34  ;;  %v3485_v55 = vmul.f32 %v13846_v46, %v13846_v46 }
 0x159   : > { %v3444_v41 = vmul.f32 0.5, %v13610_v17  ;;  %v2020_v9 = vmul.f32 %v13842_v0, %v13842_v0  ;;  %v3580_v31 = vadd.f32 %v3548_v63, %v13790_v35  ;;  %v3695_v47 = vmul.f32 %v3663_v51, %v3439_v49 }
 0x15a   : > { %11822 = vmatmul.mubr.msk.f32.gmra.mrb[64].mxu0 %vm5442_vm1, %v13717_v59  ;;  %v3446_v60 = vmul.f32 0.5, %v13618_v61  ;;  %v2022_v21 = vmul.f32 %v13851_v20, %v13851_v20  ;;  %v3582_v22 = vadd.f32 %v3550_v38, %v13795_v48  ;;  %v3697_v58 = vmul.f32 %v3665_v13, %v3441_v40 }
 0x15b   : > { %11825 = vmatmul.mubr.msk.f32.gmra.mrb[64].mxu1 %vm5442_vm1, %v13717_v59  ;;  %6014 = vmatprep.mubr.f32.mxu0 %v15566_v28  ;;  %v3700_v27 = vmul.f32 %v3668_v3, %v3444_v41  ;;  %v3607_v10 = vmul.f32 0.7978846, %v3575_v42  ;;  %v3515_v17 = vmul.f32 %v3483_v36, %v13835_v45  ;;  %v13882_v61 = vadd.f32 %v13339_v11, %v13825_v26  ;;  %v15572_v42 = vld [vmem:[#allocation4_spill] sm:$0xff] }
 0x15c   : > { %6097 = vmatprep.mubr.f32.mxu1 %v15566_v28  ;;  %v3702_v29 = vmul.f32 %v3670_v14, %v3446_v60  ;;  %v3609_v7 = vmul.f32 0.7978846, %v3577_v62  ;;  %v3517_v16 = vmul.f32 %v3485_v55, %v13846_v46  ;;  %v2052_v37 = vmul.f32 %v2020_v9, %v13842_v0 }
 0x15d   : > { %v12744_v50 = vpop.eup %12743  ;;  %v3612_v8 = vmul.f32 0.7978846, %v3580_v31  ;;  %v2054_v44 = vmul.f32 %v2022_v21, %v13851_v20  ;;  %v3614_v57 = vmul.f32 0.7978846, %v3582_v22  ;;  %v13893_v63 = vadd.f32 %v13341_v12, %v13825_v26 }
 0x15e   : > { %11826 = vmatmul.mubr.msk.f32.vlgmr.msra.gmra.mrb[66].mxu0 %vm5442_vm1, %v13637_v24  ;;  %v12746_v5 = vpop.eup %12745  ;;  %12751 = vtanh.f32 %v3607_v10  ;;  %v3547_v51 = vmul.f32 0.044715, %v3515_v17  ;;  %v2019_v13 = vmul.f32 %v13882_v61, %v13882_v61  ;;  %v13902_v3 = vadd.f32 %v13351_v18, %v13825_v26 }
 0x15f   : > { %11829 = vmatmul.mubr.msk.f32.vlgmr.msra.gmra.mrb[66].mxu1 %vm5442_vm1, %v13637_v24  ;;  %6117 = vmatpush1.msra.mxu0 %v3695_v47  ;;  %12753 = vtanh.f32 %v3609_v7  ;;  %v3549_v49 = vmul.f32 0.044715, %v3517_v16  ;;  %v2084_v12 = vmul.f32 0.044715, %v2052_v37  ;;  %v13907_v36 = vadd.f32 %v15572_v42, %v13825_v26 }
 0x160   : > { %6200 = vmatpush1.msra.mxu1 %v3697_v58  ;;  %6282 = vmatprep.subr.mxu0 %v3700_v27  ;;  %v12748_v11 = vpop.eup %12747  ;;  %v3667_v14 = vadd.f32 1.0, %v12744_v50  ;;  %12755 = vtanh.f32 %v3612_v8  ;;  %v2086_v40 = vmul.f32 0.044715, %v2054_v44  ;;  %v3669_v62 = vadd.f32 1.0, %v12746_v5 }
 0x161   : > { %6365 = vmatprep.subr.mxu1 %v3702_v29  ;;  %6020 = vmatprep.mubr.f32.mxu0 %v15566_v28  ;;  %v12750_v38 = vpop.eup %12749  ;;  %v3672_v55 = vadd.f32 1.0, %v12748_v11  ;;  %12757 = vtanh.f32 %v3614_v57  ;;  %v2021_v18 = vmul.f32 %v13893_v63, %v13893_v63  ;;  %v3443_v41 = vmul.f32 0.5, %v13710_v53 }
 0x162   : > { %6103 = vmatprep.mubr.f32.mxu1 %v15566_v28  ;;  %11827 = vmatmul.mubr.msk.f32.gmra.mrb[68].mxu0 %vm5442_vm1, %v13680_v56  ;;  %v3579_v9 = vadd.f32 %v3547_v51, %v13835_v45  ;;  %v3674_v31 = vadd.f32 1.0, %v12750_v38  ;;  %v2024_v47 = vmul.f32 %v13902_v3, %v13902_v3  ;;  %v3445_v60 = vmul.f32 0.5, %v13724_v6 }
 0x163   : > { %11830 = vmatmul.mubr.msk.f32.gmra.mrb[68].mxu1 %vm5442_vm1, %v13680_v56  ;;  %6026 = vmatprep.mubr.f32.mxu0 %v15566_v28  ;;  %v3581_v21 = vadd.f32 %v3549_v49, %v13846_v46  ;;  %v3448_v22 = vmul.f32 0.5, %v13733_v30  ;;  %v2116_v53 = vadd.f32 %v2084_v12, %v13842_v0  ;;  %v2026_v58 = vmul.f32 %v13907_v36, %v13907_v36 }
 0x164   : > { %6109 = vmatprep.mubr.f32.mxu1 %v15566_v28  ;;  %v3699_v27 = vmul.f32 %v3667_v14, %v3443_v41  ;;  %v3450_v10 = vmul.f32 0.5, %v13741_v32  ;;  %v2118_v17 = vadd.f32 %v2086_v40, %v13851_v20  ;;  %v3701_v6 = vmul.f32 %v3669_v62, %v3445_v60  ;;  %v15574_v14 = vld [vmem:[#allocation3_spill] sm:$0xff] }
 0x165   : > { %v3704_v29 = vmul.f32 %v3672_v55, %v3448_v22  ;;  %v2051_v7 = vmul.f32 %v2019_v13, %v13882_v61  ;;  %v3611_v16 = vmul.f32 0.7978846, %v3579_v9  ;;  %v2053_v50 = vmul.f32 %v2021_v18, %v13893_v63  ;;  %v15573_v13 = vld [vmem:[#allocation2_spill] sm:$0xff]  ;;  %v15575_v18 = vld [vmem:[#allocation7_spill] sm:$0xff] }
 0x166   : > { %11828 = vmatmul.mubr.msk.f32.gmra.mrb[70].mxu0 %vm5442_vm1, %v13717_v59  ;;  %v3706_v30 = vmul.f32 %v3674_v31, %v3450_v10  ;;  %v2056_v37 = vmul.f32 %v2024_v47, %v13902_v3  ;;  %v3613_v32 = vmul.f32 0.7978846, %v3581_v21  ;;  %v2148_v5 = vmul.f32 0.7978846, %v2116_v53  ;;  %v15576_v31 = vld [vmem:[#allocation8_spill] sm:$0xff] }
 0x167   : > { %11831 = vmatmul.mubr.msk.f32.gmra.mrb[70].mxu1 %vm5442_vm1, %v13717_v59  ;;  %6180 = vmatprep.mubr.f32.mxu0 %v15566_v28  ;;  %v2058_v44 = vmul.f32 %v2026_v58, %v13907_v36  ;;  %v2150_v11 = vmul.f32 0.7978846, %v2118_v17  ;;  %v2083_v38 = vmul.f32 0.044715, %v2051_v7  ;;  %v13943_v49 = vadd.f32 %v15573_v13, %v13825_v26 }
 0x168   : > { %6263 = vmatprep.mubr.f32.mxu1 %v15566_v28  ;;  %v12752_v8 = vpop.eup %12751  ;;  %12759 = vtanh.f32 %v3611_v16  ;;  %v2085_v42 = vmul.f32 0.044715, %v2053_v50  ;;  %v13950_v40 = vadd.f32 %v15574_v14, %v13825_v26  ;;  %v2088_v62 = vmul.f32 0.044715, %v2056_v37 }
 0x169   : > { %v12754_v57 = vpop.eup %12753  ;;  %12761 = vtanh.f32 %v3613_v32  ;;  %v2090_v55 = vmul.f32 0.044715, %v2058_v44  ;;  %v13955_v41 = vadd.f32 %v15575_v18, %v13825_v26  ;;  %v3671_v9 = vadd.f32 1.0, %v12752_v8 }
 0x16a   : > { %11832 = vmatmul.mubr.msk.f32.vlgmr.msra.gmra.mrb[72].mxu0 %vm5442_vm1, %v13637_v24  ;;  %v12756_v51 = vpop.eup %12755  ;;  %12763 = vtanh.f32 %v2148_v5  ;;  %v13959_v47 = vadd.f32 %v15576_v31, %v13825_v26  ;;  %v3673_v60 = vadd.f32 1.0, %v12754_v57  ;;  %v2115_v22 = vadd.f32 %v2083_v38, %v13882_v61 }
 0x16b   : > { %11835 = vmatmul.mubr.msk.f32.vlgmr.msra.gmra.mrb[72].mxu1 %vm5442_vm1, %v13637_v24  ;;  %6283 = vmatpush1.msra.mxu0 %v3699_v27  ;;  %v12758_v12 = vpop.eup %12757  ;;  %v3676_v21 = vadd.f32 1.0, %v12756_v51  ;;  %12765 = vtanh.f32 %v2150_v11  ;;  %v2023_v53 = vmul.f32 %v13943_v49, %v13943_v49  ;;  %v3447_v58 = vmul.f32 0.5, %v13779_v33 }
 0x16c   : > { %6366 = vmatpush1.msra.mxu1 %v3701_v6  ;;  %6448 = vmatprep.subr.mxu0 %v3704_v29  ;;  %v3678_v27 = vadd.f32 1.0, %v12758_v12  ;;  %v2117_v10 = vadd.f32 %v2085_v42, %v13893_v63  ;;  %v2025_v17 = vmul.f32 %v13950_v40, %v13950_v40  ;;  %v3449_v6 = vmul.f32 0.5, %v13786_v34 }
 0x16d   : > { %6531 = vmatprep.subr.mxu1 %v3706_v30  ;;  %6186 = vmatprep.mubr.f32.mxu0 %v15566_v28  ;;  %v3452_v29 = vmul.f32 0.5, %v13790_v35  ;;  %v2120_v7 = vadd.f32 %v2088_v62, %v13902_v3  ;;  %v2028_v33 = vmul.f32 %v13955_v41, %v13955_v41  ;;  %v3703_v16 = vmul.f32 %v3671_v9, %v3447_v58  ;;  %v15577_v62 = vld [vmem:[#allocation5_spill] sm:$0xff] }
 0x16e   : > { %6269 = vmatprep.mubr.f32.mxu1 %v15566_v28  ;;  %11833 = vmatmul.mubr.msk.f32.gmra.mrb[74].mxu0 %vm5442_vm1, %v13680_v56  ;;  %v3454_v30 = vmul.f32 0.5, %v13795_v48  ;;  %v2122_v50 = vadd.f32 %v2090_v55, %v13907_v36  ;;  %v2030_v37 = vmul.f32 %v13959_v47, %v13959_v47  ;;  %v3705_v34 = vmul.f32 %v3673_v60, %v3449_v6  ;;  %v15578_v60 = vld [vmem:[#allocation6_spill] sm:$0xff] }
 0x16f   : > { %11836 = vmatmul.mubr.msk.f32.gmra.mrb[74].mxu1 %vm5442_vm1, %v13680_v56  ;;  %6192 = vmatprep.mubr.f32.mxu0 %v15566_v28  ;;  %v3708_v32 = vmul.f32 %v3676_v21, %v3452_v29  ;;  %v2147_v8 = vmul.f32 0.7978846, %v2115_v22  ;;  %v2055_v35 = vmul.f32 %v2023_v53, %v13943_v49  ;;  %v2149_v44 = vmul.f32 0.7978846, %v2117_v10  ;;  %v15579_v22 = vld [vmem:[#allocation11_spill] sm:$0xff] }
 0x170   : > { %6275 = vmatprep.mubr.f32.mxu1 %v15566_v28  ;;  %v3710_v5 = vmul.f32 %v3678_v27, %v3454_v30  ;;  %v2057_v48 = vmul.f32 %v2025_v17, %v13950_v40  ;;  %v2152_v11 = vmul.f32 0.7978846, %v2120_v7  ;;  %v2060_v51 = vmul.f32 %v2028_v33, %v13955_v41  ;;  %v15580_v27 = vld [vmem:[#allocation12_spill] sm:$0xff] }
 0x171   : > { %v2154_v13 = vmul.f32 0.7978846, %v2122_v50  ;;  %v2062_v12 = vmul.f32 %v2030_v37, %v13959_v47  ;;  %12767 = vtanh.f32 %v2147_v8  ;;  %v2087_v14 = vmul.f32 0.044715, %v2055_v35 }
 0x172   : > { %11834 = vmatmul.mubr.msk.f32.gmra.mrb[76].mxu0 %vm5442_vm1, %v13717_v59  ;;  %v12760_v57 = vpop.eup %12759  ;;  %v13997_v55 = vadd.f32 %v15577_v62, %v13825_v26  ;;  %v1988_v18 = vmul.f32 0.5, %v13842_v0  ;;  %12769 = vtanh.f32 %v2149_v44  ;;  %v2089_v31 = vmul.f32 0.044715, %v2057_v48 }
 0x173   : > { %11837 = vmatmul.mubr.msk.f32.gmra.mrb[76].mxu1 %vm5442_vm1, %v13717_v59  ;;  %6346 = vmatprep.mubr.f32.mxu0 %v15566_v28  ;;  %v12762_v38 = vpop.eup %12761  ;;  %v14005_v21 = vadd.f32 %v15578_v60, %v13825_v26  ;;  %v14009_v53 = vadd.f32 %v15579_v22, %v13825_v26  ;;  %v2092_v58 = vmul.f32 0.044715, %v2060_v51  ;;  %v14014_v10 = vadd.f32 %v15580_v27, %v13825_v26  ;;  %v15581_v60 = vld [vmem:[#allocation9_spill] sm:$0xff] }
 0x174   : > { %6429 = vmatprep.mubr.f32.mxu1 %v15566_v28  ;;  %v12764_v42 = vpop.eup %12763  ;;  %v3675_v17 = vadd.f32 1.0, %v12760_v57  ;;  %12771 = vtanh.f32 %v2152_v11  ;;  %v2094_v0 = vmul.f32 0.044715, %v2062_v12  ;;  %v3677_v6 = vadd.f32 1.0, %v12762_v38 }
 0x175   : > { %v12766_v9 = vpop.eup %12765  ;;  %v2212_v29 = vadd.f32 1.0, %v12764_v42  ;;  %12773 = vtanh.f32 %v2154_v13  ;;  %v2119_v7 = vadd.f32 %v2087_v14, %v13943_v49  ;;  %v2027_v33 = vmul.f32 %v13997_v55, %v13997_v55 }
 0x176   : > { %11838 = vmatmul.mubr.msk.f32.vlgmr.msra.gmra.mrb[78].mxu0 %vm5442_vm1, %v13637_v24  ;;  %v2214_v30 = vadd.f32 1.0, %v12766_v9  ;;  %v2121_v50 = vadd.f32 %v2089_v31, %v13950_v40  ;;  %v2029_v37 = vmul.f32 %v14005_v21, %v14005_v21  ;;  %v2034_v8 = vmul.f32 %v14014_v10, %v14014_v10 }
 0x177   : > { %11841 = vmatmul.mubr.msk.f32.vlgmr.msra.gmra.mrb[78].mxu1 %vm5442_vm1, %v13637_v24  ;;  %6449 = vmatpush1.msra.mxu0 %v3703_v16  ;;  %v3451_v16 = vmul.f32 0.5, %v13835_v45  ;;  %v2124_v45 = vadd.f32 %v2092_v58, %v13955_v41  ;;  %v2126_v44 = vadd.f32 %v2094_v0, %v13959_v47  ;;  %v2244_v57 = vmul.f32 %v2212_v29, %v1988_v18 }
 0x178   : > { %6532 = vmatpush1.msra.mxu1 %v3705_v34  ;;  %6614 = vmatprep.subr.mxu0 %v3708_v32  ;;  %v2032_v34 = vmul.f32 %v14009_v53, %v14009_v53  ;;  %v3453_v32 = vmul.f32 0.5, %v13846_v46  ;;  %v2151_v11 = vmul.f32 0.7978846, %v2119_v7  ;;  %v2059_v46 = vmul.f32 %v2027_v33, %v13997_v55  ;;  %v15583_v7 = vld [vmem:[#allocation15_spill] sm:$0xff] }
 0x179   : > { %6697 = vmatprep.subr.mxu1 %v3710_v5  ;;  %6352 = vmatprep.mubr.f32.mxu0 %v15566_v28  ;;  %v3707_v35 = vmul.f32 %v3675_v17, %v3451_v16  ;;  %v1990_v5 = vmul.f32 0.5, %v13851_v20  ;;  %v2153_v38 = vmul.f32 0.7978846, %v2121_v50  ;;  %v2061_v13 = vmul.f32 %v2029_v37, %v14005_v21  ;;  %v15582_v17 = vld [vmem:[#allocation10_spill] sm:$0xff] }
 0x17a   : > { %6435 = vmatprep.mubr.f32.mxu1 %v15566_v28  ;;  %11839 = vmatmul.mubr.msk.f32.gmra.mrb[80].mxu0 %vm5442_vm1, %v13680_v56  ;;  %v3709_v48 = vmul.f32 %v3677_v6, %v3453_v32  ;;  %v2064_v20 = vmul.f32 %v2032_v34, %v14009_v53  ;;  %v2156_v42 = vmul.f32 0.7978846, %v2124_v45  ;;  %v2066_v14 = vmul.f32 %v2034_v8, %v14014_v10 }
 0x17b   : > { %11842 = vmatmul.mubr.msk.f32.gmra.mrb[80].mxu1 %vm5442_vm1, %v13680_v56  ;;  %6358 = vmatprep.mubr.f32.mxu0 %v15566_v28  ;;  %v2246_v51 = vmul.f32 %v2214_v30, %v1990_v5  ;;  %v12768_v12 = vpop.eup %12767  ;;  %v2158_v18 = vmul.f32 0.7978846, %v2126_v44  ;;  %12775 = vtanh.f32 %v2151_v11  ;;  %v2091_v31 = vmul.f32 0.044715, %v2059_v46  ;;  %v15584_v30 = vld [vmem:[#allocation16_spill] sm:$0xff] }
 0x17c   : > { %6441 = vmatprep.mubr.f32.mxu1 %v15566_v28  ;;  %v12770_v62 = vpop.eup %12769  ;;  %v14051_v22 = vadd.f32 %v15581_v60, %v13825_v26  ;;  %12777 = vtanh.f32 %v2153_v38  ;;  %v2093_v27 = vmul.f32 0.044715, %v2061_v13  ;;  %v14058_v0 = vadd.f32 %v15582_v17, %v13825_v26 }
 0x17d   : > { %v2096_v6 = vmul.f32 0.044715, %v2064_v20  ;;  %v2098_v29 = vmul.f32 0.044715, %v2066_v14  ;;  %v14063_v33 = vadd.f32 %v15583_v7, %v13825_v26  ;;  %v2211_v16 = vadd.f32 1.0, %v12768_v12 }
 0x17e   : > { %11840 = vmatmul.mubr.msk.f32.gmra.mrb[82].mxu0 %vm5442_vm1, %v13717_v59  ;;  %v12772_v9 = vpop.eup %12771  ;;  %12779 = vtanh.f32 %v2156_v42  ;;  %v14067_v50 = vadd.f32 %v15584_v30, %v13825_v26  ;;  %v2213_v37 = vadd.f32 1.0, %v12770_v62  ;;  %v1987_v32 = vmul.f32 0.5, %v13882_v61  ;;  %v15586_v30 = vld [vmem:[#allocation14_spill] sm:$0xff] }
 0x17f   : > { %11843 = vmatmul.mubr.msk.f32.gmra.mrb[82].mxu1 %vm5442_vm1, %v13717_v59  ;;  %6512 = vmatprep.mubr.f32.mxu0 %v15566_v28  ;;  %v12774_v58 = vpop.eup %12773  ;;  %v2216_v34 = vadd.f32 1.0, %v12772_v9  ;;  %12781 = vtanh.f32 %v2158_v18  ;;  %v2123_v45 = vadd.f32 %v2091_v31, %v13997_v55  ;;  %v2031_v8 = vmul.f32 %v14051_v22, %v14051_v22 }
 0x180   : > { %6595 = vmatprep.mubr.f32.mxu1 %v15566_v28  ;;  %v1989_v5 = vmul.f32 0.5, %v13893_v63  ;;  %v2125_v44 = vadd.f32 %v2093_v27, %v14005_v21  ;;  %v1992_v61 = vmul.f32 0.5, %v13902_v3  ;;  %v2036_v11 = vmul.f32 %v14063_v33, %v14063_v33 }
 0x181   : > { %v2243_v46 = vmul.f32 %v2211_v16, %v1987_v32  ;;  %v2130_v38 = vadd.f32 %v2098_v29, %v14014_v10  ;;  %v2038_v63 = vmul.f32 %v14067_v50, %v14067_v50  ;;  %v2155_v12 = vmul.f32 0.7978846, %v2123_v45  ;;  %v15588_v45 = vld [vmem:[#allocation20_spill] sm:$0xff] }
 0x182   : > { %11844 = vmatmul.mubr.msk.f32.vlgmr.msra.gmra.mrb[84].mxu0 %vm5442_vm1, %v13637_v24  ;;  %v2245_v13 = vmul.f32 %v2213_v37, %v1989_v5  ;;  %v2248_v20 = vmul.f32 %v2216_v34, %v1992_v61  ;;  %v2063_v3 = vmul.f32 %v2031_v8, %v14051_v22  ;;  %v2157_v14 = vmul.f32 0.7978846, %v2125_v44 }
 0x183   : > { %11847 = vmatmul.mubr.msk.f32.vlgmr.msra.gmra.mrb[84].mxu1 %vm5442_vm1, %v13637_v24  ;;  %6615 = vmatpush1.msra.mxu0 %v3707_v35  ;;  %v2218_v35 = vadd.f32 1.0, %v12774_v58  ;;  %v2068_v9 = vmul.f32 %v2036_v11, %v14063_v33  ;;  %v2162_v60 = vmul.f32 0.7978846, %v2130_v38  ;;  %v2070_v58 = vmul.f32 %v2038_v63, %v14067_v50  ;;  %v14136_v11 = vld [vmem:[%s15517_s6] sm:$0xff] }
 0x184   : > { %6698 = vmatpush1.msra.mxu1 %v3709_v48  ;;  %6789 = vmatprep.subr.mxu0 %v2244_v57  ;;  %v2033_v48 = vmul.f32 %v14058_v0, %v14058_v0  ;;  %v2128_v57 = vadd.f32 %v2096_v6, %v14009_v53  ;;  %v1991_v27 = vmul.f32 0.5, %v13943_v49  ;;  %12783 = vtanh.f32 %v2155_v12  ;;  %v15585_v6 = vld [vmem:[#allocation13_spill] sm:$0xff]  ;;  %v15587_v49 = vld [vmem:[#allocation19_spill] sm:$0xff] }
 0x185   : > { %6872 = vmatprep.subr.mxu1 %v2246_v51  ;;  %6518 = vmatprep.mubr.f32.mxu0 %v15566_v28  ;;  %v1994_v51 = vmul.f32 0.5, %v13907_v36  ;;  %v12776_v62 = vpop.eup %12775  ;;  %v2095_v17 = vmul.f32 0.044715, %v2063_v3  ;;  %v14106_v29 = vadd.f32 %v15585_v6, %v13825_v26  ;;  %12785 = vtanh.f32 %v2157_v14 }
 0x186   : > { %6601 = vmatprep.mubr.f32.mxu1 %v15566_v28  ;;  %11845 = vmatmul.mubr.msk.f32.gmra.mrb[86].mxu0 %vm5442_vm1, %v13680_v56  ;;  %v2065_v36 = vmul.f32 %v2033_v48, %v14058_v0  ;;  %v2160_v18 = vmul.f32 0.7978846, %v2128_v57  ;;  %v12778_v31 = vpop.eup %12777  ;;  %v14113_v37 = vadd.f32 %v15586_v30, %v13825_v26  ;;  %v14117_v34 = vadd.f32 %v15587_v49, %v13825_v26  ;;  %v14177_v49 = vld [vmem:[%s15517_s6 + $0x10] sm:$0xf] }
 0x187   : > { %11848 = vmatmul.mubr.msk.f32.gmra.mrb[86].mxu1 %vm5442_vm1, %v13680_v56  ;;  %6524 = vmatprep.mubr.f32.mxu0 %v15566_v28  ;;  %v2250_v42 = vmul.f32 %v2218_v35, %v1994_v51  ;;  %v2100_v32 = vmul.f32 0.044715, %v2068_v9  ;;  %v14122_v8 = vadd.f32 %v15588_v45, %v13825_v26  ;;  %v2102_v35 = vmul.f32 0.044715, %v2070_v58 }
 0x188   : > { %6607 = vmatprep.mubr.f32.mxu1 %v15566_v28  ;;  %v2097_v16 = vmul.f32 0.044715, %v2065_v36  ;;  %12787 = vtanh.f32 %v2160_v18  ;;  %v2217_v5 = vadd.f32 1.0, %v12778_v31  ;;  %v1993_v48 = vmul.f32 0.5, %v13950_v40  ;;  %v14158_v18 = vld [vmem:[%s15517_s6 + $0x8] sm:$0xff] }
 0x189   : > { %12789 = vtanh.f32 %v2162_v60  ;;  %v2127_v61 = vadd.f32 %v2095_v17, %v14051_v22  ;;  %v2035_v57 = vmul.f32 %v14106_v29, %v14106_v29  ;;  %v2037_v40 = vmul.f32 %v14113_v37, %v14113_v37 }
 0x18a   : > { %11846 = vmatmul.mubr.msk.f32.gmra.mrb[88].mxu0 %vm5442_vm1, %v13717_v59  ;;  %v2129_v51 = vadd.f32 %v2097_v16, %v14058_v0  ;;  %v2040_v38 = vmul.f32 %v14117_v34, %v14117_v34  ;;  %v2132_v63 = vadd.f32 %v2100_v32, %v14063_v33  ;;  %v1998_v12 = vmul.f32 0.5, %v13959_v47  ;;  %v15589_v16 = vld [vmem:[#allocation17_spill] sm:$0xff] }
 0x18b   : > { %11849 = vmatmul.mubr.msk.f32.gmra.mrb[88].mxu1 %vm5442_vm1, %v13717_v59  ;;  %6678 = vmatprep.mubr.f32.mxu0 %v15566_v28  ;;  %v2134_v3 = vadd.f32 %v2102_v35, %v14067_v50  ;;  %v2159_v36 = vmul.f32 0.7978846, %v2127_v61  ;;  %v2069_v9 = vmul.f32 %v2037_v40, %v14113_v37  ;;  %v14169_v30 = vadd.f32 %v15589_v16, %v13825_v26 }
 0x18c   : > { %6761 = vmatprep.mubr.f32.mxu1 %v15566_v28  ;;  %v2161_v47 = vmul.f32 0.7978846, %v2129_v51  ;;  %v2072_v31 = vmul.f32 %v2040_v38, %v14117_v34  ;;  %v2164_v58 = vmul.f32 0.7978846, %v2132_v63 }
 0x18d   : > { %v2166_v17 = vmul.f32 0.7978846, %v2134_v3  ;;  %12791 = vtanh.f32 %v2159_v36  ;;  %v2101_v45 = vmul.f32 0.044715, %v2069_v9 }
 0x18e   : > { %11850 = vmatmul.mubr.msk.f32.vlgmr.msra.gmra.mrb[90].mxu0 %vm5442_vm1, %v13637_v24  ;;  %12793 = vtanh.f32 %v2161_v47 }
 0x18f   : > { %11853 = vmatmul.mubr.msk.f32.vlgmr.msra.gmra.mrb[90].mxu1 %vm5442_vm1, %v13637_v24  ;;  %6790 = vmatpush1.msra.mxu0 %v2243_v46  ;;  %v12780_v24 = vpop.eup %12779  ;;  %12795 = vtanh.f32 %v2164_v58  ;;  %v2133_v3 = vadd.f32 %v2101_v45, %v14113_v37 }
 0x190   : > { %6873 = vmatpush1.msra.mxu1 %v2245_v13  ;;  %6955 = vmatprep.subr.mxu0 %v2248_v20  ;;  %v12782_v7 = vpop.eup %12781  ;;  %v2220_v44 = vadd.f32 1.0, %v12780_v24  ;;  %v2042_v13 = vmul.f32 %v14122_v8, %v14122_v8  ;;  %12797 = vtanh.f32 %v2166_v17 }
 0x191   : > { %7038 = vmatprep.subr.mxu1 %v2250_v42  ;;  %6684 = vmatprep.mubr.f32.mxu0 %v15566_v28  ;;  %v2222_v46 = vadd.f32 1.0, %v12782_v7  ;;  %v2249_v42 = vmul.f32 %v2217_v5, %v1993_v48  ;;  %v12784_v60 = vpop.eup %12783  ;;  %v2104_v5 = vmul.f32 0.044715, %v2072_v31  ;;  %v15591_v48 = vld [vmem:[#allocation23_spill] sm:$0xff] }
 0x192   : > { %6767 = vmatprep.mubr.f32.mxu1 %v15566_v28  ;;  %11851 = vmatmul.mubr.msk.f32.gmra.mrb[92].mxu0 %vm5442_vm1, %v13680_v56  ;;  %v2074_v24 = vmul.f32 %v2042_v13, %v14122_v8  ;;  %v14186_v61 = vadd.f32 %v15591_v48, %v13825_v26  ;;  %v2039_v13 = vmul.f32 %v14169_v30, %v14169_v30 }
 0x193   : > { %11854 = vmatmul.mubr.msk.f32.gmra.mrb[92].mxu1 %vm5442_vm1, %v13680_v56  ;;  %6690 = vmatprep.mubr.f32.mxu0 %v15566_v28  ;;  %v2215_v56 = vadd.f32 1.0, %v12776_v62  ;;  %v2067_v62 = vmul.f32 %v2035_v57, %v14106_v29  ;;  %v2219_v57 = vadd.f32 1.0, %v12784_v60 }
 0x194   : > { %6773 = vmatprep.mubr.f32.mxu1 %v15566_v28  ;;  %v2044_v36 = vmul.f32 %v14186_v61, %v14186_v61 }
 0x195   : > { %v2247_v20 = vmul.f32 %v2215_v56, %v1991_v27  ;;  %v12786_v27 = vpop.eup %12785  ;;  %v2099_v7 = vmul.f32 0.044715, %v2067_v62  ;;  %v15590_v56 = vld [vmem:[#allocation18_spill] sm:$0xff] }
 0x196   : > { %11852 = vmatmul.mubr.msk.f32.gmra.mrb[94].mxu0 %vm5442_vm1, %v13717_v59  ;;  %v12788_v6 = vpop.eup %12787  ;;  %v14181_v35 = vadd.f32 %v15590_v56, %v13825_v26  ;;  %v2221_v40 = vadd.f32 1.0, %v12786_v27 }
 0x197   : > { %11855 = vmatmul.mubr.msk.f32.gmra.mrb[94].mxu1 %vm5442_vm1, %v13717_v59  ;;  %6853 = vmatprep.mubr.f32.mxu0 %v15566_v28  ;;  %v1996_v59 = vmul.f32 0.5, %v13955_v41  ;;  %v2254_v41 = vmul.f32 %v2222_v46, %v1998_v12  ;;  %v12790_v32 = vpop.eup %12789  ;;  %v15592_v46 = vld [vmem:[#allocation24_spill] sm:$0xff]  ;;  %v2224_v38 = vadd.f32 1.0, %v12788_v6  ;;  %v2131_v63 = vadd.f32 %v2099_v7, %v14106_v29 }
 0x198   : > { %6936 = vmatprep.mubr.f32.mxu1 %v15566_v28  ;;  %v14190_v51 = vadd.f32 %v15592_v46, %v13825_v26  ;;  %v1997_v12 = vmul.f32 0.5, %v14005_v21  ;;  %v12792_v27 = vpop.eup %12791  ;;  %v2076_v6 = vmul.f32 %v2044_v36, %v14186_v61  ;;  %v15594_v46 = vld [vmem:[#allocation22_spill] sm:$0xff] }
 0x199   : > { %v2252_v14 = vmul.f32 %v2220_v44, %v1996_v59  ;;  %v2106_v44 = vmul.f32 0.044715, %v2074_v24  ;;  %v1995_v59 = vmul.f32 0.5, %v13997_v55  ;;  %v2000_v55 = vmul.f32 0.5, %v14009_v53  ;;  %v12794_v7 = vpop.eup %12793 }
 0x19a   : > { %11856 = vmatmul.mubr.msk.f32.vlgmr.msra.gmra.mrb[48].mxu0 %vm5442_vm1, %v14136_v11  ;;  %v2046_v21 = vmul.f32 %v14190_v51, %v14190_v51  ;;  %v2253_v9 = vmul.f32 %v2221_v40, %v1997_v12  ;;  %v2163_v60 = vmul.f32 0.7978846, %v2131_v63  ;;  %v2071_v53 = vmul.f32 %v2039_v13, %v14169_v30  ;;  %v12796_v45 = vpop.eup %12795  ;;  %v15596_v13 = vld [vmem:[#allocation28_spill] sm:$0xff] }
 0x19b   : > { %11859 = vmatmul.mubr.msk.f32.vlgmr.msra.gmra.mrb[48].mxu1 %vm5442_vm1, %v14136_v11  ;;  %6956 = vmatpush1.msra.mxu0 %v2247_v20  ;;  %v2226_v20 = vadd.f32 1.0, %v12790_v32  ;;  %v2251_v62 = vmul.f32 %v2219_v57, %v1995_v59  ;;  %v2138_v47 = vadd.f32 %v2106_v44, %v14122_v8  ;;  %v2256_v31 = vmul.f32 %v2224_v38, %v2000_v55  ;;  %v12798_v48 = vpop.eup %12797  ;;  %v15595_v38 = vld [vmem:[#allocation27_spill] sm:$0xff] }
 0x19c   : > { %7039 = vmatpush1.msra.mxu1 %v2249_v42  ;;  %7121 = vmatprep.subr.mxu0 %v2252_v14  ;;  %v2041_v42 = vmul.f32 %v14181_v35, %v14181_v35  ;;  %v2136_v14 = vadd.f32 %v2104_v5, %v14117_v34  ;;  %v2165_v24 = vmul.f32 0.7978846, %v2133_v3  ;;  %v2078_v32 = vmul.f32 %v2046_v21, %v14190_v51  ;;  %v15593_v5 = vld [vmem:[#allocation21_spill] sm:$0xff] }
 0x19d   : > { %7204 = vmatprep.subr.mxu1 %v2254_v41  ;;  %6859 = vmatprep.mubr.f32.mxu0 %v15566_v28  ;;  %v2002_v41 = vmul.f32 0.5, %v14014_v10  ;;  %v2170_v16 = vmul.f32 0.7978846, %v2138_v47  ;;  %12799 = vtanh.f32 %v2163_v60  ;;  %v2103_v56 = vmul.f32 0.044715, %v2071_v53 }
 0x19e   : > { %6942 = vmatprep.mubr.f32.mxu1 %v15566_v28  ;;  %11857 = vmatmul.mubr.msk.f32.gmra.mrb[50].mxu0 %vm5442_vm1, %v14158_v18  ;;  %v2073_v10 = vmul.f32 %v2041_v42, %v14181_v35  ;;  %v2168_v17 = vmul.f32 0.7978846, %v2136_v14  ;;  %v14228_v44 = vadd.f32 %v15593_v5, %v13825_v26  ;;  %12801 = vtanh.f32 %v2165_v24 }
 0x19f   : > { %11860 = vmatmul.mubr.msk.f32.gmra.mrb[50].mxu1 %vm5442_vm1, %v14158_v18  ;;  %6865 = vmatprep.mubr.f32.mxu0 %v15566_v28  ;;  %v2258_v58 = vmul.f32 %v2226_v20, %v2002_v41  ;;  %v14235_v40 = vadd.f32 %v15594_v46, %v13825_v26  ;;  %v14239_v59 = vadd.f32 %v15595_v38, %v13825_v26  ;;  %v2108_v63 = vmul.f32 0.044715, %v2076_v6 }
 0x1a0   : > { %6948 = vmatprep.mubr.f32.mxu1 %v15566_v28  ;;  %v2105_v57 = vmul.f32 0.044715, %v2073_v10  ;;  %v14244_v20 = vadd.f32 %v15596_v13, %v13825_v26  ;;  %v2223_v12 = vadd.f32 1.0, %v12792_v27  ;;  %12803 = vtanh.f32 %v2168_v17 }
 0x1a1   : > { %v2110_v3 = vmul.f32 0.044715, %v2078_v32  ;;  %v2225_v42 = vadd.f32 1.0, %v12794_v7  ;;  %v2228_v55 = vadd.f32 1.0, %v12796_v45  ;;  %12805 = vtanh.f32 %v2170_v16  ;;  %v14274_v16 = vpop.permute.xlu1 %3717 }
 0x1a2   : > { %11858 = vmatmul.mubr.msk.f32.gmra.mrb[52].mxu0 %vm5442_vm1, %v14177_v49  ;;  %v1999_v14 = vmul.f32 0.5, %v14051_v22  ;;  %v2135_v36 = vadd.f32 %v2103_v56, %v14169_v30  ;;  %v2230_v41 = vadd.f32 1.0, %v12798_v48  ;;  %v2001_v47 = vmul.f32 0.5, %v14058_v0  ;;  %v15597_v56 = vld [vmem:[#allocation25_spill] sm:$0xff] }
 0x1a3   : > { %11861 = vmatmul.mubr.msk.f32.gmra.mrb[52].mxu1 %vm5442_vm1, %v14177_v49  ;;  %7019 = vmatprep.mubr.f32.mxu0 %v15566_v28  ;;  %v2137_v21 = vadd.f32 %v2105_v57, %v14181_v35  ;;  %v2004_v22 = vmul.f32 0.5, %v14063_v33  ;;  %v2048_v60 = vmul.f32 %v14239_v59, %v14239_v59  ;;  %v2142_v24 = vadd.f32 %v2110_v3, %v14190_v51  ;;  %v15598_v3 = vld [vmem:[#allocation31_spill] sm:$0xff] }
 0x1a4   : > { %7102 = vmatprep.mubr.f32.mxu1 %v15566_v28  ;;  %v2255_v53 = vmul.f32 %v2223_v12, %v1999_v14  ;;  %v2050_v0 = vmul.f32 %v14244_v20, %v14244_v20  ;;  %v2257_v10 = vmul.f32 %v2225_v42, %v2001_v47  ;;  %v2167_v17 = vmul.f32 0.7978846, %v2135_v36  ;;  %v15599_v36 = vld [vmem:[#allocation26_spill] sm:$0xff] }
 0x1a5   : > { %v2260_v27 = vmul.f32 %v2228_v55, %v2004_v22  ;;  %v2169_v7 = vmul.f32 0.7978846, %v2137_v21  ;;  %v14278_v5 = vadd.f32 %v15597_v56, %v13825_v26  ;;  %v2080_v48 = vmul.f32 %v2048_v60, %v14239_v59 }
 0x1a6   : > { %11862 = vmatmul.mubr.msk.f32.vlgmr.msra.gmra.mrb[54].mxu0 %vm5442_vm1, %v14136_v11  ;;  %v2174_v46 = vmul.f32 0.7978846, %v2142_v24  ;;  %v2082_v38 = vmul.f32 %v2050_v0, %v14244_v20  ;;  %v2003_v13 = vmul.f32 0.5, %v14106_v29  ;;  %12807 = vtanh.f32 %v2167_v17  ;;  %v15600_v29 = vld [vmem:[#allocation32_spill] sm:$0xff] }
 0x1a7   : > { %11865 = vmatmul.mubr.msk.f32.vlgmr.msra.gmra.mrb[54].mxu1 %vm5442_vm1, %v14136_v11  ;;  %7122 = vmatpush1.msra.mxu0 %v2251_v62  ;;  %v2043_v62 = vmul.f32 %v14228_v44, %v14228_v44  ;;  %v12800_v32 = vpop.eup %12799  ;;  %v14292_v42 = vadd.f32 %v15598_v3, %v14274_v16  ;;  %12809 = vtanh.f32 %v2169_v7  ;;  %v2047_v47 = vmul.f32 %v14278_v5, %v14278_v5 }
 0x1a8   : > { %7205 = vmatpush1.msra.mxu1 %v2253_v9  ;;  %7287 = vmatprep.subr.mxu0 %v2256_v31  ;;  %v2045_v9 = vmul.f32 %v14235_v40, %v14235_v40  ;;  %v2140_v31 = vadd.f32 %v2108_v63, %v14186_v61  ;;  %v12802_v57 = vpop.eup %12801  ;;  %v2112_v21 = vmul.f32 0.044715, %v2080_v48  ;;  %v2114_v22 = vmul.f32 0.044715, %v2082_v38 }
 0x1a9   : > { %7370 = vmatprep.subr.mxu1 %v2258_v58  ;;  %7025 = vmatprep.mubr.f32.mxu0 %v15566_v28  ;;  %v2006_v58 = vmul.f32 0.5, %v14067_v50  ;;  %v2075_v33 = vmul.f32 %v2043_v62, %v14228_v44  ;;  %v14296_v62 = vadd.f32 %v15599_v36, %v13825_v26  ;;  %v2005_v26 = vmul.f32 0.5, %v14113_v37 }
 0x1aa   : > { %7108 = vmatprep.mubr.f32.mxu1 %v15566_v28  ;;  %11863 = vmatmul.mubr.msk.f32.gmra.mrb[56].mxu0 %vm5442_vm1, %v14158_v18  ;;  %v2077_v50 = vmul.f32 %v2045_v9, %v14235_v40  ;;  %v2172_v45 = vmul.f32 0.7978846, %v2140_v31  ;;  %v12804_v63 = vpop.eup %12803  ;;  %v2227_v9 = vadd.f32 1.0, %v12800_v32  ;;  %v2229_v31 = vadd.f32 1.0, %v12802_v57 }
 0x1ab   : > { %11866 = vmatmul.mubr.msk.f32.gmra.mrb[56].mxu1 %vm5442_vm1, %v14158_v18  ;;  %7031 = vmatprep.mubr.f32.mxu0 %v15566_v28  ;;  %v2262_v6 = vmul.f32 %v2230_v41, %v2006_v58  ;;  %v2107_v12 = vmul.f32 0.044715, %v2075_v33  ;;  %v12806_v55 = vpop.eup %12805  ;;  %v14301_v41 = vadd.f32 %v15600_v29, %v14274_v16  ;;  %v2232_v60 = vadd.f32 1.0, %v12804_v63  ;;  %v15601_v29 = vld [vmem:[#allocation29_spill] sm:$0xff] }
 0x1ac   : > { %7114 = vmatprep.mubr.f32.mxu1 %v15566_v28  ;;  %v2109_v14 = vmul.f32 0.044715, %v2077_v50  ;;  %12811 = vtanh.f32 %v2172_v45  ;;  %v2234_v58 = vadd.f32 1.0, %v12806_v55  ;;  %v4892_v24 = vmul.f32 %v14292_v42, %v14292_v42 }
 0x1ad   : > { %12813 = vtanh.f32 %v2174_v46  ;;  %v2008_v37 = vmul.f32 0.5, %v14117_v34  ;;  %v2079_v17 = vmul.f32 %v2047_v47, %v14278_v5  ;;  %v2144_v33 = vadd.f32 %v2112_v21, %v14239_v59 }
 0x1ae   : > { %11864 = vmatmul.mubr.msk.f32.gmra.mrb[58].mxu0 %vm5442_vm1, %v14177_v49  ;;  %v2141_v0 = vadd.f32 %v2109_v14, %v14235_v40  ;;  %v2010_v7 = vmul.f32 0.5, %v14122_v8  ;;  %v2146_v50 = vadd.f32 %v2114_v22, %v14244_v20  ;;  %v2261_v32 = vmul.f32 %v2229_v31, %v2005_v26  ;;  %v15602_v31 = vld [vmem:[#allocation30_spill] sm:$0xff] }
 0x1af   : > { %11867 = vmatmul.mubr.msk.f32.gmra.mrb[58].mxu1 %vm5442_vm1, %v14177_v49  ;;  %7185 = vmatprep.mubr.f32.mxu0 %v15566_v28  ;;  %v2264_v45 = vmul.f32 %v2232_v60, %v2008_v37  ;;  %v4924_v48 = vmul.f32 %v4892_v24, %v14292_v42  ;;  %v2111_v63 = vmul.f32 0.044715, %v2079_v17  ;;  %v2007_v14 = vmul.f32 0.5, %v14169_v30 }
 0x1b0   : > { %7268 = vmatprep.mubr.f32.mxu1 %v15566_v28  ;;  %v2266_v34 = vmul.f32 %v2234_v58, %v2010_v7  ;;  %v2173_v57 = vmul.f32 0.7978846, %v2141_v0  ;;  %v12808_v38 = vpop.eup %12807  ;;  %v2178_v3 = vmul.f32 0.7978846, %v2146_v50  ;;  %v14342_v47 = vadd.f32 %v15601_v29, %v14274_v16 }
 0x1b1   : > { %v4956_v36 = vmul.f32 0.044715, %v4924_v48  ;;  %v14347_v30 = vadd.f32 %v15602_v31, %v14274_v16  ;;  %v2143_v60 = vadd.f32 %v2111_v63, %v14278_v5  ;;  %v2231_v26 = vadd.f32 1.0, %v12808_v38 }
 0x1b2   : > { %11868 = vmatmul.mubr.msk.f32.vlgmr.msra.gmra.mrb[60].mxu0 %vm5442_vm1, %v14136_v11  ;;  %v2012_v50 = vmul.f32 0.5, %v14186_v61 }
 0x1b3   : > { %11871 = vmatmul.mubr.msk.f32.vlgmr.msra.gmra.mrb[60].mxu1 %vm5442_vm1, %v14136_v11  ;;  %7288 = vmatpush1.msra.mxu0 %v2255_v53  ;;  %v2139_v53 = vadd.f32 %v2107_v12, %v14228_v44  ;;  %v12810_v12 = vpop.eup %12809 }
 0x1b4   : > { %7371 = vmatpush1.msra.mxu1 %v2257_v10  ;;  %7453 = vmatprep.subr.mxu0 %v2260_v27  ;;  %v2049_v10 = vmul.f32 %v14296_v62, %v14296_v62  ;;  %v4894_v27 = vmul.f32 %v14301_v41, %v14301_v41  ;;  %v2233_v24 = vadd.f32 1.0, %v12810_v12 }
 0x1b5   : > { %7536 = vmatprep.subr.mxu1 %v2262_v6  ;;  %7191 = vmatprep.mubr.f32.mxu0 %v15566_v28  ;;  %v2259_v6 = vmul.f32 %v2227_v9, %v2003_v13  ;;  %v2171_v56 = vmul.f32 0.7978846, %v2139_v53  ;;  %v2176_v13 = vmul.f32 0.7978846, %v2144_v33  ;;  %v15603_v53 = vld [vmem:[#allocation35_spill] sm:$0xff]  ;;  %v4988_v33 = vadd.f32 %v4956_v36, %v14292_v42 }
 0x1b6   : > { %7274 = vmatprep.mubr.f32.mxu1 %v15566_v28  ;;  %11869 = vmatmul.mubr.msk.f32.gmra.mrb[62].mxu0 %vm5442_vm1, %v14158_v18  ;;  %v2081_v46 = vmul.f32 %v2049_v10, %v14296_v62  ;;  %v4926_v8 = vmul.f32 %v4894_v27, %v14301_v41  ;;  %v12812_v55 = vpop.eup %12811  ;;  %v14352_v58 = vadd.f32 %v15603_v53, %v14274_v16  ;;  %v15604_v10 = vld [vmem:[#allocation36_spill] sm:$0xff]  ;;  %v2009_v27 = vmul.f32 0.5, %v14181_v35 }
 0x1b7   : > { %11872 = vmatmul.mubr.msk.f32.gmra.mrb[62].mxu1 %vm5442_vm1, %v14158_v18  ;;  %7197 = vmatprep.mubr.f32.mxu0 %v15566_v28  ;;  %12815 = vtanh.f32 %v2171_v56  ;;  %v12814_v21 = vpop.eup %12813  ;;  %v2236_v0 = vadd.f32 1.0, %v12812_v55  ;;  %v14358_v37 = vadd.f32 %v15604_v10, %v14274_v16  ;;  %v4893_v35 = vmul.f32 %v14347_v30, %v14347_v30  ;;  %v15607_v10 = vld [vmem:[#allocation39_spill] sm:$0xff] }
 0x1b8   : > { %7280 = vmatprep.mubr.f32.mxu1 %v15566_v28  ;;  %12817 = vtanh.f32 %v2173_v57  ;;  %v2113_v9 = vmul.f32 0.044715, %v2081_v46  ;;  %v4958_v22 = vmul.f32 0.044715, %v4926_v8  ;;  %v2238_v17 = vadd.f32 1.0, %v12814_v21 }
 0x1b9   : > { %12819 = vtanh.f32 %v2176_v13  ;;  %v2263_v56 = vmul.f32 %v2231_v26, %v2007_v14  ;;  %v4896_v48 = vmul.f32 %v14352_v58, %v14352_v58  ;;  %v2265_v57 = vmul.f32 %v2233_v24, %v2009_v27  ;;  %v15606_v26 = vld [vmem:[#allocation34_spill] sm:$0xff] }
 0x1ba   : > { %11870 = vmatmul.mubr.msk.f32.gmra.mrb[64].mxu0 %vm5442_vm1, %v14177_v49  ;;  %12821 = vtanh.f32 %v2178_v3  ;;  %v2145_v7 = vadd.f32 %v2113_v9, %v14296_v62  ;;  %v2268_v46 = vmul.f32 %v2236_v0, %v2012_v50  ;;  %v4898_v61 = vmul.f32 %v14358_v37, %v14358_v37  ;;  %v15605_v9 = vld [vmem:[#allocation33_spill] sm:$0xff] }
 0x1bb   : > { %11873 = vmatmul.mubr.msk.f32.gmra.mrb[64].mxu1 %vm5442_vm1, %v14177_v49  ;;  %7351 = vmatprep.mubr.f32.mxu0 %v15566_v28  ;;  %v5020_v38 = vmul.f32 0.7978846, %v4988_v33  ;;  %v4925_v13 = vmul.f32 %v4893_v35, %v14347_v30  ;;  %v4928_v55 = vmul.f32 %v4896_v48, %v14352_v58  ;;  %v14400_v53 = vadd.f32 %v15606_v26, %v14274_v16 }
 0x1bc   : > { %7434 = vmatprep.mubr.f32.mxu1 %v15566_v28  ;;  %v2177_v3 = vmul.f32 0.7978846, %v2145_v7  ;;  %v4930_v36 = vmul.f32 %v4898_v61, %v14358_v37  ;;  %v14404_v27 = vadd.f32 %v15607_v10, %v14274_v16  ;;  %v15608_v7 = vld [vmem:[#allocation40_spill] sm:$0xff]  ;;  %v2016_v48 = vmul.f32 0.5, %v14239_v59 }
 0x1bd   : > { %v4960_v0 = vmul.f32 0.044715, %v4928_v55  ;;  %v14410_v50 = vadd.f32 %v15608_v7, %v14274_v16  ;;  %v2018_v61 = vmul.f32 0.5, %v14244_v20  ;;  %v4862_v10 = vmul.f32 0.5, %v14301_v41 }
 0x1be   : > { %11874 = vmatmul.mubr.msk.f32.vlgmr.msra.gmra.mrb[66].mxu0 %vm5442_vm1, %v14136_v11 }
 0x1bf   : > { %11877 = vmatmul.mubr.msk.f32.vlgmr.msra.gmra.mrb[66].mxu1 %vm5442_vm1, %v14136_v11  ;;  %7454 = vmatpush1.msra.mxu0 %v2259_v6  ;;  %v4891_v6 = vmul.f32 %v14342_v47, %v14342_v47 }
 0x1c0   : > { %7537 = vmatpush1.msra.mxu1 %v2261_v32  ;;  %7619 = vmatprep.subr.mxu0 %v2264_v45  ;;  %v4990_v32 = vadd.f32 %v4958_v22, %v14301_v41  ;;  %v2175_v45 = vmul.f32 0.7978846, %v2143_v60  ;;  %v14395_v22 = vadd.f32 %v15605_v9, %v14274_v16  ;;  %v4957_v60 = vmul.f32 0.044715, %v4925_v13 }
 0x1c1   : > { %7702 = vmatprep.subr.mxu1 %v2266_v34  ;;  %7357 = vmatprep.mubr.f32.mxu0 %v15566_v28  ;;  %v2014_v34 = vmul.f32 0.5, %v14190_v51  ;;  %v4923_v63 = vmul.f32 %v4891_v6, %v14342_v47  ;;  %v12816_v12 = vpop.eup %12815  ;;  %v4962_v6 = vmul.f32 0.044715, %v4930_v36  ;;  %v14460_v41 = vadd.f32 %v13653_v54, %v14274_v16 }
 0x1c2   : > { %7440 = vmatprep.mubr.f32.mxu1 %v15566_v28  ;;  %11875 = vmatmul.mubr.msk.f32.gmra.mrb[68].mxu0 %vm5442_vm1, %v14158_v18  ;;  %v5022_v51 = vmul.f32 0.7978846, %v4990_v32  ;;  %12823 = vtanh.f32 %v2175_v45  ;;  %v12818_v14 = vpop.eup %12817  ;;  %v2235_v24 = vadd.f32 1.0, %v12816_v12  ;;  %v2011_v32 = vmul.f32 0.5, %v14228_v44 }
 0x1c3   : > { %11878 = vmatmul.mubr.msk.f32.gmra.mrb[68].mxu1 %vm5442_vm1, %v14158_v18  ;;  %7363 = vmatprep.mubr.f32.mxu0 %v15566_v28  ;;  %v2270_v8 = vmul.f32 %v2238_v17, %v2014_v34  ;;  %v12820_v29 = vpop.eup %12819  ;;  %12825 = vtanh.f32 %v5020_v38  ;;  %v4955_v21 = vmul.f32 0.044715, %v4923_v63  ;;  %v2237_v17 = vadd.f32 1.0, %v12818_v14 }
 0x1c4   : > { %7446 = vmatprep.mubr.f32.mxu1 %v15566_v28  ;;  %v12822_v31 = vpop.eup %12821  ;;  %12827 = vtanh.f32 %v5022_v51  ;;  %v2240_v33 = vadd.f32 1.0, %v12820_v29  ;;  %v2013_v34 = vmul.f32 0.5, %v14235_v40  ;;  %v4897_v44 = vmul.f32 %v14400_v53, %v14400_v53 }
 0x1c5   : > { %12829 = vtanh.f32 %v2177_v3  ;;  %v2242_v35 = vadd.f32 1.0, %v12822_v31  ;;  %v4987_v45 = vadd.f32 %v4955_v21, %v14342_v47  ;;  %v4900_v38 = vmul.f32 %v14404_v27, %v14404_v27 }
 0x1c6   : > { %11876 = vmatmul.mubr.msk.f32.gmra.mrb[70].mxu0 %vm5442_vm1, %v14177_v49  ;;  %v2269_v40 = vmul.f32 %v2237_v17, %v2013_v34  ;;  %v2272_v63 = vmul.f32 %v2240_v33, %v2016_v48  ;;  %v4994_v59 = vadd.f32 %v4962_v6, %v14358_v37  ;;  %v4902_v51 = vmul.f32 %v14410_v50, %v14410_v50  ;;  %v15609_v33 = vld [vmem:[#allocation37_spill] sm:$0xff] }
 0x1c7   : > { %11879 = vmatmul.mubr.msk.f32.gmra.mrb[70].mxu1 %vm5442_vm1, %v14177_v49  ;;  %7517 = vmatprep.mubr.f32.mxu0 %v15566_v28  ;;  %v2274_v20 = vmul.f32 %v2242_v35, %v2018_v61  ;;  %v5019_v12 = vmul.f32 0.7978846, %v4987_v45  ;;  %v4929_v14 = vmul.f32 %v4897_v44, %v14400_v53  ;;  %v4932_v21 = vmul.f32 %v4900_v38, %v14404_v27 }
 0x1c8   : > { %7600 = vmatprep.mubr.f32.mxu1 %v15566_v28  ;;  %v5026_v26 = vmul.f32 0.7978846, %v4994_v59  ;;  %v14451_v6 = vadd.f32 %v15609_v33, %v14274_v16  ;;  %v2015_v44 = vmul.f32 0.5, %v14278_v5  ;;  %v2017_v61 = vmul.f32 0.5, %v14296_v62 }
 0x1c9   : > { %12831 = vtanh.f32 %v5019_v12  ;;  %v4961_v7 = vmul.f32 0.044715, %v4929_v14  ;;  %v4904_v59 = vmul.f32 %v14460_v41, %v14460_v41 }
 0x1ca   : > { %11880 = vmatmul.mubr.msk.f32.vlgmr.msra.gmra.mrb[72].mxu0 %vm5442_vm1, %v14136_v11 }
 0x1cb   : > { %11883 = vmatmul.mubr.msk.f32.vlgmr.msra.gmra.mrb[72].mxu1 %vm5442_vm1, %v14136_v11  ;;  %7620 = vmatpush1.msra.mxu0 %v2263_v56  ;;  %v4895_v56 = vmul.f32 %v14395_v22, %v14395_v22 }
 0x1cc   : > { %7703 = vmatpush1.msra.mxu1 %v2265_v57  ;;  %7785 = vmatprep.subr.mxu0 %v2268_v46  ;;  %v4989_v57 = vadd.f32 %v4957_v60, %v14347_v30  ;;  %v2267_v46 = vmul.f32 %v2235_v24, %v2011_v32  ;;  %v12824_v13 = vpop.eup %12823  ;;  %v4860_v60 = vmul.f32 0.5, %v14292_v42  ;;  %v4934_v24 = vmul.f32 %v4902_v51, %v14410_v50  ;;  %v15610_v32 = vld [vmem:[#allocation38_spill] sm:$0xff] }
 0x1cd   : > { %7868 = vmatprep.subr.mxu1 %v2270_v8  ;;  %7523 = vmatprep.mubr.f32.mxu0 %v15566_v28  ;;  %v4992_v8 = vadd.f32 %v4960_v0, %v14352_v58  ;;  %v4927_v3 = vmul.f32 %v4895_v56, %v14395_v22  ;;  %v12826_v36 = vpop.eup %12825  ;;  %v2239_v31 = vadd.f32 1.0, %v12824_v13  ;;  %v14456_v35 = vadd.f32 %v15610_v32, %v14274_v16 }
 0x1ce   : > { %7606 = vmatprep.mubr.f32.mxu1 %v15566_v28  ;;  %11881 = vmatmul.mubr.msk.f32.gmra.mrb[74].mxu0 %vm5442_vm1, %v14158_v18  ;;  %v5021_v55 = vmul.f32 0.7978846, %v4989_v57  ;;  %v12828_v9 = vpop.eup %12827  ;;  %v5084_v42 = vadd.f32 1.0, %v12826_v36  ;;  %v4964_v56 = vmul.f32 0.044715, %v4932_v21  ;;  %v14466_v57 = vadd.f32 %v13655_v1, %v14274_v16 }
 0x1cf   : > { %11884 = vmatmul.mubr.msk.f32.gmra.mrb[74].mxu1 %vm5442_vm1, %v14158_v18  ;;  %7529 = vmatprep.mubr.f32.mxu0 %v15566_v28  ;;  %v5024_v29 = vmul.f32 0.7978846, %v4992_v8  ;;  %v12830_v0 = vpop.eup %12829  ;;  %v4959_v17 = vmul.f32 0.044715, %v4927_v3  ;;  %v5086_v45 = vadd.f32 1.0, %v12828_v9  ;;  %v4993_v1 = vadd.f32 %v4961_v7, %v14400_v53  ;;  %v15612_v7 = vld [vmem:[#allocation42_spill] sm:$0xff] }
 0x1d0   : > { %7612 = vmatprep.mubr.f32.mxu1 %v15566_v28  ;;  %12833 = vtanh.f32 %v5021_v55  ;;  %v2241_v34 = vadd.f32 1.0, %v12830_v0  ;;  %v4966_v48 = vmul.f32 0.044715, %v4934_v24  ;;  %v5116_v8 = vmul.f32 %v5084_v42, %v4860_v60 }
 0x1d1   : > { %12835 = vtanh.f32 %v5024_v29  ;;  %v4991_v54 = vadd.f32 %v4959_v17, %v14395_v22  ;;  %v4901_v5 = vmul.f32 %v14456_v35, %v14456_v35  ;;  %v2271_v38 = vmul.f32 %v2239_v31, %v2015_v44  ;;  %v15611_v17 = vld [vmem:[#allocation41_spill] sm:$0xff] }
 0x1d2   : > { %11882 = vmatmul.mubr.msk.f32.gmra.mrb[76].mxu0 %vm5442_vm1, %v14177_v49  ;;  %12837 = vtanh.f32 %v5026_v26  ;;  %v2273_v51 = vmul.f32 %v2241_v34, %v2017_v61  ;;  %v4998_v62 = vadd.f32 %v4966_v48, %v14410_v50  ;;  %v4906_v13 = vmul.f32 %v14466_v57, %v14466_v57 }
 0x1d3   : > { %11885 = vmatmul.mubr.msk.f32.gmra.mrb[76].mxu1 %vm5442_vm1, %v14177_v49  ;;  %7683 = vmatprep.mubr.f32.mxu0 %v15566_v28  ;;  %v5025_v3 = vmul.f32 0.7978846, %v4993_v1  ;;  %v4933_v55 = vmul.f32 %v4901_v5, %v14456_v35  ;;  %v12832_v14 = vpop.eup %12831  ;;  %v4936_v29 = vmul.f32 %v4904_v59, %v14460_v41  ;;  %v4859_v9 = vmul.f32 0.5, %v14342_v47 }
 0x1d4   : > { %7766 = vmatprep.mubr.f32.mxu1 %v15566_v28  ;;  %v4861_v31 = vmul.f32 0.5, %v14347_v30  ;;  %v5030_v60 = vmul.f32 0.7978846, %v4998_v62  ;;  %v4938_v26 = vmul.f32 %v4906_v13, %v14466_v57  ;;  %v4864_v0 = vmul.f32 0.5, %v14352_v58 }
 0x1d5   : > { %v14506_v33 = vadd.f32 %v15611_v17, %v14274_v16  ;;  %v5083_v30 = vadd.f32 1.0, %v12832_v14  ;;  %v4965_v42 = vmul.f32 0.044715, %v4933_v55  ;;  %v14511_v32 = vadd.f32 %v15612_v7, %v14274_v16  ;;  %v15614_v17 = vld [vmem:[#allocation44_spill] sm:$0xff] }
 0x1d6   : > { %11886 = vmatmul.mubr.msk.f32.vlgmr.msra.gmra.mrb[78].mxu0 %vm5442_vm1, %v14136_v11  ;;  %v14515_v58 = vadd.f32 %v13670_v19, %v14274_v16  ;;  %v4970_v48 = vmul.f32 0.044715, %v4938_v26  ;;  %v14521_v44 = vadd.f32 %v13672_v15, %v14274_v16 }
 0x1d7   : > { %11889 = vmatmul.mubr.msk.f32.vlgmr.msra.gmra.mrb[78].mxu1 %vm5442_vm1, %v14136_v11  ;;  %7786 = vmatpush1.msra.mxu0 %v2267_v46  ;;  %v4899_v46 = vmul.f32 %v14451_v6, %v14451_v6  ;;  %v4903_v61 = vmul.f32 %v14506_v33, %v14506_v33  ;;  %v4905_v15 = vmul.f32 %v14511_v32, %v14511_v32 }
 0x1d8   : > { %7869 = vmatpush1.msra.mxu1 %v2269_v40  ;;  %7951 = vmatprep.subr.mxu0 %v2272_v63  ;;  %v5118_v40 = vmul.f32 %v5086_v45, %v4862_v10  ;;  %v4996_v63 = vadd.f32 %v4964_v56, %v14404_v27  ;;  %v4968_v56 = vmul.f32 0.044715, %v4936_v29  ;;  %v5115_v1 = vmul.f32 %v5083_v30, %v4859_v9 }
 0x1d9   : > { %8034 = vmatprep.subr.mxu1 %v2274_v20  ;;  %7689 = vmatprep.mubr.f32.mxu0 %v15566_v28  ;;  %v5023_v20 = vmul.f32 0.7978846, %v4991_v54  ;;  %v4931_v12 = vmul.f32 %v4899_v46, %v14451_v6  ;;  %v4866_v54 = vmul.f32 0.5, %v14358_v37  ;;  %v4910_v59 = vmul.f32 %v14521_v44, %v14521_v44 }
 0x1da   : > { %7772 = vmatprep.mubr.f32.mxu1 %v15566_v28  ;;  %11887 = vmatmul.mubr.msk.f32.gmra.mrb[80].mxu0 %vm5442_vm1, %v14158_v18  ;;  %v5028_v36 = vmul.f32 0.7978846, %v4996_v63  ;;  %v12834_v21 = vpop.eup %12833  ;;  %v5000_v5 = vadd.f32 %v4968_v56, %v14460_v41  ;;  %v5002_v63 = vadd.f32 %v4970_v48, %v14466_v57  ;;  %v4935_v13 = vmul.f32 %v4903_v61, %v14506_v33 }
 0x1db   : > { %11890 = vmatmul.mubr.msk.f32.gmra.mrb[80].mxu1 %vm5442_vm1, %v14158_v18  ;;  %7695 = vmatprep.mubr.f32.mxu0 %v15566_v28  ;;  %v12836_v24 = vpop.eup %12835  ;;  %12839 = vtanh.f32 %v5023_v20  ;;  %v4963_v10 = vmul.f32 0.044715, %v4931_v12  ;;  %v5085_v45 = vadd.f32 1.0, %v12834_v21  ;;  %v4937_v12 = vmul.f32 %v4905_v15, %v14511_v32 }
 0x1dc   : > { %7778 = vmatprep.mubr.f32.mxu1 %v15566_v28  ;;  %v12838_v47 = vpop.eup %12837  ;;  %12841 = vtanh.f32 %v5025_v3  ;;  %v5088_v34 = vadd.f32 1.0, %v12836_v24  ;;  %v5032_v55 = vmul.f32 0.7978846, %v5000_v5  ;;  %v4865_v29 = vmul.f32 0.5, %v14400_v53  ;;  %v15613_v24 = vld [vmem:[#allocation43_spill] sm:$0xff] }
 0x1dd   : > { %12843 = vtanh.f32 %v5028_v36  ;;  %v5090_v46 = vadd.f32 1.0, %v12838_v47  ;;  %v4995_v19 = vadd.f32 %v4963_v10, %v14451_v6  ;;  %v5117_v37 = vmul.f32 %v5085_v45, %v4861_v31 }
 0x1de   : > { %11888 = vmatmul.mubr.msk.f32.gmra.mrb[82].mxu0 %vm5442_vm1, %v14177_v49  ;;  %12845 = vtanh.f32 %v5030_v60  ;;  %v5034_v21 = vmul.f32 0.7978846, %v5002_v63  ;;  %v4942_v9 = vmul.f32 %v4910_v59, %v14521_v44  ;;  %v4868_v60 = vmul.f32 0.5, %v14404_v27 }
 0x1df   : > { %11891 = vmatmul.mubr.msk.f32.gmra.mrb[82].mxu1 %vm5442_vm1, %v14177_v49  ;;  %7849 = vmatprep.mubr.f32.mxu0 %v15566_v28  ;;  %v5027_v62 = vmul.f32 0.7978846, %v4995_v19  ;;  %v4967_v26 = vmul.f32 0.044715, %v4935_v13  ;;  %v4969_v10 = vmul.f32 0.044715, %v4937_v12  ;;  %v14565_v47 = vadd.f32 %v15614_v17, %v14274_v16 }
 0x1e0   : > { %7932 = vmatprep.mubr.f32.mxu1 %v15566_v28  ;;  %v14569_v27 = vadd.f32 %v13691_v52, %v14274_v16  ;;  %v4974_v7 = vmul.f32 0.044715, %v4942_v9  ;;  %v14575_v45 = vadd.f32 %v13693_v43, %v14274_v16  ;;  %v14583_v52 = vld [vmem:[%s15517_s6 + $0x30] sm:$0xff]  ;;  %v4870_v56 = vmul.f32 0.5, %v14410_v50 }
 0x1e1   : > { %12847 = vtanh.f32 %v5027_v62  ;;  %v4999_v48 = vadd.f32 %v4967_v26, %v14506_v33  ;;  %v5001_v43 = vadd.f32 %v4969_v10, %v14511_v32  ;;  %v14612_v62 = vadd.f32 %v13729_v23, %v14274_v16  ;;  %v15616_v26 = vld [vmem:[#allocation46_spill] sm:$0xff] }
 0x1e2   : > { %11892 = vmatmul.mubr.msk.f32.vlgmr.msra.gmra.mrb[84].mxu0 %vm5442_vm1, %v14136_v11  ;;  %v4912_v61 = vmul.f32 %v14569_v27, %v14569_v27  ;;  %v5006_v15 = vadd.f32 %v4974_v7, %v14521_v44 }
 0x1e3   : > { %11895 = vmatmul.mubr.msk.f32.vlgmr.msra.gmra.mrb[84].mxu1 %vm5442_vm1, %v14136_v11  ;;  %7952 = vmatpush1.msra.mxu0 %v2271_v38  ;;  %v4908_v38 = vmul.f32 %v14515_v58, %v14515_v58  ;;  %v5033_v63 = vmul.f32 0.7978846, %v5001_v43 }
 0x1e4   : > { %8035 = vmatpush1.msra.mxu1 %v2273_v51  ;;  %8130 = vmatprep.subr.mxu0 %v5116_v8  ;;  %v4997_v8 = vadd.f32 %v4965_v42, %v14456_v35  ;;  %v5122_v51 = vmul.f32 %v5090_v46, %v4866_v54 }
 0x1e5   : > { %8213 = vmatprep.subr.mxu1 %v5118_v40  ;;  %7855 = vmatprep.mubr.f32.mxu0 %v15566_v28  ;;  %v5120_v40 = vmul.f32 %v5088_v34, %v4864_v0  ;;  %v12840_v3 = vpop.eup %12839  ;;  %v4940_v14 = vmul.f32 %v4908_v38, %v14515_v58  ;;  %v14560_v0 = vadd.f32 %v15613_v24, %v14274_v16  ;;  %v14606_v38 = vld [vmem:[%s15517_s6 + $0x38] sm:$0xff] }
 0x1e6   : > { %7938 = vmatprep.mubr.f32.mxu1 %v15566_v28  ;;  %11893 = vmatmul.mubr.msk.f32.gmra.mrb[86].mxu0 %vm5442_vm1, %v14158_v18  ;;  %v5029_v20 = vmul.f32 0.7978846, %v4997_v8  ;;  %v12842_v36 = vpop.eup %12841  ;;  %v5087_v53 = vadd.f32 1.0, %v12840_v3  ;;  %v4867_v3 = vmul.f32 0.5, %v14451_v6  ;;  %v14638_v24 = vadd.f32 %v15616_v26, %v14274_v16 }
 0x1e7   : > { %11896 = vmatmul.mubr.msk.f32.gmra.mrb[86].mxu1 %vm5442_vm1, %v14158_v18  ;;  %7861 = vmatprep.mubr.f32.mxu0 %v15566_v28  ;;  %v12844_v31 = vpop.eup %12843  ;;  %v4972_v30 = vmul.f32 0.044715, %v4940_v14  ;;  %v4907_v54 = vmul.f32 %v14560_v0, %v14560_v0  ;;  %v5038_v14 = vmul.f32 0.7978846, %v5006_v15 }
 0x1e8   : > { %7944 = vmatprep.mubr.f32.mxu1 %v15566_v28  ;;  %12849 = vtanh.f32 %v5029_v20  ;;  %v5092_v42 = vadd.f32 1.0, %v12844_v31  ;;  %v4944_v20 = vmul.f32 %v4912_v61, %v14569_v27 }
 0x1e9   : > { %12851 = vtanh.f32 %v5032_v55  ;;  %v5004_v19 = vadd.f32 %v4972_v30, %v14515_v58  ;;  %v4869_v55 = vmul.f32 0.5, %v14456_v35  ;;  %v15615_v35 = vld [vmem:[#allocation45_spill] sm:$0xff]  ;;  %v4874_v30 = vmul.f32 0.5, %v14466_v57 }
 0x1ea   : > { %11894 = vmatmul.mubr.msk.f32.gmra.mrb[88].mxu0 %vm5442_vm1, %v14177_v49  ;;  %12853 = vtanh.f32 %v5034_v21  ;;  %v5124_v8 = vmul.f32 %v5092_v42, %v4868_v60  ;;  %v14633_v21 = vadd.f32 %v15615_v35, %v14274_v16 }
 0x1eb   : > { %11897 = vmatmul.mubr.msk.f32.gmra.mrb[88].mxu1 %vm5442_vm1, %v14177_v49  ;;  %8015 = vmatprep.mubr.f32.mxu0 %v15566_v28  ;;  %v5036_v13 = vmul.f32 0.7978846, %v5004_v19 }
 0x1ec   : > { %8098 = vmatprep.mubr.f32.mxu1 %v15566_v28  ;;  %v4911_v7 = vmul.f32 %v14633_v21, %v14633_v21 }
 0x1ee   : > { %11898 = vmatmul.mubr.msk.f32.vlgmr.msra.gmra.mrb[90].mxu0 %vm5442_vm1, %v14136_v11 }
 0x1ef   : > { %11901 = vmatmul.mubr.msk.f32.vlgmr.msra.gmra.mrb[90].mxu1 %vm5442_vm1, %v14136_v11  ;;  %8131 = vmatpush1.msra.mxu0 %v5115_v1  ;;  %v4863_v11 = vmul.f32 0.5, %v14395_v22  ;;  %v12846_v22 = vpop.eup %12845  ;;  %v4914_v1 = vmul.f32 %v14575_v45, %v14575_v45 }
 0x1f0   : > { %8214 = vmatpush1.msra.mxu1 %v5117_v37  ;;  %8296 = vmatprep.subr.mxu0 %v5120_v40  ;;  %v5094_v34 = vadd.f32 1.0, %v12846_v22  ;;  %v5031_v37 = vmul.f32 0.7978846, %v4999_v48  ;;  %v4939_v40 = vmul.f32 %v4907_v54, %v14560_v0 }
 0x1f1   : > { %8379 = vmatprep.subr.mxu1 %v5122_v51  ;;  %8021 = vmatprep.mubr.f32.mxu0 %v15566_v28  ;;  %v5119_v46 = vmul.f32 %v5087_v53, %v4863_v11  ;;  %v12848_v51 = vpop.eup %12847  ;;  %v4946_v23 = vmul.f32 %v4914_v1, %v14575_v45  ;;  %v14628_v11 = vld [vmem:[%s15517_s6 + $0x40] sm:$0xf]  ;;  %v4976_v53 = vmul.f32 0.044715, %v4944_v20 }
 0x1f2   : > { %8104 = vmatprep.mubr.f32.mxu1 %v15566_v28  ;;  %11899 = vmatmul.mubr.msk.f32.gmra.mrb[92].mxu0 %vm5442_vm1, %v14158_v18  ;;  %v5126_v5 = vmul.f32 %v5094_v34, %v4870_v56  ;;  %v12850_v12 = vpop.eup %12849  ;;  %12855 = vtanh.f32 %v5031_v37  ;;  %v4971_v6 = vmul.f32 0.044715, %v4939_v40  ;;  %v5091_v31 = vadd.f32 1.0, %v12848_v51 }
 0x1f3   : > { %11902 = vmatmul.mubr.msk.f32.gmra.mrb[92].mxu1 %vm5442_vm1, %v14158_v18  ;;  %8027 = vmatprep.mubr.f32.mxu0 %v15566_v28  ;;  %v5089_v18 = vadd.f32 1.0, %v12842_v36  ;;  %v12852_v36 = vpop.eup %12851  ;;  %12857 = vtanh.f32 %v5033_v63  ;;  %v5093_v22 = vadd.f32 1.0, %v12850_v12  ;;  %v4978_v17 = vmul.f32 0.044715, %v4946_v23 }
 0x1f4   : > { %8110 = vmatprep.mubr.f32.mxu1 %v15566_v28  ;;  %v12854_v9 = vpop.eup %12853  ;;  %12859 = vtanh.f32 %v5036_v13  ;;  %v5096_v10 = vadd.f32 1.0, %v12852_v36  ;;  %v4920_v34 = vmul.f32 %v14612_v62, %v14612_v62  ;;  %v5123_v48 = vmul.f32 %v5091_v31, %v4867_v3 }
 0x1f5   : > { %v5121_v50 = vmul.f32 %v5089_v18, %v4865_v29  ;;  %v4872_v29 = vmul.f32 0.5, %v14460_v41  ;;  %v14642_v41 = vadd.f32 %v13702_v25, %v14274_v16  ;;  %12861 = vtanh.f32 %v5038_v14 }
 0x1f6   : > { %11900 = vmatmul.mubr.msk.f32.gmra.mrb[94].mxu0 %vm5442_vm1, %v14177_v49  ;;  %v14648_v18 = vadd.f32 %v13704_v39, %v14274_v16  ;;  %v5098_v42 = vadd.f32 1.0, %v12854_v9  ;;  %v5003_v25 = vadd.f32 %v4971_v6, %v14560_v0  ;;  %v4913_v39 = vmul.f32 %v14638_v24, %v14638_v24 }
 0x1f7   : > { %11903 = vmatmul.mubr.msk.f32.gmra.mrb[94].mxu1 %vm5442_vm1, %v14177_v49  ;;  %8194 = vmatprep.mubr.f32.mxu0 %v15566_v28  ;;  %v4909_v49 = vmul.f32 %v14565_v47, %v14565_v47  ;;  %v5008_v54 = vadd.f32 %v4976_v53, %v14569_v27  ;;  %v4916_v57 = vmul.f32 %v14642_v41, %v14642_v41  ;;  %v4871_v3 = vmul.f32 0.5, %v14506_v33  ;;  %v15618_v33 = vld [vmem:[#allocation48_spill] sm:$0xff] }
 0x1f8   : > { %8277 = vmatprep.mubr.f32.mxu1 %v15566_v28  ;;  %v5125_v43 = vmul.f32 %v5093_v22, %v4869_v55  ;;  %v4918_v19 = vmul.f32 %v14648_v18, %v14648_v18  ;;  %v5130_v61 = vmul.f32 %v5098_v42, %v4874_v30  ;;  %v4945_v1 = vmul.f32 %v4913_v39, %v14638_v24  ;;  %v15619_v42 = vld [vmem:[#allocation49_spill] sm:$0xff] }
 0x1f9   : > { %v4941_v59 = vmul.f32 %v4909_v49, %v14565_v47  ;;  %v5128_v49 = vmul.f32 %v5096_v10, %v4872_v29  ;;  %v14677_v37 = vadd.f32 %v13719_v2, %v14274_v16  ;;  %v5040_v40 = vmul.f32 0.7978846, %v5008_v54  ;;  %v15617_v29 = vld [vmem:[#allocation47_spill] sm:$0xff] }
 0x1fa   : > { %11907 = vmatmul.mubr.msk.f32.vlgmr.msra.gmra.mrb[48].mxu0 %vm5442_vm1, %v14583_v52  ;;  %v4948_v63 = vmul.f32 %v4916_v57, %v14642_v41  ;;  %v4952_v51 = vmul.f32 %v4920_v34, %v14612_v62  ;;  %v14684_v13 = vadd.f32 %v13737_v4, %v14274_v16  ;;  %v4950_v20 = vmul.f32 %v4918_v19, %v14648_v18 }
 0x1fb   : > { %11910 = vmatmul.mubr.msk.f32.vlgmr.msra.gmra.mrb[48].mxu1 %vm5442_vm1, %v14583_v52  ;;  %8297 = vmatpush1.msra.mxu0 %v5119_v46  ;;  %v4973_v60 = vmul.f32 0.044715, %v4941_v59  ;;  %v5010_v46 = vadd.f32 %v4978_v17, %v14575_v45  ;;  %v4873_v55 = vmul.f32 0.5, %v14511_v32  ;;  %v4876_v23 = vmul.f32 0.5, %v14515_v58 }
 0x1fc   : > { %8380 = vmatpush1.msra.mxu1 %v5121_v50  ;;  %8462 = vmatprep.subr.mxu0 %v5124_v8  ;;  %v5035_v50 = vmul.f32 0.7978846, %v5003_v25  ;;  %v4943_v8 = vmul.f32 %v4911_v7, %v14633_v21  ;;  %v4977_v36 = vmul.f32 0.044715, %v4945_v1  ;;  %v14699_v6 = vadd.f32 %v15617_v29, %v14274_v16 }
 0x1fd   : > { %8545 = vmatprep.subr.mxu1 %v5126_v5  ;;  %8200 = vmatprep.mubr.f32.mxu0 %v15566_v28  ;;  %v5005_v56 = vadd.f32 %v4973_v60, %v14565_v47  ;;  %v12856_v5 = vpop.eup %12855  ;;  %v5042_v2 = vmul.f32 0.7978846, %v5010_v46  ;;  %v4980_v9 = vmul.f32 0.044715, %v4948_v63  ;;  %v14703_v32 = vadd.f32 %v15618_v33, %v14274_v16 }
 0x1fe   : > { %8283 = vmatprep.mubr.f32.mxu1 %v15566_v28  ;;  %11908 = vmatmul.mubr.msk.f32.gmra.mrb[50].mxu0 %vm5442_vm1, %v14606_v38  ;;  %v12858_v59 = vpop.eup %12857  ;;  %12863 = vtanh.f32 %v5035_v50  ;;  %v4975_v4 = vmul.f32 0.044715, %v4943_v8  ;;  %v5095_v35 = vadd.f32 1.0, %v12856_v5  ;;  %v4982_v58 = vmul.f32 0.044715, %v4950_v20 }
 0x1ff   : > { %11911 = vmatmul.mubr.msk.f32.gmra.mrb[50].mxu1 %vm5442_vm1, %v14606_v38  ;;  %8206 = vmatprep.mubr.f32.mxu0 %v15566_v28  ;;  %v5037_v15 = vmul.f32 0.7978846, %v5005_v56  ;;  %v12860_v12 = vpop.eup %12859  ;;  %v5097_v31 = vadd.f32 1.0, %v12858_v59  ;;  %v4922_v26 = vmul.f32 %v14684_v13, %v14684_v13  ;;  %v4878_v22 = vmul.f32 0.5, %v14521_v44  ;;  %v14752_v59 = vld [vmem:[%s14734_s13 + $0x8] sm:$0xff] }
 0x200   : > { %8289 = vmatprep.mubr.f32.mxu1 %v15566_v28  ;;  %v12862_v14 = vpop.eup %12861  ;;  %v5100_v60 = vadd.f32 1.0, %v12860_v12  ;;  %v5007_v10 = vadd.f32 %v4975_v4, %v14633_v21  ;;  %v5009_v17 = vadd.f32 %v4977_v36, %v14638_v24  ;;  %v4915_v30 = vmul.f32 %v14699_v6, %v14699_v6 }
 0x201   : > { %12865 = vtanh.f32 %v5037_v15  ;;  %v5102_v53 = vadd.f32 1.0, %v12862_v14  ;;  %v14721_v25 = vadd.f32 %v15619_v42, %v14274_v16  ;;  %v5127_v7 = vmul.f32 %v5095_v35, %v4871_v3  ;;  %v14743_v15 = vld [vmem:[%s14734_s13] sm:$0xff] }
 0x202   : > { %11909 = vmatmul.mubr.msk.f32.gmra.mrb[52].mxu0 %vm5442_vm1, %v14628_v11  ;;  %12867 = vtanh.f32 %v5040_v40  ;;  %v5012_v56 = vadd.f32 %v4980_v9, %v14642_v41  ;;  %v4917_v44 = vmul.f32 %v14703_v32, %v14703_v32  ;;  %v4919_v39 = vmul.f32 %v14677_v37, %v14677_v37 }
 0x203   : > { %11912 = vmatmul.mubr.msk.f32.gmra.mrb[52].mxu1 %vm5442_vm1, %v14628_v11  ;;  %8360 = vmatprep.mubr.f32.mxu0 %v15566_v28  ;;  %12869 = vtanh.f32 %v5042_v2  ;;  %v5129_v34 = vmul.f32 %v5097_v31, %v4873_v55  ;;  %v5014_v54 = vadd.f32 %v4982_v58, %v14648_v18  ;;  %v4984_v16 = vmul.f32 0.044715, %v4952_v51 }
 0x204   : > { %8443 = vmatprep.mubr.f32.mxu1 %v15566_v28  ;;  %v4954_v57 = vmul.f32 %v4922_v26, %v14684_v13  ;;  %v5041_v46 = vmul.f32 0.7978846, %v5009_v17  ;;  %v4947_v19 = vmul.f32 %v4915_v30, %v14699_v6  ;;  %v5044_v50 = vmul.f32 0.7978846, %v5012_v56 }
 0x205   : > { %v4949_v8 = vmul.f32 %v4917_v44, %v14703_v32  ;;  %v4951_v5 = vmul.f32 %v4919_v39, %v14677_v37  ;;  %v4921_v40 = vmul.f32 %v14721_v25, %v14721_v25  ;;  %v5046_v63 = vmul.f32 0.7978846, %v5014_v54 }
 0x206   : > { %11913 = vmatmul.mubr.msk.f32.vlgmr.msra.gmra.mrb[54].mxu0 %vm5442_vm1, %v14583_v52  ;;  %v5016_v2 = vadd.f32 %v4984_v16, %v14612_v62  ;;  %v4986_v20 = vmul.f32 0.044715, %v4954_v57  ;;  %v4875_v12 = vmul.f32 0.5, %v14560_v0  ;;  %v4877_v55 = vmul.f32 0.5, %v14565_v47  ;;  %v14791_v16 = vld [vmem:[%s14734_s13 + $0x10] sm:$0xff] }
 0x207   : > { %11916 = vmatmul.mubr.msk.f32.vlgmr.msra.gmra.mrb[54].mxu1 %vm5442_vm1, %v14583_v52  ;;  %8463 = vmatpush1.msra.mxu0 %v5123_v48  ;;  %v5132_v48 = vmul.f32 %v5100_v60, %v4876_v23  ;;  %v4979_v4 = vmul.f32 0.044715, %v4947_v19  ;;  %v14762_v14 = vunpack.c.h.bf16 %v14743_v15  ;;  %v4981_v36 = vmul.f32 0.044715, %v4949_v8 }
 0x208   : > { %8546 = vmatpush1.msra.mxu1 %v5125_v43  ;;  %8628 = vmatprep.subr.mxu0 %v5128_v49  ;;  %v5134_v43 = vmul.f32 %v5102_v53, %v4878_v22  ;;  %v5039_v49 = vmul.f32 0.7978846, %v5007_v10  ;;  %v14765_v29 = vunpack.c.h.bf16 %v14752_v59  ;;  %v4880_v35 = vmul.f32 0.5, %v14569_v27 }
 0x209   : > { %8711 = vmatprep.subr.mxu1 %v5130_v61  ;;  %8366 = vmatprep.mubr.f32.mxu0 %v15566_v28  ;;  %v12864_v61 = vpop.eup %12863  ;;  %v4953_v47 = vmul.f32 %v4921_v40, %v14721_v25  ;;  %v5018_v33 = vadd.f32 %v4986_v20, %v14684_v13  ;;  %v4882_v31 = vmul.f32 0.5, %v14575_v45  ;;  %v5011_v58 = vadd.f32 %v4979_v4, %v14699_v6 }
 0x20a   : > { %8449 = vmatprep.mubr.f32.mxu1 %v15566_v28  ;;  %11914 = vmatmul.mubr.msk.f32.gmra.mrb[56].mxu0 %vm5442_vm1, %v14606_v38  ;;  %12871 = vtanh.f32 %v5039_v49  ;;  %v5099_v23 = vadd.f32 1.0, %v12864_v61  ;;  %v5180_v27 = vmul.f32 %v14762_v14, %v14762_v14  ;;  %v5013_v22 = vadd.f32 %v4981_v36, %v14703_v32 }
 0x20b   : > { %11917 = vmatmul.mubr.msk.f32.gmra.mrb[56].mxu1 %vm5442_vm1, %v14606_v38  ;;  %8372 = vmatprep.mubr.f32.mxu0 %v15566_v28  ;;  %v12866_v1 = vpop.eup %12865  ;;  %12873 = vtanh.f32 %v5041_v46  ;;  %v5182_v53 = vmul.f32 %v14765_v29, %v14765_v29  ;;  %v4983_v10 = vmul.f32 0.044715, %v4951_v5  ;;  %v5048_v17 = vmul.f32 0.7978846, %v5016_v2  ;;  %v14801_v46 = vld [vmem:[%s14734_s13 + $0x18] sm:$0xff] }
 0x20c   : > { %8455 = vmatprep.mubr.f32.mxu1 %v15566_v28  ;;  %v12868_v51 = vpop.eup %12867  ;;  %12875 = vtanh.f32 %v5044_v50  ;;  %v5101_v0 = vadd.f32 1.0, %v12866_v1  ;;  %v5131_v26 = vmul.f32 %v5099_v23, %v4875_v12  ;;  %v4985_v42 = vmul.f32 0.044715, %v4953_v47 }
 0x20d   : > { %v12870_v3 = vpop.eup %12869  ;;  %v5104_v9 = vadd.f32 1.0, %v12868_v51  ;;  %12877 = vtanh.f32 %v5046_v63  ;;  %v5043_v44 = vmul.f32 0.7978846, %v5011_v58  ;;  %v5212_v39 = vmul.f32 %v5180_v27, %v14762_v14 }
 0x20e   : > { %11915 = vmatmul.mubr.msk.f32.gmra.mrb[58].mxu0 %vm5442_vm1, %v14628_v11  ;;  %v5106_v60 = vadd.f32 1.0, %v12870_v3  ;;  %v5133_v45 = vmul.f32 %v5101_v0, %v4877_v55  ;;  %v5214_v54 = vmul.f32 %v5182_v53, %v14765_v29  ;;  %12879 = vtanh.f32 %v5048_v17  ;;  %v14847_v17 = vld [vmem:[%s14734_s13 + $0x20] sm:$0xff] }
 0x20f   : > { %11918 = vmatmul.mubr.msk.f32.gmra.mrb[58].mxu1 %vm5442_vm1, %v14628_v11  ;;  %8526 = vmatprep.mubr.f32.mxu0 %v15566_v28  ;;  %v5136_v30 = vmul.f32 %v5104_v9, %v4880_v35  ;;  %v14798_v49 = vunpack.c.l.bf16 %v14743_v15  ;;  %v5017_v61 = vadd.f32 %v4985_v42, %v14721_v25  ;;  %v4879_v50 = vmul.f32 0.5, %v14633_v21 }
 0x210   : > { %8609 = vmatprep.mubr.f32.mxu1 %v15566_v28  ;;  %v5138_v56 = vmul.f32 %v5106_v60, %v4882_v31  ;;  %v14809_v8 = vunpack.c.l.bf16 %v14752_v59  ;;  %v4881_v15 = vmul.f32 0.5, %v14638_v24  ;;  %v5244_v5 = vmul.f32 0.044715, %v5212_v39 }
 0x211   : > { %v14814_v40 = vunpack.c.h.bf16 %v14791_v16  ;;  %v5246_v51 = vmul.f32 0.044715, %v5214_v54  ;;  %v14817_v2 = vunpack.c.h.bf16 %v14801_v46  ;;  %v4884_v59 = vmul.f32 0.5, %v14642_v41 }
 0x212   : > { %11919 = vmatmul.mubr.msk.f32.vlgmr.msra.gmra.mrb[60].mxu0 %vm5442_vm1, %v14583_v52  ;;  %v5179_v24 = vmul.f32 %v14798_v49, %v14798_v49  ;;  %v4886_v12 = vmul.f32 0.5, %v14648_v18  ;;  %v5181_v55 = vmul.f32 %v14809_v8, %v14809_v8  ;;  %v5276_v4 = vadd.f32 %v5244_v5, %v14762_v14 }
 0x213   : > { %11922 = vmatmul.mubr.msk.f32.vlgmr.msra.gmra.mrb[60].mxu1 %vm5442_vm1, %v14583_v52  ;;  %8629 = vmatpush1.msra.mxu0 %v5127_v7  ;;  %v5050_v7 = vmul.f32 0.7978846, %v5018_v33  ;;  %v5184_v41 = vmul.f32 %v14814_v40, %v14814_v40  ;;  %v5278_v0 = vadd.f32 %v5246_v51, %v14765_v29  ;;  %v5186_v35 = vmul.f32 %v14817_v2, %v14817_v2 }
 0x214   : > { %8712 = vmatpush1.msra.mxu1 %v5129_v34  ;;  %8794 = vmatprep.subr.mxu0 %v5132_v48  ;;  %v12872_v34 = vpop.eup %12871  ;;  %v5045_v48 = vmul.f32 0.7978846, %v5013_v22  ;;  %v5049_v9 = vmul.f32 0.7978846, %v5017_v61  ;;  %v5211_v33 = vmul.f32 %v5179_v24, %v14798_v49  ;;  %v5213_v60 = vmul.f32 %v5181_v55, %v14809_v8 }
 0x215   : > { %8877 = vmatprep.subr.mxu1 %v5134_v43  ;;  %8532 = vmatprep.mubr.f32.mxu0 %v15566_v28  ;;  %v12874_v57 = vpop.eup %12873  ;;  %v5015_v43 = vadd.f32 %v4983_v10, %v14677_v37  ;;  %12881 = vtanh.f32 %v5050_v7  ;;  %v5103_v63 = vadd.f32 1.0, %v12872_v34  ;;  %v5308_v27 = vmul.f32 0.7978846, %v5276_v4  ;;  %v14856_v7 = vld [vmem:[%s14734_s13 + $0x28] sm:$0xff] }
 0x216   : > { %8615 = vmatprep.mubr.f32.mxu1 %v15566_v28  ;;  %11920 = vmatmul.mubr.msk.f32.gmra.mrb[62].mxu0 %vm5442_vm1, %v14606_v38  ;;  %v12876_v19 = vpop.eup %12875  ;;  %12883 = vtanh.f32 %v5043_v44  ;;  %v5105_v21 = vadd.f32 1.0, %v12874_v57  ;;  %v5310_v53 = vmul.f32 0.7978846, %v5278_v0  ;;  %v5218_v10 = vmul.f32 %v5186_v35, %v14817_v2 }
 0x217   : > { %11923 = vmatmul.mubr.msk.f32.gmra.mrb[62].mxu1 %vm5442_vm1, %v14606_v38  ;;  %8538 = vmatprep.mubr.f32.mxu0 %v15566_v28  ;;  %v12878_v1 = vpop.eup %12877  ;;  %12885 = vtanh.f32 %v5045_v48  ;;  %v5108_v20 = vadd.f32 1.0, %v12876_v19  ;;  %v5047_v23 = vmul.f32 0.7978846, %v5015_v43  ;;  %v5135_v36 = vmul.f32 %v5103_v63, %v4879_v50 }
 0x218   : > { %8621 = vmatprep.mubr.f32.mxu1 %v15566_v28  ;;  %v5110_v3 = vadd.f32 1.0, %v12878_v1  ;;  %v5137_v18 = vmul.f32 %v5105_v21, %v4881_v15  ;;  %v12880_v58 = vpop.eup %12879  ;;  %v14853_v42 = vunpack.c.l.bf16 %v14791_v16  ;;  %v4883_v44 = vmul.f32 0.5, %v14699_v6 }
 0x219   : > { %v5140_v47 = vmul.f32 %v5108_v20, %v4884_v59  ;;  %12887 = vtanh.f32 %v5047_v23  ;;  %v4888_v39 = vmul.f32 0.5, %v14612_v62  ;;  %v5245_v34 = vmul.f32 0.044715, %v5213_v60 }
 0x21a   : > { %11921 = vmatmul.mubr.msk.f32.gmra.mrb[64].mxu0 %vm5442_vm1, %v14628_v11  ;;  %v5142_v31 = vmul.f32 %v5110_v3, %v4886_v12  ;;  %12889 = vtanh.f32 %v5049_v9  ;;  %v14864_v48 = vunpack.c.l.bf16 %v14801_v46  ;;  %v4885_v54 = vmul.f32 0.5, %v14703_v32 }
 0x21b   : > { %11924 = vmatmul.mubr.msk.f32.gmra.mrb[64].mxu1 %vm5442_vm1, %v14628_v11  ;;  %8692 = vmatprep.mubr.f32.mxu0 %v15566_v28  ;;  %12891 = vtanh.f32 %v5308_v27  ;;  %v14869_v57 = vunpack.c.h.bf16 %v14847_v17  ;;  %v5250_v19 = vmul.f32 0.044715, %v5218_v10  ;;  %v14872_v6 = vunpack.c.h.bf16 %v14856_v7 }
 0x21c   : > { %8775 = vmatprep.mubr.f32.mxu1 %v15566_v28  ;;  %12893 = vtanh.f32 %v5310_v53  ;;  %v5112_v46 = vadd.f32 1.0, %v12880_v58  ;;  %v5183_v32 = vmul.f32 %v14853_v42, %v14853_v42  ;;  %v4890_v50 = vmul.f32 0.5, %v14684_v13 }
 0x21d   : > { %v5277_v15 = vadd.f32 %v5245_v34, %v14809_v8  ;;  %v5185_v5 = vmul.f32 %v14864_v48, %v14864_v48  ;;  %v5188_v51 = vmul.f32 %v14869_v57, %v14869_v57  ;;  %v5282_v59 = vadd.f32 %v5250_v19, %v14817_v2 }
 0x21e   : > { %11925 = vmatmul.mubr.msk.f32.vlgmr.msra.gmra.mrb[66].mxu0 %vm5442_vm1, %v14583_v52  ;;  %v5190_v20 = vmul.f32 %v14872_v6, %v14872_v6  ;;  %v5144_v24 = vmul.f32 %v5112_v46, %v4888_v39  ;;  %v5215_v3 = vmul.f32 %v5183_v32, %v14853_v42  ;;  %v4887_v9 = vmul.f32 0.5, %v14677_v37 }
 0x21f   : > { %11928 = vmatmul.mubr.msk.f32.vlgmr.msra.gmra.mrb[66].mxu1 %vm5442_vm1, %v14583_v52  ;;  %8795 = vmatpush1.msra.mxu0 %v5131_v26  ;;  %v5216_v26 = vmul.f32 %v5184_v41, %v14814_v40  ;;  %v12882_v22 = vpop.eup %12881  ;;  %v5309_v41 = vmul.f32 0.7978846, %v5277_v15  ;;  %v5217_v23 = vmul.f32 %v5185_v5, %v14864_v48  ;;  %v5220_v35 = vmul.f32 %v5188_v51, %v14869_v57 }
 0x220   : > { %8878 = vmatpush1.msra.mxu1 %v5133_v45  ;;  %8960 = vmatprep.subr.mxu0 %v5136_v30  ;;  %v12884_v45 = vpop.eup %12883  ;;  %v5243_v30 = vmul.f32 0.044715, %v5211_v33  ;;  %v5114_v1 = vadd.f32 1.0, %v12882_v22  ;;  %v5222_v33 = vmul.f32 %v5190_v20, %v14872_v6  ;;  %v5247_v27 = vmul.f32 0.044715, %v5215_v3 }
 0x221   : > { %9043 = vmatprep.subr.mxu1 %v5138_v56  ;;  %8698 = vmatprep.mubr.f32.mxu0 %v15566_v28  ;;  %v12886_v56 = vpop.eup %12885  ;;  %v5248_v16 = vmul.f32 0.044715, %v5216_v26  ;;  %v5107_v43 = vadd.f32 1.0, %v12884_v45  ;;  %v14911_v37 = vunpack.c.l.bf16 %v14847_v17  ;;  %v5249_v53 = vmul.f32 0.044715, %v5217_v23 }
 0x222   : > { %8781 = vmatprep.mubr.f32.mxu1 %v15566_v28  ;;  %11926 = vmatmul.mubr.msk.f32.gmra.mrb[68].mxu0 %vm5442_vm1, %v14606_v38  ;;  %v5109_v62 = vadd.f32 1.0, %v12886_v56  ;;  %v5275_v61 = vadd.f32 %v5243_v30, %v14798_v49  ;;  %v5146_v4 = vmul.f32 %v5114_v1, %v4890_v50  ;;  %v14920_v10 = vunpack.c.l.bf16 %v14856_v7 }
 0x223   : > { %11929 = vmatmul.mubr.msk.f32.gmra.mrb[68].mxu1 %vm5442_vm1, %v14606_v38  ;;  %8704 = vmatprep.mubr.f32.mxu0 %v15566_v28  ;;  %v5280_v63 = vadd.f32 %v5248_v16, %v14814_v40  ;;  %v5139_v21 = vmul.f32 %v5107_v43, %v4883_v44  ;;  %v12888_v55 = vpop.eup %12887  ;;  %v5148_v45 = vmul.f32 0.5, %v14762_v14  ;;  %v5252_v17 = vmul.f32 0.044715, %v5220_v35 }
 0x224   : > { %8787 = vmatprep.mubr.f32.mxu1 %v15566_v28  ;;  %v5141_v13 = vmul.f32 %v5109_v62, %v4885_v54  ;;  %v5307_v12 = vmul.f32 0.7978846, %v5275_v61  ;;  %v5111_v58 = vadd.f32 1.0, %v12888_v55  ;;  %v5254_v44 = vmul.f32 0.044715, %v5222_v33 }
 0x225   : > { %v5312_v0 = vmul.f32 0.7978846, %v5280_v63  ;;  %v5150_v7 = vmul.f32 0.5, %v14765_v29  ;;  %v5279_v54 = vadd.f32 %v5247_v27, %v14853_v42  ;;  %v5187_v14 = vmul.f32 %v14911_v37, %v14911_v37 }
 0x226   : > { %11927 = vmatmul.mubr.msk.f32.gmra.mrb[70].mxu0 %vm5442_vm1, %v14628_v11  ;;  %12895 = vtanh.f32 %v5307_v12  ;;  %v5281_v16 = vadd.f32 %v5249_v53, %v14864_v48  ;;  %v5189_v43 = vmul.f32 %v14920_v10, %v14920_v10  ;;  %v5284_v29 = vadd.f32 %v5252_v17, %v14869_v57 }
 0x227   : > { %11930 = vmatmul.mubr.msk.f32.gmra.mrb[70].mxu1 %vm5442_vm1, %v14628_v11  ;;  %8858 = vmatprep.mubr.f32.mxu0 %v15566_v28  ;;  %12897 = vtanh.f32 %v5309_v41  ;;  %v5143_v62 = vmul.f32 %v5111_v58, %v4887_v9  ;;  %v5286_v61 = vadd.f32 %v5254_v44, %v14872_v6  ;;  %v5311_v15 = vmul.f32 0.7978846, %v5279_v54 }
 0x228   : > { %8941 = vmatprep.mubr.f32.mxu1 %v15566_v28  ;;  %12899 = vtanh.f32 %v5312_v0  ;;  %v5219_v5 = vmul.f32 %v5187_v14, %v14911_v37  ;;  %v5313_v63 = vmul.f32 0.7978846, %v5281_v16  ;;  %v5221_v51 = vmul.f32 %v5189_v43, %v14920_v10 }
 0x229   : > { %v5149_v12 = vmul.f32 0.5, %v14809_v8  ;;  %v5318_v3 = vmul.f32 0.7978846, %v5286_v61  ;;  %v5152_v23 = vmul.f32 0.5, %v14814_v40  ;;  %v5154_v27 = vmul.f32 0.5, %v14817_v2 }
 0x22a   : > { %11931 = vmatmul.mubr.msk.f32.vlgmr.msra.gmra.mrb[72].mxu0 %vm5442_vm1, %v14583_v52  ;;  %v5253_v9 = vmul.f32 0.044715, %v5221_v51  ;;  %v5156_v51 = vmul.f32 0.5, %v14869_v57 }
 0x22b   : > { %11934 = vmatmul.mubr.msk.f32.vlgmr.msra.gmra.mrb[72].mxu1 %vm5442_vm1, %v14583_v52  ;;  %8961 = vmatpush1.msra.mxu0 %v5135_v36  ;;  %v12890_v36 = vpop.eup %12889 }
 0x22c   : > { %9044 = vmatpush1.msra.mxu1 %v5137_v18  ;;  %9126 = vmatprep.subr.mxu0 %v5140_v47  ;;  %v4889_v18 = vmul.f32 0.5, %v14721_v25  ;;  %v5314_v47 = vmul.f32 0.7978846, %v5282_v59  ;;  %v12892_v60 = vpop.eup %12891  ;;  %v14914_v25 = vld [vmem:[%s14734_s13 + $0x38] sm:$0xff]  ;;  %v5113_v22 = vadd.f32 1.0, %v12890_v36  ;;  %v5285_v53 = vadd.f32 %v5253_v9, %v14920_v10 }
 0x22d   : > { %9209 = vmatprep.subr.mxu1 %v5142_v31  ;;  %8864 = vmatprep.mubr.f32.mxu0 %v15566_v28  ;;  %v14905_v31 = vld [vmem:[%s14734_s13 + $0x30] sm:$0xff]  ;;  %v12894_v26 = vpop.eup %12893  ;;  %v5372_v56 = vadd.f32 1.0, %v12892_v60  ;;  %v14928_v39 = vunpack.c.h.bf16 %v14914_v25  ;;  %v5316_v59 = vmul.f32 0.7978846, %v5284_v29  ;;  %v5251_v36 = vmul.f32 0.044715, %v5219_v5 }
 0x22e   : > { %8947 = vmatprep.mubr.f32.mxu1 %v15566_v28  ;;  %11932 = vmatmul.mubr.msk.f32.gmra.mrb[74].mxu0 %vm5442_vm1, %v14606_v38  ;;  %v14925_v30 = vunpack.c.h.bf16 %v14905_v31  ;;  %12901 = vtanh.f32 %v5314_v47  ;;  %v5374_v34 = vadd.f32 1.0, %v12894_v26  ;;  %v5145_v50 = vmul.f32 %v5113_v22, %v4889_v18  ;;  %v15018_v5 = vld [vmem:[%s14734_s13 + $0x50] sm:$0xff] }
 0x22f   : > { %11935 = vmatmul.mubr.msk.f32.gmra.mrb[74].mxu1 %vm5442_vm1, %v14606_v38  ;;  %8870 = vmatprep.mubr.f32.mxu0 %v15566_v28  ;;  %v5404_v46 = vmul.f32 %v5372_v56, %v5148_v45  ;;  %v5194_v32 = vmul.f32 %v14928_v39, %v14928_v39  ;;  %12903 = vtanh.f32 %v5311_v15  ;;  %v14968_v0 = vunpack.c.l.bf16 %v14905_v31 }
 0x230   : > { %8953 = vmatprep.mubr.f32.mxu1 %v15566_v28  ;;  %v5192_v19 = vmul.f32 %v14925_v30, %v14925_v30  ;;  %v5406_v1 = vmul.f32 %v5374_v34, %v5150_v7  ;;  %12905 = vtanh.f32 %v5313_v63  ;;  %v14977_v18 = vunpack.c.l.bf16 %v14914_v25 }
 0x231   : > { %v5226_v55 = vmul.f32 %v5194_v32, %v14928_v39  ;;  %12907 = vtanh.f32 %v5316_v59  ;;  %v5283_v26 = vadd.f32 %v5251_v36, %v14911_v37  ;;  %v5191_v22 = vmul.f32 %v14968_v0, %v14968_v0 }
 0x232   : > { %11933 = vmatmul.mubr.msk.f32.gmra.mrb[76].mxu0 %vm5442_vm1, %v14628_v11  ;;  %v5224_v20 = vmul.f32 %v5192_v19, %v14925_v30  ;;  %12909 = vtanh.f32 %v5318_v3  ;;  %v5193_v45 = vmul.f32 %v14977_v18, %v14977_v18  ;;  %v5317_v29 = vmul.f32 0.7978846, %v5285_v53  ;;  %v15075_v53 = vld [vmem:[%s15517_s6 + $0x50] sm:$0xff] }
 0x233   : > { %11936 = vmatmul.mubr.msk.f32.gmra.mrb[76].mxu1 %vm5442_vm1, %v14628_v11  ;;  %9024 = vmatprep.mubr.f32.mxu0 %v15566_v28  ;;  %v5258_v60 = vmul.f32 0.044715, %v5226_v55  ;;  %v5315_v16 = vmul.f32 0.7978846, %v5283_v26  ;;  %v5223_v43 = vmul.f32 %v5191_v22, %v14968_v0  ;;  %v15037_v3 = vunpack.c.h.bf16 %v15018_v5 }
 0x234   : > { %9107 = vmatprep.mubr.f32.mxu1 %v15566_v28  ;;  %v5256_v47 = vmul.f32 0.044715, %v5224_v20  ;;  %v5225_v19 = vmul.f32 %v5193_v45, %v14977_v18 }
 0x235   : > { %v5290_v34 = vadd.f32 %v5258_v60, %v14928_v39  ;;  %12911 = vtanh.f32 %v5315_v16 }
 0x236   : > { %11937 = vmatmul.mubr.msk.f32.vlgmr.msra.gmra.mrb[78].mxu0 %vm5442_vm1, %v14583_v52  ;;  %v5288_v2 = vadd.f32 %v5256_v47, %v14925_v30  ;;  %12913 = vtanh.f32 %v5317_v29 }
 0x237   : > { %11940 = vmatmul.mubr.msk.f32.vlgmr.msra.gmra.mrb[78].mxu1 %vm5442_vm1, %v14583_v52  ;;  %9127 = vmatpush1.msra.mxu0 %v5139_v21  ;;  %v12896_v21 = vpop.eup %12895 }
 0x238   : > { %9210 = vmatpush1.msra.mxu1 %v5141_v13  ;;  %9292 = vmatprep.subr.mxu0 %v5144_v24  ;;  %v12898_v13 = vpop.eup %12897  ;;  %v5147_v24 = vmul.f32 0.5, %v14798_v49  ;;  %v14971_v49 = vld [vmem:[%s14734_s13 + $0x48] sm:$0xff]  ;;  %v5371_v35 = vadd.f32 1.0, %v12896_v21  ;;  %v5255_v21 = vmul.f32 0.044715, %v5223_v43  ;;  %v15084_v43 = vld [vmem:[%s14734_s13 + $0x60] sm:$0xff] }
 0x239   : > { %9375 = vmatprep.subr.mxu1 %v5146_v4  ;;  %9030 = vmatprep.mubr.f32.mxu0 %v15566_v28  ;;  %v14962_v4 = vld [vmem:[%s14734_s13 + $0x40] sm:$0xff]  ;;  %v12900_v41 = vpop.eup %12899  ;;  %v5373_v40 = vadd.f32 1.0, %v12898_v13  ;;  %v14984_v58 = vunpack.c.h.bf16 %v14971_v49  ;;  %v5257_v13 = vmul.f32 0.044715, %v5225_v19  ;;  %v5160_v19 = vmul.f32 0.5, %v14925_v30 }
 0x23a   : > { %9113 = vmatprep.mubr.f32.mxu1 %v15566_v28  ;;  %11938 = vmatmul.mubr.msk.f32.gmra.mrb[80].mxu0 %vm5442_vm1, %v14606_v38  ;;  %v12902_v8 = vpop.eup %12901  ;;  %v14981_v33 = vunpack.c.h.bf16 %v14962_v4  ;;  %v5376_v31 = vadd.f32 1.0, %v12900_v41  ;;  %v5403_v17 = vmul.f32 %v5371_v35, %v5147_v24  ;;  %v15024_v59 = vunpack.c.l.bf16 %v14962_v4 }
 0x23b   : > { %11941 = vmatmul.mubr.msk.f32.gmra.mrb[80].mxu1 %vm5442_vm1, %v14606_v38  ;;  %9036 = vmatprep.mubr.f32.mxu0 %v15566_v28  ;;  %v5378_v25 = vadd.f32 1.0, %v12902_v8  ;;  %v5405_v44 = vmul.f32 %v5373_v40, %v5149_v12  ;;  %v5198_v54 = vmul.f32 %v14984_v58, %v14984_v58  ;;  %v15033_v24 = vunpack.c.l.bf16 %v14971_v49  ;;  %v15054_v8 = vld [vmem:[%s15517_s6 + $0x48] sm:$0xff] }
 0x23c   : > { %9119 = vmatprep.mubr.f32.mxu1 %v15566_v28  ;;  %v5196_v56 = vmul.f32 %v14981_v33, %v14981_v33  ;;  %v5408_v7 = vmul.f32 %v5376_v31, %v5152_v23  ;;  %v5158_v41 = vmul.f32 0.5, %v14872_v6  ;;  %v5287_v36 = vadd.f32 %v5255_v21, %v14968_v0 }
 0x23d   : > { %v5410_v14 = vmul.f32 %v5378_v25, %v5154_v27  ;;  %v5230_v15 = vmul.f32 %v5198_v54, %v14984_v58  ;;  %v5195_v49 = vmul.f32 %v15024_v59, %v15024_v59  ;;  %v5289_v35 = vadd.f32 %v5257_v13, %v14977_v18 }
 0x23e   : > { %11939 = vmatmul.mubr.msk.f32.gmra.mrb[82].mxu0 %vm5442_vm1, %v14628_v11  ;;  %v5228_v61 = vmul.f32 %v5196_v56, %v14981_v33  ;;  %v5197_v6 = vmul.f32 %v15033_v24, %v15033_v24  ;;  %v5319_v26 = vmul.f32 0.7978846, %v5287_v36  ;;  %v5157_v54 = vmul.f32 0.5, %v14920_v10 }
 0x23f   : > { %11942 = vmatmul.mubr.msk.f32.gmra.mrb[82].mxu1 %vm5442_vm1, %v14628_v11  ;;  %9190 = vmatprep.mubr.f32.mxu0 %v15566_v28  ;;  %v5262_v4 = vmul.f32 0.044715, %v5230_v15  ;;  %v5227_v22 = vmul.f32 %v5195_v49, %v15024_v59  ;;  %v5321_v45 = vmul.f32 0.7978846, %v5289_v35  ;;  %v15108_v15 = vunpack.c.h.bf16 %v15084_v43 }
 0x240   : > { %9273 = vmatprep.mubr.f32.mxu1 %v15566_v28  ;;  %v5260_v12 = vmul.f32 0.044715, %v5228_v61  ;;  %v15101_v61 = vld [vmem:[%s15517_s6 + $0x58] sm:$0xf]  ;;  %v5162_v21 = vmul.f32 0.5, %v14928_v39 }
 0x241   : > { %v5294_v60 = vadd.f32 %v5262_v4, %v14984_v58 }
 0x242   : > { %11943 = vmatmul.mubr.msk.f32.vlgmr.msra.gmra.mrb[84].mxu0 %vm5442_vm1, %v14583_v52  ;;  %v5292_v40 = vadd.f32 %v5260_v12, %v14981_v33 }
 0x243   : > { %11946 = vmatmul.mubr.msk.f32.vlgmr.msra.gmra.mrb[84].mxu1 %vm5442_vm1, %v14583_v52  ;;  %9293 = vmatpush1.msra.mxu0 %v5143_v62  ;;  %v12904_v62 = vpop.eup %12903 }
 0x244   : > { %9376 = vmatpush1.msra.mxu1 %v5145_v50  ;;  %9196 = vmatprep.mubr.f32.mxu0 %v15566_v28  ;;  %v12906_v32 = vpop.eup %12905  ;;  %v5151_v50 = vmul.f32 0.5, %v14853_v42  ;;  %v15027_v42 = vld [vmem:[%s14734_s13 + $0x58] sm:$0xff]  ;;  %v5375_v20 = vadd.f32 1.0, %v12904_v62  ;;  %v5324_v56 = vmul.f32 0.7978846, %v5292_v40 }
 0x245   : > { %9279 = vmatprep.mubr.f32.mxu1 %v15566_v28  ;;  %9567 = vmatprep.subr.mxu0 %v5404_v46  ;;  %v5320_v46 = vmul.f32 0.7978846, %v5288_v2  ;;  %v12908_v63 = vpop.eup %12907  ;;  %v5377_v57 = vadd.f32 1.0, %v12906_v32  ;;  %v5259_v62 = vmul.f32 0.044715, %v5227_v22 }
 0x246   : > { %11944 = vmatmul.mubr.msk.f32.gmra.mrb[86].mxu0 %vm5442_vm1, %v14606_v38  ;;  %9650 = vmatprep.subr.mxu1 %v5406_v1  ;;  %v5322_v1 = vmul.f32 0.7978846, %v5290_v34  ;;  %v5380_v55 = vadd.f32 1.0, %v12908_v63  ;;  %v5407_v9 = vmul.f32 %v5375_v20, %v5151_v50  ;;  %v5155_v34 = vmul.f32 0.5, %v14911_v37  ;;  %v15093_v37 = vld [vmem:[%s14734_s13 + $0x68] sm:$0xff] }
 0x247   : > { %11947 = vmatmul.mubr.msk.f32.gmra.mrb[86].mxu1 %vm5442_vm1, %v14606_v38  ;;  %9202 = vmatprep.mubr.f32.mxu0 %v15566_v28  ;;  %12915 = vtanh.f32 %v5320_v46  ;;  %v15090_v46 = vunpack.c.l.bf16 %v15018_v5  ;;  %v15104_v50 = vunpack.c.l.bf16 %v15027_v42 }
 0x248   : > { %9285 = vmatprep.mubr.f32.mxu1 %v15566_v28  ;;  %12917 = vtanh.f32 %v5322_v1  ;;  %v5412_v31 = vmul.f32 %v5380_v55, %v5156_v51  ;;  %v15111_v51 = vunpack.c.h.bf16 %v15093_v37  ;;  %v5204_v55 = vmul.f32 %v15108_v15, %v15108_v15 }
 0x249   : > { %12919 = vtanh.f32 %v5319_v26  ;;  %v5199_v20 = vmul.f32 %v15090_v46, %v15090_v46 }
 0x24a   : > { %11945 = vmatmul.mubr.msk.f32.gmra.mrb[88].mxu0 %vm5442_vm1, %v14628_v11  ;;  %12921 = vtanh.f32 %v5321_v45  ;;  %v5206_v36 = vmul.f32 %v15111_v51, %v15111_v51  ;;  %v15145_v45 = vld [vmem:[%s14734_s13 + $0x70] sm:$0xff] }
 0x24b   : > { %11948 = vmatmul.mubr.msk.f32.gmra.mrb[88].mxu1 %vm5442_vm1, %v14628_v11  ;;  %9356 = vmatprep.mubr.f32.mxu0 %v15566_v28  ;;  %12923 = vtanh.f32 %v5324_v56 }
 0x24c   : > { %9439 = vmatprep.mubr.f32.mxu1 %v15566_v28  ;;  %v5238_v22 = vmul.f32 %v5206_v36, %v15111_v51 }
 0x24e   : > { %11949 = vmatmul.mubr.msk.f32.vlgmr.msra.gmra.mrb[90].mxu0 %vm5442_vm1, %v14583_v52 }
 0x24f   : > { %11952 = vmatmul.mubr.msk.f32.vlgmr.msra.gmra.mrb[90].mxu1 %vm5442_vm1, %v14583_v52  ;;  %9362 = vmatprep.mubr.f32.mxu0 %v15566_v28  ;;  %v5153_v52 = vmul.f32 0.5, %v14864_v48  ;;  %v12910_v48 = vpop.eup %12909 }
 0x250   : > { %9445 = vmatprep.mubr.f32.mxu1 %v15566_v28  ;;  %9568 = vmatpush1.msra.mxu0 %v5403_v17  ;;  %v5382_v23 = vadd.f32 1.0, %v12910_v48  ;;  %v5229_v17 = vmul.f32 %v5197_v6, %v15033_v24  ;;  %v12912_v2 = vpop.eup %12911  ;;  %v5291_v48 = vadd.f32 %v5259_v62, %v15024_v59  ;;  %v5231_v6 = vmul.f32 %v5199_v20, %v15090_v46 }
 0x251   : > { %9651 = vmatpush1.msra.mxu1 %v5405_v44  ;;  %9733 = vmatprep.subr.mxu0 %v5408_v7  ;;  %v5409_v47 = vmul.f32 %v5377_v57, %v5153_v52  ;;  %v12914_v7 = vpop.eup %12913  ;;  %v5379_v32 = vadd.f32 1.0, %v12912_v2  ;;  %v5201_v57 = vmul.f32 %v15104_v50, %v15104_v50  ;;  %v5164_v2 = vmul.f32 0.5, %v14981_v33 }
 0x252   : > { %11950 = vmatmul.mubr.msk.f32.gmra.mrb[92].mxu0 %vm5442_vm1, %v14606_v38  ;;  %9816 = vmatprep.subr.mxu1 %v5410_v14  ;;  %v5414_v25 = vmul.f32 %v5382_v23, %v5158_v41  ;;  %v5326_v14 = vmul.f32 0.7978846, %v5294_v60  ;;  %v12916_v29 = vpop.eup %12915  ;;  %v5261_v30 = vmul.f32 0.044715, %v5229_v17  ;;  %v5381_v52 = vadd.f32 1.0, %v12914_v7 }
 0x253   : > { %11953 = vmatmul.mubr.msk.f32.gmra.mrb[92].mxu1 %vm5442_vm1, %v14606_v38  ;;  %9368 = vmatprep.mubr.f32.mxu0 %v15566_v28  ;;  %v15040_v38 = vunpack.c.h.bf16 %v15027_v42  ;;  %v12918_v10 = vpop.eup %12917  ;;  %v5384_v5 = vadd.f32 1.0, %v12916_v29  ;;  %v5411_v12 = vmul.f32 %v5379_v32, %v5155_v34  ;;  %v5323_v35 = vmul.f32 0.7978846, %v5291_v48 }
 0x254   : > { %9451 = vmatprep.mubr.f32.mxu1 %v15566_v28  ;;  %12925 = vtanh.f32 %v5326_v14  ;;  %v5386_v42 = vadd.f32 1.0, %v12918_v10  ;;  %v5293_v13 = vadd.f32 %v5261_v30, %v15033_v24  ;;  %v5413_v4 = vmul.f32 %v5381_v52, %v5157_v54 }
 0x255   : > { %v5202_v27 = vmul.f32 %v15040_v38, %v15040_v38  ;;  %v5416_v41 = vmul.f32 %v5384_v5, %v5160_v19  ;;  %v5233_v40 = vmul.f32 %v5201_v57, %v15104_v50  ;;  %12927 = vtanh.f32 %v5323_v35 }
 0x256   : > { %11951 = vmatmul.mubr.msk.f32.gmra.mrb[94].mxu0 %vm5442_vm1, %v14628_v11  ;;  %v5418_v49 = vmul.f32 %v5386_v42, %v5162_v21  ;;  %v5263_v56 = vmul.f32 0.044715, %v5231_v6  ;;  %v15160_v54 = vunpack.c.l.bf16 %v15093_v37  ;;  %v5270_v29 = vmul.f32 0.044715, %v5238_v22 }
 0x257   : > { %11954 = vmatmul.mubr.msk.f32.gmra.mrb[94].mxu1 %vm5442_vm1, %v14628_v11  ;;  %9631 = vmatprep.mubr.f32.mxu0 %v15566_v28  ;;  %v5200_v11 = vmul.f32 %v15037_v3, %v15037_v3  ;;  %v5234_v16 = vmul.f32 %v5202_v27, %v15040_v38  ;;  %v5159_v27 = vmul.f32 0.5, %v14968_v0  ;;  %v15154_v0 = vld [vmem:[%s14734_s13 + $0x78] sm:$0xff]  ;;  %v5265_v34 = vmul.f32 0.044715, %v5233_v40 }
 0x258   : > { %9714 = vmatprep.mubr.f32.mxu1 %v15566_v28  ;;  %v15167_v19 = vunpack.c.h.bf16 %v15154_v0  ;;  %v5166_v62 = vmul.f32 0.5, %v14984_v58  ;;  %v5295_v10 = vadd.f32 %v5263_v56, %v15090_v46  ;;  %v5205_v52 = vmul.f32 %v15160_v54, %v15160_v54 }
 0x259   : > { %v5232_v44 = vmul.f32 %v5200_v11, %v15037_v3  ;;  %v5266_v63 = vmul.f32 0.044715, %v5234_v16  ;;  %v12920_v11 = vpop.eup %12919  ;;  %v15164_v16 = vunpack.c.h.bf16 %v15145_v45  ;;  %v5297_v30 = vadd.f32 %v5265_v34, %v15104_v50 }
 0x25a   : > { %11958 = vmatmul.mubr.msk.f32.vlgmr.msra.gmra.mrb[48].mxu0 %vm5442_vm1, %v15054_v8  ;;  %v12922_v60 = vpop.eup %12921  ;;  %v5383_v7 = vadd.f32 1.0, %v12920_v11  ;;  %v5302_v42 = vadd.f32 %v5270_v29, %v15111_v51  ;;  %v5210_v48 = vmul.f32 %v15167_v19, %v15167_v19  ;;  %v5163_v6 = vmul.f32 0.5, %v15024_v59 }
 0x25b   : > { %11961 = vmatmul.mubr.msk.f32.vlgmr.msra.gmra.mrb[48].mxu1 %vm5442_vm1, %v15054_v8  ;;  %9637 = vmatprep.mubr.f32.mxu0 %v15566_v28  ;;  %v5264_v1 = vmul.f32 0.044715, %v5232_v44  ;;  %v5298_v23 = vadd.f32 %v5266_v63, %v15040_v38  ;;  %v12924_v17 = vpop.eup %12923  ;;  %v15151_v44 = vunpack.c.l.bf16 %v15084_v43  ;;  %v5385_v33 = vadd.f32 1.0, %v12922_v60 }
 0x25c   : > { %9720 = vmatprep.mubr.f32.mxu1 %v15566_v28  ;;  %9734 = vmatpush1.msra.mxu0 %v5407_v9  ;;  %v5325_v9 = vmul.f32 0.7978846, %v5293_v13  ;;  %v5388_v43 = vadd.f32 1.0, %v12924_v17  ;;  %v5208_v5 = vmul.f32 %v15164_v16, %v15164_v16  ;;  %v5327_v13 = vmul.f32 0.7978846, %v5295_v10 }
 0x25d   : > { %9817 = vmatpush1.msra.mxu1 %v5409_v47  ;;  %9899 = vmatprep.subr.mxu0 %v5412_v31  ;;  %v5296_v39 = vadd.f32 %v5264_v1, %v15037_v3  ;;  %v5236_v31 = vmul.f32 %v5204_v55, %v15108_v15  ;;  %v5330_v26 = vmul.f32 0.7978846, %v5298_v23  ;;  %v5203_v32 = vmul.f32 %v15151_v44, %v15151_v44 }
 0x25e   : > { %11959 = vmatmul.mubr.msk.f32.gmra.mrb[50].mxu0 %vm5442_vm1, %v15075_v53  ;;  %9982 = vmatprep.subr.mxu1 %v5414_v25  ;;  %v5161_v25 = vmul.f32 0.5, %v14977_v18  ;;  %v12926_v18 = vpop.eup %12925  ;;  %12929 = vtanh.f32 %v5325_v9  ;;  %v5415_v1 = vmul.f32 %v5383_v7, %v5159_v27  ;;  %v5420_v21 = vmul.f32 %v5388_v43, %v5164_v2 }
 0x25f   : > { %11962 = vmatmul.mubr.msk.f32.gmra.mrb[50].mxu1 %vm5442_vm1, %v15075_v53  ;;  %9643 = vmatprep.mubr.f32.mxu0 %v15566_v28  ;;  %v5328_v47 = vmul.f32 0.7978846, %v5296_v39  ;;  %v5268_v14 = vmul.f32 0.044715, %v5236_v31  ;;  %v5390_v37 = vadd.f32 1.0, %v12926_v18  ;;  %v5235_v57 = vmul.f32 %v5203_v32, %v15151_v44  ;;  %v12928_v55 = vpop.eup %12927 }
 0x260   : > { %9726 = vmatprep.mubr.f32.mxu1 %v15566_v28  ;;  %v5417_v63 = vmul.f32 %v5385_v33, %v5161_v25  ;;  %v5237_v39 = vmul.f32 %v5205_v52, %v15160_v54  ;;  %v5334_v36 = vmul.f32 0.7978846, %v5302_v42  ;;  %v5165_v9 = vmul.f32 0.5, %v15033_v24 }
 0x261   : > { %12931 = vtanh.f32 %v5328_v47  ;;  %v5300_v58 = vadd.f32 %v5268_v14, %v15108_v15  ;;  %v5422_v20 = vmul.f32 %v5390_v37, %v5166_v62  ;;  %v5267_v40 = vmul.f32 0.044715, %v5235_v57 }
 0x262   : > { %11960 = vmatmul.mubr.msk.f32.gmra.mrb[52].mxu0 %vm5442_vm1, %v15101_v61  ;;  %12933 = vtanh.f32 %v5330_v26  ;;  %v5168_v47 = vmul.f32 0.5, %v15037_v3  ;;  %v5269_v31 = vmul.f32 0.044715, %v5237_v39  ;;  %v15207_v60 = vunpack.c.l.bf16 %v15145_v45 }
 0x263   : > { %11963 = vmatmul.mubr.msk.f32.gmra.mrb[52].mxu1 %vm5442_vm1, %v15101_v61  ;;  %9797 = vmatprep.mubr.f32.mxu0 %v15566_v28  ;;  %12935 = vtanh.f32 %v5327_v13  ;;  %v5387_v59 = vadd.f32 1.0, %v12928_v55  ;;  %v15211_v27 = vunpack.c.l.bf16 %v15154_v0  ;;  %v5170_v3 = vmul.f32 0.5, %v15040_v38 }
 0x264   : > { %9880 = vmatprep.mubr.f32.mxu1 %v15566_v28  ;;  %v5299_v45 = vadd.f32 %v5267_v40, %v15151_v44  ;;  %v5301_v2 = vadd.f32 %v5269_v31, %v15160_v54  ;;  %v5207_v56 = vmul.f32 %v15207_v60, %v15207_v60  ;;  %v5169_v42 = vmul.f32 0.5, %v15104_v50 }
 0x265   : > { %v5419_v0 = vmul.f32 %v5387_v59, %v5163_v6  ;;  %v5209_v38 = vmul.f32 %v15211_v27, %v15211_v27  ;;  %v5172_v13 = vmul.f32 0.5, %v15108_v15  ;;  %v5176_v31 = vmul.f32 0.5, %v15164_v16 }
 0x266   : > { %11964 = vmatmul.mubr.msk.f32.vlgmr.msra.gmra.mrb[54].mxu0 %vm5442_vm1, %v15054_v8  ;;  %v5331_v43 = vmul.f32 0.7978846, %v5299_v45  ;;  %v5333_v29 = vmul.f32 0.7978846, %v5301_v2  ;;  %v5239_v62 = vmul.f32 %v5207_v56, %v15207_v60  ;;  %v5177_v45 = vmul.f32 0.5, %v15211_v27 }
 0x267   : > { %11967 = vmatmul.mubr.msk.f32.vlgmr.msra.gmra.mrb[54].mxu1 %vm5442_vm1, %v15054_v8  ;;  %9803 = vmatprep.mubr.f32.mxu0 %v15566_v28  ;;  %v5241_v32 = vmul.f32 %v5209_v38, %v15211_v27 }
 0x268   : > { %9886 = vmatprep.mubr.f32.mxu1 %v15566_v28  ;;  %9900 = vmatpush1.msra.mxu0 %v5411_v12  ;;  %v5329_v12 = vmul.f32 0.7978846, %v5297_v30  ;;  %v12930_v23 = vpop.eup %12929 }
 0x269   : > { %9983 = vmatpush1.msra.mxu1 %v5413_v4  ;;  %10065 = vmatprep.subr.mxu0 %v5416_v41  ;;  %v5332_v4 = vmul.f32 0.7978846, %v5300_v58  ;;  %v5240_v41 = vmul.f32 %v5208_v5, %v15164_v16  ;;  %v5389_v25 = vadd.f32 1.0, %v12930_v23  ;;  %v5167_v5 = vmul.f32 0.5, %v15090_v46 }
 0x26a   : > { %11965 = vmatmul.mubr.msk.f32.gmra.mrb[56].mxu0 %vm5442_vm1, %v15075_v53  ;;  %10148 = vmatprep.subr.mxu1 %v5418_v49  ;;  %v5242_v49 = vmul.f32 %v5210_v48, %v15167_v19  ;;  %12937 = vtanh.f32 %v5329_v12  ;;  %v5273_v48 = vmul.f32 0.044715, %v5241_v32  ;;  %v5174_v12 = vmul.f32 0.5, %v15111_v51 }
 0x26b   : > { %11968 = vmatmul.mubr.msk.f32.gmra.mrb[56].mxu1 %vm5442_vm1, %v15075_v53  ;;  %9809 = vmatprep.mubr.f32.mxu0 %v15566_v28  ;;  %v12932_v35 = vpop.eup %12931  ;;  %12939 = vtanh.f32 %v5332_v4  ;;  %v5272_v24 = vmul.f32 0.044715, %v5240_v41  ;;  %v5421_v7 = vmul.f32 %v5389_v25, %v5165_v9  ;;  %v5171_v9 = vmul.f32 0.5, %v15151_v44 }
 0x26c   : > { %9892 = vmatprep.mubr.f32.mxu1 %v15566_v28  ;;  %v12934_v11 = vpop.eup %12933  ;;  %v5392_v26 = vadd.f32 1.0, %v12932_v35  ;;  %12941 = vtanh.f32 %v5334_v36  ;;  %v5274_v22 = vmul.f32 0.044715, %v5242_v49  ;;  %v5305_v15 = vadd.f32 %v5273_v48, %v15211_v27 }
 0x26d   : > { %v5394_v17 = vadd.f32 1.0, %v12934_v11  ;;  %v5304_v18 = vadd.f32 %v5272_v24, %v15164_v16  ;;  %v12936_v37 = vpop.eup %12935  ;;  %12943 = vtanh.f32 %v5331_v43  ;;  %v5173_v11 = vmul.f32 0.5, %v15160_v54 }
 0x26e   : > { %11966 = vmatmul.mubr.msk.f32.gmra.mrb[58].mxu0 %vm5442_vm1, %v15101_v61  ;;  %v5424_v34 = vmul.f32 %v5392_v26, %v5168_v47  ;;  %v5306_v33 = vadd.f32 %v5274_v22, %v15167_v19  ;;  %12945 = vtanh.f32 %v5333_v29  ;;  %v5337_v36 = vmul.f32 0.7978846, %v5305_v15 }
 0x26f   : > { %11969 = vmatmul.mubr.msk.f32.gmra.mrb[58].mxu1 %vm5442_vm1, %v15101_v61  ;;  %9963 = vmatprep.mubr.f32.mxu0 %v15566_v28  ;;  %v5426_v14 = vmul.f32 %v5394_v17, %v5170_v3  ;;  %v5336_v10 = vmul.f32 0.7978846, %v5304_v18  ;;  %v5178_v24 = vmul.f32 0.5, %v15167_v19  ;;  %v5175_v3 = vmul.f32 0.5, %v15207_v60 }
 0x270   : > { %10046 = vmatprep.mubr.f32.mxu1 %v15566_v28  ;;  %v5338_v52 = vmul.f32 0.7978846, %v5306_v33  ;;  %v12981_v33 = vmov 1983009808   ;;  %v11398_v43 = vlaneseq }
 0x271   : > { %12947 = vtanh.f32 %v5336_v10 }
 0x272   : > { %11970 = vmatmul.mubr.msk.f32.vlgmr.msra.gmra.mrb[60].mxu0 %vm5442_vm1, %v15054_v8  ;;  %12949 = vtanh.f32 %v5338_v52 }
 0x273   : > { %11973 = vmatmul.mubr.msk.f32.vlgmr.msra.gmra.mrb[60].mxu1 %vm5442_vm1, %v15054_v8  ;;  %9969 = vmatprep.mubr.f32.mxu0 %v15566_v28 }
 0x274   : > { %10052 = vmatprep.mubr.f32.mxu1 %v15566_v28  ;;  %10066 = vmatpush1.msra.mxu0 %v5415_v1  ;;  %v12938_v30 = vpop.eup %12937 }
 0x275   : > { %10149 = vmatpush1.msra.mxu1 %v5417_v63  ;;  %10231 = vmatprep.subr.mxu0 %v5420_v21  ;;  %v12940_v1 = vpop.eup %12939  ;;  %v5271_v63 = vmul.f32 0.044715, %v5239_v62  ;;  %v5391_v21 = vadd.f32 1.0, %v12936_v37 }
 0x276   : > { %11971 = vmatmul.mubr.msk.f32.gmra.mrb[62].mxu0 %vm5442_vm1, %v15075_v53  ;;  %10314 = vmatprep.subr.mxu1 %v5422_v20  ;;  %v12942_v58 = vpop.eup %12941  ;;  %v5393_v20 = vadd.f32 1.0, %v12938_v30  ;;  %v5396_v57 = vadd.f32 1.0, %v12940_v1 }
 0x277   : > { %11974 = vmatmul.mubr.msk.f32.gmra.mrb[62].mxu1 %vm5442_vm1, %v15075_v53  ;;  %9975 = vmatprep.mubr.f32.mxu0 %v15566_v28  ;;  %v5398_v46 = vadd.f32 1.0, %v12942_v58  ;;  %v5303_v50 = vadd.f32 %v5271_v63, %v15207_v60  ;;  %v5423_v39 = vmul.f32 %v5391_v21, %v5167_v5  ;;  %v12944_v23 = vpop.eup %12943  ;;  %v15332_v60 = vpop.permute.xlu0 %10996  ;;  %v11399_v21 = vshrl.u32 %v11398_v43, 7 }
 0x278   : > { %10058 = vmatprep.mubr.f32.mxu1 %v15566_v28  ;;  %v5425_v55 = vmul.f32 %v5393_v20, %v5169_v42  ;;  %v5428_v4 = vmul.f32 %v5396_v57, %v5172_v13  ;;  %v12946_v49 = vpop.eup %12945  ;;  %v5395_v40 = vadd.f32 1.0, %v12944_v23 }
 0x279   : > { %v5430_v41 = vmul.f32 %v5398_v46, %v5174_v12  ;;  %v5335_v51 = vmul.f32 0.7978846, %v5303_v50  ;;  %v5397_v47 = vadd.f32 1.0, %v12946_v49 }
 0x27a   : > { %11972 = vmatmul.mubr.msk.f32.gmra.mrb[64].mxu0 %vm5442_vm1, %v15101_v61  ;;  %v5427_v44 = vmul.f32 %v5395_v40, %v5171_v9 }
 0x27b   : > { %11975 = vmatmul.mubr.msk.f32.gmra.mrb[64].mxu1 %vm5442_vm1, %v15101_v61  ;;  %10129 = vmatprep.mubr.f32.mxu0 %v15566_v28  ;;  %v12948_v35 = vpop.eup %12947  ;;  %12951 = vtanh.f32 %v5335_v51  ;;  %v5429_v26 = vmul.f32 %v5397_v47, %v5173_v11 }
 0x27c   : > { %10212 = vmatprep.mubr.f32.mxu1 %v15566_v28  ;;  %v12950_v6 = vpop.eup %12949  ;;  %12953 = vtanh.f32 %v5337_v36  ;;  %v5400_v59 = vadd.f32 1.0, %v12948_v35 }
 0x27d   : > { %v5402_v25 = vadd.f32 1.0, %v12950_v6 }
 0x27e   : > { %11976 = vmatmul.mubr.msk.f32.vlgmr.msra.gmra.mrb[66].mxu0 %vm5442_vm1, %v15054_v8  ;;  %v5432_v54 = vmul.f32 %v5400_v59, %v5176_v31 }
 0x27f   : > { %11979 = vmatmul.mubr.msk.f32.vlgmr.msra.gmra.mrb[66].mxu1 %vm5442_vm1, %v15054_v8  ;;  %10135 = vmatprep.mubr.f32.mxu0 %v15566_v28  ;;  %v5434_v16 = vmul.f32 %v5402_v25, %v5178_v24 }
 0x280   : > { %10218 = vmatprep.mubr.f32.mxu1 %v15566_v28  ;;  %10232 = vmatpush1.msra.mxu0 %v5419_v0 }
 0x281   : > { %10315 = vmatpush1.msra.mxu1 %v5421_v7  ;;  %10397 = vmatprep.subr.mxu0 %v5424_v34 }
 0x282   : > { %11977 = vmatmul.mubr.msk.f32.gmra.mrb[68].mxu0 %vm5442_vm1, %v15075_v53  ;;  %10480 = vmatprep.subr.mxu1 %v5426_v14  ;;  %v11396_v14 = vunpack.c.l.s4 %v12981_v33 }
 0x283   : > { %11980 = vmatmul.mubr.msk.f32.gmra.mrb[68].mxu1 %vm5442_vm1, %v15075_v53  ;;  %10141 = vmatprep.mubr.f32.mxu0 %v15566_v28 }
 0x284   : > { %10224 = vmatprep.mubr.f32.mxu1 %v15566_v28  ;;  %v11397_v63 = vunpack.c.0.s8 %v11396_v14 }
 0x285   : > { %v12952_v19 = vpop.eup %12951 }
 0x286   : > { %11978 = vmatmul.mubr.msk.f32.gmra.mrb[70].mxu0 %vm5442_vm1, %v15101_v61  ;;  %v12954_v22 = vpop.eup %12953  ;;  %v5399_v17 = vadd.f32 1.0, %v12952_v19  ;;  %v15356_v15 = vsub.s32 %v11397_v63, %v11399_v21 }
 0x287   : > { %11981 = vmatmul.mubr.msk.f32.gmra.mrb[70].mxu1 %vm5442_vm1, %v15101_v61  ;;  %10295 = vmatprep.mubr.f32.mxu0 %v15566_v28  ;;  %v5401_v2 = vadd.f32 1.0, %v12954_v22 }
 0x288   : > { %10378 = vmatprep.mubr.f32.mxu1 %v15566_v28  ;;  %v5431_v56 = vmul.f32 %v5399_v17, %v5175_v3 }
 0x289   : > { %v5433_v0 = vmul.f32 %v5401_v2, %v5177_v45 }
 0x28a   : > { %11982 = vmatmul.mubr.msk.f32.vlgmr.msra.gmra.mrb[72].mxu0 %vm5442_vm1, %v15054_v8 }
 0x28b   : > { %11985 = vmatmul.mubr.msk.f32.vlgmr.msra.gmra.mrb[72].mxu1 %vm5442_vm1, %v15054_v8  ;;  %10301 = vmatprep.mubr.f32.mxu0 %v15566_v28 }
 0x28c   : > { %10384 = vmatprep.mubr.f32.mxu1 %v15566_v28  ;;  %10398 = vmatpush1.msra.mxu0 %v5423_v39 }
 0x28d   : > { %10481 = vmatpush1.msra.mxu1 %v5425_v55  ;;  %10563 = vmatprep.subr.mxu0 %v5428_v4 }
 0x28e   : > { %11983 = vmatmul.mubr.msk.f32.gmra.mrb[74].mxu0 %vm5442_vm1, %v15075_v53  ;;  %10646 = vmatprep.subr.mxu1 %v5430_v41 }
 0x28f   : > { %11986 = vmatmul.mubr.msk.f32.gmra.mrb[74].mxu1 %vm5442_vm1, %v15075_v53  ;;  %10307 = vmatprep.mubr.f32.mxu0 %v15566_v28 }
 0x290   : > { %10390 = vmatprep.mubr.f32.mxu1 %v15566_v28 }
 0x292   : > { %11984 = vmatmul.mubr.msk.f32.gmra.mrb[76].mxu0 %vm5442_vm1, %v15101_v61 }
 0x293   : > { %11987 = vmatmul.mubr.msk.f32.gmra.mrb[76].mxu1 %vm5442_vm1, %v15101_v61  ;;  %10461 = vmatprep.mubr.f32.mxu0 %v15566_v28 }
 0x294   : > { %10544 = vmatprep.mubr.f32.mxu1 %v15566_v28 }
 0x296   : > { %11988 = vmatmul.mubr.msk.f32.vlgmr.msra.gmra.mrb[78].mxu0 %vm5442_vm1, %v15054_v8 }
 0x297   : > { %11991 = vmatmul.mubr.msk.f32.vlgmr.msra.gmra.mrb[78].mxu1 %vm5442_vm1, %v15054_v8  ;;  %10467 = vmatprep.mubr.f32.mxu0 %v15566_v28 }
 0x298   : > { %10550 = vmatprep.mubr.f32.mxu1 %v15566_v28  ;;  %10564 = vmatpush1.msra.mxu0 %v5427_v44 }
 0x299   : > { %10647 = vmatpush1.msra.mxu1 %v5429_v26  ;;  %10729 = vmatprep.subr.mxu0 %v5432_v54 }
 0x29a   : > { %11989 = vmatmul.mubr.msk.f32.gmra.mrb[80].mxu0 %vm5442_vm1, %v15075_v53  ;;  %10812 = vmatprep.subr.mxu1 %v5434_v16 }
 0x29b   : > { %11992 = vmatmul.mubr.msk.f32.gmra.mrb[80].mxu1 %vm5442_vm1, %v15075_v53  ;;  %10473 = vmatprep.mubr.f32.mxu0 %v15566_v28 }
 0x29c   : > { %10556 = vmatprep.mubr.f32.mxu1 %v15566_v28 }
 0x29e   : > { %11990 = vmatmul.mubr.msk.f32.gmra.mrb[82].mxu0 %vm5442_vm1, %v15101_v61 }
 0x29f   : > { %11993 = vmatmul.mubr.msk.f32.gmra.mrb[82].mxu1 %vm5442_vm1, %v15101_v61  ;;  %10627 = vmatprep.mubr.f32.mxu0 %v15566_v28 }
 0x2a0   : > { %10710 = vmatprep.mubr.f32.mxu1 %v15566_v28 }
 0x2a2   : > { %11994 = vmatmul.mubr.msk.f32.vlgmr.msra.gmra.mrb[84].mxu0 %vm5442_vm1, %v15054_v8 }
 0x2a3   : > { %11997 = vmatmul.mubr.msk.f32.vlgmr.msra.gmra.mrb[84].mxu1 %vm5442_vm1, %v15054_v8  ;;  %10633 = vmatprep.mubr.f32.mxu0 %v15566_v28 }
 0x2a4   : > { %10716 = vmatprep.mubr.f32.mxu1 %v15566_v28  ;;  %10730 = vmatpush1.msra.mxu0 %v5431_v56 }
 0x2a5   : > { %10813 = vmatpush1.msra.mxu1 %v5433_v0 }
 0x2a6   : > { %11995 = vmatmul.mubr.msk.f32.gmra.mrb[86].mxu0 %vm5442_vm1, %v15075_v53 }
 0x2a7   : > { %11998 = vmatmul.mubr.msk.f32.gmra.mrb[86].mxu1 %vm5442_vm1, %v15075_v53  ;;  %10639 = vmatprep.mubr.f32.mxu0 %v15566_v28 }
 0x2a8   : > { %10722 = vmatprep.mubr.f32.mxu1 %v15566_v28 }
 0x2aa   : > { %11996 = vmatmul.mubr.msk.f32.gmra.mrb[88].mxu0 %vm5442_vm1, %v15101_v61 }
 0x2ab   : > { %11999 = vmatmul.mubr.msk.f32.gmra.mrb[88].mxu1 %vm5442_vm1, %v15101_v61  ;;  %10793 = vmatprep.mubr.f32.mxu0 %v15566_v28 }
 0x2ac   : > { %10876 = vmatprep.mubr.f32.mxu1 %v15566_v28 }
 0x2ae   : > { %12000 = vmatmul.mubr.msk.f32.vlgmr.msra.gmra.mrb[90].mxu0 %vm5442_vm1, %v15054_v8 }
 0x2af   : > { %12003 = vmatmul.mubr.msk.f32.vlgmr.msra.gmra.mrb[90].mxu1 %vm5442_vm1, %v15054_v8  ;;  %10799 = vmatprep.mubr.f32.mxu0 %v15566_v28  ;;  %v15330_v8 = vpop.permute.xlu1 %11006 }
 0x2b0   : > { %10882 = vmatprep.mubr.f32.mxu1 %v15566_v28 }
 0x2b2   : > { %12001 = vmatmul.mubr.msk.f32.gmra.mrb[92].mxu0 %vm5442_vm1, %v15075_v53 }
 0x2b3   : > { %12004 = vmatmul.mubr.msk.f32.gmra.mrb[92].mxu1 %vm5442_vm1, %v15075_v53  ;;  %10805 = vmatprep.mubr.f32.mxu0 %v15566_v28  ;;  %v15344_v29 = vpop.permute.xlu1 %11001 }
 0x2b4   : > { %10888 = vmatprep.mubr.f32.mxu1 %v15566_v28 }
 0x2b6   : > { %12002 = vmatmul.mubr.msk.f32.gmra.mrb[94].mxu0 %vm5442_vm1, %v15101_v61 }
 0x2b7   : > { %12005 = vmatmul.mubr.msk.f32.gmra.mrb[94].mxu1 %vm5442_vm1, %v15101_v61 }
 0x32d   : > { %v9633_v27 = vpop.f32.mrb[48].mxu0 }
 0x32e   : > { %v11009_v18 = vadd.f32 %v15332_v60, %v9633_v27  ;;  %v9716_v38 = vpop.f32.mrb[48].mxu1  ;;  %v9635_v53 = vpop.f32.mrb[49].mxu0 }
 0x32f   : > { %v11011_v7 = vadd.f32 %v15332_v60, %v9716_v38  ;;  %v11010_v34 = vadd.f32 %v15332_v60, %v9635_v53  ;;  %v9718_v28 = vpop.f32.mrb[49].mxu1 }
 0x330   : > { %v11012_v61 = vadd.f32 %v15332_v60, %v9718_v28 }
 0x331   : > { %v12062_v62 = vpack.c.bf16 %v11010_v34, %v11009_v18  ;;  %v9639_v37 = vpop.f32.mrb[50].mxu0 }
 0x332   : > { %v12063_v10 = vpack.c.bf16 %v11012_v61, %v11011_v7  ;;  %v11041_v32 = vadd.f32 %v15344_v29, %v9639_v37  ;;  %v9722_v30 = vpop.f32.mrb[50].mxu1  ;;  %v9641_v52 = vpop.f32.mrb[51].mxu0 }
 0x333   : > { %11297 = vst [vmem:[%s15341_s23] sm:$0xff] %v12062_v62  ;;  %v11043_v1 = vadd.f32 %v15344_v29, %v9722_v30  ;;  %v11042_v58 = vadd.f32 %v15344_v29, %v9641_v52  ;;  %v9724_v5 = vpop.f32.mrb[51].mxu1 }
 0x334   : > { %11298 = vst [vmem:[%s15341_s23 + $0x8] sm:$0xff] %v12063_v10  ;;  %v11044_v42 = vadd.f32 %v15344_v29, %v9724_v5 }
 0x335   : > { %v12078_v48 = vpack.c.bf16 %v11042_v58, %v11041_v32  ;;  %v9645_v20 = vpop.f32.mrb[52].mxu0 }
 0x336   : > { %v12079_v13 = vpack.c.bf16 %v11044_v42, %v11043_v1  ;;  %v11073_v57 = vadd.f32 %v15330_v8, %v9645_v20  ;;  %v9728_v12 = vpop.f32.mrb[52].mxu1  ;;  %v9647_v46 = vpop.f32.mrb[53].mxu0 }
 0x337   : > { %11313 = vst [vmem:[%s15341_s23 + $0x80] sm:$0xff] %v12078_v48  ;;  %v11075_v50 = vadd.f32 %v15330_v8, %v9728_v12  ;;  %v11074_v39 = vadd.f32 %v15330_v8, %v9647_v46  ;;  %v9730_v55 = vpop.f32.mrb[53].mxu1 }
 0x338   : > { %11314 = vst [vmem:[%s15341_s23 + $0x88] sm:$0xff] %v12079_v13  ;;  %v11076_v4 = vadd.f32 %v15330_v8, %v9730_v55 }
 0x339   : > { %v12038_v41 = vpack.c.bf16 %v11074_v39, %v11073_v57  ;;  %v9799_v51 = vpop.f32.mrb[54].mxu0 }
 0x33a   : > { %v12039_v23 = vpack.c.bf16 %v11076_v4, %v11075_v50  ;;  %v11013_v36 = vadd.f32 %v15332_v60, %v9799_v51  ;;  %v9882_v49 = vpop.f32.mrb[54].mxu1  ;;  %v9801_v35 = vpop.f32.mrb[55].mxu0 }
 0x33b   : > { %v11401_v6 = vrot.slane %v12038_v41, %v15356_v15  ;;  %v11015_v9 = vadd.f32 %v15332_v60, %v9882_v49  ;;  %v11014_v40 = vadd.f32 %v15332_v60, %v9801_v35  ;;  %v9884_v11 = vpop.f32.mrb[55].mxu1 }
 0x33c   : > { %v11408_v47 = vrot.slane %v12039_v23, %v15356_v15  ;;  %v11016_v31 = vadd.f32 %v15332_v60, %v9884_v11 }
 0x33d   : > { %v12064_v59 = vpack.c.bf16 %v11014_v40, %v11013_v36  ;;  %v9805_v24 = vpop.f32.mrb[56].mxu0 }
 0x33e   : > { %v11409_v25 = vcombine.low %v11401_v6, %v11408_v47  ;;  %v12065_v44 = vpack.c.bf16 %v11016_v31, %v11015_v9  ;;  %v11045_v26 = vadd.f32 %v15344_v29, %v9805_v24  ;;  %v9888_v54 = vpop.f32.mrb[56].mxu1  ;;  %v9807_v16 = vpop.f32.mrb[57].mxu0 }
 0x33f   : > { %11299 = vst [vmem:[%s15341_s23 + $0x10] sm:$0xff] %v12064_v59  ;;  %v11047_v19 = vadd.f32 %v15344_v29, %v9888_v54  ;;  %v11046_v22 = vadd.f32 %v15344_v29, %v9807_v16  ;;  %v9890_v3 = vpop.f32.mrb[57].mxu1 }
 0x340   : > { %11537 = vst [vmem:[%s15370_s25] sm:$0xff] %v11409_v25  ;;  %11300 = vst [vmem:[%s15341_s23 + $0x18] sm:$0xff] %v12065_v44  ;;  %v11048_v17 = vadd.f32 %v15344_v29, %v9890_v3 }
 0x341   : > { %v12080_v45 = vpack.c.bf16 %v11046_v22, %v11045_v26  ;;  %v9811_v2 = vpop.f32.mrb[58].mxu0 }
 0x342   : > { %v12081_v56 = vpack.c.bf16 %v11048_v17, %v11047_v19  ;;  %v11077_v0 = vadd.f32 %v15330_v8, %v9811_v2  ;;  %v9894_v27 = vpop.f32.mrb[58].mxu1  ;;  %v9813_v18 = vpop.f32.mrb[59].mxu0 }
 0x343   : > { %11315 = vst [vmem:[%s15341_s23 + $0x90] sm:$0xff] %v12080_v45  ;;  %v11079_v38 = vadd.f32 %v15330_v8, %v9894_v27  ;;  %v11078_v53 = vadd.f32 %v15330_v8, %v9813_v18  ;;  %v9896_v7 = vpop.f32.mrb[59].mxu1 }
 0x344   : > { %11316 = vst [vmem:[%s15341_s23 + $0x98] sm:$0xff] %v12081_v56  ;;  %v11080_v34 = vadd.f32 %v15330_v8, %v9896_v7 }
 0x345   : > { %v12040_v28 = vpack.c.bf16 %v11078_v53, %v11077_v0  ;;  %v9965_v33 = vpop.f32.mrb[60].mxu0 }
 0x346   : > { %v12041_v14 = vpack.c.bf16 %v11080_v34, %v11079_v38  ;;  %v11017_v43 = vadd.f32 %v15332_v60, %v9965_v33  ;;  %v10048_v61 = vpop.f32.mrb[60].mxu1  ;;  %v9967_v62 = vpop.f32.mrb[61].mxu0 }
 0x347   : > { %v11418_v37 = vrot.slane %v12040_v28, %v15356_v15  ;;  %v11019_v10 = vadd.f32 %v15332_v60, %v10048_v61  ;;  %v11018_v32 = vadd.f32 %v15332_v60, %v9967_v62  ;;  %v10050_v30 = vpop.f32.mrb[61].mxu1 }
 0x348   : > { %v11425_v52 = vrot.slane %v12041_v14, %v15356_v15  ;;  %v11020_v1 = vadd.f32 %v15332_v60, %v10050_v30 }
 0x349   : > { %v12066_v58 = vpack.c.bf16 %v11018_v32, %v11017_v43  ;;  %v9971_v5 = vpop.f32.mrb[62].mxu0 }
 0x34a   : > { %v11426_v63 = vcombine.low %v11418_v37, %v11425_v52  ;;  %v12067_v21 = vpack.c.bf16 %v11020_v1, %v11019_v10  ;;  %v11049_v42 = vadd.f32 %v15344_v29, %v9971_v5  ;;  %v10054_v48 = vpop.f32.mrb[62].mxu1  ;;  %v9973_v20 = vpop.f32.mrb[63].mxu0 }
 0x34b   : > { %11301 = vst [vmem:[%s15341_s23 + $0x20] sm:$0xff] %v12066_v58  ;;  %v11051_v13 = vadd.f32 %v15344_v29, %v10054_v48  ;;  %v11050_v57 = vadd.f32 %v15344_v29, %v9973_v20  ;;  %v10056_v12 = vpop.f32.mrb[63].mxu1 }
 0x34c   : > { %11538 = vst [vmem:[%s15370_s25 + $0x8] sm:$0xff] %v11426_v63  ;;  %11302 = vst [vmem:[%s15341_s23 + $0x28] sm:$0xff] %v12067_v21  ;;  %v11052_v46 = vadd.f32 %v15344_v29, %v10056_v12 }
 0x34d   : > { %v12082_v50 = vpack.c.bf16 %v11050_v57, %v11049_v42  ;;  %v9977_v39 = vpop.f32.mrb[64].mxu0 }
 0x34e   : > { %v12083_v55 = vpack.c.bf16 %v11052_v46, %v11051_v13  ;;  %v11081_v4 = vadd.f32 %v15330_v8, %v9977_v39  ;;  %v10060_v41 = vpop.f32.mrb[64].mxu1  ;;  %v9979_v51 = vpop.f32.mrb[65].mxu0 }
 0x34f   : > { %11317 = vst [vmem:[%s15341_s23 + $0xa0] sm:$0xff] %v12082_v50  ;;  %v11083_v23 = vadd.f32 %v15330_v8, %v10060_v41  ;;  %v11082_v36 = vadd.f32 %v15330_v8, %v9979_v51  ;;  %v10062_v49 = vpop.f32.mrb[65].mxu1 }
 0x350   : > { %11318 = vst [vmem:[%s15341_s23 + $0xa8] sm:$0xff] %v12083_v55  ;;  %v11084_v35 = vadd.f32 %v15330_v8, %v10062_v49 }
 0x351   : > { %v12042_v6 = vpack.c.bf16 %v11082_v36, %v11081_v4  ;;  %v10131_v9 = vpop.f32.mrb[66].mxu0 }
 0x352   : > { %v12043_v40 = vpack.c.bf16 %v11084_v35, %v11083_v23  ;;  %v11021_v11 = vadd.f32 %v15332_v60, %v10131_v9  ;;  %v10214_v47 = vpop.f32.mrb[66].mxu1  ;;  %v10133_v31 = vpop.f32.mrb[67].mxu0 }
 0x353   : > { %v11435_v59 = vrot.slane %v12042_v6, %v15356_v15  ;;  %v11023_v24 = vadd.f32 %v15332_v60, %v10214_v47  ;;  %v11022_v25 = vadd.f32 %v15332_v60, %v10133_v31  ;;  %v10216_v44 = vpop.f32.mrb[67].mxu1 }
 0x354   : > { %v11442_v26 = vrot.slane %v12043_v40, %v15356_v15  ;;  %v11024_v54 = vadd.f32 %v15332_v60, %v10216_v44 }
 0x355   : > { %v12068_v16 = vpack.c.bf16 %v11022_v25, %v11021_v11  ;;  %v10137_v19 = vpop.f32.mrb[68].mxu0 }
 0x356   : > { %v11443_v22 = vcombine.low %v11435_v59, %v11442_v26  ;;  %v12069_v3 = vpack.c.bf16 %v11024_v54, %v11023_v24  ;;  %v11053_v17 = vadd.f32 %v15344_v29, %v10137_v19  ;;  %v10220_v45 = vpop.f32.mrb[68].mxu1  ;;  %v10139_v2 = vpop.f32.mrb[69].mxu0 }
 0x357   : > { %11303 = vst [vmem:[%s15341_s23 + $0x30] sm:$0xff] %v12068_v16  ;;  %v11055_v56 = vadd.f32 %v15344_v29, %v10220_v45  ;;  %v11054_v0 = vadd.f32 %v15344_v29, %v10139_v2  ;;  %v10222_v27 = vpop.f32.mrb[69].mxu1 }
 0x358   : > { %11539 = vst [vmem:[%s15370_s25 + $0x10] sm:$0xff] %v11443_v22  ;;  %11304 = vst [vmem:[%s15341_s23 + $0x38] sm:$0xff] %v12069_v3  ;;  %v11056_v18 = vadd.f32 %v15344_v29, %v10222_v27 }
 0x359   : > { %v12084_v38 = vpack.c.bf16 %v11054_v0, %v11053_v17  ;;  %v10143_v53 = vpop.f32.mrb[70].mxu0 }
 0x35a   : > { %v12085_v7 = vpack.c.bf16 %v11056_v18, %v11055_v56  ;;  %v11085_v34 = vadd.f32 %v15330_v8, %v10143_v53  ;;  %v10226_v28 = vpop.f32.mrb[70].mxu1  ;;  %v10145_v33 = vpop.f32.mrb[71].mxu0 }
 0x35b   : > { %11319 = vst [vmem:[%s15341_s23 + $0xb0] sm:$0xff] %v12084_v38  ;;  %v11087_v14 = vadd.f32 %v15330_v8, %v10226_v28  ;;  %v11086_v43 = vadd.f32 %v15330_v8, %v10145_v33  ;;  %v10228_v61 = vpop.f32.mrb[71].mxu1 }
 0x35c   : > { %11320 = vst [vmem:[%s15341_s23 + $0xb8] sm:$0xff] %v12085_v7  ;;  %v11088_v62 = vadd.f32 %v15330_v8, %v10228_v61 }
 0x35d   : > { %v12044_v37 = vpack.c.bf16 %v11086_v43, %v11085_v34  ;;  %v10297_v10 = vpop.f32.mrb[72].mxu0 }
 0x35e   : > { %v12045_v32 = vpack.c.bf16 %v11088_v62, %v11087_v14  ;;  %v11025_v30 = vadd.f32 %v15332_v60, %v10297_v10  ;;  %v10380_v52 = vpop.f32.mrb[72].mxu1  ;;  %v10299_v1 = vpop.f32.mrb[73].mxu0 }
 0x35f   : > { %v11452_v58 = vrot.slane %v12044_v37, %v15356_v15  ;;  %v11027_v5 = vadd.f32 %v15332_v60, %v10380_v52  ;;  %v11026_v63 = vadd.f32 %v15332_v60, %v10299_v1  ;;  %v10382_v21 = vpop.f32.mrb[73].mxu1 }
 0x360   : > { %v11459_v42 = vrot.slane %v12045_v32, %v15356_v15  ;;  %v11028_v48 = vadd.f32 %v15332_v60, %v10382_v21 }
 0x361   : > { %v12070_v20 = vpack.c.bf16 %v11026_v63, %v11025_v30  ;;  %v10303_v13 = vpop.f32.mrb[74].mxu0 }
 0x362   : > { %v11460_v57 = vcombine.low %v11452_v58, %v11459_v42  ;;  %v12071_v12 = vpack.c.bf16 %v11028_v48, %v11027_v5  ;;  %v11057_v46 = vadd.f32 %v15344_v29, %v10303_v13  ;;  %v10386_v50 = vpop.f32.mrb[74].mxu1  ;;  %v10305_v39 = vpop.f32.mrb[75].mxu0 }
 0x363   : > { %11305 = vst [vmem:[%s15341_s23 + $0x40] sm:$0xff] %v12070_v20  ;;  %v11059_v55 = vadd.f32 %v15344_v29, %v10386_v50  ;;  %v11058_v4 = vadd.f32 %v15344_v29, %v10305_v39  ;;  %v10388_v41 = vpop.f32.mrb[75].mxu1 }
 0x364   : > { %11540 = vst [vmem:[%s15370_s25 + $0x18] sm:$0xff] %v11460_v57  ;;  %11306 = vst [vmem:[%s15341_s23 + $0x48] sm:$0xff] %v12071_v12  ;;  %v11060_v51 = vadd.f32 %v15344_v29, %v10388_v41 }
 0x365   : > { %v12086_v23 = vpack.c.bf16 %v11058_v4, %v11057_v46  ;;  %v10309_v36 = vpop.f32.mrb[76].mxu0 }
 0x366   : > { %v12087_v49 = vpack.c.bf16 %v11060_v51, %v11059_v55  ;;  %v11089_v35 = vadd.f32 %v15330_v8, %v10309_v36  ;;  %v10392_v6 = vpop.f32.mrb[76].mxu1  ;;  %v10311_v9 = vpop.f32.mrb[77].mxu0 }
 0x367   : > { %11321 = vst [vmem:[%s15341_s23 + $0xc0] sm:$0xff] %v12086_v23  ;;  %v11091_v40 = vadd.f32 %v15330_v8, %v10392_v6  ;;  %v11090_v11 = vadd.f32 %v15330_v8, %v10311_v9  ;;  %v10394_v47 = vpop.f32.mrb[77].mxu1 }
 0x368   : > { %11322 = vst [vmem:[%s15341_s23 + $0xc8] sm:$0xff] %v12087_v49  ;;  %v11092_v31 = vadd.f32 %v15330_v8, %v10394_v47 }
 0x369   : > { %v12046_v59 = vpack.c.bf16 %v11090_v11, %v11089_v35  ;;  %v10463_v24 = vpop.f32.mrb[78].mxu0 }
 0x36a   : > { %v12047_v25 = vpack.c.bf16 %v11092_v31, %v11091_v40  ;;  %v11029_v44 = vadd.f32 %v15332_v60, %v10463_v24  ;;  %v10546_v26 = vpop.f32.mrb[78].mxu1  ;;  %v10465_v54 = vpop.f32.mrb[79].mxu0 }
 0x36b   : > { %v11469_v16 = vrot.slane %v12046_v59, %v15356_v15  ;;  %v11031_v19 = vadd.f32 %v15332_v60, %v10546_v26  ;;  %v11030_v22 = vadd.f32 %v15332_v60, %v10465_v54  ;;  %v10548_v3 = vpop.f32.mrb[79].mxu1 }
 0x36c   : > { %v11476_v17 = vrot.slane %v12047_v25, %v15356_v15  ;;  %v11032_v45 = vadd.f32 %v15332_v60, %v10548_v3 }
 0x36d   : > { %v12072_v2 = vpack.c.bf16 %v11030_v22, %v11029_v44  ;;  %v10469_v56 = vpop.f32.mrb[80].mxu0 }
 0x36e   : > { %v11477_v0 = vcombine.low %v11469_v16, %v11476_v17  ;;  %v12073_v27 = vpack.c.bf16 %v11032_v45, %v11031_v19  ;;  %v11061_v18 = vadd.f32 %v15344_v29, %v10469_v56  ;;  %v10552_v38 = vpop.f32.mrb[80].mxu1  ;;  %v10471_v53 = vpop.f32.mrb[81].mxu0 }
 0x36f   : > { %11307 = vst [vmem:[%s15341_s23 + $0x50] sm:$0xff] %v12072_v2  ;;  %v11063_v7 = vadd.f32 %v15344_v29, %v10552_v38  ;;  %v11062_v34 = vadd.f32 %v15344_v29, %v10471_v53  ;;  %v10554_v28 = vpop.f32.mrb[81].mxu1 }
 0x370   : > { %11541 = vst [vmem:[%s15370_s25 + $0x20] sm:$0xff] %v11477_v0  ;;  %11308 = vst [vmem:[%s15341_s23 + $0x58] sm:$0xff] %v12073_v27  ;;  %v11064_v33 = vadd.f32 %v15344_v29, %v10554_v28 }
 0x371   : > { %v12088_v14 = vpack.c.bf16 %v11062_v34, %v11061_v18  ;;  %v10475_v43 = vpop.f32.mrb[82].mxu0 }
 0x372   : > { %v12089_v61 = vpack.c.bf16 %v11064_v33, %v11063_v7  ;;  %v11093_v62 = vadd.f32 %v15330_v8, %v10475_v43  ;;  %v10558_v37 = vpop.f32.mrb[82].mxu1  ;;  %v10477_v10 = vpop.f32.mrb[83].mxu0 }
 0x373   : > { %11323 = vst [vmem:[%s15341_s23 + $0xd0] sm:$0xff] %v12088_v14  ;;  %v11095_v32 = vadd.f32 %v15330_v8, %v10558_v37  ;;  %v11094_v30 = vadd.f32 %v15330_v8, %v10477_v10  ;;  %v10560_v52 = vpop.f32.mrb[83].mxu1 }
 0x374   : > { %11324 = vst [vmem:[%s15341_s23 + $0xd8] sm:$0xff] %v12089_v61  ;;  %v11096_v1 = vadd.f32 %v15330_v8, %v10560_v52 }
 0x375   : > { %v12048_v58 = vpack.c.bf16 %v11094_v30, %v11093_v62  ;;  %v10629_v5 = vpop.f32.mrb[84].mxu0 }
 0x376   : > { %v12049_v63 = vpack.c.bf16 %v11096_v1, %v11095_v32  ;;  %v11033_v21 = vadd.f32 %v15332_v60, %v10629_v5  ;;  %v10712_v42 = vpop.f32.mrb[84].mxu1  ;;  %v10631_v48 = vpop.f32.mrb[85].mxu0 }
 0x377   : > { %v11486_v20 = vrot.slane %v12048_v58, %v15356_v15  ;;  %v11035_v13 = vadd.f32 %v15332_v60, %v10712_v42  ;;  %v11034_v57 = vadd.f32 %v15332_v60, %v10631_v48  ;;  %v10714_v12 = vpop.f32.mrb[85].mxu1 }
 0x378   : > { %v11493_v46 = vrot.slane %v12049_v63, %v15356_v15  ;;  %v11036_v50 = vadd.f32 %v15332_v60, %v10714_v12 }
 0x379   : > { %v12074_v39 = vpack.c.bf16 %v11034_v57, %v11033_v21  ;;  %v10635_v55 = vpop.f32.mrb[86].mxu0 }
 0x37a   : > { %v11494_v4 = vcombine.low %v11486_v20, %v11493_v46  ;;  %v12075_v41 = vpack.c.bf16 %v11036_v50, %v11035_v13  ;;  %v11065_v51 = vadd.f32 %v15344_v29, %v10635_v55  ;;  %v10718_v23 = vpop.f32.mrb[86].mxu1  ;;  %v10637_v36 = vpop.f32.mrb[87].mxu0 }
 0x37b   : > { %11309 = vst [vmem:[%s15341_s23 + $0x60] sm:$0xff] %v12074_v39  ;;  %v11067_v49 = vadd.f32 %v15344_v29, %v10718_v23  ;;  %v11066_v35 = vadd.f32 %v15344_v29, %v10637_v36  ;;  %v10720_v6 = vpop.f32.mrb[87].mxu1 }
 0x37c   : > { %11542 = vst [vmem:[%s15370_s25 + $0x28] sm:$0xff] %v11494_v4  ;;  %11310 = vst [vmem:[%s15341_s23 + $0x68] sm:$0xff] %v12075_v41  ;;  %v11068_v9 = vadd.f32 %v15344_v29, %v10720_v6 }
 0x37d   : > { %v12090_v40 = vpack.c.bf16 %v11066_v35, %v11065_v51  ;;  %v10641_v11 = vpop.f32.mrb[88].mxu0 }
 0x37e   : > { %v12091_v47 = vpack.c.bf16 %v11068_v9, %v11067_v49  ;;  %v11097_v31 = vadd.f32 %v15330_v8, %v10641_v11  ;;  %v10724_v59 = vpop.f32.mrb[88].mxu1  ;;  %v10643_v24 = vpop.f32.mrb[89].mxu0 }
 0x37f   : > { %11325 = vst [vmem:[%s15341_s23 + $0xe0] sm:$0xff] %v12090_v40  ;;  %v11099_v25 = vadd.f32 %v15330_v8, %v10724_v59  ;;  %v11098_v44 = vadd.f32 %v15330_v8, %v10643_v24  ;;  %v10726_v26 = vpop.f32.mrb[89].mxu1 }
 0x380   : > { %11326 = vst [vmem:[%s15341_s23 + $0xe8] sm:$0xff] %v12091_v47  ;;  %v11100_v54 = vadd.f32 %v15330_v8, %v10726_v26 }
 0x381   : > { %v12050_v16 = vpack.c.bf16 %v11098_v44, %v11097_v31  ;;  %v10795_v19 = vpop.f32.mrb[90].mxu0 }
 0x382   : > { %v12051_v22 = vpack.c.bf16 %v11100_v54, %v11099_v25  ;;  %v11037_v3 = vadd.f32 %v15332_v60, %v10795_v19  ;;  %v10878_v17 = vpop.f32.mrb[90].mxu1  ;;  %v10797_v45 = vpop.f32.mrb[91].mxu0 }
 0x383   : > { %v11503_v2 = vrot.slane %v12050_v16, %v15356_v15  ;;  %v11039_v56 = vadd.f32 %v15332_v60, %v10878_v17  ;;  %v11038_v0 = vadd.f32 %v15332_v60, %v10797_v45  ;;  %v10880_v27 = vpop.f32.mrb[91].mxu1 }
 0x384   : > { %v11510_v18 = vrot.slane %v12051_v22, %v15356_v15  ;;  %v11040_v38 = vadd.f32 %v15332_v60, %v10880_v27 }
 0x385   : > { %v12076_v53 = vpack.c.bf16 %v11038_v0, %v11037_v3  ;;  %v10801_v7 = vpop.f32.mrb[92].mxu0 }
 0x386   : > { %v11511_v34 = vcombine.low %v11503_v2, %v11510_v18  ;;  %v12077_v28 = vpack.c.bf16 %v11040_v38, %v11039_v56  ;;  %v11069_v33 = vadd.f32 %v15344_v29, %v10801_v7  ;;  %v10884_v14 = vpop.f32.mrb[92].mxu1  ;;  %v10803_v43 = vpop.f32.mrb[93].mxu0 }
 0x387   : > { %11311 = vst [vmem:[%s15341_s23 + $0x70] sm:$0xff] %v12076_v53  ;;  %v11071_v61 = vadd.f32 %v15344_v29, %v10884_v14  ;;  %v11070_v62 = vadd.f32 %v15344_v29, %v10803_v43  ;;  %v10886_v37 = vpop.f32.mrb[93].mxu1 }
 0x388   : > { %11543 = vst [vmem:[%s15370_s25 + $0x30] sm:$0xff] %v11511_v34  ;;  %11312 = vst [vmem:[%s15341_s23 + $0x78] sm:$0xff] %v12077_v28  ;;  %v11072_v60 = vadd.f32 %v15344_v29, %v10886_v37 }
 0x389   : > { %v12092_v10 = vpack.c.bf16 %v11070_v62, %v11069_v33  ;;  %v10807_v32 = vpop.f32.mrb[94].mxu0 }
 0x38a   : > { %v12093_v30 = vpack.c.bf16 %v11072_v60, %v11071_v61  ;;  %v11101_v52 = vadd.f32 %v15330_v8, %v10807_v32  ;;  %v10890_v1 = vpop.f32.mrb[94].mxu1  ;;  %v10809_v58 = vpop.f32.mrb[95].mxu0 }
 0x38b   : > { %11327 = vst [vmem:[%s15341_s23 + $0xf0] sm:$0xff] %v12092_v10  ;;  %v11103_v5 = vadd.f32 %v15330_v8, %v10890_v1  ;;  %v11102_v63 = vadd.f32 %v15330_v8, %v10809_v58  ;;  %v10892_v21 = vpop.f32.mrb[95].mxu1 }
 0x38c   : > { %11328 = vst [vmem:[%s15341_s23 + $0xf8] sm:$0xff] %v12093_v30  ;;  %v11104_v42 = vadd.f32 %v15330_v8, %v10892_v21 }
 0x38d   : > { %v12052_v48 = vpack.c.bf16 %v11102_v63, %v11101_v52 }
 0x38e   : > { %v12053_v20 = vpack.c.bf16 %v11104_v42, %v11103_v5 }
 0x38f   : > { %v11520_v29 = vrot.slane %v12052_v48, %v15356_v15 }
 0x390   : > { %v11527_v13 = vrot.slane %v12053_v20, %v15356_v15 }
 0x392   : > { %v11528_v57 = vcombine.low %v11520_v29, %v11527_v13 }
 0x394   : > { %11544 = vst [vmem:[%s15370_s25 + $0x38] sm:$0xff] %v11528_v57 }
 0x395 PF: > { %s20_s11 = sadd.s32 1, %s12977_s11   ;;  %s15620_s30 = smov %s12973_s10 }
 0x396   : > { %p17_p5 = scmp.ge.s32.totalorder %s20_s11, 4   ;;  %s15621_s10 = smov %s15623_s12 }
 0x398   :  { %19 = sbr.rel (!%p17_p5) target bundleno = 2 (0x2), region = 110 }

// kernel: rfdb_pallas.3
= control target key start
LH: loop header
LB: loop body
LE: loop exit
PB: predicated region body
PF: predicated region fallthrough
CT: control target
= control target key end

     0   :  { %s4066_s24 = smov 0   ;;  %s4068_s25 = smov 0   ;;  %s4938_s0 = inlined_call_operand.vmem [shape: bf16[2,16,4096], index: 0, kind: input, shape index: {}]   ;;  %s4939_s1 = inlined_call_operand.vmem [shape: bf16[2,4,4096], index: 1, kind: input, shape index: {}]   ;;  %s4940_s2 = inlined_call_operand.vmem [shape: bf16[2,4,4096], index: 2, kind: input, shape index: {}]   ;;  %s4941_s3 = inlined_call_operand.vmem [shape: f32[4,4], index: 3, kind: input, shape index: {}]   ;;  %s4942_s4 = inlined_call_operand.vmem [shape: f32[4,1], index: 4, kind: input, shape index: {}]   ;;  %s4943_s5 = inlined_call_operand.vmem [shape: f32[16,4], index: 5, kind: input, shape index: {}]   ;;  %s4944_s6 = inlined_call_operand.vmem [shape: f32[16,1], index: 6, kind: input, shape index: {}]   ;;  %s4945_s7 = inlined_call_operand.vmem [shape: f32[2,16,4096], index: 7, kind: output, shape index: {}]  }
   0x1   :  { %s4070_s26 = smov 0  }
   0x2 LB: > { %s29_s27 = sadd.s32 1, %s4018_s25  ;;  %p3717_p0 = scmp.ge.s32.totalorder %s4022_s26, 1  ;;  %s4022_s26 = sphi %s4070_s26, %s17_s26   ;;  %s4018_s25 = sphi %s4068_s25, %s4992_s25   ;;  %s4014_s24 = sphi %s4066_s24, %s4991_s24  }
   0x3   : > { %p31_p1 = scmp.ge.s32.totalorder %s29_s27, 2  ;;  %p292_p2 = scmp.lt.s32.totalorder %s4022_s26, 3 }
   0x5   : > { %s4994_s27 = smov (%p31_p1, %s29_s27), 0  ;;  %p293_p3 = pnand %p3717_p0, %p292_p2 }
   0x6   : > { %p351_p4 = scmp.lt.s32.totalorder (!%p293_p3), %s4014_s24, 1  ;;  %v4024_v0 = vmov (!%p293_p3), 0.0   ;;  %v535_v1 = vld [vmem:[%s4942_s4] sm:$0xf] (!%p293_p3)  ;;  %v4025_v2 = vmov (!%p293_p3), 0   ;;  %vm577_vm0 = vcmask (!%p293_p3), 1043456  }
   0x7   : > { %296 = sbr.rel (%p293_p3) target bundleno = 584 (0x248), region = 48  ;;  %706 = vmatprep.mubr.f32.mxu0 (!%p293_p3), %v4024_v0  ;;  %777 = vmatprep.mubr.f32.mxu1 (!%p293_p3), %v4024_v0  ;;  %v1860_v3 = vld [vmem:[%s4944_s6] sm:$0xff] (!%p293_p3)  ;;  %vm573_vm1 = vcmask (!%p293_p3), 31744   ;;  %v1861_v45 = vld [vmem:[%s4944_s6 + $0x8] sm:$0xff] (!%p293_p3) }
   0x8   : > { %3870 = vset.pattern.permute.xlu0 (!%p293_p3), %v4025_v2  ;;  %3871 = vset.pattern.permute.xlu1 (!%p293_p3), %v4025_v2  ;;  %v4108_v13 = vld [vmem:[%s4941_s3] sm:$0xf] (!%p293_p3) }
   0x9   : > { %538 = vperm.xlu0 (!%p293_p3), %3870, %v535_v1   ;;  %1869 = vperm.xlu1 (!%p293_p3), %3871, %v1861_v45   ;;  %v4246_v45 = vld [vmem:[%s4943_s5 + $0x8] sm:$0xff] (!%p293_p3) }
   0xd   : > { %1864 = vperm.xlu0 (!%p293_p3), %3870, %v1860_v3  }
   0xe   : > { %s4996_s24 = smov (!%p351_p4, %s4014_s24), 1 }
   0xf   : > { %s3841_s30 = sshll.u32 %s4996_s24, 6  ;;  %s3840_s28 = sshll.u32 %s4996_s24, 8 }
  0x10   : > { %s4100_s12 = scalar_lea.vmem %s4939_s1, %s3841_s30  ;;  %s4203_s19 = scalar_lea.vmem %s4940_s2, %s3841_s30 }
  0x11   : > { %v486_v4 = vld [vmem:[%s4100_s12] sm:$0xff]  ;;  %v487_v5 = vld [vmem:[%s4100_s12 + $0x8] sm:$0xff]  ;;  %v488_v10 = vld [vmem:[%s4100_s12 + $0x10] sm:$0xff]  ;;  %s4407_s8 = scalar_lea.vmem %s4938_s0, %s3840_s28  ;;  %s3843_s9 = sshll.u32 %s4996_s24, 9 }
  0x12   : > { %v494_v6 = vunpack.c.l.bf16 %v486_v4  ;;  %v495_v7 = vunpack.c.h.bf16 %v486_v4  ;;  %v496_v8 = vunpack.c.l.bf16 %v487_v5  ;;  %v497_v9 = vunpack.c.h.bf16 %v487_v5  ;;  %v489_v18 = vld [vmem:[%s4100_s12 + $0x18] sm:$0xff]  ;;  %v490_v23 = vld [vmem:[%s4100_s12 + $0x20] sm:$0xff]  ;;  %v491_v28 = vld [vmem:[%s4100_s12 + $0x28] sm:$0xff]  ;;  %s4574_s11 = scalar_lea.vmem %s4945_s7, %s3843_s9 }
  0x13   : > { %v498_v16 = vunpack.c.l.bf16 %v488_v10  ;;  %v499_v17 = vunpack.c.h.bf16 %v488_v10  ;;  %v500_v21 = vunpack.c.l.bf16 %v489_v18  ;;  %v501_v22 = vunpack.c.h.bf16 %v489_v18  ;;  %v492_v33 = vld [vmem:[%s4100_s12 + $0x30] sm:$0xff]  ;;  %v493_v38 = vld [vmem:[%s4100_s12 + $0x38] sm:$0xff]  ;;  %v510_v47 = vld [vmem:[%s4203_s19] sm:$0xff] }
  0x14   : > { %v557_v11 = vcombine.high %v494_v6, %v494_v6  ;;  %v558_v12 = vcombine.high %v495_v7, %v495_v7  ;;  %v559_v14 = vcombine.high %v496_v8, %v496_v8  ;;  %v560_v15 = vcombine.high %v497_v9, %v497_v9  ;;  %v511_v58 = vld [vmem:[%s4203_s19 + $0x8] sm:$0xff]  ;;  %v512_v10 = vld [vmem:[%s4203_s19 + $0x10] sm:$0xff] }
  0x15   : > { %v561_v19 = vcombine.high %v498_v16, %v498_v16  ;;  %v562_v20 = vcombine.high %v499_v17, %v499_v17  ;;  %v563_v24 = vcombine.high %v500_v21, %v500_v21  ;;  %v564_v25 = vcombine.high %v501_v22, %v501_v22 }
  0x16   : > { %3726 = vmatprep.subr.msk.mxu0 %vm577_vm0, %v557_v11  ;;  %3729 = vmatprep.subr.msk.mxu1 %vm577_vm0, %v558_v12  ;;  %v502_v26 = vunpack.c.l.bf16 %v490_v23  ;;  %v503_v27 = vunpack.c.h.bf16 %v490_v23  ;;  %v504_v31 = vunpack.c.l.bf16 %v491_v28  ;;  %v505_v32 = vunpack.c.h.bf16 %v491_v28  ;;  %v513_v28 = vld [vmem:[%s4203_s19 + $0x18] sm:$0xff] }
  0x17   : > { %3727 = vmatpush1.msk.msra.mxu0 %vm577_vm0, %v494_v6  ;;  %3730 = vmatpush1.msk.msra.mxu1 %vm577_vm0, %v495_v7  ;;  %v506_v36 = vunpack.c.l.bf16 %v492_v33  ;;  %v507_v37 = vunpack.c.h.bf16 %v492_v33  ;;  %v508_v41 = vunpack.c.l.bf16 %v493_v38  ;;  %v509_v42 = vunpack.c.h.bf16 %v493_v38 }
  0x18   : > { %3728 = vmatmul.mubr.msk.f32.vlgmr.msra.gmra.mrb[0].mxu0 %vm573_vm1, %v4108_v13  ;;  %3731 = vmatmul.mubr.msk.f32.vlgmr.msra.gmra.mrb[0].mxu1 %vm573_vm1, %v4108_v13  ;;  %v565_v29 = vcombine.high %v502_v26, %v502_v26  ;;  %v566_v30 = vcombine.high %v503_v27, %v503_v27  ;;  %v567_v34 = vcombine.high %v504_v31, %v504_v31  ;;  %v518_v54 = vunpack.c.l.bf16 %v510_v47 }
  0x19   : > { %3732 = vmatprep.subr.msk.mxu0 %vm577_vm0, %v559_v14  ;;  %3735 = vmatprep.subr.msk.mxu1 %vm577_vm0, %v560_v15  ;;  %v568_v35 = vcombine.high %v505_v32, %v505_v32  ;;  %v569_v39 = vcombine.high %v506_v36, %v506_v36  ;;  %v570_v40 = vcombine.high %v507_v37, %v507_v37  ;;  %v519_v56 = vunpack.c.h.bf16 %v510_v47  ;;  %v514_v47 = vld [vmem:[%s4203_s19 + $0x20] sm:$0xff] }
  0x1a   : > { %3733 = vmatpush1.msk.msra.mxu0 %vm577_vm0, %v496_v8  ;;  %848 = vmatprep.mubr.f32.mxu0 %v4024_v0  ;;  %v571_v43 = vcombine.high %v508_v41, %v508_v41  ;;  %v572_v44 = vcombine.high %v509_v42, %v509_v42  ;;  %v520_v2 = vunpack.c.l.bf16 %v511_v58  ;;  %v521_v4 = vunpack.c.h.bf16 %v511_v58 }
  0x1b   : > { %3736 = vmatpush1.msk.msra.mxu1 %vm577_vm0, %v497_v9  ;;  %919 = vmatprep.mubr.f32.mxu1 %v4024_v0 }
  0x1c   : > { %3734 = vmatmul.mubr.msk.f32.vlgmr.msra.gmra.mrb[2].mxu0 %vm573_vm1, %v4108_v13  ;;  %3737 = vmatmul.mubr.msk.f32.vlgmr.msra.gmra.mrb[2].mxu1 %vm573_vm1, %v4108_v13 }
  0x1d   : > { %3738 = vmatprep.subr.msk.mxu0 %vm577_vm0, %v561_v19  ;;  %3741 = vmatprep.subr.msk.mxu1 %vm577_vm0, %v562_v20  ;;  %v522_v19 = vunpack.c.l.bf16 %v512_v10 }
  0x1e   : > { %3739 = vmatpush1.msk.msra.mxu0 %vm577_vm0, %v498_v16  ;;  %990 = vmatprep.mubr.f32.mxu0 %v4024_v0 }
  0x1f   : > { %3742 = vmatpush1.msk.msra.mxu1 %vm577_vm0, %v499_v17  ;;  %1061 = vmatprep.mubr.f32.mxu1 %v4024_v0 }
  0x20   : > { %3740 = vmatmul.mubr.msk.f32.vlgmr.msra.gmra.mrb[4].mxu0 %vm573_vm1, %v4108_v13  ;;  %3743 = vmatmul.mubr.msk.f32.vlgmr.msra.gmra.mrb[4].mxu1 %vm573_vm1, %v4108_v13 }
  0x21   : > { %3744 = vmatprep.subr.msk.mxu0 %vm577_vm0, %v563_v24  ;;  %3747 = vmatprep.subr.msk.mxu1 %vm577_vm0, %v564_v25 }
  0x22   : > { %3745 = vmatpush1.msk.msra.mxu0 %vm577_vm0, %v500_v21  ;;  %1132 = vmatprep.mubr.f32.mxu0 %v4024_v0  ;;  %v523_v21 = vunpack.c.h.bf16 %v512_v10 }
  0x23   : > { %3748 = vmatpush1.msk.msra.mxu1 %vm577_vm0, %v501_v22  ;;  %1203 = vmatprep.mubr.f32.mxu1 %v4024_v0 }
  0x24   : > { %3746 = vmatmul.mubr.msk.f32.vlgmr.msra.gmra.mrb[6].mxu0 %vm573_vm1, %v4108_v13  ;;  %3749 = vmatmul.mubr.msk.f32.vlgmr.msra.gmra.mrb[6].mxu1 %vm573_vm1, %v4108_v13 }
  0x25   : > { %3750 = vmatprep.subr.msk.mxu0 %vm577_vm0, %v565_v29  ;;  %3753 = vmatprep.subr.msk.mxu1 %vm577_vm0, %v566_v30 }
  0x26   : > { %3751 = vmatpush1.msk.msra.mxu0 %vm577_vm0, %v502_v26  ;;  %1274 = vmatprep.mubr.f32.mxu0 %v4024_v0 }
  0x27   : > { %3754 = vmatpush1.msk.msra.mxu1 %vm577_vm0, %v503_v27  ;;  %1345 = vmatprep.mubr.f32.mxu1 %v4024_v0  ;;  %v4226_v27 = vld [vmem:[%s4943_s5] sm:$0xff] }
  0x28   : > { %3752 = vmatmul.mubr.msk.f32.vlgmr.msra.gmra.mrb[8].mxu0 %vm573_vm1, %v4108_v13  ;;  %3755 = vmatmul.mubr.msk.f32.vlgmr.msra.gmra.mrb[8].mxu1 %vm573_vm1, %v4108_v13 }
  0x29   : > { %3756 = vmatprep.subr.msk.mxu0 %vm577_vm0, %v567_v34  ;;  %3759 = vmatprep.subr.msk.mxu1 %vm577_vm0, %v568_v35 }
  0x2a   : > { %3757 = vmatpush1.msk.msra.mxu0 %vm577_vm0, %v504_v31  ;;  %1416 = vmatprep.mubr.f32.mxu0 %v4024_v0 }
  0x2b   : > { %3760 = vmatpush1.msk.msra.mxu1 %vm577_vm0, %v505_v32  ;;  %1487 = vmatprep.mubr.f32.mxu1 %v4024_v0 }
  0x2c   : > { %3758 = vmatmul.mubr.msk.f32.vlgmr.msra.gmra.mrb[10].mxu0 %vm573_vm1, %v4108_v13  ;;  %3761 = vmatmul.mubr.msk.f32.vlgmr.msra.gmra.mrb[10].mxu1 %vm573_vm1, %v4108_v13 }
  0x2d   : > { %3762 = vmatprep.subr.msk.mxu0 %vm577_vm0, %v569_v39  ;;  %3765 = vmatprep.subr.msk.mxu1 %vm577_vm0, %v570_v40  ;;  %v525_v39 = vunpack.c.h.bf16 %v513_v28 }
  0x2e   : > { %3763 = vmatpush1.msk.msra.mxu0 %vm577_vm0, %v506_v36  ;;  %1558 = vmatprep.mubr.f32.mxu0 %v4024_v0 }
  0x2f   : > { %3766 = vmatpush1.msk.msra.mxu1 %vm577_vm0, %v507_v37  ;;  %1629 = vmatprep.mubr.f32.mxu1 %v4024_v0  ;;  %v524_v37 = vunpack.c.l.bf16 %v513_v28  ;;  %v517_v28 = vld [vmem:[%s4203_s19 + $0x38] sm:$0xff] }
  0x30   : > { %3764 = vmatmul.mubr.msk.f32.vlgmr.msra.gmra.mrb[12].mxu0 %vm573_vm1, %v4108_v13  ;;  %3767 = vmatmul.mubr.msk.f32.vlgmr.msra.gmra.mrb[12].mxu1 %vm573_vm1, %v4108_v13 }
  0x31   : > { %3768 = vmatprep.subr.msk.mxu0 %vm577_vm0, %v571_v43  ;;  %3771 = vmatprep.subr.msk.mxu1 %vm577_vm0, %v572_v44 }
  0x32   : > { %3769 = vmatpush1.msk.msra.mxu0 %vm577_vm0, %v508_v41  ;;  %1700 = vmatprep.mubr.f32.mxu0 %v4024_v0 }
  0x33   : > { %3772 = vmatpush1.msk.msra.mxu1 %vm577_vm0, %v509_v42  ;;  %1771 = vmatprep.mubr.f32.mxu1 %v4024_v0 }
  0x34   : > { %3770 = vmatmul.mubr.msk.f32.vlgmr.msra.gmra.mrb[14].mxu0 %vm573_vm1, %v4108_v13  ;;  %3773 = vmatmul.mubr.msk.f32.vlgmr.msra.gmra.mrb[14].mxu1 %vm573_vm1, %v4108_v13 }
  0x35   : > { %2038 = vmatprep.mubr.f32.mxu0 %v4024_v0  ;;  %2115 = vmatprep.mubr.f32.mxu1 %v4024_v0 }
  0x88   : > { %v4205_v46 = vpop.permute.xlu0 %538 }
  0xeb   : > { %v708_v48 = vpop.f32.mrb[0].mxu0  ;;  %v779_v49 = vpop.f32.mrb[0].mxu1 }
  0xec   : > { %v709_v50 = vadd.f32 %v708_v48, %v4205_v46  ;;  %v780_v51 = vadd.f32 %v779_v49, %v4205_v46  ;;  %v710_v52 = vpop.f32.mrb[1].mxu0  ;;  %v781_v53 = vpop.f32.mrb[1].mxu1 }
  0xed   : > { %v711_v55 = vadd.f32 %v710_v52, %v4205_v46  ;;  %v782_v57 = vadd.f32 %v781_v53, %v4205_v46 }
  0xef   : > { %v1812_v59 = vcombine.low %v709_v50, %v711_v55  ;;  %v1813_v60 = vcombine.low %v780_v51, %v782_v57  ;;  %v850_v61 = vpop.f32.mrb[2].mxu0  ;;  %v921_v62 = vpop.f32.mrb[2].mxu1 }
  0xf0   : > { %v851_v63 = vadd.f32 %v850_v61, %v4205_v46  ;;  %v922_v1 = vadd.f32 %v921_v62, %v4205_v46  ;;  %v852_v3 = vpop.f32.mrb[3].mxu0  ;;  %v923_v5 = vpop.f32.mrb[3].mxu1  ;;  %v515_v62 = vld [vmem:[%s4203_s19 + $0x28] sm:$0xff] }
  0xf1   : > { %v1844_v6 = vadd.f32 %v1812_v59, %v518_v54  ;;  %v1845_v7 = vadd.f32 %v1813_v60, %v519_v56  ;;  %v853_v8 = vadd.f32 %v852_v3, %v4205_v46  ;;  %v924_v9 = vadd.f32 %v923_v5, %v4205_v46 }
  0xf2   : > { %v526_v60 = vunpack.c.l.bf16 %v514_v47  ;;  %v528_v10 = vunpack.c.l.bf16 %v515_v62 }
  0xf3   : > { %v1888_v11 = vcombine.high %v1844_v6, %v1844_v6  ;;  %v1889_v12 = vcombine.high %v1845_v7, %v1845_v7  ;;  %v1814_v13 = vcombine.low %v851_v63, %v853_v8  ;;  %v1815_v14 = vcombine.low %v922_v1, %v924_v9  ;;  %v992_v15 = vpop.f32.mrb[4].mxu0  ;;  %v1063_v16 = vpop.f32.mrb[4].mxu1 }
  0xf4   : > { %v993_v17 = vadd.f32 %v992_v15, %v4205_v46  ;;  %v1064_v18 = vadd.f32 %v1063_v16, %v4205_v46  ;;  %v994_v20 = vpop.f32.mrb[5].mxu0  ;;  %v1065_v22 = vpop.f32.mrb[5].mxu1  ;;  %v527_v63 = vunpack.c.h.bf16 %v514_v47  ;;  %v529_v15 = vunpack.c.h.bf16 %v515_v62  ;;  %v4419_v62 = vld [vmem:[%s4407_s8 + $0x88] sm:$0xff] }
  0xf5   : > { %v1846_v23 = vadd.f32 %v1814_v13, %v520_v2  ;;  %v1847_v24 = vadd.f32 %v1815_v14, %v521_v4  ;;  %v995_v25 = vadd.f32 %v994_v20, %v4205_v46  ;;  %v1066_v26 = vadd.f32 %v1065_v22, %v4205_v46  ;;  %3774 = vmatprep.subr.msk.mxu0 %vm577_vm0, %v1888_v11 }
  0xf6   : > { %3778 = vmatprep.subr.msk.mxu1 %vm577_vm0, %v1889_v12  ;;  %3775 = vmatpush1.msk.msra.mxu0 %vm577_vm0, %v1844_v6 }
  0xf7   : > { %v1890_v29 = vcombine.high %v1846_v23, %v1846_v23  ;;  %v1891_v30 = vcombine.high %v1847_v24, %v1847_v24  ;;  %v1816_v31 = vcombine.low %v993_v17, %v995_v25  ;;  %v1817_v32 = vcombine.low %v1064_v18, %v1066_v26  ;;  %3779 = vmatpush1.msk.msra.mxu1 %vm577_vm0, %v1845_v7  ;;  %v1134_v33 = vpop.f32.mrb[6].mxu0  ;;  %v1205_v34 = vpop.f32.mrb[6].mxu1  ;;  %v516_v18 = vld [vmem:[%s4203_s19 + $0x30] sm:$0xff] }
  0xf8   : > { %v1135_v35 = vadd.f32 %v1134_v33, %v4205_v46  ;;  %v1206_v36 = vadd.f32 %v1205_v34, %v4205_v46  ;;  %3776 = vmatmul.mubr.msk.f32.vlgmr.msra.gmra.mrb[16].mxu0 %vm573_vm1, %v4226_v27  ;;  %3780 = vmatmul.mubr.msk.f32.vlgmr.msra.gmra.mrb[16].mxu1 %vm573_vm1, %v4226_v27  ;;  %v1136_v38 = vpop.f32.mrb[7].mxu0  ;;  %v1207_v40 = vpop.f32.mrb[7].mxu1  ;;  %v531_v33 = vunpack.c.h.bf16 %v516_v18 }
  0xf9   : > { %v1848_v41 = vadd.f32 %v1816_v31, %v522_v19  ;;  %v1849_v42 = vadd.f32 %v1817_v32, %v523_v21  ;;  %v1137_v43 = vadd.f32 %v1136_v38, %v4205_v46  ;;  %v1208_v44 = vadd.f32 %v1207_v40, %v4205_v46  ;;  %3782 = vmatprep.subr.msk.mxu0 %vm577_vm0, %v1890_v29 }
  0xfa   : > { %3786 = vmatprep.subr.msk.mxu1 %vm577_vm0, %v1891_v30  ;;  %2044 = vmatprep.mubr.f32.mxu0 %v4024_v0  ;;  %v530_v31 = vunpack.c.l.bf16 %v516_v18 }
  0xfb   : > { %v1892_v48 = vcombine.high %v1848_v41, %v1848_v41  ;;  %v1893_v49 = vcombine.high %v1849_v42, %v1849_v42  ;;  %v1818_v50 = vcombine.low %v1135_v35, %v1137_v43  ;;  %v1819_v51 = vcombine.low %v1206_v36, %v1208_v44  ;;  %2121 = vmatprep.mubr.f32.mxu1 %v4024_v0  ;;  %v1276_v52 = vpop.f32.mrb[8].mxu0  ;;  %v1347_v53 = vpop.f32.mrb[8].mxu1 }
  0xfc   : > { %3783 = vmatpush1.msk.msra.mxu0 %vm577_vm0, %v1846_v23  ;;  %3787 = vmatpush1.msk.msra.mxu1 %vm577_vm0, %v1847_v24  ;;  %v1277_v54 = vadd.f32 %v1276_v52, %v4205_v46  ;;  %v1348_v55 = vadd.f32 %v1347_v53, %v4205_v46  ;;  %v1278_v56 = vpop.f32.mrb[9].mxu0  ;;  %v1349_v57 = vpop.f32.mrb[9].mxu1 }
  0xfd   : > { %v4254_v58 = vadd.f32 %v1818_v50, %v524_v37  ;;  %v4256_v59 = vadd.f32 %v1819_v51, %v525_v39  ;;  %3777 = vmatmul.mubr.msk.f32.gmra.mrb[18].mxu0 %vm573_vm1, %v4246_v45  ;;  %3781 = vmatmul.mubr.msk.f32.gmra.mrb[18].mxu1 %vm573_vm1, %v4246_v45  ;;  %v1279_v61 = vadd.f32 %v1278_v56, %v4205_v46  ;;  %v532_v39 = vunpack.c.l.bf16 %v517_v28 }
  0xfe   : > { %v1350_v1 = vadd.f32 %v1349_v57, %v4205_v46  ;;  %3790 = vmatprep.subr.msk.mxu0 %vm577_vm0, %v1892_v48  ;;  %3794 = vmatprep.subr.msk.mxu1 %vm577_vm0, %v1893_v49  ;;  %v533_v50 = vunpack.c.h.bf16 %v517_v28 }
  0xff   : > { %v1894_v2 = vcombine.high %v4254_v58, %v4254_v58  ;;  %v1895_v3 = vcombine.high %v4256_v59, %v4256_v59  ;;  %v1820_v4 = vcombine.low %v1277_v54, %v1279_v61  ;;  %2192 = vmatprep.mubr.f32.mxu0 %v4024_v0  ;;  %2269 = vmatprep.mubr.f32.mxu1 %v4024_v0  ;;  %v1418_v5 = vpop.f32.mrb[10].mxu0  ;;  %v1489_v6 = vpop.f32.mrb[10].mxu1 }
 0x100   : > { %v1821_v7 = vcombine.low %v1348_v55, %v1350_v1  ;;  %v1419_v8 = vadd.f32 %v1418_v5, %v4205_v46  ;;  %v1490_v9 = vadd.f32 %v1489_v6, %v4205_v46  ;;  %v1420_v11 = vpop.f32.mrb[11].mxu0  ;;  %v1491_v12 = vpop.f32.mrb[11].mxu1  ;;  %v4425_v1 = vld [vmem:[%s4407_s8 + $0x18] sm:$0xff] }
 0x101   : > { %v4275_v13 = vadd.f32 %v1820_v4, %v526_v60  ;;  %3784 = vmatmul.mubr.msk.f32.vlgmr.msra.gmra.mrb[20].mxu0 %vm573_vm1, %v4226_v27  ;;  %3788 = vmatmul.mubr.msk.f32.vlgmr.msra.gmra.mrb[20].mxu1 %vm573_vm1, %v4226_v27  ;;  %v1421_v14 = vadd.f32 %v1420_v11, %v4205_v46  ;;  %v1492_v16 = vadd.f32 %v1491_v12, %v4205_v46  ;;  %v4430_v4 = vld [vmem:[%s4407_s8 + $0x90] sm:$0xff]  ;;  %v4433_v5 = vld [vmem:[%s4407_s8 + $0x98] sm:$0xff]  ;;  %v4443_v11 = vld [vmem:[%s4407_s8 + $0x28] sm:$0xff] }
 0x102   : > { %v4283_v17 = vadd.f32 %v1821_v7, %v527_v63  ;;  %3791 = vmatpush1.msk.msra.mxu0 %vm577_vm0, %v1848_v41  ;;  %3795 = vmatpush1.msk.msra.mxu1 %vm577_vm0, %v1849_v42  ;;  %v4422_v63 = vld [vmem:[%s4407_s8 + $0x10] sm:$0xff] }
 0x103   : > { %v1822_v19 = vcombine.low %v1419_v8, %v1421_v14  ;;  %v1823_v20 = vcombine.low %v1490_v9, %v1492_v16  ;;  %3798 = vmatprep.subr.msk.mxu0 %vm577_vm0, %v1894_v2  ;;  %3802 = vmatprep.subr.msk.mxu1 %vm577_vm0, %v1895_v3  ;;  %v1560_v21 = vpop.f32.mrb[12].mxu0  ;;  %v1631_v22 = vpop.f32.mrb[12].mxu1  ;;  %v1896_v35 = vcombine.high %v4275_v13, %v4275_v13  ;;  %v456_v9 = vunpack.c.l.bf16 %v4419_v62  ;;  %v4450_v16 = vld [vmem:[%s4407_s8 + $0xa0] sm:$0xff] }
 0x104   : > { %2198 = vmatprep.mubr.f32.mxu0 %v4024_v0  ;;  %2275 = vmatprep.mubr.f32.mxu1 %v4024_v0  ;;  %v1561_v23 = vadd.f32 %v1560_v21, %v4205_v46  ;;  %v1632_v24 = vadd.f32 %v1631_v22, %v4205_v46  ;;  %v1562_v25 = vpop.f32.mrb[13].mxu0  ;;  %v1633_v26 = vpop.f32.mrb[13].mxu1  ;;  %v1897_v40 = vcombine.high %v4283_v17, %v4283_v17  ;;  %v426_v14 = vunpack.c.l.bf16 %v4422_v63  ;;  %v4460_v22 = vld [vmem:[%s4407_s8 + $0x30] sm:$0xff] }
 0x105   : > { %v1854_v29 = vadd.f32 %v1822_v19, %v528_v10  ;;  %v1855_v30 = vadd.f32 %v1823_v20, %v529_v15  ;;  %3785 = vmatmul.mubr.msk.f32.gmra.mrb[22].mxu0 %vm573_vm1, %v4246_v45  ;;  %3789 = vmatmul.mubr.msk.f32.gmra.mrb[22].mxu1 %vm573_vm1, %v4246_v45  ;;  %v1563_v32 = vadd.f32 %v1562_v25, %v4205_v46  ;;  %v4440_v10 = vld [vmem:[%s4407_s8 + $0x20] sm:$0xff]  ;;  %v428_v15 = vunpack.c.l.bf16 %v4425_v1 }
 0x106   : > { %v1634_v34 = vadd.f32 %v1633_v26, %v4205_v46  ;;  %2346 = vmatprep.mubr.f32.mxu0 %v4024_v0  ;;  %2423 = vmatprep.mubr.f32.mxu1 %v4024_v0  ;;  %v427_v18 = vunpack.c.h.bf16 %v4422_v63 }
 0x107   : > { %v1824_v36 = vcombine.low %v1561_v23, %v1563_v32  ;;  %v1702_v37 = vpop.f32.mrb[14].mxu0  ;;  %v1773_v38 = vpop.f32.mrb[14].mxu1  ;;  %v1899_v57 = vcombine.high %v1855_v30, %v1855_v30  ;;  %v4463_v23 = vld [vmem:[%s4407_s8 + $0x38] sm:$0xff] }
 0x108   : > { %v1825_v41 = vcombine.low %v1632_v24, %v1634_v34  ;;  %v1703_v42 = vadd.f32 %v1702_v37, %v4205_v46  ;;  %v1774_v43 = vadd.f32 %v1773_v38, %v4205_v46  ;;  %v1704_v44 = vpop.f32.mrb[15].mxu0  ;;  %v1775_v47 = vpop.f32.mrb[15].mxu1  ;;  %v4538_v37 = vld [vmem:[%s4407_s8 + $0x60] sm:$0xff] }
 0x109   : > { %v1856_v48 = vadd.f32 %v1824_v36, %v530_v31  ;;  %3792 = vmatmul.mubr.msk.f32.vlgmr.msra.gmra.mrb[24].mxu0 %vm573_vm1, %v4226_v27  ;;  %3796 = vmatmul.mubr.msk.f32.vlgmr.msra.gmra.mrb[24].mxu1 %vm573_vm1, %v4226_v27  ;;  %v1705_v49 = vadd.f32 %v1704_v44, %v4205_v46  ;;  %v1776_v51 = vadd.f32 %v1775_v47, %v4205_v46  ;;  %v4483_v36 = vld [vmem:[%s4407_s8 + $0x48] sm:$0xff]  ;;  %v4550_v31 = vld [vmem:[%s4407_s8 + $0xe0] sm:$0xff] }
 0x10a   : > { %v1857_v52 = vadd.f32 %v1825_v41, %v531_v33  ;;  %3799 = vmatpush1.msk.msra.mxu0 %vm577_vm0, %v4254_v58  ;;  %3803 = vmatpush1.msk.msra.mxu1 %vm577_vm0, %v4256_v59  ;;  %v1898_v46 = vcombine.high %v1854_v29, %v1854_v29  ;;  %v4489_v41 = vpop.permute.xlu0 %1864 }
 0x10b   : > { %v1826_v53 = vcombine.low %v1703_v42, %v1705_v49  ;;  %v1827_v54 = vcombine.low %v1774_v43, %v1776_v51  ;;  %3806 = vmatprep.subr.msk.mxu0 %vm577_vm0, %v1896_v35  ;;  %3810 = vmatprep.subr.msk.mxu1 %vm577_vm0, %v1897_v40  ;;  %v1900_v58 = vcombine.high %v1856_v48, %v1856_v48  ;;  %v4480_v35 = vld [vmem:[%s4407_s8 + $0x40] sm:$0xff]  ;;  %v4499_v49 = vld [vmem:[%s4407_s8 + $0xc8] sm:$0xff]  ;;  %v4522_v43 = vpop.permute.xlu1 %1869  ;;  %v4527_v42 = vld [vmem:[%s4407_s8 + $0xd8] sm:$0xff] }
 0x10c   : > { %2352 = vmatprep.mubr.f32.mxu0 %v4024_v0  ;;  %2429 = vmatprep.mubr.f32.mxu1 %v4024_v0  ;;  %v1901_v59 = vcombine.high %v1857_v52, %v1857_v52 }
 0x10d   : > { %v1858_v55 = vadd.f32 %v1826_v53, %v532_v39  ;;  %v1859_v56 = vadd.f32 %v1827_v54, %v533_v50  ;;  %3793 = vmatmul.mubr.msk.f32.gmra.mrb[26].mxu0 %vm573_vm1, %v4246_v45  ;;  %3797 = vmatmul.mubr.msk.f32.gmra.mrb[26].mxu1 %vm573_vm1, %v4246_v45 }
 0x10e   : > { %2500 = vmatprep.mubr.f32.mxu0 %v4024_v0  ;;  %2577 = vmatprep.mubr.f32.mxu1 %v4024_v0 }
 0x10f   : > { %v1902_v60 = vcombine.high %v1858_v55, %v1858_v55  ;;  %v1903_v61 = vcombine.high %v1859_v56, %v1859_v56 }
 0x111   : > { %3800 = vmatmul.mubr.msk.f32.vlgmr.msra.gmra.mrb[28].mxu0 %vm573_vm1, %v4226_v27  ;;  %3804 = vmatmul.mubr.msk.f32.vlgmr.msra.gmra.mrb[28].mxu1 %vm573_vm1, %v4226_v27 }
 0x112   : > { %3807 = vmatpush1.msk.msra.mxu0 %vm577_vm0, %v4275_v13  ;;  %3811 = vmatpush1.msk.msra.mxu1 %vm577_vm0, %v4283_v17  ;;  %v457_v13 = vunpack.c.h.bf16 %v4419_v62  ;;  %v4453_v17 = vld [vmem:[%s4407_s8 + $0xa8] sm:$0xff] }
 0x113   : > { %3814 = vmatprep.subr.msk.mxu0 %vm577_vm0, %v1898_v46  ;;  %3818 = vmatprep.subr.msk.mxu1 %vm577_vm0, %v1899_v57 }
 0x114   : > { %2506 = vmatprep.mubr.f32.mxu0 %v4024_v0  ;;  %2583 = vmatprep.mubr.f32.mxu1 %v4024_v0 }
 0x115   : > { %3801 = vmatmul.mubr.msk.f32.gmra.mrb[30].mxu0 %vm573_vm1, %v4246_v45  ;;  %3805 = vmatmul.mubr.msk.f32.gmra.mrb[30].mxu1 %vm573_vm1, %v4246_v45 }
 0x116   : > { %2654 = vmatprep.mubr.f32.mxu0 %v4024_v0  ;;  %2731 = vmatprep.mubr.f32.mxu1 %v4024_v0 }
 0x119   : > { %3808 = vmatmul.mubr.msk.f32.vlgmr.msra.gmra.mrb[32].mxu0 %vm573_vm1, %v4226_v27  ;;  %3812 = vmatmul.mubr.msk.f32.vlgmr.msra.gmra.mrb[32].mxu1 %vm573_vm1, %v4226_v27 }
 0x11a   : > { %3815 = vmatpush1.msk.msra.mxu0 %vm577_vm0, %v1854_v29  ;;  %3819 = vmatpush1.msk.msra.mxu1 %vm577_vm0, %v1855_v30  ;;  %v4470_v29 = vld [vmem:[%s4407_s8 + $0xb0] sm:$0xff]  ;;  %v4473_v30 = vld [vmem:[%s4407_s8 + $0xb8] sm:$0xff] }
 0x11b   : > { %3822 = vmatprep.subr.msk.mxu0 %vm577_vm0, %v1900_v58  ;;  %3826 = vmatprep.subr.msk.mxu1 %vm577_vm0, %v1901_v59 }
 0x11c   : > { %2660 = vmatprep.mubr.f32.mxu0 %v4024_v0  ;;  %2737 = vmatprep.mubr.f32.mxu1 %v4024_v0 }
 0x11d   : > { %3809 = vmatmul.mubr.msk.f32.gmra.mrb[34].mxu0 %vm573_vm1, %v4246_v45  ;;  %3813 = vmatmul.mubr.msk.f32.gmra.mrb[34].mxu1 %vm573_vm1, %v4246_v45 }
 0x11e   : > { %2808 = vmatprep.mubr.f32.mxu0 %v4024_v0  ;;  %2885 = vmatprep.mubr.f32.mxu1 %v4024_v0 }
 0x121   : > { %3816 = vmatmul.mubr.msk.f32.vlgmr.msra.gmra.mrb[36].mxu0 %vm573_vm1, %v4226_v27  ;;  %3820 = vmatmul.mubr.msk.f32.vlgmr.msra.gmra.mrb[36].mxu1 %vm573_vm1, %v4226_v27 }
 0x122   : > { %3823 = vmatpush1.msk.msra.mxu0 %vm577_vm0, %v1856_v48  ;;  %3827 = vmatpush1.msk.msra.mxu1 %vm577_vm0, %v1857_v52  ;;  %v4496_v48 = vld [vmem:[%s4407_s8 + $0xc0] sm:$0xff]  ;;  %v4513_v52 = vld [vmem:[%s4407_s8 + $0x58] sm:$0xff] }
 0x123   : > { %3830 = vmatprep.subr.msk.mxu0 %vm577_vm0, %v1902_v60  ;;  %3834 = vmatprep.subr.msk.mxu1 %vm577_vm0, %v1903_v61  ;;  %v4510_v61 = vld [vmem:[%s4407_s8 + $0x50] sm:$0xff] }
 0x124   : > { %2814 = vmatprep.mubr.f32.mxu0 %v4024_v0  ;;  %2891 = vmatprep.mubr.f32.mxu1 %v4024_v0 }
 0x125   : > { %3817 = vmatmul.mubr.msk.f32.gmra.mrb[38].mxu0 %vm573_vm1, %v4246_v45  ;;  %3821 = vmatmul.mubr.msk.f32.gmra.mrb[38].mxu1 %vm573_vm1, %v4246_v45 }
 0x126   : > { %2962 = vmatprep.mubr.f32.mxu0 %v4024_v0  ;;  %3039 = vmatprep.mubr.f32.mxu1 %v4024_v0 }
 0x129   : > { %3824 = vmatmul.mubr.msk.f32.vlgmr.msra.gmra.mrb[40].mxu0 %vm573_vm1, %v4226_v27  ;;  %3828 = vmatmul.mubr.msk.f32.vlgmr.msra.gmra.mrb[40].mxu1 %vm573_vm1, %v4226_v27 }
 0x12a   : > { %3831 = vmatpush1.msk.msra.mxu0 %vm577_vm0, %v1858_v55  ;;  %3835 = vmatpush1.msk.msra.mxu1 %vm577_vm0, %v1859_v56 }
 0x12b   : > { %2968 = vmatprep.mubr.f32.mxu0 %v4024_v0  ;;  %3045 = vmatprep.mubr.f32.mxu1 %v4024_v0 }
 0x12d   : > { %3825 = vmatmul.mubr.msk.f32.gmra.mrb[42].mxu0 %vm573_vm1, %v4246_v45  ;;  %3829 = vmatmul.mubr.msk.f32.gmra.mrb[42].mxu1 %vm573_vm1, %v4246_v45 }
 0x12e   : > { %3116 = vmatprep.mubr.f32.mxu0 %v4024_v0  ;;  %3193 = vmatprep.mubr.f32.mxu1 %v4024_v0 }
 0x131   : > { %3832 = vmatmul.mubr.msk.f32.vlgmr.msra.gmra.mrb[44].mxu0 %vm573_vm1, %v4226_v27  ;;  %3836 = vmatmul.mubr.msk.f32.vlgmr.msra.gmra.mrb[44].mxu1 %vm573_vm1, %v4226_v27  ;;  %v4413_v27 = vld [vmem:[%s4407_s8 + $0x8] sm:$0xff] }
 0x132   : > { %3122 = vmatprep.mubr.f32.mxu0 %v4024_v0  ;;  %3199 = vmatprep.mubr.f32.mxu1 %v4024_v0  ;;  %v4410_v0 = vld [vmem:[%s4407_s8] sm:$0xff]  ;;  %v424_v3 = vunpack.c.l.bf16 %v4413_v27  ;;  %v425_v7 = vunpack.c.h.bf16 %v4413_v27 }
 0x133   : > { %v422_v2 = vunpack.c.l.bf16 %v4410_v0  ;;  %v423_v6 = vunpack.c.h.bf16 %v4410_v0 }
 0x135   : > { %3833 = vmatmul.mubr.msk.f32.gmra.mrb[46].mxu0 %vm573_vm1, %v4246_v45  ;;  %3837 = vmatmul.mubr.msk.f32.gmra.mrb[46].mxu1 %vm573_vm1, %v4246_v45  ;;  %v4416_v45 = vld [vmem:[%s4407_s8 + $0x80] sm:$0xff] }
 0x136   : > { %v454_v8 = vunpack.c.l.bf16 %v4416_v45  ;;  %v455_v12 = vunpack.c.h.bf16 %v4416_v45 }
 0x1cb   : > { %v2040_v50 = vpop.f32.mrb[16].mxu0  ;;  %v2117_v51 = vpop.f32.mrb[16].mxu1 }
 0x1cc   : > { %v2041_v56 = vadd.f32 %v2040_v50, %v4489_v41  ;;  %v2118_v46 = vadd.f32 %v2117_v51, %v4489_v41  ;;  %v2042_v57 = vpop.f32.mrb[17].mxu0  ;;  %v2119_v58 = vpop.f32.mrb[17].mxu1  ;;  %v4520_v51 = vld [vmem:[%s4407_s8 + $0xd0] sm:$0xff] }
 0x1cd   : > { %v2043_v53 = vadd.f32 %v2042_v57, %v4489_v41  ;;  %v2120_v54 = vadd.f32 %v2119_v58, %v4489_v41 }
 0x1ce   : > { %v3206_v47 = vmul.f32 0.5, %v2041_v56  ;;  %v3208_v44 = vmul.f32 0.5, %v2118_v46 }
 0x1cf   : > { %v3207_v40 = vmul.f32 0.5, %v2043_v53  ;;  %v3209_v57 = vmul.f32 0.5, %v2120_v54 }
 0x1d0   : > { %3872 = vtanh.f32 %v3206_v47  ;;  %v2046_v55 = vpop.f32.mrb[18].mxu0  ;;  %v2123_v56 = vpop.f32.mrb[18].mxu1  ;;  %v4541_v47 = vld [vmem:[%s4407_s8 + $0x68] sm:$0xff] }
 0x1d1   : > { %3874 = vtanh.f32 %v3208_v44  ;;  %v2047_v59 = vadd.f32 %v2046_v55, %v4522_v43  ;;  %v2048_v53 = vpop.f32.mrb[19].mxu0  ;;  %v2124_v54 = vadd.f32 %v2123_v56, %v4522_v43  ;;  %v2125_v38 = vpop.f32.mrb[19].mxu1  ;;  %v4556_v56 = vld [vmem:[%s4407_s8 + $0xe8] sm:$0xff] }
 0x1d2   : > { %3876 = vtanh.f32 %v3207_v40  ;;  %v2049_v46 = vadd.f32 %v2048_v53, %v4522_v43  ;;  %v2126_v39 = vadd.f32 %v2125_v38, %v4522_v43 }
 0x1d3   : > { %3878 = vtanh.f32 %v3209_v57  ;;  %v3238_v55 = vmul.f32 0.5, %v2047_v59  ;;  %v3240_v60 = vmul.f32 0.5, %v2124_v54 }
 0x1d4   : > { %v3239_v50 = vmul.f32 0.5, %v2049_v46  ;;  %v3241_v58 = vmul.f32 0.5, %v2126_v39  ;;  %v2194_v34 = vpop.f32.mrb[20].mxu0  ;;  %v2271_v33 = vpop.f32.mrb[20].mxu1 }
 0x1d5   : > { %3880 = vtanh.f32 %v3238_v55  ;;  %v2195_v38 = vadd.f32 %v2194_v34, %v4489_v41  ;;  %v2272_v57 = vadd.f32 %v2271_v33, %v4489_v41  ;;  %v2196_v59 = vpop.f32.mrb[21].mxu0  ;;  %v2273_v53 = vpop.f32.mrb[21].mxu1 }
 0x1d6   : > { %3882 = vtanh.f32 %v3239_v50  ;;  %v2197_v39 = vadd.f32 %v2196_v59, %v4489_v41  ;;  %v2274_v46 = vadd.f32 %v2273_v53, %v4489_v41 }
 0x1d7   : > { %3884 = vtanh.f32 %v3240_v60  ;;  %v3210_v32 = vmul.f32 0.5, %v2195_v38  ;;  %v3212_v55 = vmul.f32 0.5, %v2272_v57 }
 0x1d8   : > { %3886 = vtanh.f32 %v3241_v58  ;;  %v3211_v33 = vmul.f32 0.5, %v2197_v39  ;;  %v3213_v44 = vmul.f32 0.5, %v2274_v46  ;;  %v2200_v28 = vpop.f32.mrb[22].mxu0  ;;  %v2277_v54 = vpop.f32.mrb[22].mxu1 }
 0x1d9   : > { %3888 = vtanh.f32 %v3210_v32  ;;  %v2201_v50 = vadd.f32 %v2200_v28, %v4522_v43  ;;  %v2278_v59 = vadd.f32 %v2277_v54, %v4522_v43  ;;  %v2202_v53 = vpop.f32.mrb[23].mxu0  ;;  %v2279_v40 = vpop.f32.mrb[23].mxu1 }
 0x1da   : > { %v3873_v38 = vpop.eup %3872  ;;  %3890 = vtanh.f32 %v3212_v55  ;;  %v2203_v58 = vadd.f32 %v2202_v53, %v4522_v43  ;;  %v2280_v57 = vadd.f32 %v2279_v40, %v4522_v43 }
 0x1db   : > { %v3875_v46 = vpop.eup %3874  ;;  %v3334_v26 = vadd.f32 1.0, %v3873_v38  ;;  %3892 = vtanh.f32 %v3211_v33  ;;  %v3242_v32 = vmul.f32 0.5, %v2201_v50  ;;  %v3244_v28 = vmul.f32 0.5, %v2278_v59 }
 0x1dc   : > { %v3877_v34 = vpop.eup %3876  ;;  %v3336_v54 = vadd.f32 1.0, %v3875_v46  ;;  %3894 = vtanh.f32 %v3213_v44  ;;  %v3243_v25 = vmul.f32 0.5, %v2203_v58  ;;  %v3245_v24 = vmul.f32 0.5, %v2280_v57  ;;  %v2348_v60 = vpop.f32.mrb[24].mxu0 }
 0x1dd   : > { %v2425_v21 = vpop.f32.mrb[24].mxu1  ;;  %v3879_v55 = vpop.eup %3878  ;;  %v3398_v20 = vmul.f32 0.5, %v3334_v26  ;;  %v3335_v53 = vadd.f32 1.0, %v3877_v34  ;;  %3896 = vtanh.f32 %v3242_v32  ;;  %v2349_v40 = vadd.f32 %v2348_v60, %v4489_v41 }
 0x1de   : > { %v2350_v39 = vpop.f32.mrb[25].mxu0  ;;  %v2427_v19 = vpop.f32.mrb[25].mxu1  ;;  %v3400_v33 = vmul.f32 0.5, %v3336_v54  ;;  %v3337_v50 = vadd.f32 1.0, %v3879_v55  ;;  %3898 = vtanh.f32 %v3244_v28  ;;  %v2426_v44 = vadd.f32 %v2425_v21, %v4489_v41 }
 0x1df   : > { %v3881_v59 = vpop.eup %3880  ;;  %v3462_v26 = vmul.f32 %v3398_v20, %v422_v2  ;;  %v3399_v34 = vmul.f32 0.5, %v3335_v53  ;;  %3900 = vtanh.f32 %v3243_v25  ;;  %v3214_v60 = vmul.f32 0.5, %v2349_v40 }
 0x1e0   : > { %v3883_v38 = vpop.eup %3882  ;;  %v3464_v58 = vmul.f32 %v3400_v33, %v424_v3  ;;  %v3401_v57 = vmul.f32 0.5, %v3337_v50  ;;  %v3366_v46 = vadd.f32 1.0, %v3881_v59  ;;  %3902 = vtanh.f32 %v3245_v24  ;;  %v2354_v32 = vpop.f32.mrb[26].mxu0 }
 0x1e1   : > { %v2431_v54 = vpop.f32.mrb[26].mxu1  ;;  %v3885_v28 = vpop.eup %3884  ;;  %3526 = vst [vmem:[%s4574_s11] sm:$0xff] %v3462_v26  ;;  %v3463_v21 = vmul.f32 %v3399_v34, %v423_v6  ;;  %v3367_v2 = vadd.f32 1.0, %v3883_v38  ;;  %3904 = vtanh.f32 %v3214_v60  ;;  %v3216_v20 = vmul.f32 0.5, %v2426_v44 }
 0x1e2   : > { %v4584_v25 = vpop.f32.mrb[27].mxu0  ;;  %v4586_v55 = vpop.f32.mrb[27].mxu1  ;;  %3528 = vst [vmem:[%s4574_s11 + $0x10] sm:$0xff] %v3464_v58  ;;  %v3465_v24 = vmul.f32 %v3401_v57, %v425_v7  ;;  %v3430_v53 = vmul.f32 0.5, %v3366_v46  ;;  %v3368_v40 = vadd.f32 1.0, %v3885_v28  ;;  %v2351_v33 = vadd.f32 %v2350_v39, %v4489_v41 }
 0x1e3   : > { %v3887_v3 = vpop.eup %3886  ;;  %3527 = vst [vmem:[%s4574_s11 + $0x8] sm:$0xff] %v3463_v21  ;;  %v3431_v0 = vmul.f32 0.5, %v3367_v2  ;;  %3906 = vtanh.f32 %v3216_v20  ;;  %v2428_v44 = vadd.f32 %v2427_v19, %v4489_v41 }
 0x1e4   : > { %v3889_v50 = vpop.eup %3888  ;;  %v3369_v6 = vadd.f32 1.0, %v3887_v3  ;;  %3529 = vst [vmem:[%s4574_s11 + $0x18] sm:$0xff] %v3465_v24  ;;  %v3494_v26 = vmul.f32 %v3430_v53, %v454_v8  ;;  %v3432_v34 = vmul.f32 0.5, %v3368_v40  ;;  %v3215_v7 = vmul.f32 0.5, %v2351_v33  ;;  %v4597_v60 = vpop.f32.mrb[28].mxu0 }
 0x1e5   : > { %v3891_v59 = vpop.eup %3890  ;;  %v3338_v27 = vadd.f32 1.0, %v3889_v50  ;;  %v4599_v39 = vpop.f32.mrb[28].mxu1  ;;  %v3495_v58 = vmul.f32 %v3431_v0, %v455_v12  ;;  %v3217_v46 = vmul.f32 0.5, %v2428_v44  ;;  %v2355_v0 = vadd.f32 %v2354_v32, %v4522_v43 }
 0x1e6   : > { %v3893_v38 = vpop.eup %3892  ;;  %v3433_v57 = vmul.f32 0.5, %v3369_v6  ;;  %v3340_v19 = vadd.f32 1.0, %v3891_v59  ;;  %v4603_v28 = vpop.f32.mrb[29].mxu0  ;;  %3558 = vst [vmem:[%s4574_s11 + $0x100] sm:$0xff] %v3494_v26  ;;  %v3496_v2 = vmul.f32 %v3432_v34, %v456_v9  ;;  %3908 = vtanh.f32 %v3215_v7 }
 0x1e7   : > { %v4605_v21 = vpop.f32.mrb[29].mxu1  ;;  %v3895_v8 = vpop.eup %3894  ;;  %v3402_v20 = vmul.f32 0.5, %v3338_v27  ;;  %v3339_v3 = vadd.f32 1.0, %v3893_v38  ;;  %3559 = vst [vmem:[%s4574_s11 + $0x108] sm:$0xff] %v3495_v58  ;;  %3910 = vtanh.f32 %v3217_v46  ;;  %v2432_v34 = vadd.f32 %v2431_v54, %v4522_v43 }
 0x1e8   : > { %v3897_v24 = vpop.eup %3896  ;;  %v3497_v45 = vmul.f32 %v3433_v57, %v457_v13  ;;  %v3404_v12 = vmul.f32 0.5, %v3340_v19  ;;  %v3341_v53 = vadd.f32 1.0, %v3895_v8  ;;  %3560 = vst [vmem:[%s4574_s11 + $0x110] sm:$0xff] %v3496_v2  ;;  %v4617_v6 = vpop.f32.mrb[30].mxu0  ;;  %v3246_v57 = vmul.f32 0.5, %v2355_v0 }
 0x1e9   : > { %v3899_v40 = vpop.eup %3898  ;;  %v3466_v33 = vmul.f32 %v3402_v20, %v426_v14  ;;  %v3403_v50 = vmul.f32 0.5, %v3339_v3  ;;  %v3370_v9 = vadd.f32 1.0, %v3897_v24  ;;  %v4619_v44 = vpop.f32.mrb[30].mxu1  ;;  %v3248_v2 = vmul.f32 0.5, %v2432_v34 }
 0x1ea   : > { %v3901_v62 = vpop.eup %3900  ;;  %3561 = vst [vmem:[%s4574_s11 + $0x118] sm:$0xff] %v3497_v45  ;;  %v3468_v13 = vmul.f32 %v3404_v12, %v428_v15  ;;  %v3405_v59 = vmul.f32 0.5, %v3341_v53  ;;  %v3372_v26 = vadd.f32 1.0, %v3899_v40  ;;  %v4625_v14 = vpop.f32.mrb[31].mxu0  ;;  %v4946_v15 = vunpack.c.h.bf16 %v4425_v1 }
 0x1eb   : > { %v4627_v27 = vpop.f32.mrb[31].mxu1  ;;  %v3903_v32 = vpop.eup %3902  ;;  %3530 = vst [vmem:[%s4574_s11 + $0x20] sm:$0xff] %v3466_v33  ;;  %v3467_v7 = vmul.f32 %v3403_v50, %v427_v18  ;;  %v3434_v38 = vmul.f32 0.5, %v3370_v9  ;;  %v3371_v58 = vadd.f32 1.0, %v3901_v62  ;;  %v4947_v20 = vunpack.c.l.bf16 %v4430_v4 }
 0x1ec   : > { %v3905_v19 = vpop.eup %3904  ;;  %3532 = vst [vmem:[%s4574_s11 + $0x30] sm:$0xff] %v3468_v13  ;;  %v3469_v46 = vmul.f32 %v3405_v59, %v4946_v15  ;;  %v3436_v8 = vmul.f32 0.5, %v3372_v26  ;;  %v3373_v54 = vadd.f32 1.0, %v3903_v32  ;;  %3912 = vtanh.f32 %v3246_v57  ;;  %v4638_v18 = vpop.f32.mrb[32].mxu0 }
 0x1ed   : > { %3531 = vst [vmem:[%s4574_s11 + $0x28] sm:$0xff] %v3467_v7  ;;  %v3498_v3 = vmul.f32 %v3434_v38, %v4947_v20  ;;  %v3435_v24 = vmul.f32 0.5, %v3371_v58  ;;  %v3342_v63 = vadd.f32 1.0, %v3905_v19  ;;  %v4640_v45 = vpop.f32.mrb[32].mxu1  ;;  %v3907_v12 = vpop.eup %3906  ;;  %v4948_v1 = vunpack.c.l.bf16 %v4433_v5 }
 0x1ee   : > { %3533 = vst [vmem:[%s4574_s11 + $0x38] sm:$0xff] %v3469_v46  ;;  %v3437_v40 = vmul.f32 0.5, %v3373_v54  ;;  %3914 = vtanh.f32 %v3248_v2  ;;  %v2357_v33 = vadd.f32 %v4584_v25, %v4522_v43  ;;  %v4647_v50 = vpop.f32.mrb[33].mxu0  ;;  %v4649_v9 = vpop.f32.mrb[33].mxu1  ;;  %v4949_v0 = vunpack.c.h.bf16 %v4430_v4 }
 0x1ef   : > { %v3500_v53 = vmul.f32 %v3436_v8, %v4948_v1  ;;  %3562 = vst [vmem:[%s4574_s11 + $0x120] sm:$0xff] %v3498_v3  ;;  %v3406_v13 = vmul.f32 0.5, %v3342_v63  ;;  %v3344_v59 = vadd.f32 1.0, %v3907_v12  ;;  %v2434_v26 = vadd.f32 %v4586_v55, %v4522_v43 }
 0x1f0   : > { %v3499_v62 = vmul.f32 %v3435_v24, %v4949_v0  ;;  %v4950_v34 = vunpack.c.h.bf16 %v4433_v5  ;;  %v3247_v7 = vmul.f32 0.5, %v2357_v33  ;;  %v2503_v25 = vadd.f32 %v4597_v60, %v4489_v41  ;;  %v3909_v58 = vpop.eup %3908  ;;  %v4668_v5 = vpop.f32.mrb[34].mxu0 }
 0x1f1   : > { %3564 = vst [vmem:[%s4574_s11 + $0x130] sm:$0xff] %v3500_v53  ;;  %v2580_v38 = vadd.f32 %v4599_v39, %v4489_v41  ;;  %v4951_v4 = vunpack.c.l.bf16 %v4440_v10  ;;  %v3408_v19 = vmul.f32 0.5, %v3344_v59  ;;  %v3249_v15 = vmul.f32 0.5, %v2434_v26  ;;  %v4670_v46 = vpop.f32.mrb[34].mxu1  ;;  %v3911_v8 = vpop.eup %3910 }
 0x1f2   : > { %v3501_v32 = vmul.f32 %v3437_v40, %v4950_v34  ;;  %3563 = vst [vmem:[%s4574_s11 + $0x128] sm:$0xff] %v3499_v62  ;;  %v2505_v55 = vadd.f32 %v4603_v28, %v4489_v41  ;;  %v3343_v60 = vadd.f32 1.0, %v3909_v58  ;;  %3916 = vtanh.f32 %v3247_v7  ;;  %v4673_v2 = vpop.f32.mrb[35].mxu0  ;;  %v4675_v20 = vpop.f32.mrb[35].mxu1 }
 0x1f3   : > { %v3470_v57 = vmul.f32 %v3406_v13, %v4951_v4  ;;  %v3218_v39 = vmul.f32 0.5, %v2503_v25  ;;  %v3220_v54 = vmul.f32 0.5, %v2580_v38  ;;  %v4952_v3 = vunpack.c.l.bf16 %v4443_v11 }
 0x1f4   : > { %3565 = vst [vmem:[%s4574_s11 + $0x138] sm:$0xff] %v3501_v32  ;;  %v3345_v28 = vadd.f32 1.0, %v3911_v8  ;;  %3918 = vtanh.f32 %v3249_v15  ;;  %v3219_v63 = vmul.f32 0.5, %v2505_v55  ;;  %v3407_v12 = vmul.f32 0.5, %v3343_v60  ;;  %v4689_v62 = vpop.f32.mrb[36].mxu0  ;;  %v4691_v13 = vpop.f32.mrb[36].mxu1 }
 0x1f5   : > { %3534 = vst [vmem:[%s4574_s11 + $0x40] sm:$0xff] %v3470_v57  ;;  %v3472_v24 = vmul.f32 %v3408_v19, %v4952_v3  ;;  %3920 = vtanh.f32 %v3218_v39  ;;  %v2582_v1 = vadd.f32 %v4605_v21, %v4489_v41  ;;  %v2509_v53 = vadd.f32 %v4617_v6, %v4522_v43  ;;  %v4695_v34 = vpop.f32.mrb[37].mxu0  ;;  %v4697_v32 = vpop.f32.mrb[37].mxu1 }
 0x1f6   : > { %v3409_v40 = vmul.f32 0.5, %v3345_v28  ;;  %3922 = vtanh.f32 %v3220_v54  ;;  %v2586_v33 = vadd.f32 %v4619_v44, %v4522_v43  ;;  %v2511_v0 = vadd.f32 %v4625_v14, %v4522_v43  ;;  %v3913_v44 = vpop.eup %3912 }
 0x1f7   : > { %3536 = vst [vmem:[%s4574_s11 + $0x50] sm:$0xff] %v3472_v24  ;;  %v4953_v59 = vunpack.c.h.bf16 %v4440_v10  ;;  %3924 = vtanh.f32 %v3219_v63  ;;  %v3221_v6 = vmul.f32 0.5, %v2582_v1  ;;  %v3250_v26 = vmul.f32 0.5, %v2509_v53 }
 0x1f8   : > { %v4954_v7 = vunpack.c.h.bf16 %v4443_v11  ;;  %v3252_v14 = vmul.f32 0.5, %v2586_v33  ;;  %v3251_v38 = vmul.f32 0.5, %v2511_v0  ;;  %v2588_v58 = vadd.f32 %v4627_v27, %v4522_v43  ;;  %v3915_v4 = vpop.eup %3914  ;;  %v4711_v8 = vpop.f32.mrb[38].mxu0 }
 0x1f9   : > { %v3471_v21 = vmul.f32 %v3407_v12, %v4953_v59  ;;  %v3374_v10 = vadd.f32 1.0, %v3913_v44  ;;  %3926 = vtanh.f32 %v3221_v6  ;;  %v2657_v57 = vadd.f32 %v4638_v18, %v4489_v41  ;;  %v4713_v27 = vpop.f32.mrb[38].mxu1  ;;  %v4715_v3 = vpop.f32.mrb[39].mxu0 }
 0x1fa   : > { %v3473_v25 = vmul.f32 %v3409_v40, %v4954_v7  ;;  %v2734_v19 = vadd.f32 %v4640_v45, %v4489_v41  ;;  %v3376_v15 = vadd.f32 1.0, %v3915_v4  ;;  %3928 = vtanh.f32 %v3250_v26  ;;  %v4717_v18 = vpop.f32.mrb[39].mxu1 }
 0x1fb   : > { %3535 = vst [vmem:[%s4574_s11 + $0x48] sm:$0xff] %v3471_v21  ;;  %v3253_v11 = vmul.f32 0.5, %v2588_v58  ;;  %v2659_v55 = vadd.f32 %v4647_v50, %v4489_v41  ;;  %v3438_v60 = vmul.f32 0.5, %v3374_v10  ;;  %3930 = vtanh.f32 %v3252_v14 }
 0x1fc   : > { %3537 = vst [vmem:[%s4574_s11 + $0x58] sm:$0xff] %v3473_v25  ;;  %v3222_v39 = vmul.f32 0.5, %v2657_v57  ;;  %v3224_v54 = vmul.f32 0.5, %v2734_v19  ;;  %v3440_v45 = vmul.f32 0.5, %v3376_v15  ;;  %3932 = vtanh.f32 %v3251_v38  ;;  %v3917_v50 = vpop.eup %3916  ;;  %v4731_v6 = vpop.f32.mrb[40].mxu1 }
 0x1fd   : > { %v3223_v24 = vmul.f32 0.5, %v2659_v55  ;;  %v2736_v28 = vadd.f32 %v4649_v9, %v4489_v41  ;;  %v4955_v63 = vunpack.c.l.bf16 %v4450_v16  ;;  %3934 = vtanh.f32 %v3253_v11  ;;  %v4729_v9 = vpop.f32.mrb[40].mxu0 }
 0x1fe   : > { %v2663_v1 = vadd.f32 %v4668_v5, %v4522_v43  ;;  %v2740_v53 = vadd.f32 %v4670_v46, %v4522_v43  ;;  %v3919_v40 = vpop.eup %3918  ;;  %v4956_v33 = vunpack.c.l.bf16 %v4453_v17  ;;  %v3375_v59 = vadd.f32 1.0, %v3917_v50  ;;  %v4734_v25 = vpop.f32.mrb[41].mxu0 }
 0x1ff   : > { %v3502_v12 = vmul.f32 %v3438_v60, %v4955_v63  ;;  %3936 = vtanh.f32 %v3222_v39  ;;  %v3225_v21 = vmul.f32 0.5, %v2736_v28  ;;  %v3921_v26 = vpop.eup %3920  ;;  %v3377_v44 = vadd.f32 1.0, %v3919_v40  ;;  %v4736_v46 = vpop.f32.mrb[41].mxu1 }
 0x200   : > { %v3504_v0 = vmul.f32 %v3440_v45, %v4956_v33  ;;  %3938 = vtanh.f32 %v3224_v54  ;;  %v3254_v5 = vmul.f32 0.5, %v2663_v1  ;;  %v3256_v7 = vmul.f32 0.5, %v2740_v53  ;;  %v3923_v14 = vpop.eup %3922  ;;  %v4745_v54 = vpop.f32.mrb[42].mxu0 }
 0x201   : > { %3566 = vst [vmem:[%s4574_s11 + $0x140] sm:$0xff] %v3502_v12  ;;  %v3439_v38 = vmul.f32 0.5, %v3375_v59  ;;  %v3346_v58 = vadd.f32 1.0, %v3921_v26  ;;  %3940 = vtanh.f32 %v3223_v24  ;;  %v2665_v4 = vadd.f32 %v4673_v2, %v4522_v43  ;;  %v3925_v10 = vpop.eup %3924  ;;  %v4747_v45 = vpop.f32.mrb[42].mxu1 }
 0x202   : > { %3568 = vst [vmem:[%s4574_s11 + $0x150] sm:$0xff] %v3504_v0  ;;  %v3441_v57 = vmul.f32 0.5, %v3377_v44  ;;  %v3348_v19 = vadd.f32 1.0, %v3923_v14  ;;  %3942 = vtanh.f32 %v3225_v21  ;;  %v2742_v15 = vadd.f32 %v4675_v20, %v4522_v43  ;;  %v4751_v20 = vpop.f32.mrb[43].mxu0 }
 0x203   : > { %v4957_v11 = vunpack.c.h.bf16 %v4450_v16  ;;  %v3410_v60 = vmul.f32 0.5, %v3346_v58  ;;  %v3347_v39 = vadd.f32 1.0, %v3925_v10  ;;  %3944 = vtanh.f32 %v3254_v5  ;;  %v3927_v2 = vpop.eup %3926  ;;  %v4753_v16 = vpop.f32.mrb[43].mxu1 }
 0x204   : > { %v4958_v24 = vunpack.c.h.bf16 %v4453_v17  ;;  %v3412_v50 = vmul.f32 0.5, %v3348_v19  ;;  %3946 = vtanh.f32 %v3256_v7  ;;  %v3255_v63 = vmul.f32 0.5, %v2665_v4  ;;  %v3929_v12 = vpop.eup %3928  ;;  %v4766_v4 = vpop.f32.mrb[44].mxu0 }
 0x205   : > { %v3503_v55 = vmul.f32 %v3439_v38, %v4957_v11  ;;  %v4959_v1 = vunpack.c.l.bf16 %v4460_v22  ;;  %v3411_v40 = vmul.f32 0.5, %v3347_v39  ;;  %v3349_v33 = vadd.f32 1.0, %v3927_v2  ;;  %v3931_v59 = vpop.eup %3930  ;;  %v4768_v10 = vpop.f32.mrb[44].mxu1 }
 0x206   : > { %v3505_v28 = vmul.f32 %v3441_v57, %v4958_v24  ;;  %v3257_v0 = vmul.f32 0.5, %v2742_v15  ;;  %v4960_v17 = vunpack.c.l.bf16 %v4463_v23  ;;  %v3378_v26 = vadd.f32 1.0, %v3929_v12  ;;  %v3933_v5 = vpop.eup %3932 }
 0x207   : > { %3567 = vst [vmem:[%s4574_s11 + $0x148] sm:$0xff] %v3503_v55  ;;  %v3474_v53 = vmul.f32 %v3410_v60, %v4959_v1  ;;  %3948 = vtanh.f32 %v3255_v63  ;;  %v2811_v44 = vadd.f32 %v4689_v62, %v4489_v41  ;;  %v4961_v7 = vunpack.c.h.bf16 %v4460_v22  ;;  %v3935_v57 = vpop.eup %3934  ;;  %v4773_v55 = vpop.f32.mrb[45].mxu0 }
 0x208   : > { %3569 = vst [vmem:[%s4574_s11 + $0x158] sm:$0xff] %v3505_v28  ;;  %v3476_v21 = vmul.f32 %v3412_v50, %v4960_v17  ;;  %v3413_v38 = vmul.f32 0.5, %v3349_v33  ;;  %v3380_v58 = vadd.f32 1.0, %v3931_v59  ;;  %3950 = vtanh.f32 %v3257_v0  ;;  %v4775_v22 = vpop.f32.mrb[45].mxu1 }
 0x209   : > { %3538 = vst [vmem:[%s4574_s11 + $0x60] sm:$0xff] %v3474_v53  ;;  %v3475_v14 = vmul.f32 %v3411_v40, %v4961_v7  ;;  %v3442_v19 = vmul.f32 0.5, %v3378_v26  ;;  %v3379_v15 = vadd.f32 1.0, %v3933_v5  ;;  %v3226_v11 = vmul.f32 0.5, %v2811_v44  ;;  %v3937_v60 = vpop.eup %3936  ;;  %v4789_v26 = vpop.f32.mrb[46].mxu1 }
 0x20a   : > { %3540 = vst [vmem:[%s4574_s11 + $0x70] sm:$0xff] %v3476_v21  ;;  %v2888_v62 = vadd.f32 %v4691_v13, %v4489_v41  ;;  %v4962_v39 = vunpack.c.h.bf16 %v4463_v23  ;;  %v3444_v24 = vmul.f32 0.5, %v3380_v58  ;;  %v3381_v28 = vadd.f32 1.0, %v3935_v57  ;;  %v3939_v63 = vpop.eup %3938  ;;  %v4787_v21 = vpop.f32.mrb[46].mxu0 }
 0x20b   : > { %3539 = vst [vmem:[%s4574_s11 + $0x68] sm:$0xff] %v3475_v14  ;;  %v2813_v50 = vadd.f32 %v4695_v34, %v4489_v41  ;;  %v4963_v12 = vunpack.c.l.bf16 %v4470_v29  ;;  %v3443_v13 = vmul.f32 0.5, %v3379_v15  ;;  %v3350_v53 = vadd.f32 1.0, %v3937_v60  ;;  %v3941_v40 = vpop.eup %3940  ;;  %v4794_v58 = vpop.f32.mrb[47].mxu0 }
 0x20c   : > { %v3477_v2 = vmul.f32 %v3413_v38, %v4962_v39  ;;  %3952 = vtanh.f32 %v3226_v11  ;;  %v4964_v33 = vunpack.c.l.bf16 %v4473_v30  ;;  %v3445_v0 = vmul.f32 0.5, %v3381_v28  ;;  %v3943_v34 = vpop.eup %3942  ;;  %v4796_v57 = vpop.f32.mrb[47].mxu1 }
 0x20d   : > { %v3506_v1 = vmul.f32 %v3442_v19, %v4963_v12  ;;  %v3352_v59 = vadd.f32 1.0, %v3939_v63  ;;  %v3228_v17 = vmul.f32 0.5, %v2888_v62  ;;  %v4965_v44 = vunpack.c.h.bf16 %v4470_v29  ;;  %v3945_v19 = vpop.eup %3944 }
 0x20e   : > { %3541 = vst [vmem:[%s4574_s11 + $0x78] sm:$0xff] %v3477_v2  ;;  %v3508_v23 = vmul.f32 %v3444_v24, %v4964_v33  ;;  %v3414_v7 = vmul.f32 0.5, %v3350_v53  ;;  %v3351_v14 = vadd.f32 1.0, %v3941_v40  ;;  %v3227_v38 = vmul.f32 0.5, %v2813_v50  ;;  %v3947_v39 = vpop.eup %3946 }
 0x20f   : > { %3570 = vst [vmem:[%s4574_s11 + $0x160] sm:$0xff] %v3506_v1  ;;  %v3507_v5 = vmul.f32 %v3443_v13, %v4965_v44  ;;  %v4966_v15 = vunpack.c.h.bf16 %v4473_v30  ;;  %v3416_v62 = vmul.f32 0.5, %v3352_v59  ;;  %v3353_v60 = vadd.f32 1.0, %v3943_v34 }
 0x210   : > { %3572 = vst [vmem:[%s4574_s11 + $0x170] sm:$0xff] %v3508_v23  ;;  %3954 = vtanh.f32 %v3228_v17  ;;  %v4967_v29 = vunpack.c.l.bf16 %v4480_v35  ;;  %v3415_v24 = vmul.f32 0.5, %v3351_v14  ;;  %v3382_v28 = vadd.f32 1.0, %v3945_v19 }
 0x211   : > { %v3509_v11 = vmul.f32 %v3445_v0, %v4966_v15  ;;  %3571 = vst [vmem:[%s4574_s11 + $0x168] sm:$0xff] %v3507_v5  ;;  %3956 = vtanh.f32 %v3227_v38  ;;  %v4968_v50 = vunpack.c.l.bf16 %v4483_v36  ;;  %v3417_v30 = vmul.f32 0.5, %v3353_v60  ;;  %v3949_v13 = vpop.eup %3948 }
 0x212   : > { %v3478_v2 = vmul.f32 %v3414_v7, %v4967_v29  ;;  %v3384_v12 = vadd.f32 1.0, %v3947_v39  ;;  %v2890_v1 = vadd.f32 %v4697_v32, %v4489_v41  ;;  %v4969_v53 = vunpack.c.h.bf16 %v4480_v35  ;;  %v3951_v59 = vpop.eup %3950 }
 0x213   : > { %3573 = vst [vmem:[%s4574_s11 + $0x178] sm:$0xff] %v3509_v11  ;;  %v3480_v63 = vmul.f32 %v3416_v62, %v4968_v50  ;;  %v3446_v33 = vmul.f32 0.5, %v3382_v28  ;;  %v2817_v23 = vadd.f32 %v4711_v8, %v4522_v43  ;;  %v2894_v0 = vadd.f32 %v4713_v27, %v4522_v43 }
 0x214   : > { %3542 = vst [vmem:[%s4574_s11 + $0x80] sm:$0xff] %v3478_v2  ;;  %v3479_v40 = vmul.f32 %v3415_v24, %v4969_v53  ;;  %v4970_v17 = vunpack.c.h.bf16 %v4483_v36  ;;  %v3448_v32 = vmul.f32 0.5, %v3384_v12  ;;  %v3383_v44 = vadd.f32 1.0, %v3949_v13 }
 0x215   : > { %3544 = vst [vmem:[%s4574_s11 + $0x90] sm:$0xff] %v3480_v63  ;;  %v3229_v5 = vmul.f32 0.5, %v2890_v1  ;;  %v4971_v35 = vunpack.c.l.bf16 %v4496_v48  ;;  %v3385_v14 = vadd.f32 1.0, %v3951_v59  ;;  %v3258_v38 = vmul.f32 0.5, %v2817_v23 }
 0x216   : > { %v3481_v34 = vmul.f32 %v3417_v30, %v4970_v17  ;;  %3543 = vst [vmem:[%s4574_s11 + $0x88] sm:$0xff] %v3479_v40  ;;  %v3260_v8 = vmul.f32 0.5, %v2894_v0  ;;  %v4972_v27 = vunpack.c.l.bf16 %v4499_v49  ;;  %v3447_v15 = vmul.f32 0.5, %v3383_v44  ;;  %v3953_v11 = vpop.eup %3952 }
 0x217   : > { %v3510_v7 = vmul.f32 %v3446_v33, %v4971_v35  ;;  %3958 = vtanh.f32 %v3229_v5  ;;  %v2819_v36 = vadd.f32 %v4715_v3, %v4522_v43  ;;  %v3449_v62 = vmul.f32 0.5, %v3385_v14 }
 0x218   : > { %3545 = vst [vmem:[%s4574_s11 + $0x98] sm:$0xff] %v3481_v34  ;;  %v3512_v19 = vmul.f32 %v3448_v32, %v4972_v27  ;;  %3960 = vtanh.f32 %v3258_v38  ;;  %v2896_v60 = vadd.f32 %v4717_v18, %v4522_v43  ;;  %v2965_v39 = vadd.f32 %v4729_v9, %v4489_v41 }
 0x219   : > { %3574 = vst [vmem:[%s4574_s11 + $0x180] sm:$0xff] %v3510_v7  ;;  %v4973_v29 = vunpack.c.h.bf16 %v4496_v48  ;;  %v3354_v24 = vadd.f32 1.0, %v3953_v11  ;;  %3962 = vtanh.f32 %v3260_v8  ;;  %v3259_v28 = vmul.f32 0.5, %v2819_v36 }
 0x21a   : > { %3576 = vst [vmem:[%s4574_s11 + $0x190] sm:$0xff] %v3512_v19  ;;  %v4974_v3 = vunpack.c.h.bf16 %v4499_v49  ;;  %v3261_v63 = vmul.f32 0.5, %v2896_v60  ;;  %v3230_v30 = vmul.f32 0.5, %v2965_v39  ;;  %v3042_v12 = vadd.f32 %v4731_v6, %v4489_v41  ;;  %v3955_v18 = vpop.eup %3954 }
 0x21b   : > { %v3511_v2 = vmul.f32 %v3447_v15, %v4973_v29  ;;  %v3418_v1 = vmul.f32 0.5, %v3354_v24  ;;  %3964 = vtanh.f32 %v3259_v28  ;;  %v2967_v48 = vadd.f32 %v4734_v25, %v4489_v41  ;;  %v3957_v13 = vpop.eup %3956 }
 0x21c   : > { %v3513_v50 = vmul.f32 %v3449_v62, %v4974_v3  ;;  %v3044_v9 = vadd.f32 %v4736_v46, %v4489_v41  ;;  %v3356_v49 = vadd.f32 1.0, %v3955_v18  ;;  %3966 = vtanh.f32 %v3261_v63 }
 0x21d   : > { %3575 = vst [vmem:[%s4574_s11 + $0x188] sm:$0xff] %v3511_v2  ;;  %v3232_v53 = vmul.f32 0.5, %v3042_v12  ;;  %v2971_v40 = vadd.f32 %v4745_v54, %v4522_v43  ;;  %v4975_v6 = vunpack.c.l.bf16 %v4510_v61  ;;  %v3355_v23 = vadd.f32 1.0, %v3957_v13 }
 0x21e   : > { %3577 = vst [vmem:[%s4574_s11 + $0x198] sm:$0xff] %v3513_v50  ;;  %3968 = vtanh.f32 %v3230_v30  ;;  %v3231_v0 = vmul.f32 0.5, %v2967_v48  ;;  %v3420_v59 = vmul.f32 0.5, %v3356_v49  ;;  %v3233_v25 = vmul.f32 0.5, %v3044_v9 }
 0x21f   : > { %v3482_v33 = vmul.f32 %v3418_v1, %v4975_v6  ;;  %3970 = vtanh.f32 %v3232_v53  ;;  %v3262_v17 = vmul.f32 0.5, %v2971_v40  ;;  %v3419_v46 = vmul.f32 0.5, %v3355_v23 }
 0x220   : > { %3972 = vtanh.f32 %v3231_v0  ;;  %v3048_v34 = vadd.f32 %v4747_v45, %v4522_v43  ;;  %v2973_v54 = vadd.f32 %v4751_v20, %v4522_v43  ;;  %v4976_v32 = vunpack.c.l.bf16 %v4513_v52 }
 0x221   : > { %3546 = vst [vmem:[%s4574_s11 + $0xa0] sm:$0xff] %v3482_v33  ;;  %3974 = vtanh.f32 %v3233_v25  ;;  %v3050_v5 = vadd.f32 %v4753_v16, %v4522_v43  ;;  %v3119_v35 = vadd.f32 %v4766_v4, %v4489_v41  ;;  %v3959_v7 = vpop.eup %3958  ;;  %v4977_v14 = vunpack.c.h.bf16 %v4510_v61 }
 0x222   : > { %v3484_v44 = vmul.f32 %v3420_v59, %v4976_v32  ;;  %3976 = vtanh.f32 %v3262_v17  ;;  %v3264_v45 = vmul.f32 0.5, %v3048_v34  ;;  %v3263_v8 = vmul.f32 0.5, %v2973_v54  ;;  %v3961_v27 = vpop.eup %3960 }
 0x223   : > { %v3483_v38 = vmul.f32 %v3419_v46, %v4977_v14  ;;  %v3357_v20 = vadd.f32 1.0, %v3959_v7  ;;  %v3265_v19 = vmul.f32 0.5, %v3050_v5  ;;  %v3234_v15 = vmul.f32 0.5, %v3119_v35  ;;  %v3963_v11 = vpop.eup %3962 }
 0x224   : > { %3548 = vst [vmem:[%s4574_s11 + $0xb0] sm:$0xff] %v3484_v44  ;;  %v3196_v36 = vadd.f32 %v4768_v10, %v4489_v41  ;;  %v3386_v16 = vadd.f32 1.0, %v3961_v27  ;;  %3978 = vtanh.f32 %v3264_v45  ;;  %v3121_v4 = vadd.f32 %v4773_v55, %v4489_v41  ;;  %v404_v45 = vld [vmem:[%s4407_s8 + $0x70] sm:$0xff] }
 0x225   : > { %3547 = vst [vmem:[%s4574_s11 + $0xa8] sm:$0xff] %v3483_v38  ;;  %v3198_v61 = vadd.f32 %v4775_v22, %v4489_v41  ;;  %v3421_v62 = vmul.f32 0.5, %v3357_v20  ;;  %v3388_v60 = vadd.f32 1.0, %v3963_v11  ;;  %3980 = vtanh.f32 %v3263_v8  ;;  %v3965_v29 = vpop.eup %3964 }
 0x226   : > { %v3236_v39 = vmul.f32 0.5, %v3196_v36  ;;  %v3450_v2 = vmul.f32 0.5, %v3386_v16  ;;  %3982 = vtanh.f32 %v3265_v19  ;;  %v3235_v24 = vmul.f32 0.5, %v3121_v4  ;;  %v3967_v28 = vpop.eup %3966  ;;  %v405_v16 = vld [vmem:[%s4407_s8 + $0x78] sm:$0xff] }
 0x227   : > { %v3237_v10 = vmul.f32 0.5, %v3198_v61  ;;  %v4978_v3 = vunpack.c.h.bf16 %v4513_v52  ;;  %v3452_v63 = vmul.f32 0.5, %v3388_v60  ;;  %v3387_v55 = vadd.f32 1.0, %v3965_v29 }
 0x228   : > { %3984 = vtanh.f32 %v3234_v15  ;;  %v3969_v30 = vpop.eup %3968  ;;  %v4979_v41 = vunpack.c.l.bf16 %v4520_v51  ;;  %v3389_v12 = vadd.f32 1.0, %v3967_v28  ;;  %v3125_v18 = vadd.f32 %v4787_v21, %v4522_v43 }
 0x229   : > { %v3485_v50 = vmul.f32 %v3421_v62, %v4978_v3  ;;  %3986 = vtanh.f32 %v3236_v39  ;;  %v3971_v1 = vpop.eup %3970  ;;  %v4980_v48 = vunpack.c.l.bf16 %v4527_v42  ;;  %v3451_v9 = vmul.f32 0.5, %v3387_v55 }
 0x22a   : > { %v3514_v22 = vmul.f32 %v3450_v2, %v4979_v41  ;;  %v3358_v13 = vadd.f32 1.0, %v3969_v30  ;;  %3988 = vtanh.f32 %v3235_v24  ;;  %v3973_v49 = vpop.eup %3972  ;;  %v3453_v53 = vmul.f32 0.5, %v3389_v12 }
 0x22b   : > { %3549 = vst [vmem:[%s4574_s11 + $0xb8] sm:$0xff] %v3485_v50  ;;  %v3516_v52 = vmul.f32 %v3452_v63, %v4980_v48  ;;  %v3360_v40 = vadd.f32 1.0, %v3971_v1  ;;  %3990 = vtanh.f32 %v3237_v10  ;;  %v3266_v6 = vmul.f32 0.5, %v3125_v18  ;;  %v3975_v33 = vpop.eup %3974 }
 0x22c   : > { %3578 = vst [vmem:[%s4574_s11 + $0x1a0] sm:$0xff] %v3514_v22  ;;  %v4981_v23 = vunpack.c.h.bf16 %v4520_v51  ;;  %v3422_v0 = vmul.f32 0.5, %v3358_v13  ;;  %v3359_v59 = vadd.f32 1.0, %v3973_v49  ;;  %v3202_v25 = vadd.f32 %v4789_v26, %v4522_v43  ;;  %v3977_v17 = vpop.eup %3976 }
 0x22d   : > { %3580 = vst [vmem:[%s4574_s11 + $0x1b0] sm:$0xff] %v3516_v52  ;;  %v4982_v46 = vunpack.c.h.bf16 %v4527_v42  ;;  %v3424_v54 = vmul.f32 0.5, %v3360_v40  ;;  %v3361_v32 = vadd.f32 1.0, %v3975_v33  ;;  %3992 = vtanh.f32 %v3266_v6 }
 0x22e   : > { %v3515_v21 = vmul.f32 %v3451_v9, %v4981_v23  ;;  %v4983_v44 = vunpack.c.l.bf16 %v4538_v37  ;;  %v3423_v5 = vmul.f32 0.5, %v3359_v59  ;;  %v3390_v35 = vadd.f32 1.0, %v3977_v17  ;;  %v3979_v14 = vpop.eup %3978  ;;  %v420_v9 = vld [vmem:[%s4407_s8 + $0xf0] sm:$0xff]  ;;  %v421_v17 = vld [vmem:[%s4407_s8 + $0xf8] sm:$0xff] }
 0x22f   : > { %v3517_v34 = vmul.f32 %v3453_v53, %v4982_v46  ;;  %v3268_v7 = vmul.f32 0.5, %v3202_v25  ;;  %v4984_v26 = vunpack.c.l.bf16 %v4541_v47  ;;  %v3425_v42 = vmul.f32 0.5, %v3361_v32  ;;  %v3981_v20 = vpop.eup %3980 }
 0x230   : > { %3579 = vst [vmem:[%s4574_s11 + $0x1a8] sm:$0xff] %v3515_v21  ;;  %v3486_v51 = vmul.f32 %v3422_v0, %v4983_v44  ;;  %v3127_v8 = vadd.f32 %v4794_v58, %v4522_v43  ;;  %v3204_v27 = vadd.f32 %v4796_v57, %v4522_v43  ;;  %v4985_v19 = vunpack.c.h.bf16 %v4538_v37  ;;  %v3983_v4 = vpop.eup %3982 }
 0x231   : > { %3581 = vst [vmem:[%s4574_s11 + $0x1b8] sm:$0xff] %v3517_v34  ;;  %v3488_v38 = vmul.f32 %v3424_v54, %v4984_v26  ;;  %v3454_v36 = vmul.f32 0.5, %v3390_v35  ;;  %v3392_v11 = vadd.f32 1.0, %v3979_v14  ;;  %3994 = vtanh.f32 %v3268_v7 }
 0x232   : > { %3550 = vst [vmem:[%s4574_s11 + $0xc0] sm:$0xff] %v3486_v51  ;;  %v3487_v15 = vmul.f32 %v3423_v5, %v4985_v19  ;;  %v4986_v61 = vunpack.c.h.bf16 %v4541_v47  ;;  %v3391_v58 = vadd.f32 1.0, %v3981_v20  ;;  %v3267_v60 = vmul.f32 0.5, %v3127_v8  ;;  %v3985_v43 = vpop.eup %3984 }
 0x233   : > { %3552 = vst [vmem:[%s4574_s11 + $0xd0] sm:$0xff] %v3488_v38  ;;  %v3269_v39 = vmul.f32 0.5, %v3204_v27  ;;  %v4987_v57 = vunpack.c.l.bf16 %v4550_v31  ;;  %v3456_v29 = vmul.f32 0.5, %v3392_v11  ;;  %v3393_v2 = vadd.f32 1.0, %v3983_v4  ;;  %v3987_v10 = vpop.eup %3986 }
 0x234   : > { %v3489_v62 = vmul.f32 %v3425_v42, %v4986_v61  ;;  %3551 = vst [vmem:[%s4574_s11 + $0xc8] sm:$0xff] %v3487_v15  ;;  %v450_v24 = vunpack.c.l.bf16 %v404_v45  ;;  %v3455_v28 = vmul.f32 0.5, %v3391_v58  ;;  %v3362_v3 = vadd.f32 1.0, %v3985_v43  ;;  %v3989_v50 = vpop.eup %3988 }
 0x235   : > { %v3518_v37 = vmul.f32 %v3454_v36, %v4987_v57  ;;  %v452_v47 = vunpack.c.l.bf16 %v405_v16  ;;  %3996 = vtanh.f32 %v3267_v60  ;;  %v4988_v63 = vunpack.c.l.bf16 %v4556_v56  ;;  %v3991_v22 = vpop.eup %3990 }
 0x236   : > { %3553 = vst [vmem:[%s4574_s11 + $0xd8] sm:$0xff] %v3489_v62  ;;  %v3457_v30 = vmul.f32 0.5, %v3393_v2  ;;  %v3364_v41 = vadd.f32 1.0, %v3987_v10  ;;  %3998 = vtanh.f32 %v3269_v39  ;;  %v4989_v12 = vunpack.c.h.bf16 %v4550_v31 }
 0x237   : > { %3582 = vst [vmem:[%s4574_s11 + $0x1c0] sm:$0xff] %v3518_v37  ;;  %v3520_v55 = vmul.f32 %v3456_v29, %v4988_v63  ;;  %v3426_v1 = vmul.f32 0.5, %v3362_v3  ;;  %v451_v48 = vunpack.c.h.bf16 %v404_v45  ;;  %v3363_v52 = vadd.f32 1.0, %v3989_v50  ;;  %v3993_v33 = vpop.eup %3992 }
 0x238   : > { %v3519_v18 = vmul.f32 %v3455_v28, %v4989_v12  ;;  %v4990_v13 = vunpack.c.h.bf16 %v4556_v56  ;;  %v3428_v53 = vmul.f32 0.5, %v3364_v41  ;;  %v453_v40 = vunpack.c.h.bf16 %v405_v16 }
 0x239   : > { %3584 = vst [vmem:[%s4574_s11 + $0x1d0] sm:$0xff] %v3520_v55  ;;  %v3365_v6 = vadd.f32 1.0, %v3991_v22  ;;  %v3490_v23 = vmul.f32 %v3426_v1, %v450_v24  ;;  %v3427_v31 = vmul.f32 0.5, %v3363_v52  ;;  %v482_v59 = vunpack.c.l.bf16 %v420_v9 }
 0x23a   : > { %v3521_v49 = vmul.f32 %v3457_v30, %v4990_v13  ;;  %3583 = vst [vmem:[%s4574_s11 + $0x1c8] sm:$0xff] %v3519_v18  ;;  %v3492_v21 = vmul.f32 %v3428_v53, %v452_v47  ;;  %v3394_v25 = vadd.f32 1.0, %v3993_v33  ;;  %v484_v32 = vunpack.c.l.bf16 %v421_v17 }
 0x23b   : > { %v3429_v0 = vmul.f32 0.5, %v3365_v6  ;;  %3554 = vst [vmem:[%s4574_s11 + $0xe0] sm:$0xff] %v3490_v23  ;;  %v3491_v56 = vmul.f32 %v3427_v31, %v451_v48  ;;  %v3995_v46 = vpop.eup %3994  ;;  %v483_v14 = vunpack.c.h.bf16 %v420_v9  ;;  %v485_v42 = vunpack.c.h.bf16 %v421_v17 }
 0x23c   : > { %3585 = vst [vmem:[%s4574_s11 + $0x1d8] sm:$0xff] %v3521_v49  ;;  %3556 = vst [vmem:[%s4574_s11 + $0xf0] sm:$0xff] %v3492_v21  ;;  %v3458_v54 = vmul.f32 0.5, %v3394_v25  ;;  %v3396_v44 = vadd.f32 1.0, %v3995_v46 }
 0x23d   : > { %v3493_v34 = vmul.f32 %v3429_v0, %v453_v40  ;;  %3555 = vst [vmem:[%s4574_s11 + $0xe8] sm:$0xff] %v3491_v56 }
 0x23e   : > { %v3522_v51 = vmul.f32 %v3458_v54, %v482_v59  ;;  %v3460_v35 = vmul.f32 0.5, %v3396_v44 }
 0x23f   : > { %3557 = vst [vmem:[%s4574_s11 + $0xf8] sm:$0xff] %v3493_v34  ;;  %v3997_v5 = vpop.eup %3996 }
 0x240   : > { %v3999_v7 = vpop.eup %3998  ;;  %3586 = vst [vmem:[%s4574_s11 + $0x1e0] sm:$0xff] %v3522_v51  ;;  %v3395_v26 = vadd.f32 1.0, %v3997_v5  ;;  %v3524_v38 = vmul.f32 %v3460_v35, %v484_v32 }
 0x241   : > { %v3397_v45 = vadd.f32 1.0, %v3999_v7 }
 0x242   : > { %v3459_v8 = vmul.f32 0.5, %v3395_v26  ;;  %3588 = vst [vmem:[%s4574_s11 + $0x1f0] sm:$0xff] %v3524_v38 }
 0x243   : > { %v3461_v27 = vmul.f32 0.5, %v3397_v45 }
 0x244   : > { %v3523_v20 = vmul.f32 %v3459_v8, %v483_v14 }
 0x245   : > { %v3525_v19 = vmul.f32 %v3461_v27, %v485_v42 }
 0x246   : > { %3587 = vst [vmem:[%s4574_s11 + $0x1e8] sm:$0xff] %v3523_v20 }
 0x247   : > { %3589 = vst [vmem:[%s4574_s11 + $0x1f8] sm:$0xff] %v3525_v19 }
 0x248 PF: > { %s17_s26 = sadd.s32 1, %s4022_s26   ;;  %s4991_s24 = smov %s4018_s25 }
 0x249   : > { %p14_p5 = scmp.ge.s32.totalorder %s17_s26, 4   ;;  %s4992_s25 = smov %s4994_s27 }
 0x24b   :  { %16 = sbr.rel (!%p14_p5) target bundleno = 2 (0x2), region = 84 }

</bundles_post_ra>
